<compile_context>
chip_gen: v7x
topology: tpu7x:2x2x1
jax: 0.10.0
libtpu: 0.0.40
codegen_flags: <defaults>
</compile_context>

<pallas_src>
import functools
import math

import jax
import jax.numpy as jnp
from jax.experimental import pallas as pl
from jax.experimental.pallas import tpu as pltpu

F32 = jnp.float32
BF16 = jnp.bfloat16
EPS = 1e-5


def _ru(x, m):
    return (x + m - 1) // m * m


def _pick_tm(M):
    if M >= 1024:
        return 512
    if M >= 256:
        return 256
    return _ru(M, 16)


def _pick_tn(N):
    return _ru(N, 128) if N <= 512 else 512


def _gelu_f32(x):
    # tanh-approximate GELU computed in f32 (EUP tanh slot).
    # TODO(synk): torch's default nn.GELU is exact erf; tanh approx differs ~3e-4.
    c = 0.7978845608028654  # sqrt(2/pi)
    return 0.5 * x * (1.0 + jnp.tanh(c * (x + 0.044715 * x * x * x)))


# ---------------------------------------------------------------------------
# Kernel 1: fused LayerNorm prologue + matmul (+bias, +optional GELU).
#   K (= model dim) is loaded in full, so LN rides in VPU/XLU slots under the
#   MXU.  Output dtype is bf16 when the consumer is another matmul / conv.
# ---------------------------------------------------------------------------
def _ln_mm_kernel(x_ref, g_ref, b_ref, w_ref, bias_ref, o_ref, *, activation):
    x = x_ref[...]                                     # (tm, K) f32 residual stream
    mu = jnp.mean(x, axis=-1, keepdims=True)
    xc = x - mu
    var = jnp.mean(xc * xc, axis=-1, keepdims=True)
    xn = xc * jax.lax.rsqrt(var + EPS) * g_ref[...] + b_ref[...]
    acc = jnp.dot(xn.astype(BF16), w_ref[...], preferred_element_type=jnp.float32)
    r = acc + bias_ref[...]
    if activation == "gelu":
        r = _gelu_f32(r)
    o_ref[...] = r.astype(o_ref.dtype)


@functools.lru_cache(maxsize=None)
def _build_ln_matmul(M, K, N, activation, out_bf16):
    assert K % 128 == 0 and K <= 512, "fused-LN matmul needs aligned K <= 512"
    tm = _pick_tm(M)
    tn = _pick_tn(N)
    Mp, Np = _ru(M, tm), _ru(N, tn)
    kernel = functools.partial(_ln_mm_kernel, activation=activation)
    call = pl.pallas_call(
        kernel,
        out_shape=jax.ShapeDtypeStruct((Mp, Np), BF16 if out_bf16 else F32),
        grid_spec=pltpu.PrefetchScalarGridSpec(
            num_scalar_prefetch=0,
            grid=(Mp // tm, Np // tn),
            in_specs=[pl.BlockSpec((tm, K), lambda i, j: (i, 0)),
                      pl.BlockSpec((1, K), lambda i, j: (0, 0)),
                      pl.BlockSpec((1, K), lambda i, j: (0, 0)),
                      pl.BlockSpec((K, tn), lambda i, j: (0, j)),
                      pl.BlockSpec((1, tn), lambda i, j: (0, j))],
            out_specs=pl.BlockSpec((tm, tn), lambda i, j: (i, j))),
        compiler_params=pltpu.CompilerParams(
            dimension_semantics=("parallel", "parallel")),
    )

    def f(x, g, b, w, bias):
        # All pads / casts below are no-ops for the aligned shapes used here
        # (weights pre-cast to bf16 outside jit).
        x_p = jnp.pad(x, ((0, Mp - M), (0, 0)))
        w_p = jnp.pad(w.astype(BF16), ((0, 0), (0, Np - N)))
        bias_p = jnp.pad(bias.reshape(1, N), ((0, 0), (0, Np - N)))
        out = call(x_p, g.reshape(1, K), b.reshape(1, K), w_p, bias_p)
        if Mp != M or Np != N:
            out = out[:M, :N]
        return out

    return f


def ln_matmul(x, g, b, w, bias, activation="none", out_bf16=True):
    M, K = x.shape
    N = w.shape[1]
    return _build_ln_matmul(M, K, N, activation, out_bf16)(x, g, b, w, bias)


# ---------------------------------------------------------------------------
# Kernel 2: matmul (+bias) with fused residual-add epilogue
#           out = res + scale * (a @ w + bias)        [+ optional fused out-LN]
#   a / w are bf16 (a comes straight from the producing kernel), acc / res /
#   output are f32 (residual stream).
# ---------------------------------------------------------------------------
def _mm_res_kernel(*refs, scale, out_ln):
    if out_ln:
        a_ref, w_ref, bias_ref, res_ref, g_ref, b_ref, o_ref, acc_ref = refs
    else:
        a_ref, w_ref, bias_ref, res_ref, o_ref, acc_ref = refs
        g_ref = b_ref = None

    @pl.when(pl.program_id(2) == 0)
    def _():
        acc_ref[...] = jnp.zeros_like(acc_ref)

    acc_ref[...] += jnp.dot(a_ref[...], w_ref[...],
                            preferred_element_type=jnp.float32)

    @pl.when(pl.program_id(2) == pl.num_programs(2) - 1)
    def _():
        r = res_ref[...] + scale * (acc_ref[...] + bias_ref[...])
        if out_ln:                       # final LayerNorm fused (full-row tile)
            mu = jnp.mean(r, axis=-1, keepdims=True)
            rc = r - mu
            var = jnp.mean(rc * rc, axis=-1, keepdims=True)
            r = rc * jax.lax.rsqrt(var + EPS) * g_ref[...] + b_ref[...]
        o_ref[...] = r.astype(o_ref.dtype)


@functools.lru_cache(maxsize=None)
def _build_matmul_res(M, K, N, scale, has_out_ln):
    tm = _pick_tm(M)
    tn = _pick_tn(N)
    if K <= 512:
        tk = _ru(K, 128)
    else:
        n_k = -(-K // 512)
        tk = _ru(-(-K // n_k), 128)
    Mp, Kp, Np = _ru(M, tm), _ru(K, tk), _ru(N, tn)
    if has_out_ln:
        assert Np == tn == N, "fused output LN requires a full-row N tile"

    kernel = functools.partial(_mm_res_kernel, scale=scale, out_ln=has_out_ln)
    in_specs = [pl.BlockSpec((tm, tk), lambda i, j, k: (i, k)),
                pl.BlockSpec((tk, tn), lambda i, j, k: (k, j)),
                pl.BlockSpec((1, tn), lambda i, j, k: (0, j)),
                # residual index_map ignores k -> fetched once per (i, j)
                pl.BlockSpec((tm, tn), lambda i, j, k: (i, j))]
    if has_out_ln:
        in_specs += [pl.BlockSpec((1, tn), lambda i, j, k: (0, j)),
                     pl.BlockSpec((1, tn), lambda i, j, k: (0, j))]

    call = pl.pallas_call(
        kernel,
        out_shape=jax.ShapeDtypeStruct((Mp, Np), jnp.float32),
        grid_spec=pltpu.PrefetchScalarGridSpec(
            num_scalar_prefetch=0,
            grid=(Mp // tm, Np // tn, Kp // tk),
            in_specs=in_specs,
            out_specs=pl.BlockSpec((tm, tn), lambda i, j, k: (i, j)),
            scratch_shapes=[pltpu.VMEM((tm, tn), jnp.float32)]),
        compiler_params=pltpu.CompilerParams(
            dimension_semantics=("parallel", "parallel", "arbitrary")),
    )

    def f(a, w, bias, res, ln_g=None, ln_b=None):
        a_p = jnp.pad(a.astype(BF16), ((0, Mp - M), (0, Kp - K)))   # no-op here
        w_p = jnp.pad(w.astype(BF16), ((0, Kp - K), (0, Np - N)))
        bias_p = jnp.pad(bias.reshape(1, N), ((0, 0), (0, Np - N)))
        res_p = jnp.pad(res, ((0, Mp - M), (0, Np - N)))
        args = [a_p, w_p, bias_p, res_p]
        if has_out_ln:
            args += [ln_g.reshape(1, N), ln_b.reshape(1, N)]
        out = call(*args)
        if Mp != M or Np != N:
            out = out[:M, :N]
        return out

    return f


def matmul_res(a, w, bias, res, scale=1.0, out_ln=None):
    M, K = a.shape
    N = w.shape[1]
    if out_ln is not None and (N > 512 or N % 128 != 0):
        # fallback: unfused final LN for large / unaligned model dims
        out = _build_matmul_res(M, K, N, scale, False)(a, w, bias, res)
        return layernorm(out, out_ln[0], out_ln[1])
    f = _build_matmul_res(M, K, N, scale, out_ln is not None)
    if out_ln is None:
        return f(a, w, bias, res)
    return f(a, w, bias, res, out_ln[0], out_ln[1])


# ---------------------------------------------------------------------------
# Standalone LayerNorm (fallback only; all LNs are fused at the test shapes)
# ---------------------------------------------------------------------------
def _ln_kernel(x_ref, g_ref, b_ref, o_ref):
    x = x_ref[...]
    mu = jnp.mean(x, axis=-1, keepdims=True)
    xc = x - mu
    var = jnp.mean(xc * xc, axis=-1, keepdims=True)
    o_ref[...] = xc * jax.lax.rsqrt(var + EPS) * g_ref[...] + b_ref[...]


@functools.lru_cache(maxsize=None)
def _build_layernorm(R, D):
    assert D % 128 == 0
    tr = 512 if R > 512 else _ru(R, 8)
    Rp = _ru(R, tr)
    call = pl.pallas_call(
        _ln_kernel,
        out_shape=jax.ShapeDtypeStruct((Rp, D), jnp.float32),
        grid_spec=pltpu.PrefetchScalarGridSpec(
            num_scalar_prefetch=0, grid=(Rp // tr,),
            in_specs=[pl.BlockSpec((tr, D), lambda i: (i, 0)),
                      pl.BlockSpec((1, D), lambda i: (0, 0)),
                      pl.BlockSpec((1, D), lambda i: (0, 0))],
            out_specs=pl.BlockSpec((tr, D), lambda i: (i, 0))),
        compiler_params=pltpu.CompilerParams(dimension_semantics=("parallel",)),
    )

    def f(x, g, b):
        x_p = jnp.pad(x, ((0, Rp - R), (0, 0)))
        out = call(x_p, g.reshape(1, D), b.reshape(1, D))
        return out[:R] if Rp != R else out

    return f


def layernorm(x, g, b):
    return _build_layernorm(x.shape[0], x.shape[1])(x, g, b)


# ---------------------------------------------------------------------------
# Kernel 3: multi-head self-attention from a fused (L, 3D) qkv block.
#   One grid step per batch element; each head's (L, dh) result is written
#   straight into its o_ref column slice (single head live at a time).
#   Output bf16 (consumer is the out-projection matmul).
# TODO(synk): for long sequences, switch to flash-style (B, q, kv) tiling with
#             an online-softmax VMEM accumulator to bound VMEM on v7x.
# ---------------------------------------------------------------------------
def _attn_kernel(qkv_ref, o_ref, *, heads, dh, D, scale, lk, lp):
    for h in range(heads):
        lo = h * dh
        qh = qkv_ref[0, :, lo:lo + dh]                 # (Lp, dh) bf16
        kh = qkv_ref[0, :, D + lo:D + lo + dh]
        vh = qkv_ref[0, :, 2 * D + lo:2 * D + lo + dh]
        s = jax.lax.dot_general(qh, kh, (((1,), (1,)), ((), ())),
                                preferred_element_type=jnp.float32) * scale
        if lp != lk:                                   # mask padded key rows
            kidx = jax.lax.broadcasted_iota(jnp.int32, s.shape, 1)
            s = jnp.where(kidx < lk, s, -1e30)
        m = jnp.max(s, axis=-1, keepdims=True)
        p = jnp.exp(s - m)
        p = p / jnp.sum(p, axis=-1, keepdims=True)     # exact division
        o_h = jnp.dot(p.astype(qkv_ref.dtype), vh,
                      preferred_element_type=jnp.float32)
        o_ref[0, :, lo:lo + dh] = o_h.astype(o_ref.dtype)


@functools.lru_cache(maxsize=None)
def _build_attention(B, L, D, heads):
    assert D % heads == 0 and D % 128 == 0
    dh = D // heads
    Lp = _ru(L, 8)
    kernel = functools.partial(_attn_kernel, heads=heads, dh=dh, D=D,
                               scale=1.0 / math.sqrt(dh), lk=L, lp=Lp)
    call = pl.pallas_call(
        kernel,
        out_shape=jax.ShapeDtypeStruct((B, Lp, D), BF16),
        grid_spec=pltpu.PrefetchScalarGridSpec(
            num_scalar_prefetch=0, grid=(B,),
            in_specs=[pl.BlockSpec((1, Lp, 3 * D), lambda i: (i, 0, 0))],
            out_specs=pl.BlockSpec((1, Lp, D), lambda i: (i, 0, 0))),
        compiler_params=pltpu.CompilerParams(dimension_semantics=("parallel",)),
    )

    def f(qkv):
        qkv_p = jnp.pad(qkv, ((0, 0), (0, Lp - L), (0, 0)))   # no-op when aligned
        out = call(qkv_p)
        return out[:, :L, :] if Lp != L else out

    return f


# ---------------------------------------------------------------------------
# Kernel 4: depthwise conv1d over time (channels-last, "same" padding)
#   + folded eval-mode BatchNorm (already in w/b) + fused GELU, bf16 in/out.
#   Per-tap VMEM loads (vld handles the sublane offset), f32 accumulate.
# TODO(synk): add a T-tile grid axis with (K-1)-row halo for long sequences.
# ---------------------------------------------------------------------------
def _dwconv_kernel(x_ref, w_ref, b_ref, o_ref, *, K, T):
    acc = x_ref[0, pl.ds(0, T), :].astype(jnp.float32) * w_ref[0:1, :]
    for k in range(1, K):
        acc = acc + x_ref[0, pl.ds(k, T), :].astype(jnp.float32) * w_ref[k:k + 1, :]
    o_ref[0] = _gelu_f32(acc + b_ref[...]).astype(o_ref.dtype)


@functools.lru_cache(maxsize=None)
def _build_dwconv(B, T, C, K):
    assert C % 128 == 0
    pad = K // 2
    Tp = _ru(T + 2 * pad, 8)
    extra = Tp - (T + 2 * pad)
    kernel = functools.partial(_dwconv_kernel, K=K, T=T)
    call = pl.pallas_call(
        kernel,
        out_shape=jax.ShapeDtypeStruct((B, T, C), BF16),
        grid_spec=pltpu.PrefetchScalarGridSpec(
            num_scalar_prefetch=0, grid=(B,),
            in_specs=[pl.BlockSpec((1, Tp, C), lambda i: (i, 0, 0)),
                      pl.BlockSpec((K, C), lambda i: (0, 0)),
                      pl.BlockSpec((1, C), lambda i: (0, 0))],
            out_specs=pl.BlockSpec((1, T, C), lambda i: (i, 0, 0))),
        compiler_params=pltpu.CompilerParams(dimension_semantics=("parallel",)),
    )

    def f(x, w, b):
        x_p = jnp.pad(x.astype(BF16), ((0, 0), (pad, pad + extra), (0, 0)))
        return call(x_p, w, b.reshape(1, C))

    return f


def depthwise_conv1d_gelu(x, w, b):
    B, T, C = x.shape
    return _build_dwconv(B, T, C, w.shape[0])(x, w, b)


# ---------------------------------------------------------------------------
# ConformerBlock forward (eval mode: dropout = identity, BN folded)
# ---------------------------------------------------------------------------
@functools.partial(jax.jit, static_argnames=("heads",))
def conformer_block(params, x, heads=8):
    p = params
    B, T, D = x.shape
    M = B * T
    x2 = x.reshape(M, D)                                    # f32 residual stream

    # FF1 half-step: [LN -> Linear + GELU] -> [Linear + bias + residual*0.5]
    h = ln_matmul(x2, p["ff1_ln_g"], p["ff1_ln_b"], p["ff1_w1"], p["ff1_b1"],
                  activation="gelu", out_bf16=True)
    x2 = matmul_res(h, p["ff1_w2"], p["ff1_b2"], x2, scale=0.5)

    # Self-attention: [LN -> fused qkv proj] -> attention -> [out-proj + residual]
    qkv = ln_matmul(x2, p["attn_ln_g"], p["attn_ln_b"],
                    p["attn_in_w"], p["attn_in_b"],
                    activation="none", out_bf16=True)       # (M, 3D) bf16
    a = _build_attention(B, T, D, heads)(qkv.reshape(B, T, 3 * D))
    x2 = matmul_res(a.reshape(M, D), p["attn_out_w"], p["attn_out_b"],
                    x2, scale=1.0)

    # Conv module: [LN -> pw1 + GELU] -> depthwise(+BN fold +GELU) -> [pw2 + res]
    cd = p["pw1_w"].shape[1]
    c = ln_matmul(x2, p["conv_ln_g"], p["conv_ln_b"], p["pw1_w"], p["pw1_b"],
                  activation="gelu", out_bf16=True).reshape(B, T, cd)
    c = depthwise_conv1d_gelu(c, p["dw_w"], p["dw_b"])      # (B, T, cd) bf16
    x2 = matmul_res(c.reshape(M, cd), p["pw2_w"], p["pw2_b"], x2, scale=1.0)

    # FF2 half-step with the final LayerNorm fused into the epilogue
    h = ln_matmul(x2, p["ff2_ln_g"], p["ff2_ln_b"], p["ff2_w1"], p["ff2_b1"],
                  activation="gelu", out_bf16=True)
    out = matmul_res(h, p["ff2_w2"], p["ff2_b2"], x2, scale=0.5,
                     out_ln=(p["final_ln_g"], p["final_ln_b"]))
    return out.reshape(B, T, D)


# ---------------------------------------------------------------------------
# Deterministic synthetic parameters + one-time (outside-jit) preparation
# ---------------------------------------------------------------------------
def init_params(key, dim, heads, ff_dim, kernel_size, conv_expansion):
    cd = dim * conv_expansion
    ks = list(jax.random.split(key, 12))
    it = iter(ks)
    lin = lambda k, fi, fo: jax.random.normal(k, (fi, fo), F32) * (1.0 / fi) ** 0.5
    ones = lambda n: jnp.ones((n,), F32)
    zeros = lambda n: jnp.zeros((n,), F32)
    return dict(
        ff1_ln_g=ones(dim), ff1_ln_b=zeros(dim),
        ff1_w1=lin(next(it), dim, ff_dim), ff1_b1=zeros(ff_dim),
        ff1_w2=lin(next(it), ff_dim, dim), ff1_b2=zeros(dim),
        attn_ln_g=ones(dim), attn_ln_b=zeros(dim),
        attn_in_w=lin(next(it), dim, 3 * dim), attn_in_b=zeros(3 * dim),
        attn_out_w=lin(next(it), dim, dim), attn_out_b=zeros(dim),
        conv_ln_g=ones(dim), conv_ln_b=zeros(dim),
        pw1_w=lin(next(it), dim, cd), pw1_b=zeros(cd),
        dw_w=jax.random.normal(next(it), (kernel_size, cd), F32)
             * (1.0 / kernel_size) ** 0.5,
        dw_b=zeros(cd),
        bn_g=ones(cd), bn_b=zeros(cd),
        pw2_w=lin(next(it), cd, dim), pw2_b=zeros(dim),
        ff2_ln_g=ones(dim), ff2_ln_b=zeros(dim),
        ff2_w1=lin(next(it), dim, ff_dim), ff2_b1=zeros(ff_dim),
        ff2_w2=lin(next(it), ff_dim, dim), ff2_b2=zeros(dim),
        final_ln_g=ones(dim), final_ln_b=zeros(dim),
    )


def prepare_params(params):
    """One-time, outside-jit: cast matmul weights to bf16 and fold eval-mode BN
    into the depthwise-conv weights, so no per-forward cast/pad passes remain."""
    p = dict(params)
    for k in ("ff1_w1", "ff1_w2", "attn_in_w", "attn_out_w",
              "pw1_w", "pw2_w", "ff2_w1", "ff2_w2"):
        p[k] = params[k].astype(BF16)
    # TODO(synk): BN fold assumes fresh running stats (mean=0, var=1); use the
    #             checkpoint's running stats for trained models.
    bn_scale = params["bn_g"] / jnp.sqrt(1.0 + EPS)
    p["dw_w"] = params["dw_w"] * bn_scale[None, :]
    p["dw_b"] = params["dw_b"] * bn_scale + params["bn_b"]
    del p["bn_g"], p["bn_b"]
    return p


# ---------------------------------------------------------------------------
if __name__ == "__main__":
    B, T, DIM = 2, 16, 128
    HEADS, FF_DIM, KSIZE, EXP = 8, 512, 31, 2

    key = jax.random.PRNGKey(0)
    kx, kp = jax.random.split(key)
    x = jax.random.normal(kx, (B, T, DIM), F32)
    params = prepare_params(init_params(kp, DIM, HEADS, FF_DIM, KSIZE, EXP))

    out = conformer_block(params, x, heads=HEADS)
    out = jax.block_until_ready(out)

    assert out.shape == (B, T, DIM), out.shape
    assert bool(jnp.all(jnp.isfinite(out)))
    print("KERNEL_OK")
</pallas_src>

<mosaic_0001>
module attributes {stable_mosaic.version = 11 : i64} {
  func.func @_mm_res_kernel(%arg0: i32, %arg1: i32, %arg2: i32, %arg3: memref<32x512xbf16, #tpu.memory_space<vmem>>, %arg4: memref<512x128xbf16, #tpu.memory_space<vmem>>, %arg5: memref<1x128xf32, #tpu.memory_space<vmem>>, %arg6: memref<32x128xf32, #tpu.memory_space<vmem>>, %arg7: memref<32x128xf32, #tpu.memory_space<vmem>>, %arg8: memref<32x128xf32, #tpu.memory_space<vmem>>) attributes {dimension_semantics = [#tpu.dimension_semantics<parallel>, #tpu.dimension_semantics<parallel>, #tpu.dimension_semantics<arbitrary>], iteration_bounds = array<i64: 1, 1, 1>, scalar_prefetch = 0 : i64, scratch_operands = 1 : i64, tpu.core_type = #tpu.core_type<tc>, window_params = [{transform_indices = @transform_0, window_bounds = array<i64: 32, 512>}, {transform_indices = @transform_1, window_bounds = array<i64: 512, 128>}, {transform_indices = @transform_2, window_bounds = array<i64: 1, 128>}, {transform_indices = @transform_3, window_bounds = array<i64: 32, 128>}, {transform_indices = @transform_4, window_bounds = array<i64: 32, 128>}]} {
    %c0_i32 = arith.constant 0 : i32
    %0 = arith.cmpi eq, %arg2, %c0_i32 : i32
    %1 = arith.extui %0 : i1 to i32
    %c0_i32_0 = arith.constant 0 : i32
    %2 = arith.cmpi ne, %1, %c0_i32_0 : i32
    scf.if %2 {
      %cst_10 = arith.constant 0.000000e+00 : f32
      %12 = vector.broadcast %cst_10 : f32 to vector<32x128xf32>
      %c0_11 = arith.constant 0 : index
      %c0_12 = arith.constant 0 : index
      %13 = vector.load %arg8[%c0_11, %c0_12] : memref<32x128xf32, #tpu.memory_space<vmem>>, vector<32x128xf32>
      tpu.vector_store %arg8[%c0_11, %c0_12], %12 {strides = array<i32>} : memref<32x128xf32, #tpu.memory_space<vmem>>, vector<32x128xf32>,
    } else {
    }
    %c0 = arith.constant 0 : index
    %c0_1 = arith.constant 0 : index
    %3 = vector.load %arg8[%c0, %c0_1] : memref<32x128xf32, #tpu.memory_space<vmem>>, vector<32x128xf32>
    %c0_2 = arith.constant 0 : index
    %c0_3 = arith.constant 0 : index
    %4 = vector.load %arg3[%c0_2, %c0_3] : memref<32x512xbf16, #tpu.memory_space<vmem>>, vector<32x512xbf16>
    %c0_4 = arith.constant 0 : index
    %c0_5 = arith.constant 0 : index
    %5 = vector.load %arg4[%c0_4, %c0_5] : memref<512x128xbf16, #tpu.memory_space<vmem>>, vector<512x128xbf16>
    %cst = arith.constant dense<0.000000e+00> : vector<32x128xf32>
    %6 = tpu.matmul %4, %5, %cst {dimension_numbers = #tpu.dot_dimension_numbers<[1], [0], [0], [1], [0, 0, 1, 1], [], []>} : vector<32x512xbf16>, vector<512x128xbf16>, vector<32x128xf32> -> vector<32x128xf32>
    %7 = arith.addf %3, %6 : vector<32x128xf32>
    %c0_6 = arith.constant 0 : index
    %c0_7 = arith.constant 0 : index
    %8 = vector.load %arg8[%c0_6, %c0_7] : memref<32x128xf32, #tpu.memory_space<vmem>>, vector<32x128xf32>
    tpu.vector_store %arg8[%c0_6, %c0_7], %7 {strides = array<i32>} : memref<32x128xf32, #tpu.memory_space<vmem>>, vector<32x128xf32>,
    %c0_i32_8 = arith.constant 0 : i32
    %9 = arith.cmpi eq, %arg2, %c0_i32_8 : i32
    %10 = arith.extui %9 : i1 to i32
    %c0_i32_9 = arith.constant 0 : i32
    %11 = arith.cmpi ne, %10, %c0_i32_9 : i32
    scf.if %11 {
      %c0_10 = arith.constant 0 : index
      %c0_11 = arith.constant 0 : index
      %12 = vector.load %arg6[%c0_10, %c0_11] : memref<32x128xf32, #tpu.memory_space<vmem>>, vector<32x128xf32>
      %c0_12 = arith.constant 0 : index
      %c0_13 = arith.constant 0 : index
      %13 = vector.load %arg8[%c0_12, %c0_13] : memref<32x128xf32, #tpu.memory_space<vmem>>, vector<32x128xf32>
      %c0_14 = arith.constant 0 : index
      %c0_15 = arith.constant 0 : index
      %14 = vector.load %arg5[%c0_14, %c0_15] : memref<1x128xf32, #tpu.memory_space<vmem>>, vector<1x128xf32>
      %15 = vector.broadcast %14 : vector<1x128xf32> to vector<32x128xf32>
      %16 = arith.addf %13, %15 : vector<32x128xf32>
      %cst_16 = arith.constant 5.000000e-01 : f32
      %17 = vector.broadcast %cst_16 : f32 to vector<32x128xf32>
      %18 = arith.mulf %17, %16 : vector<32x128xf32>
      %19 = arith.addf %12, %18 : vector<32x128xf32>
      %c0_17 = arith.constant 0 : index
      %c0_18 = arith.constant 0 : index
      %20 = vector.load %arg7[%c0_17, %c0_18] : memref<32x128xf32, #tpu.memory_space<vmem>>, vector<32x128xf32>
      tpu.vector_store %arg7[%c0_17, %c0_18], %19 {strides = array<i32>} : memref<32x128xf32, #tpu.memory_space<vmem>>, vector<32x128xf32>,
    } else {
    }
    return
  }
  func.func @transform_0(%arg0: i32, %arg1: i32, %arg2: i32) -> (i32, i32) {
    %c0_i32 = arith.constant 0 : i32
    return %arg0, %arg2 : i32, i32
  }
  func.func @transform_1(%arg0: i32, %arg1: i32, %arg2: i32) -> (i32, i32) {
    %c0_i32 = arith.constant 0 : i32
    return %arg2, %arg1 : i32, i32
  }
  func.func @transform_2(%arg0: i32, %arg1: i32, %arg2: i32) -> (i32, i32) {
    %c0_i32 = arith.constant 0 : i32
    %c0_i32_0 = arith.constant 0 : i32
    return %c0_i32, %arg1 : i32, i32
  }
  func.func @transform_3(%arg0: i32, %arg1: i32, %arg2: i32) -> (i32, i32) {
    %c0_i32 = arith.constant 0 : i32
    return %arg0, %arg1 : i32, i32
  }
  func.func @transform_4(%arg0: i32, %arg1: i32, %arg2: i32) -> (i32, i32) {
    %c0_i32 = arith.constant 0 : i32
    return %arg0, %arg1 : i32, i32
  }
}

module attributes {stable_mosaic.version = 11 : i64} {
  func.func @_ln_mm_kernel(%arg0: i32, %arg1: i32, %arg2: memref<32x128xf32, #tpu.memory_space<vmem>>, %arg3: memref<1x128xf32, #tpu.memory_space<vmem>>, %arg4: memref<1x128xf32, #tpu.memory_space<vmem>>, %arg5: memref<128x384xbf16, #tpu.memory_space<vmem>>, %arg6: memref<1x384xf32, #tpu.memory_space<vmem>>, %arg7: memref<32x384xbf16, #tpu.memory_space<vmem>>) attributes {dimension_semantics = [#tpu.dimension_semantics<parallel>, #tpu.dimension_semantics<parallel>], iteration_bounds = array<i64: 1, 1>, scalar_prefetch = 0 : i64, scratch_operands = 0 : i64, tpu.core_type = #tpu.core_type<tc>, window_params = [{transform_indices = @transform_0, window_bounds = array<i64: 32, 128>}, {pipeline_mode = #tpu.pipeline_mode<synchronous>, transform_indices = @transform_1, window_bounds = array<i64: 1, 128>}, {pipeline_mode = #tpu.pipeline_mode<synchronous>, transform_indices = @transform_2, window_bounds = array<i64: 1, 128>}, {transform_indices = @transform_3, window_bounds = array<i64: 128, 384>}, {transform_indices = @transform_4, window_bounds = array<i64: 1, 384>}, {transform_indices = @transform_5, window_bounds = array<i64: 32, 384>}]} {
    %c0 = arith.constant 0 : index
    %c0_0 = arith.constant 0 : index
    %0 = vector.load %arg2[%c0, %c0_0] : memref<32x128xf32, #tpu.memory_space<vmem>>, vector<32x128xf32>
    %cst = arith.constant dense<0.000000e+00> : vector<32xf32>
    %1 = vector.multi_reduction <add>, %0, %cst [1] : vector<32x128xf32> to vector<32xf32>
    %2 = vector.shape_cast %1 : vector<32xf32> to vector<32x1xf32>
    %cst_1 = arith.constant 1.280000e+02 : f32
    %3 = vector.broadcast %cst_1 : f32 to vector<32x1xf32>
    %4 = arith.divf %2, %3 : vector<32x1xf32>
    %5 = vector.broadcast %4 : vector<32x1xf32> to vector<32x128xf32>
    %6 = arith.subf %0, %5 : vector<32x128xf32>
    %7 = arith.mulf %6, %6 : vector<32x128xf32>
    %cst_2 = arith.constant dense<0.000000e+00> : vector<32xf32>
    %8 = vector.multi_reduction <add>, %7, %cst_2 [1] : vector<32x128xf32> to vector<32xf32>
    %9 = vector.shape_cast %8 : vector<32xf32> to vector<32x1xf32>
    %cst_3 = arith.constant 1.280000e+02 : f32
    %10 = vector.broadcast %cst_3 : f32 to vector<32x1xf32>
    %11 = arith.divf %9, %10 : vector<32x1xf32>
    %cst_4 = arith.constant 9.99999974E-6 : f32
    %12 = vector.broadcast %cst_4 : f32 to vector<32x1xf32>
    %13 = arith.addf %11, %12 : vector<32x1xf32>
    %14 = math.rsqrt %13 : vector<32x1xf32>
    %15 = vector.broadcast %14 : vector<32x1xf32> to vector<32x128xf32>
    %16 = arith.mulf %6, %15 : vector<32x128xf32>
    %c0_5 = arith.constant 0 : index
    %c0_6 = arith.constant 0 : index
    %17 = vector.load %arg3[%c0_5, %c0_6] : memref<1x128xf32, #tpu.memory_space<vmem>>, vector<1x128xf32>
    %18 = vector.broadcast %17 : vector<1x128xf32> to vector<32x128xf32>
    %19 = arith.mulf %16, %18 : vector<32x128xf32>
    %c0_7 = arith.constant 0 : index
    %c0_8 = arith.constant 0 : index
    %20 = vector.load %arg4[%c0_7, %c0_8] : memref<1x128xf32, #tpu.memory_space<vmem>>, vector<1x128xf32>
    %21 = vector.broadcast %20 : vector<1x128xf32> to vector<32x128xf32>
    %22 = arith.addf %19, %21 : vector<32x128xf32>
    %23 = arith.truncf %22 : vector<32x128xf32> to vector<32x128xbf16>
    %c0_9 = arith.constant 0 : index
    %c0_10 = arith.constant 0 : index
    %24 = vector.load %arg5[%c0_9, %c0_10] : memref<128x384xbf16, #tpu.memory_space<vmem>>, vector<128x384xbf16>
    %cst_11 = arith.constant dense<0.000000e+00> : vector<32x384xf32>
    %25 = tpu.matmul %23, %24, %cst_11 {dimension_numbers = #tpu.dot_dimension_numbers<[1], [0], [0], [1], [0, 0, 1, 1], [], []>} : vector<32x128xbf16>, vector<128x384xbf16>, vector<32x384xf32> -> vector<32x384xf32>
    %c0_12 = arith.constant 0 : index
    %c0_13 = arith.constant 0 : index
    %26 = vector.load %arg6[%c0_12, %c0_13] : memref<1x384xf32, #tpu.memory_space<vmem>>, vector<1x384xf32>
    %27 = vector.broadcast %26 : vector<1x384xf32> to vector<32x384xf32>
    %28 = arith.addf %25, %27 : vector<32x384xf32>
    %29 = arith.truncf %28 : vector<32x384xf32> to vector<32x384xbf16>
    %c0_14 = arith.constant 0 : index
    %c0_15 = arith.constant 0 : index
    %30 = vector.load %arg7[%c0_14, %c0_15] : memref<32x384xbf16, #tpu.memory_space<vmem>>, vector<32x384xbf16>
    tpu.vector_store %arg7[%c0_14, %c0_15], %29 {strides = array<i32>} : memref<32x384xbf16, #tpu.memory_space<vmem>>, vector<32x384xbf16>,
    return
  }
  func.func @transform_0(%arg0: i32, %arg1: i32) -> (i32, i32) {
    %c0_i32 = arith.constant 0 : i32
    %c0_i32_0 = arith.constant 0 : i32
    return %arg0, %c0_i32 : i32, i32
  }
  func.func @transform_1(%arg0: i32, %arg1: i32) -> (i32, i32) {
    %c0_i32 = arith.constant 0 : i32
    %c0_i32_0 = arith.constant 0 : i32
    %c0_i32_1 = arith.constant 0 : i32
    return %c0_i32, %c0_i32_0 : i32, i32
  }
  func.func @transform_2(%arg0: i32, %arg1: i32) -> (i32, i32) {
    %c0_i32 = arith.constant 0 : i32
    %c0_i32_0 = arith.constant 0 : i32
    %c0_i32_1 = arith.constant 0 : i32
    return %c0_i32, %c0_i32_0 : i32, i32
  }
  func.func @transform_3(%arg0: i32, %arg1: i32) -> (i32, i32) {
    %c0_i32 = arith.constant 0 : i32
    %c0_i32_0 = arith.constant 0 : i32
    return %c0_i32, %arg1 : i32, i32
  }
  func.func @transform_4(%arg0: i32, %arg1: i32) -> (i32, i32) {
    %c0_i32 = arith.constant 0 : i32
    %c0_i32_0 = arith.constant 0 : i32
    return %c0_i32, %arg1 : i32, i32
  }
  func.func @transform_5(%arg0: i32, %arg1: i32) -> (i32, i32) {
    %c0_i32 = arith.constant 0 : i32
    return %arg0, %arg1 : i32, i32
  }
}

module attributes {stable_mosaic.version = 11 : i64} {
  func.func @_ln_mm_kernel(%arg0: i32, %arg1: i32, %arg2: memref<32x128xf32, #tpu.memory_space<vmem>>, %arg3: memref<1x128xf32, #tpu.memory_space<vmem>>, %arg4: memref<1x128xf32, #tpu.memory_space<vmem>>, %arg5: memref<128x512xbf16, #tpu.memory_space<vmem>>, %arg6: memref<1x512xf32, #tpu.memory_space<vmem>>, %arg7: memref<32x512xbf16, #tpu.memory_space<vmem>>) attributes {dimension_semantics = [#tpu.dimension_semantics<parallel>, #tpu.dimension_semantics<parallel>], iteration_bounds = array<i64: 1, 1>, scalar_prefetch = 0 : i64, scratch_operands = 0 : i64, tpu.core_type = #tpu.core_type<tc>, window_params = [{transform_indices = @transform_0, window_bounds = array<i64: 32, 128>}, {pipeline_mode = #tpu.pipeline_mode<synchronous>, transform_indices = @transform_1, window_bounds = array<i64: 1, 128>}, {pipeline_mode = #tpu.pipeline_mode<synchronous>, transform_indices = @transform_2, window_bounds = array<i64: 1, 128>}, {transform_indices = @transform_3, window_bounds = array<i64: 128, 512>}, {transform_indices = @transform_4, window_bounds = array<i64: 1, 512>}, {transform_indices = @transform_5, window_bounds = array<i64: 32, 512>}]} {
    %c0 = arith.constant 0 : index
    %c0_0 = arith.constant 0 : index
    %0 = vector.load %arg2[%c0, %c0_0] : memref<32x128xf32, #tpu.memory_space<vmem>>, vector<32x128xf32>
    %cst = arith.constant dense<0.000000e+00> : vector<32xf32>
    %1 = vector.multi_reduction <add>, %0, %cst [1] : vector<32x128xf32> to vector<32xf32>
    %2 = vector.shape_cast %1 : vector<32xf32> to vector<32x1xf32>
    %cst_1 = arith.constant 1.280000e+02 : f32
    %3 = vector.broadcast %cst_1 : f32 to vector<32x1xf32>
    %4 = arith.divf %2, %3 : vector<32x1xf32>
    %5 = vector.broadcast %4 : vector<32x1xf32> to vector<32x128xf32>
    %6 = arith.subf %0, %5 : vector<32x128xf32>
    %7 = arith.mulf %6, %6 : vector<32x128xf32>
    %cst_2 = arith.constant dense<0.000000e+00> : vector<32xf32>
    %8 = vector.multi_reduction <add>, %7, %cst_2 [1] : vector<32x128xf32> to vector<32xf32>
    %9 = vector.shape_cast %8 : vector<32xf32> to vector<32x1xf32>
    %cst_3 = arith.constant 1.280000e+02 : f32
    %10 = vector.broadcast %cst_3 : f32 to vector<32x1xf32>
    %11 = arith.divf %9, %10 : vector<32x1xf32>
    %cst_4 = arith.constant 9.99999974E-6 : f32
    %12 = vector.broadcast %cst_4 : f32 to vector<32x1xf32>
    %13 = arith.addf %11, %12 : vector<32x1xf32>
    %14 = math.rsqrt %13 : vector<32x1xf32>
    %15 = vector.broadcast %14 : vector<32x1xf32> to vector<32x128xf32>
    %16 = arith.mulf %6, %15 : vector<32x128xf32>
    %c0_5 = arith.constant 0 : index
    %c0_6 = arith.constant 0 : index
    %17 = vector.load %arg3[%c0_5, %c0_6] : memref<1x128xf32, #tpu.memory_space<vmem>>, vector<1x128xf32>
    %18 = vector.broadcast %17 : vector<1x128xf32> to vector<32x128xf32>
    %19 = arith.mulf %16, %18 : vector<32x128xf32>
    %c0_7 = arith.constant 0 : index
    %c0_8 = arith.constant 0 : index
    %20 = vector.load %arg4[%c0_7, %c0_8] : memref<1x128xf32, #tpu.memory_space<vmem>>, vector<1x128xf32>
    %21 = vector.broadcast %20 : vector<1x128xf32> to vector<32x128xf32>
    %22 = arith.addf %19, %21 : vector<32x128xf32>
    %23 = arith.truncf %22 : vector<32x128xf32> to vector<32x128xbf16>
    %c0_9 = arith.constant 0 : index
    %c0_10 = arith.constant 0 : index
    %24 = vector.load %arg5[%c0_9, %c0_10] : memref<128x512xbf16, #tpu.memory_space<vmem>>, vector<128x512xbf16>
    %cst_11 = arith.constant dense<0.000000e+00> : vector<32x512xf32>
    %25 = tpu.matmul %23, %24, %cst_11 {dimension_numbers = #tpu.dot_dimension_numbers<[1], [0], [0], [1], [0, 0, 1, 1], [], []>} : vector<32x128xbf16>, vector<128x512xbf16>, vector<32x512xf32> -> vector<32x512xf32>
    %c0_12 = arith.constant 0 : index
    %c0_13 = arith.constant 0 : index
    %26 = vector.load %arg6[%c0_12, %c0_13] : memref<1x512xf32, #tpu.memory_space<vmem>>, vector<1x512xf32>
    %27 = vector.broadcast %26 : vector<1x512xf32> to vector<32x512xf32>
    %28 = arith.addf %25, %27 : vector<32x512xf32>
    %cst_14 = arith.constant 5.000000e-01 : f32
    %29 = vector.broadcast %cst_14 : f32 to vector<32x512xf32>
    %30 = arith.mulf %29, %28 : vector<32x512xf32>
    %cst_15 = arith.constant 4.471500e-02 : f32
    %31 = vector.broadcast %cst_15 : f32 to vector<32x512xf32>
    %32 = arith.mulf %31, %28 : vector<32x512xf32>
    %33 = arith.mulf %32, %28 : vector<32x512xf32>
    %34 = arith.mulf %33, %28 : vector<32x512xf32>
    %35 = arith.addf %28, %34 : vector<32x512xf32>
    %cst_16 = arith.constant 0.797884583 : f32
    %36 = vector.broadcast %cst_16 : f32 to vector<32x512xf32>
    %37 = arith.mulf %36, %35 : vector<32x512xf32>
    %38 = math.tanh %37 : vector<32x512xf32>
    %cst_17 = arith.constant 1.000000e+00 : f32
    %39 = vector.broadcast %cst_17 : f32 to vector<32x512xf32>
    %40 = arith.addf %39, %38 : vector<32x512xf32>
    %41 = arith.mulf %30, %40 : vector<32x512xf32>
    %42 = arith.truncf %41 : vector<32x512xf32> to vector<32x512xbf16>
    %c0_18 = arith.constant 0 : index
    %c0_19 = arith.constant 0 : index
    %43 = vector.load %arg7[%c0_18, %c0_19] : memref<32x512xbf16, #tpu.memory_space<vmem>>, vector<32x512xbf16>
    tpu.vector_store %arg7[%c0_18, %c0_19], %42 {strides = array<i32>} : memref<32x512xbf16, #tpu.memory_space<vmem>>, vector<32x512xbf16>,
    return
  }
  func.func @transform_0(%arg0: i32, %arg1: i32) -> (i32, i32) {
    %c0_i32 = arith.constant 0 : i32
    %c0_i32_0 = arith.constant 0 : i32
    return %arg0, %c0_i32 : i32, i32
  }
  func.func @transform_1(%arg0: i32, %arg1: i32) -> (i32, i32) {
    %c0_i32 = arith.constant 0 : i32
    %c0_i32_0 = arith.constant 0 : i32
    %c0_i32_1 = arith.constant 0 : i32
    return %c0_i32, %c0_i32_0 : i32, i32
  }
  func.func @transform_2(%arg0: i32, %arg1: i32) -> (i32, i32) {
    %c0_i32 = arith.constant 0 : i32
    %c0_i32_0 = arith.constant 0 : i32
    %c0_i32_1 = arith.constant 0 : i32
    return %c0_i32, %c0_i32_0 : i32, i32
  }
  func.func @transform_3(%arg0: i32, %arg1: i32) -> (i32, i32) {
    %c0_i32 = arith.constant 0 : i32
    %c0_i32_0 = arith.constant 0 : i32
    return %c0_i32, %arg1 : i32, i32
  }
  func.func @transform_4(%arg0: i32, %arg1: i32) -> (i32, i32) {
    %c0_i32 = arith.constant 0 : i32
    %c0_i32_0 = arith.constant 0 : i32
    return %c0_i32, %arg1 : i32, i32
  }
  func.func @transform_5(%arg0: i32, %arg1: i32) -> (i32, i32) {
    %c0_i32 = arith.constant 0 : i32
    return %arg0, %arg1 : i32, i32
  }
}

module attributes {stable_mosaic.version = 11 : i64} {
  func.func @_attn_kernel(%arg0: i32, %arg1: memref<1x16x384xbf16, #tpu.memory_space<vmem>>, %arg2: memref<1x16x128xbf16, #tpu.memory_space<vmem>>) attributes {dimension_semantics = [#tpu.dimension_semantics<parallel>], iteration_bounds = array<i64: 2>, scalar_prefetch = 0 : i64, scratch_operands = 0 : i64, tpu.core_type = #tpu.core_type<tc>, window_params = [{transform_indices = @transform_0, window_bounds = array<i64: 1, 16, 384>}, {transform_indices = @transform_1, window_bounds = array<i64: 1, 16, 128>}]} {
    %c0 = arith.constant 0 : index
    %c0_0 = arith.constant 0 : index
    %c0_1 = arith.constant 0 : index
    %0 = vector.load %arg1[%c0, %c0_0, %c0_1] : memref<1x16x384xbf16, #tpu.memory_space<vmem>>, vector<1x16x16xbf16>
    %1 = vector.shape_cast %0 : vector<1x16x16xbf16> to vector<16x16xbf16>
    %c0_2 = arith.constant 0 : index
    %c0_3 = arith.constant 0 : index
    %c128 = arith.constant 128 : index
    %2 = vector.load %arg1[%c0_2, %c0_3, %c128] : memref<1x16x384xbf16, #tpu.memory_space<vmem>>, vector<1x16x16xbf16>
    %3 = vector.shape_cast %2 : vector<1x16x16xbf16> to vector<16x16xbf16>
    %c0_4 = arith.constant 0 : index
    %c0_5 = arith.constant 0 : index
    %c256 = arith.constant 256 : index
    %4 = vector.load %arg1[%c0_4, %c0_5, %c256] : memref<1x16x384xbf16, #tpu.memory_space<vmem>>, vector<1x16x16xbf16>
    %5 = vector.shape_cast %4 : vector<1x16x16xbf16> to vector<16x16xbf16>
    %cst = arith.constant dense<0.000000e+00> : vector<16x16xf32>
    %6 = tpu.matmul %1, %3, %cst {dimension_numbers = #tpu.dot_dimension_numbers<[1], [1], [0], [0], [0, 0, 1, 0], [], []>} : vector<16x16xbf16>, vector<16x16xbf16>, vector<16x16xf32> -> vector<16x16xf32>
    %cst_6 = arith.constant 2.500000e-01 : f32
    %7 = vector.broadcast %cst_6 : f32 to vector<16x16xf32>
    %8 = arith.mulf %6, %7 : vector<16x16xf32>
    %cst_7 = arith.constant dense<0xFF800000> : vector<16xf32>
    %9 = vector.multi_reduction <maximumf>, %8, %cst_7 [1] : vector<16x16xf32> to vector<16xf32>
    %10 = vector.shape_cast %9 : vector<16xf32> to vector<16x1xf32>
    %11 = vector.broadcast %10 : vector<16x1xf32> to vector<16x16xf32>
    %12 = arith.subf %8, %11 : vector<16x16xf32>
    %13 = math.exp %12 : vector<16x16xf32>
    %cst_8 = arith.constant dense<0.000000e+00> : vector<16xf32>
    %14 = vector.multi_reduction <add>, %13, %cst_8 [1] : vector<16x16xf32> to vector<16xf32>
    %15 = vector.shape_cast %14 : vector<16xf32> to vector<16x1xf32>
    %16 = vector.broadcast %15 : vector<16x1xf32> to vector<16x16xf32>
    %17 = arith.divf %13, %16 : vector<16x16xf32>
    %18 = arith.truncf %17 : vector<16x16xf32> to vector<16x16xbf16>
    %cst_9 = arith.constant dense<0.000000e+00> : vector<16x16xf32>
    %19 = tpu.matmul %18, %5, %cst_9 {dimension_numbers = #tpu.dot_dimension_numbers<[1], [0], [0], [1], [0, 0, 1, 1], [], []>} : vector<16x16xbf16>, vector<16x16xbf16>, vector<16x16xf32> -> vector<16x16xf32>
    %20 = arith.truncf %19 : vector<16x16xf32> to vector<16x16xbf16>
    %c0_10 = arith.constant 0 : index
    %c0_11 = arith.constant 0 : index
    %c0_12 = arith.constant 0 : index
    %21 = vector.load %arg2[%c0_10, %c0_11, %c0_12] : memref<1x16x128xbf16, #tpu.memory_space<vmem>>, vector<1x16x16xbf16>
    %22 = vector.shape_cast %21 : vector<1x16x16xbf16> to vector<16x16xbf16>
    %23 = vector.shape_cast %20 : vector<16x16xbf16> to vector<1x16x16xbf16>
    tpu.vector_store %arg2[%c0_10, %c0_11, %c0_12], %23 {strides = array<i32>} : memref<1x16x128xbf16, #tpu.memory_space<vmem>>, vector<1x16x16xbf16>,
    %c0_13 = arith.constant 0 : index
    %c0_14 = arith.constant 0 : index
    %c16 = arith.constant 16 : index
    %24 = vector.load %arg1[%c0_13, %c0_14, %c16] : memref<1x16x384xbf16, #tpu.memory_space<vmem>>, vector<1x16x16xbf16>
    %25 = vector.shape_cast %24 : vector<1x16x16xbf16> to vector<16x16xbf16>
    %c0_15 = arith.constant 0 : index
    %c0_16 = arith.constant 0 : index
    %c144 = arith.constant 144 : index
    %26 = vector.load %arg1[%c0_15, %c0_16, %c144] : memref<1x16x384xbf16, #tpu.memory_space<vmem>>, vector<1x16x16xbf16>
    %27 = vector.shape_cast %26 : vector<1x16x16xbf16> to vector<16x16xbf16>
    %c0_17 = arith.constant 0 : index
    %c0_18 = arith.constant 0 : index
    %c272 = arith.constant 272 : index
    %28 = vector.load %arg1[%c0_17, %c0_18, %c272] : memref<1x16x384xbf16, #tpu.memory_space<vmem>>, vector<1x16x16xbf16>
    %29 = vector.shape_cast %28 : vector<1x16x16xbf16> to vector<16x16xbf16>
    %cst_19 = arith.constant dense<0.000000e+00> : vector<16x16xf32>
    %30 = tpu.matmul %25, %27, %cst_19 {dimension_numbers = #tpu.dot_dimension_numbers<[1], [1], [0], [0], [0, 0, 1, 0], [], []>} : vector<16x16xbf16>, vector<16x16xbf16>, vector<16x16xf32> -> vector<16x16xf32>
    %cst_20 = arith.constant 2.500000e-01 : f32
    %31 = vector.broadcast %cst_20 : f32 to vector<16x16xf32>
    %32 = arith.mulf %30, %31 : vector<16x16xf32>
    %cst_21 = arith.constant dense<0xFF800000> : vector<16xf32>
    %33 = vector.multi_reduction <maximumf>, %32, %cst_21 [1] : vector<16x16xf32> to vector<16xf32>
    %34 = vector.shape_cast %33 : vector<16xf32> to vector<16x1xf32>
    %35 = vector.broadcast %34 : vector<16x1xf32> to vector<16x16xf32>
    %36 = arith.subf %32, %35 : vector<16x16xf32>
    %37 = math.exp %36 : vector<16x16xf32>
    %cst_22 = arith.constant dense<0.000000e+00> : vector<16xf32>
    %38 = vector.multi_reduction <add>, %37, %cst_22 [1] : vector<16x16xf32> to vector<16xf32>
    %39 = vector.shape_cast %38 : vector<16xf32> to vector<16x1xf32>
    %40 = vector.broadcast %39 : vector<16x1xf32> to vector<16x16xf32>
    %41 = arith.divf %37, %40 : vector<16x16xf32>
    %42 = arith.truncf %41 : vector<16x16xf32> to vector<16x16xbf16>
    %cst_23 = arith.constant dense<0.000000e+00> : vector<16x16xf32>
    %43 = tpu.matmul %42, %29, %cst_23 {dimension_numbers = #tpu.dot_dimension_numbers<[1], [0], [0], [1], [0, 0, 1, 1], [], []>} : vector<16x16xbf16>, vector<16x16xbf16>, vector<16x16xf32> -> vector<16x16xf32>
    %44 = arith.truncf %43 : vector<16x16xf32> to vector<16x16xbf16>
    %c0_24 = arith.constant 0 : index
    %c0_25 = arith.constant 0 : index
    %c16_26 = arith.constant 16 : index
    %45 = vector.load %arg2[%c0_24, %c0_25, %c16_26] : memref<1x16x128xbf16, #tpu.memory_space<vmem>>, vector<1x16x16xbf16>
    %46 = vector.shape_cast %45 : vector<1x16x16xbf16> to vector<16x16xbf16>
    %47 = vector.shape_cast %44 : vector<16x16xbf16> to vector<1x16x16xbf16>
    tpu.vector_store %arg2[%c0_24, %c0_25, %c16_26], %47 {strides = array<i32>} : memref<1x16x128xbf16, #tpu.memory_space<vmem>>, vector<1x16x16xbf16>,
    %c0_27 = arith.constant 0 : index
    %c0_28 = arith.constant 0 : index
    %c32 = arith.constant 32 : index
    %48 = vector.load %arg1[%c0_27, %c0_28, %c32] : memref<1x16x384xbf16, #tpu.memory_space<vmem>>, vector<1x16x16xbf16>
    %49 = vector.shape_cast %48 : vector<1x16x16xbf16> to vector<16x16xbf16>
    %c0_29 = arith.constant 0 : index
    %c0_30 = arith.constant 0 : index
    %c160 = arith.constant 160 : index
    %50 = vector.load %arg1[%c0_29, %c0_30, %c160] : memref<1x16x384xbf16, #tpu.memory_space<vmem>>, vector<1x16x16xbf16>
    %51 = vector.shape_cast %50 : vector<1x16x16xbf16> to vector<16x16xbf16>
    %c0_31 = arith.constant 0 : index
    %c0_32 = arith.constant 0 : index
    %c288 = arith.constant 288 : index
    %52 = vector.load %arg1[%c0_31, %c0_32, %c288] : memref<1x16x384xbf16, #tpu.memory_space<vmem>>, vector<1x16x16xbf16>
    %53 = vector.shape_cast %52 : vector<1x16x16xbf16> to vector<16x16xbf16>
    %cst_33 = arith.constant dense<0.000000e+00> : vector<16x16xf32>
    %54 = tpu.matmul %49, %51, %cst_33 {dimension_numbers = #tpu.dot_dimension_numbers<[1], [1], [0], [0], [0, 0, 1, 0], [], []>} : vector<16x16xbf16>, vector<16x16xbf16>, vector<16x16xf32> -> vector<16x16xf32>
    %cst_34 = arith.constant 2.500000e-01 : f32
    %55 = vector.broadcast %cst_34 : f32 to vector<16x16xf32>
    %56 = arith.mulf %54, %55 : vector<16x16xf32>
    %cst_35 = arith.constant dense<0xFF800000> : vector<16xf32>
    %57 = vector.multi_reduction <maximumf>, %56, %cst_35 [1] : vector<16x16xf32> to vector<16xf32>
    %58 = vector.shape_cast %57 : vector<16xf32> to vector<16x1xf32>
    %59 = vector.broadcast %58 : vector<16x1xf32> to vector<16x16xf32>
    %60 = arith.subf %56, %59 : vector<16x16xf32>
    %61 = math.exp %60 : vector<16x16xf32>
    %cst_36 = arith.constant dense<0.000000e+00> : vector<16xf32>
    %62 = vector.multi_reduction <add>, %61, %cst_36 [1] : vector<16x16xf32> to vector<16xf32>
    %63 = vector.shape_cast %62 : vector<16xf32> to vector<16x1xf32>
    %64 = vector.broadcast %63 : vector<16x1xf32> to vector<16x16xf32>
    %65 = arith.divf %61, %64 : vector<16x16xf32>
    %66 = arith.truncf %65 : vector<16x16xf32> to vector<16x16xbf16>
    %cst_37 = arith.constant dense<0.000000e+00> : vector<16x16xf32>
    %67 = tpu.matmul %66, %53, %cst_37 {dimension_numbers = #tpu.dot_dimension_numbers<[1], [0], [0], [1], [0, 0, 1, 1], [], []>} : vector<16x16xbf16>, vector<16x16xbf16>, vector<16x16xf32> -> vector<16x16xf32>
    %68 = arith.truncf %67 : vector<16x16xf32> to vector<16x16xbf16>
    %c0_38 = arith.constant 0 : index
    %c0_39 = arith.constant 0 : index
    %c32_40 = arith.constant 32 : index
    %69 = vector.load %arg2[%c0_38, %c0_39, %c32_40] : memref<1x16x128xbf16, #tpu.memory_space<vmem>>, vector<1x16x16xbf16>
    %70 = vector.shape_cast %69 : vector<1x16x16xbf16> to vector<16x16xbf16>
    %71 = vector.shape_cast %68 : vector<16x16xbf16> to vector<1x16x16xbf16>
    tpu.vector_store %arg2[%c0_38, %c0_39, %c32_40], %71 {strides = array<i32>} : memref<1x16x128xbf16, #tpu.memory_space<vmem>>, vector<1x16x16xbf16>,
    %c0_41 = arith.constant 0 : index
    %c0_42 = arith.constant 0 : index
    %c48 = arith.constant 48 : index
    %72 = vector.load %arg1[%c0_41, %c0_42, %c48] : memref<1x16x384xbf16, #tpu.memory_space<vmem>>, vector<1x16x16xbf16>
    %73 = vector.shape_cast %72 : vector<1x16x16xbf16> to vector<16x16xbf16>
    %c0_43 = arith.constant 0 : index
    %c0_44 = arith.constant 0 : index
    %c176 = arith.constant 176 : index
    %74 = vector.load %arg1[%c0_43, %c0_44, %c176] : memref<1x16x384xbf16, #tpu.memory_space<vmem>>, vector<1x16x16xbf16>
    %75 = vector.shape_cast %74 : vector<1x16x16xbf16> to vector<16x16xbf16>
    %c0_45 = arith.constant 0 : index
    %c0_46 = arith.constant 0 : index
    %c304 = arith.constant 304 : index
    %76 = vector.load %arg1[%c0_45, %c0_46, %c304] : memref<1x16x384xbf16, #tpu.memory_space<vmem>>, vector<1x16x16xbf16>
    %77 = vector.shape_cast %76 : vector<1x16x16xbf16> to vector<16x16xbf16>
    %cst_47 = arith.constant dense<0.000000e+00> : vector<16x16xf32>
    %78 = tpu.matmul %73, %75, %cst_47 {dimension_numbers = #tpu.dot_dimension_numbers<[1], [1], [0], [0], [0, 0, 1, 0], [], []>} : vector<16x16xbf16>, vector<16x16xbf16>, vector<16x16xf32> -> vector<16x16xf32>
    %cst_48 = arith.constant 2.500000e-01 : f32
    %79 = vector.broadcast %cst_48 : f32 to vector<16x16xf32>
    %80 = arith.mulf %78, %79 : vector<16x16xf32>
    %cst_49 = arith.constant dense<0xFF800000> : vector<16xf32>
    %81 = vector.multi_reduction <maximumf>, %80, %cst_49 [1] : vector<16x16xf32> to vector<16xf32>
    %82 = vector.shape_cast %81 : vector<16xf32> to vector<16x1xf32>
    %83 = vector.broadcast %82 : vector<16x1xf32> to vector<16x16xf32>
    %84 = arith.subf %80, %83 : vector<16x16xf32>
    %85 = math.exp %84 : vector<16x16xf32>
    %cst_50 = arith.constant dense<0.000000e+00> : vector<16xf32>
    %86 = vector.multi_reduction <add>, %85, %cst_50 [1] : vector<16x16xf32> to vector<16xf32>
    %87 = vector.shape_cast %86 : vector<16xf32> to vector<16x1xf32>
    %88 = vector.broadcast %87 : vector<16x1xf32> to vector<16x16xf32>
    %89 = arith.divf %85, %88 : vector<16x16xf32>
    %90 = arith.truncf %89 : vector<16x16xf32> to vector<16x16xbf16>
    %cst_51 = arith.constant dense<0.000000e+00> : vector<16x16xf32>
    %91 = tpu.matmul %90, %77, %cst_51 {dimension_numbers = #tpu.dot_dimension_numbers<[1], [0], [0], [1], [0, 0, 1, 1], [], []>} : vector<16x16xbf16>, vector<16x16xbf16>, vector<16x16xf32> -> vector<16x16xf32>
    %92 = arith.truncf %91 : vector<16x16xf32> to vector<16x16xbf16>
    %c0_52 = arith.constant 0 : index
    %c0_53 = arith.constant 0 : index
    %c48_54 = arith.constant 48 : index
    %93 = vector.load %arg2[%c0_52, %c0_53, %c48_54] : memref<1x16x128xbf16, #tpu.memory_space<vmem>>, vector<1x16x16xbf16>
    %94 = vector.shape_cast %93 : vector<1x16x16xbf16> to vector<16x16xbf16>
    %95 = vector.shape_cast %92 : vector<16x16xbf16> to vector<1x16x16xbf16>
    tpu.vector_store %arg2[%c0_52, %c0_53, %c48_54], %95 {strides = array<i32>} : memref<1x16x128xbf16, #tpu.memory_space<vmem>>, vector<1x16x16xbf16>,
    %c0_55 = arith.constant 0 : index
    %c0_56 = arith.constant 0 : index
    %c64 = arith.constant 64 : index
    %96 = vector.load %arg1[%c0_55, %c0_56, %c64] : memref<1x16x384xbf16, #tpu.memory_space<vmem>>, vector<1x16x16xbf16>
    %97 = vector.shape_cast %96 : vector<1x16x16xbf16> to vector<16x16xbf16>
    %c0_57 = arith.constant 0 : index
    %c0_58 = arith.constant 0 : index
    %c192 = arith.constant 192 : index
    %98 = vector.load %arg1[%c0_57, %c0_58, %c192] : memref<1x16x384xbf16, #tpu.memory_space<vmem>>, vector<1x16x16xbf16>
    %99 = vector.shape_cast %98 : vector<1x16x16xbf16> to vector<16x16xbf16>
    %c0_59 = arith.constant 0 : index
    %c0_60 = arith.constant 0 : index
    %c320 = arith.constant 320 : index
    %100 = vector.load %arg1[%c0_59, %c0_60, %c320] : memref<1x16x384xbf16, #tpu.memory_space<vmem>>, vector<1x16x16xbf16>
    %101 = vector.shape_cast %100 : vector<1x16x16xbf16> to vector<16x16xbf16>
    %cst_61 = arith.constant dense<0.000000e+00> : vector<16x16xf32>
    %102 = tpu.matmul %97, %99, %cst_61 {dimension_numbers = #tpu.dot_dimension_numbers<[1], [1], [0], [0], [0, 0, 1, 0], [], []>} : vector<16x16xbf16>, vector<16x16xbf16>, vector<16x16xf32> -> vector<16x16xf32>
    %cst_62 = arith.constant 2.500000e-01 : f32
    %103 = vector.broadcast %cst_62 : f32 to vector<16x16xf32>
    %104 = arith.mulf %102, %103 : vector<16x16xf32>
    %cst_63 = arith.constant dense<0xFF800000> : vector<16xf32>
    %105 = vector.multi_reduction <maximumf>, %104, %cst_63 [1] : vector<16x16xf32> to vector<16xf32>
    %106 = vector.shape_cast %105 : vector<16xf32> to vector<16x1xf32>
    %107 = vector.broadcast %106 : vector<16x1xf32> to vector<16x16xf32>
    %108 = arith.subf %104, %107 : vector<16x16xf32>
    %109 = math.exp %108 : vector<16x16xf32>
    %cst_64 = arith.constant dense<0.000000e+00> : vector<16xf32>
    %110 = vector.multi_reduction <add>, %109, %cst_64 [1] : vector<16x16xf32> to vector<16xf32>
    %111 = vector.shape_cast %110 : vector<16xf32> to vector<16x1xf32>
    %112 = vector.broadcast %111 : vector<16x1xf32> to vector<16x16xf32>
    %113 = arith.divf %109, %112 : vector<16x16xf32>
    %114 = arith.truncf %113 : vector<16x16xf32> to vector<16x16xbf16>
    %cst_65 = arith.constant dense<0.000000e+00> : vector<16x16xf32>
    %115 = tpu.matmul %114, %101, %cst_65 {dimension_numbers = #tpu.dot_dimension_numbers<[1], [0], [0], [1], [0, 0, 1, 1], [], []>} : vector<16x16xbf16>, vector<16x16xbf16>, vector<16x16xf32> -> vector<16x16xf32>
    %116 = arith.truncf %115 : vector<16x16xf32> to vector<16x16xbf16>
    %c0_66 = arith.constant 0 : index
    %c0_67 = arith.constant 0 : index
    %c64_68 = arith.constant 64 : index
    %117 = vector.load %arg2[%c0_66, %c0_67, %c64_68] : memref<1x16x128xbf16, #tpu.memory_space<vmem>>, vector<1x16x16xbf16>
    %118 = vector.shape_cast %117 : vector<1x16x16xbf16> to vector<16x16xbf16>
    %119 = vector.shape_cast %116 : vector<16x16xbf16> to vector<1x16x16xbf16>
    tpu.vector_store %arg2[%c0_66, %c0_67, %c64_68], %119 {strides = array<i32>} : memref<1x16x128xbf16, #tpu.memory_space<vmem>>, vector<1x16x16xbf16>,
    %c0_69 = arith.constant 0 : index
    %c0_70 = arith.constant 0 : index
    %c80 = arith.constant 80 : index
    %120 = vector.load %arg1[%c0_69, %c0_70, %c80] : memref<1x16x384xbf16, #tpu.memory_space<vmem>>, vector<1x16x16xbf16>
    %121 = vector.shape_cast %120 : vector<1x16x16xbf16> to vector<16x16xbf16>
    %c0_71 = arith.constant 0 : index
    %c0_72 = arith.constant 0 : index
    %c208 = arith.constant 208 : index
    %122 = vector.load %arg1[%c0_71, %c0_72, %c208] : memref<1x16x384xbf16, #tpu.memory_space<vmem>>, vector<1x16x16xbf16>
    %123 = vector.shape_cast %122 : vector<1x16x16xbf16> to vector<16x16xbf16>
    %c0_73 = arith.constant 0 : index
    %c0_74 = arith.constant 0 : index
    %c336 = arith.constant 336 : index
    %124 = vector.load %arg1[%c0_73, %c0_74, %c336] : memref<1x16x384xbf16, #tpu.memory_space<vmem>>, vector<1x16x16xbf16>
    %125 = vector.shape_cast %124 : vector<1x16x16xbf16> to vector<16x16xbf16>
    %cst_75 = arith.constant dense<0.000000e+00> : vector<16x16xf32>
    %126 = tpu.matmul %121, %123, %cst_75 {dimension_numbers = #tpu.dot_dimension_numbers<[1], [1], [0], [0], [0, 0, 1, 0], [], []>} : vector<16x16xbf16>, vector<16x16xbf16>, vector<16x16xf32> -> vector<16x16xf32>
    %cst_76 = arith.constant 2.500000e-01 : f32
    %127 = vector.broadcast %cst_76 : f32 to vector<16x16xf32>
    %128 = arith.mulf %126, %127 : vector<16x16xf32>
    %cst_77 = arith.constant dense<0xFF800000> : vector<16xf32>
    %129 = vector.multi_reduction <maximumf>, %128, %cst_77 [1] : vector<16x16xf32> to vector<16xf32>
    %130 = vector.shape_cast %129 : vector<16xf32> to vector<16x1xf32>
    %131 = vector.broadcast %130 : vector<16x1xf32> to vector<16x16xf32>
    %132 = arith.subf %128, %131 : vector<16x16xf32>
    %133 = math.exp %132 : vector<16x16xf32>
    %cst_78 = arith.constant dense<0.000000e+00> : vector<16xf32>
    %134 = vector.multi_reduction <add>, %133, %cst_78 [1] : vector<16x16xf32> to vector<16xf32>
    %135 = vector.shape_cast %134 : vector<16xf32> to vector<16x1xf32>
    %136 = vector.broadcast %135 : vector<16x1xf32> to vector<16x16xf32>
    %137 = arith.divf %133, %136 : vector<16x16xf32>
    %138 = arith.truncf %137 : vector<16x16xf32> to vector<16x16xbf16>
    %cst_79 = arith.constant dense<0.000000e+00> : vector<16x16xf32>
    %139 = tpu.matmul %138, %125, %cst_79 {dimension_numbers = #tpu.dot_dimension_numbers<[1], [0], [0], [1], [0, 0, 1, 1], [], []>} : vector<16x16xbf16>, vector<16x16xbf16>, vector<16x16xf32> -> vector<16x16xf32>
    %140 = arith.truncf %139 : vector<16x16xf32> to vector<16x16xbf16>
    %c0_80 = arith.constant 0 : index
    %c0_81 = arith.constant 0 : index
    %c80_82 = arith.constant 80 : index
    %141 = vector.load %arg2[%c0_80, %c0_81, %c80_82] : memref<1x16x128xbf16, #tpu.memory_space<vmem>>, vector<1x16x16xbf16>
    %142 = vector.shape_cast %141 : vector<1x16x16xbf16> to vector<16x16xbf16>
    %143 = vector.shape_cast %140 : vector<16x16xbf16> to vector<1x16x16xbf16>
    tpu.vector_store %arg2[%c0_80, %c0_81, %c80_82], %143 {strides = array<i32>} : memref<1x16x128xbf16, #tpu.memory_space<vmem>>, vector<1x16x16xbf16>,
    %c0_83 = arith.constant 0 : index
    %c0_84 = arith.constant 0 : index
    %c96 = arith.constant 96 : index
    %144 = vector.load %arg1[%c0_83, %c0_84, %c96] : memref<1x16x384xbf16, #tpu.memory_space<vmem>>, vector<1x16x16xbf16>
    %145 = vector.shape_cast %144 : vector<1x16x16xbf16> to vector<16x16xbf16>
    %c0_85 = arith.constant 0 : index
    %c0_86 = arith.constant 0 : index
    %c224 = arith.constant 224 : index
    %146 = vector.load %arg1[%c0_85, %c0_86, %c224] : memref<1x16x384xbf16, #tpu.memory_space<vmem>>, vector<1x16x16xbf16>
    %147 = vector.shape_cast %146 : vector<1x16x16xbf16> to vector<16x16xbf16>
    %c0_87 = arith.constant 0 : index
    %c0_88 = arith.constant 0 : index
    %c352 = arith.constant 352 : index
    %148 = vector.load %arg1[%c0_87, %c0_88, %c352] : memref<1x16x384xbf16, #tpu.memory_space<vmem>>, vector<1x16x16xbf16>
    %149 = vector.shape_cast %148 : vector<1x16x16xbf16> to vector<16x16xbf16>
    %cst_89 = arith.constant dense<0.000000e+00> : vector<16x16xf32>
    %150 = tpu.matmul %145, %147, %cst_89 {dimension_numbers = #tpu.dot_dimension_numbers<[1], [1], [0], [0], [0, 0, 1, 0], [], []>} : vector<16x16xbf16>, vector<16x16xbf16>, vector<16x16xf32> -> vector<16x16xf32>
    %cst_90 = arith.constant 2.500000e-01 : f32
    %151 = vector.broadcast %cst_90 : f32 to vector<16x16xf32>
    %152 = arith.mulf %150, %151 : vector<16x16xf32>
    %cst_91 = arith.constant dense<0xFF800000> : vector<16xf32>
    %153 = vector.multi_reduction <maximumf>, %152, %cst_91 [1] : vector<16x16xf32> to vector<16xf32>
    %154 = vector.shape_cast %153 : vector<16xf32> to vector<16x1xf32>
    %155 = vector.broadcast %154 : vector<16x1xf32> to vector<16x16xf32>
    %156 = arith.subf %152, %155 : vector<16x16xf32>
    %157 = math.exp %156 : vector<16x16xf32>
    %cst_92 = arith.constant dense<0.000000e+00> : vector<16xf32>
    %158 = vector.multi_reduction <add>, %157, %cst_92 [1] : vector<16x16xf32> to vector<16xf32>
    %159 = vector.shape_cast %158 : vector<16xf32> to vector<16x1xf32>
    %160 = vector.broadcast %159 : vector<16x1xf32> to vector<16x16xf32>
    %161 = arith.divf %157, %160 : vector<16x16xf32>
    %162 = arith.truncf %161 : vector<16x16xf32> to vector<16x16xbf16>
    %cst_93 = arith.constant dense<0.000000e+00> : vector<16x16xf32>
    %163 = tpu.matmul %162, %149, %cst_93 {dimension_numbers = #tpu.dot_dimension_numbers<[1], [0], [0], [1], [0, 0, 1, 1], [], []>} : vector<16x16xbf16>, vector<16x16xbf16>, vector<16x16xf32> -> vector<16x16xf32>
    %164 = arith.truncf %163 : vector<16x16xf32> to vector<16x16xbf16>
    %c0_94 = arith.constant 0 : index
    %c0_95 = arith.constant 0 : index
    %c96_96 = arith.constant 96 : index
    %165 = vector.load %arg2[%c0_94, %c0_95, %c96_96] : memref<1x16x128xbf16, #tpu.memory_space<vmem>>, vector<1x16x16xbf16>
    %166 = vector.shape_cast %165 : vector<1x16x16xbf16> to vector<16x16xbf16>
    %167 = vector.shape_cast %164 : vector<16x16xbf16> to vector<1x16x16xbf16>
    tpu.vector_store %arg2[%c0_94, %c0_95, %c96_96], %167 {strides = array<i32>} : memref<1x16x128xbf16, #tpu.memory_space<vmem>>, vector<1x16x16xbf16>,
    %c0_97 = arith.constant 0 : index
    %c0_98 = arith.constant 0 : index
    %c112 = arith.constant 112 : index
    %168 = vector.load %arg1[%c0_97, %c0_98, %c112] : memref<1x16x384xbf16, #tpu.memory_space<vmem>>, vector<1x16x16xbf16>
    %169 = vector.shape_cast %168 : vector<1x16x16xbf16> to vector<16x16xbf16>
    %c0_99 = arith.constant 0 : index
    %c0_100 = arith.constant 0 : index
    %c240 = arith.constant 240 : index
    %170 = vector.load %arg1[%c0_99, %c0_100, %c240] : memref<1x16x384xbf16, #tpu.memory_space<vmem>>, vector<1x16x16xbf16>
    %171 = vector.shape_cast %170 : vector<1x16x16xbf16> to vector<16x16xbf16>
    %c0_101 = arith.constant 0 : index
    %c0_102 = arith.constant 0 : index
    %c368 = arith.constant 368 : index
    %172 = vector.load %arg1[%c0_101, %c0_102, %c368] : memref<1x16x384xbf16, #tpu.memory_space<vmem>>, vector<1x16x16xbf16>
    %173 = vector.shape_cast %172 : vector<1x16x16xbf16> to vector<16x16xbf16>
    %cst_103 = arith.constant dense<0.000000e+00> : vector<16x16xf32>
    %174 = tpu.matmul %169, %171, %cst_103 {dimension_numbers = #tpu.dot_dimension_numbers<[1], [1], [0], [0], [0, 0, 1, 0], [], []>} : vector<16x16xbf16>, vector<16x16xbf16>, vector<16x16xf32> -> vector<16x16xf32>
    %cst_104 = arith.constant 2.500000e-01 : f32
    %175 = vector.broadcast %cst_104 : f32 to vector<16x16xf32>
    %176 = arith.mulf %174, %175 : vector<16x16xf32>
    %cst_105 = arith.constant dense<0xFF800000> : vector<16xf32>
    %177 = vector.multi_reduction <maximumf>, %176, %cst_105 [1] : vector<16x16xf32> to vector<16xf32>
    %178 = vector.shape_cast %177 : vector<16xf32> to vector<16x1xf32>
    %179 = vector.broadcast %178 : vector<16x1xf32> to vector<16x16xf32>
    %180 = arith.subf %176, %179 : vector<16x16xf32>
    %181 = math.exp %180 : vector<16x16xf32>
    %cst_106 = arith.constant dense<0.000000e+00> : vector<16xf32>
    %182 = vector.multi_reduction <add>, %181, %cst_106 [1] : vector<16x16xf32> to vector<16xf32>
    %183 = vector.shape_cast %182 : vector<16xf32> to vector<16x1xf32>
    %184 = vector.broadcast %183 : vector<16x1xf32> to vector<16x16xf32>
    %185 = arith.divf %181, %184 : vector<16x16xf32>
    %186 = arith.truncf %185 : vector<16x16xf32> to vector<16x16xbf16>
    %cst_107 = arith.constant dense<0.000000e+00> : vector<16x16xf32>
    %187 = tpu.matmul %186, %173, %cst_107 {dimension_numbers = #tpu.dot_dimension_numbers<[1], [0], [0], [1], [0, 0, 1, 1], [], []>} : vector<16x16xbf16>, vector<16x16xbf16>, vector<16x16xf32> -> vector<16x16xf32>
    %188 = arith.truncf %187 : vector<16x16xf32> to vector<16x16xbf16>
    %c0_108 = arith.constant 0 : index
    %c0_109 = arith.constant 0 : index
    %c112_110 = arith.constant 112 : index
    %189 = vector.load %arg2[%c0_108, %c0_109, %c112_110] : memref<1x16x128xbf16, #tpu.memory_space<vmem>>, vector<1x16x16xbf16>
    %190 = vector.shape_cast %189 : vector<1x16x16xbf16> to vector<16x16xbf16>
    %191 = vector.shape_cast %188 : vector<16x16xbf16> to vector<1x16x16xbf16>
    tpu.vector_store %arg2[%c0_108, %c0_109, %c112_110], %191 {strides = array<i32>} : memref<1x16x128xbf16, #tpu.memory_space<vmem>>, vector<1x16x16xbf16>,
    return
  }
  func.func @transform_0(%arg0: i32) -> (i32, i32, i32) {
    %c0_i32 = arith.constant 0 : i32
    %c0_i32_0 = arith.constant 0 : i32
    %c0_i32_1 = arith.constant 0 : i32
    return %arg0, %c0_i32, %c0_i32_0 : i32, i32, i32
  }
  func.func @transform_1(%arg0: i32) -> (i32, i32, i32) {
    %c0_i32 = arith.constant 0 : i32
    %c0_i32_0 = arith.constant 0 : i32
    %c0_i32_1 = arith.constant 0 : i32
    return %arg0, %c0_i32, %c0_i32_0 : i32, i32, i32
  }
}

module attributes {stable_mosaic.version = 11 : i64} {
  func.func @_mm_res_kernel(%arg0: i32, %arg1: i32, %arg2: i32, %arg3: memref<32x128xbf16, #tpu.memory_space<vmem>>, %arg4: memref<128x128xbf16, #tpu.memory_space<vmem>>, %arg5: memref<1x128xf32, #tpu.memory_space<vmem>>, %arg6: memref<32x128xf32, #tpu.memory_space<vmem>>, %arg7: memref<32x128xf32, #tpu.memory_space<vmem>>, %arg8: memref<32x128xf32, #tpu.memory_space<vmem>>) attributes {dimension_semantics = [#tpu.dimension_semantics<parallel>, #tpu.dimension_semantics<parallel>, #tpu.dimension_semantics<arbitrary>], iteration_bounds = array<i64: 1, 1, 1>, scalar_prefetch = 0 : i64, scratch_operands = 1 : i64, tpu.core_type = #tpu.core_type<tc>, window_params = [{transform_indices = @transform_0, window_bounds = array<i64: 32, 128>}, {transform_indices = @transform_1, window_bounds = array<i64: 128, 128>}, {transform_indices = @transform_2, window_bounds = array<i64: 1, 128>}, {transform_indices = @transform_3, window_bounds = array<i64: 32, 128>}, {transform_indices = @transform_4, window_bounds = array<i64: 32, 128>}]} {
    %c0_i32 = arith.constant 0 : i32
    %0 = arith.cmpi eq, %arg2, %c0_i32 : i32
    %1 = arith.extui %0 : i1 to i32
    %c0_i32_0 = arith.constant 0 : i32
    %2 = arith.cmpi ne, %1, %c0_i32_0 : i32
    scf.if %2 {
      %cst_10 = arith.constant 0.000000e+00 : f32
      %12 = vector.broadcast %cst_10 : f32 to vector<32x128xf32>
      %c0_11 = arith.constant 0 : index
      %c0_12 = arith.constant 0 : index
      %13 = vector.load %arg8[%c0_11, %c0_12] : memref<32x128xf32, #tpu.memory_space<vmem>>, vector<32x128xf32>
      tpu.vector_store %arg8[%c0_11, %c0_12], %12 {strides = array<i32>} : memref<32x128xf32, #tpu.memory_space<vmem>>, vector<32x128xf32>,
    } else {
    }
    %c0 = arith.constant 0 : index
    %c0_1 = arith.constant 0 : index
    %3 = vector.load %arg8[%c0, %c0_1] : memref<32x128xf32, #tpu.memory_space<vmem>>, vector<32x128xf32>
    %c0_2 = arith.constant 0 : index
    %c0_3 = arith.constant 0 : index
    %4 = vector.load %arg3[%c0_2, %c0_3] : memref<32x128xbf16, #tpu.memory_space<vmem>>, vector<32x128xbf16>
    %c0_4 = arith.constant 0 : index
    %c0_5 = arith.constant 0 : index
    %5 = vector.load %arg4[%c0_4, %c0_5] : memref<128x128xbf16, #tpu.memory_space<vmem>>, vector<128x128xbf16>
    %cst = arith.constant dense<0.000000e+00> : vector<32x128xf32>
    %6 = tpu.matmul %4, %5, %cst {dimension_numbers = #tpu.dot_dimension_numbers<[1], [0], [0], [1], [0, 0, 1, 1], [], []>} : vector<32x128xbf16>, vector<128x128xbf16>, vector<32x128xf32> -> vector<32x128xf32>
    %7 = arith.addf %3, %6 : vector<32x128xf32>
    %c0_6 = arith.constant 0 : index
    %c0_7 = arith.constant 0 : index
    %8 = vector.load %arg8[%c0_6, %c0_7] : memref<32x128xf32, #tpu.memory_space<vmem>>, vector<32x128xf32>
    tpu.vector_store %arg8[%c0_6, %c0_7], %7 {strides = array<i32>} : memref<32x128xf32, #tpu.memory_space<vmem>>, vector<32x128xf32>,
    %c0_i32_8 = arith.constant 0 : i32
    %9 = arith.cmpi eq, %arg2, %c0_i32_8 : i32
    %10 = arith.extui %9 : i1 to i32
    %c0_i32_9 = arith.constant 0 : i32
    %11 = arith.cmpi ne, %10, %c0_i32_9 : i32
    scf.if %11 {
      %c0_10 = arith.constant 0 : index
      %c0_11 = arith.constant 0 : index
      %12 = vector.load %arg6[%c0_10, %c0_11] : memref<32x128xf32, #tpu.memory_space<vmem>>, vector<32x128xf32>
      %c0_12 = arith.constant 0 : index
      %c0_13 = arith.constant 0 : index
      %13 = vector.load %arg8[%c0_12, %c0_13] : memref<32x128xf32, #tpu.memory_space<vmem>>, vector<32x128xf32>
      %c0_14 = arith.constant 0 : index
      %c0_15 = arith.constant 0 : index
      %14 = vector.load %arg5[%c0_14, %c0_15] : memref<1x128xf32, #tpu.memory_space<vmem>>, vector<1x128xf32>
      %15 = vector.broadcast %14 : vector<1x128xf32> to vector<32x128xf32>
      %16 = arith.addf %13, %15 : vector<32x128xf32>
      %cst_16 = arith.constant 1.000000e+00 : f32
      %17 = vector.broadcast %cst_16 : f32 to vector<32x128xf32>
      %18 = arith.mulf %17, %16 : vector<32x128xf32>
      %19 = arith.addf %12, %18 : vector<32x128xf32>
      %c0_17 = arith.constant 0 : index
      %c0_18 = arith.constant 0 : index
      %20 = vector.load %arg7[%c0_17, %c0_18] : memref<32x128xf32, #tpu.memory_space<vmem>>, vector<32x128xf32>
      tpu.vector_store %arg7[%c0_17, %c0_18], %19 {strides = array<i32>} : memref<32x128xf32, #tpu.memory_space<vmem>>, vector<32x128xf32>,
    } else {
    }
    return
  }
  func.func @transform_0(%arg0: i32, %arg1: i32, %arg2: i32) -> (i32, i32) {
    %c0_i32 = arith.constant 0 : i32
    return %arg0, %arg2 : i32, i32
  }
  func.func @transform_1(%arg0: i32, %arg1: i32, %arg2: i32) -> (i32, i32) {
    %c0_i32 = arith.constant 0 : i32
    return %arg2, %arg1 : i32, i32
  }
  func.func @transform_2(%arg0: i32, %arg1: i32, %arg2: i32) -> (i32, i32) {
    %c0_i32 = arith.constant 0 : i32
    %c0_i32_0 = arith.constant 0 : i32
    return %c0_i32, %arg1 : i32, i32
  }
  func.func @transform_3(%arg0: i32, %arg1: i32, %arg2: i32) -> (i32, i32) {
    %c0_i32 = arith.constant 0 : i32
    return %arg0, %arg1 : i32, i32
  }
  func.func @transform_4(%arg0: i32, %arg1: i32, %arg2: i32) -> (i32, i32) {
    %c0_i32 = arith.constant 0 : i32
    return %arg0, %arg1 : i32, i32
  }
}

module attributes {stable_mosaic.version = 11 : i64} {
  func.func @_ln_mm_kernel(%arg0: i32, %arg1: i32, %arg2: memref<32x128xf32, #tpu.memory_space<vmem>>, %arg3: memref<1x128xf32, #tpu.memory_space<vmem>>, %arg4: memref<1x128xf32, #tpu.memory_space<vmem>>, %arg5: memref<128x256xbf16, #tpu.memory_space<vmem>>, %arg6: memref<1x256xf32, #tpu.memory_space<vmem>>, %arg7: memref<32x256xbf16, #tpu.memory_space<vmem>>) attributes {dimension_semantics = [#tpu.dimension_semantics<parallel>, #tpu.dimension_semantics<parallel>], iteration_bounds = array<i64: 1, 1>, scalar_prefetch = 0 : i64, scratch_operands = 0 : i64, tpu.core_type = #tpu.core_type<tc>, window_params = [{transform_indices = @transform_0, window_bounds = array<i64: 32, 128>}, {pipeline_mode = #tpu.pipeline_mode<synchronous>, transform_indices = @transform_1, window_bounds = array<i64: 1, 128>}, {pipeline_mode = #tpu.pipeline_mode<synchronous>, transform_indices = @transform_2, window_bounds = array<i64: 1, 128>}, {transform_indices = @transform_3, window_bounds = array<i64: 128, 256>}, {transform_indices = @transform_4, window_bounds = array<i64: 1, 256>}, {transform_indices = @transform_5, window_bounds = array<i64: 32, 256>}]} {
    %c0 = arith.constant 0 : index
    %c0_0 = arith.constant 0 : index
    %0 = vector.load %arg2[%c0, %c0_0] : memref<32x128xf32, #tpu.memory_space<vmem>>, vector<32x128xf32>
    %cst = arith.constant dense<0.000000e+00> : vector<32xf32>
    %1 = vector.multi_reduction <add>, %0, %cst [1] : vector<32x128xf32> to vector<32xf32>
    %2 = vector.shape_cast %1 : vector<32xf32> to vector<32x1xf32>
    %cst_1 = arith.constant 1.280000e+02 : f32
    %3 = vector.broadcast %cst_1 : f32 to vector<32x1xf32>
    %4 = arith.divf %2, %3 : vector<32x1xf32>
    %5 = vector.broadcast %4 : vector<32x1xf32> to vector<32x128xf32>
    %6 = arith.subf %0, %5 : vector<32x128xf32>
    %7 = arith.mulf %6, %6 : vector<32x128xf32>
    %cst_2 = arith.constant dense<0.000000e+00> : vector<32xf32>
    %8 = vector.multi_reduction <add>, %7, %cst_2 [1] : vector<32x128xf32> to vector<32xf32>
    %9 = vector.shape_cast %8 : vector<32xf32> to vector<32x1xf32>
    %cst_3 = arith.constant 1.280000e+02 : f32
    %10 = vector.broadcast %cst_3 : f32 to vector<32x1xf32>
    %11 = arith.divf %9, %10 : vector<32x1xf32>
    %cst_4 = arith.constant 9.99999974E-6 : f32
    %12 = vector.broadcast %cst_4 : f32 to vector<32x1xf32>
    %13 = arith.addf %11, %12 : vector<32x1xf32>
    %14 = math.rsqrt %13 : vector<32x1xf32>
    %15 = vector.broadcast %14 : vector<32x1xf32> to vector<32x128xf32>
    %16 = arith.mulf %6, %15 : vector<32x128xf32>
    %c0_5 = arith.constant 0 : index
    %c0_6 = arith.constant 0 : index
    %17 = vector.load %arg3[%c0_5, %c0_6] : memref<1x128xf32, #tpu.memory_space<vmem>>, vector<1x128xf32>
    %18 = vector.broadcast %17 : vector<1x128xf32> to vector<32x128xf32>
    %19 = arith.mulf %16, %18 : vector<32x128xf32>
    %c0_7 = arith.constant 0 : index
    %c0_8 = arith.constant 0 : index
    %20 = vector.load %arg4[%c0_7, %c0_8] : memref<1x128xf32, #tpu.memory_space<vmem>>, vector<1x128xf32>
    %21 = vector.broadcast %20 : vector<1x128xf32> to vector<32x128xf32>
    %22 = arith.addf %19, %21 : vector<32x128xf32>
    %23 = arith.truncf %22 : vector<32x128xf32> to vector<32x128xbf16>
    %c0_9 = arith.constant 0 : index
    %c0_10 = arith.constant 0 : index
    %24 = vector.load %arg5[%c0_9, %c0_10] : memref<128x256xbf16, #tpu.memory_space<vmem>>, vector<128x256xbf16>
    %cst_11 = arith.constant dense<0.000000e+00> : vector<32x256xf32>
    %25 = tpu.matmul %23, %24, %cst_11 {dimension_numbers = #tpu.dot_dimension_numbers<[1], [0], [0], [1], [0, 0, 1, 1], [], []>} : vector<32x128xbf16>, vector<128x256xbf16>, vector<32x256xf32> -> vector<32x256xf32>
    %c0_12 = arith.constant 0 : index
    %c0_13 = arith.constant 0 : index
    %26 = vector.load %arg6[%c0_12, %c0_13] : memref<1x256xf32, #tpu.memory_space<vmem>>, vector<1x256xf32>
    %27 = vector.broadcast %26 : vector<1x256xf32> to vector<32x256xf32>
    %28 = arith.addf %25, %27 : vector<32x256xf32>
    %cst_14 = arith.constant 5.000000e-01 : f32
    %29 = vector.broadcast %cst_14 : f32 to vector<32x256xf32>
    %30 = arith.mulf %29, %28 : vector<32x256xf32>
    %cst_15 = arith.constant 4.471500e-02 : f32
    %31 = vector.broadcast %cst_15 : f32 to vector<32x256xf32>
    %32 = arith.mulf %31, %28 : vector<32x256xf32>
    %33 = arith.mulf %32, %28 : vector<32x256xf32>
    %34 = arith.mulf %33, %28 : vector<32x256xf32>
    %35 = arith.addf %28, %34 : vector<32x256xf32>
    %cst_16 = arith.constant 0.797884583 : f32
    %36 = vector.broadcast %cst_16 : f32 to vector<32x256xf32>
    %37 = arith.mulf %36, %35 : vector<32x256xf32>
    %38 = math.tanh %37 : vector<32x256xf32>
    %cst_17 = arith.constant 1.000000e+00 : f32
    %39 = vector.broadcast %cst_17 : f32 to vector<32x256xf32>
    %40 = arith.addf %39, %38 : vector<32x256xf32>
    %41 = arith.mulf %30, %40 : vector<32x256xf32>
    %42 = arith.truncf %41 : vector<32x256xf32> to vector<32x256xbf16>
    %c0_18 = arith.constant 0 : index
    %c0_19 = arith.constant 0 : index
    %43 = vector.load %arg7[%c0_18, %c0_19] : memref<32x256xbf16, #tpu.memory_space<vmem>>, vector<32x256xbf16>
    tpu.vector_store %arg7[%c0_18, %c0_19], %42 {strides = array<i32>} : memref<32x256xbf16, #tpu.memory_space<vmem>>, vector<32x256xbf16>,
    return
  }
  func.func @transform_0(%arg0: i32, %arg1: i32) -> (i32, i32) {
    %c0_i32 = arith.constant 0 : i32
    %c0_i32_0 = arith.constant 0 : i32
    return %arg0, %c0_i32 : i32, i32
  }
  func.func @transform_1(%arg0: i32, %arg1: i32) -> (i32, i32) {
    %c0_i32 = arith.constant 0 : i32
    %c0_i32_0 = arith.constant 0 : i32
    %c0_i32_1 = arith.constant 0 : i32
    return %c0_i32, %c0_i32_0 : i32, i32
  }
  func.func @transform_2(%arg0: i32, %arg1: i32) -> (i32, i32) {
    %c0_i32 = arith.constant 0 : i32
    %c0_i32_0 = arith.constant 0 : i32
    %c0_i32_1 = arith.constant 0 : i32
    return %c0_i32, %c0_i32_0 : i32, i32
  }
  func.func @transform_3(%arg0: i32, %arg1: i32) -> (i32, i32) {
    %c0_i32 = arith.constant 0 : i32
    %c0_i32_0 = arith.constant 0 : i32
    return %c0_i32, %arg1 : i32, i32
  }
  func.func @transform_4(%arg0: i32, %arg1: i32) -> (i32, i32) {
    %c0_i32 = arith.constant 0 : i32
    %c0_i32_0 = arith.constant 0 : i32
    return %c0_i32, %arg1 : i32, i32
  }
  func.func @transform_5(%arg0: i32, %arg1: i32) -> (i32, i32) {
    %c0_i32 = arith.constant 0 : i32
    return %arg0, %arg1 : i32, i32
  }
}

module attributes {stable_mosaic.version = 11 : i64} {
  func.func @_dwconv_kernel(%arg0: i32, %arg1: memref<1x48x256xbf16, #tpu.memory_space<vmem>>, %arg2: memref<31x256xf32, #tpu.memory_space<vmem>>, %arg3: memref<1x256xf32, #tpu.memory_space<vmem>>, %arg4: memref<1x16x256xbf16, #tpu.memory_space<vmem>>) attributes {dimension_semantics = [#tpu.dimension_semantics<parallel>], iteration_bounds = array<i64: 2>, scalar_prefetch = 0 : i64, scratch_operands = 0 : i64, tpu.core_type = #tpu.core_type<tc>, window_params = [{transform_indices = @transform_0, window_bounds = array<i64: 1, 48, 256>}, {pipeline_mode = #tpu.pipeline_mode<synchronous>, transform_indices = @transform_1, window_bounds = array<i64: 31, 256>}, {pipeline_mode = #tpu.pipeline_mode<synchronous>, transform_indices = @transform_2, window_bounds = array<i64: 1, 256>}, {transform_indices = @transform_3, window_bounds = array<i64: 1, 16, 256>}]} {
    %c0 = arith.constant 0 : index
    %c0_0 = arith.constant 0 : index
    %c0_1 = arith.constant 0 : index
    %0 = vector.load %arg1[%c0, %c0_0, %c0_1] : memref<1x48x256xbf16, #tpu.memory_space<vmem>>, vector<1x16x256xbf16>
    %1 = vector.shape_cast %0 : vector<1x16x256xbf16> to vector<16x256xbf16>
    %2 = arith.extf %1 : vector<16x256xbf16> to vector<16x256xf32>
    %c0_2 = arith.constant 0 : index
    %c0_3 = arith.constant 0 : index
    %3 = vector.load %arg2[%c0_2, %c0_3] : memref<31x256xf32, #tpu.memory_space<vmem>>, vector<1x256xf32>
    %4 = vector.broadcast %3 : vector<1x256xf32> to vector<16x256xf32>
    %5 = arith.mulf %2, %4 : vector<16x256xf32>
    %c0_4 = arith.constant 0 : index
    %c1 = arith.constant 1 : index
    %c0_5 = arith.constant 0 : index
    %6 = vector.load %arg1[%c0_4, %c1, %c0_5] : memref<1x48x256xbf16, #tpu.memory_space<vmem>>, vector<1x16x256xbf16>
    %7 = vector.shape_cast %6 : vector<1x16x256xbf16> to vector<16x256xbf16>
    %8 = arith.extf %7 : vector<16x256xbf16> to vector<16x256xf32>
    %c1_6 = arith.constant 1 : index
    %c0_7 = arith.constant 0 : index
    %9 = vector.load %arg2[%c1_6, %c0_7] : memref<31x256xf32, #tpu.memory_space<vmem>>, vector<1x256xf32>
    %10 = vector.broadcast %9 : vector<1x256xf32> to vector<16x256xf32>
    %11 = arith.mulf %8, %10 : vector<16x256xf32>
    %12 = arith.addf %5, %11 : vector<16x256xf32>
    %c0_8 = arith.constant 0 : index
    %c2 = arith.constant 2 : index
    %c0_9 = arith.constant 0 : index
    %13 = vector.load %arg1[%c0_8, %c2, %c0_9] : memref<1x48x256xbf16, #tpu.memory_space<vmem>>, vector<1x16x256xbf16>
    %14 = vector.shape_cast %13 : vector<1x16x256xbf16> to vector<16x256xbf16>
    %15 = arith.extf %14 : vector<16x256xbf16> to vector<16x256xf32>
    %c2_10 = arith.constant 2 : index
    %c0_11 = arith.constant 0 : index
    %16 = vector.load %arg2[%c2_10, %c0_11] : memref<31x256xf32, #tpu.memory_space<vmem>>, vector<1x256xf32>
    %17 = vector.broadcast %16 : vector<1x256xf32> to vector<16x256xf32>
    %18 = arith.mulf %15, %17 : vector<16x256xf32>
    %19 = arith.addf %12, %18 : vector<16x256xf32>
    %c0_12 = arith.constant 0 : index
    %c3 = arith.constant 3 : index
    %c0_13 = arith.constant 0 : index
    %20 = vector.load %arg1[%c0_12, %c3, %c0_13] : memref<1x48x256xbf16, #tpu.memory_space<vmem>>, vector<1x16x256xbf16>
    %21 = vector.shape_cast %20 : vector<1x16x256xbf16> to vector<16x256xbf16>
    %22 = arith.extf %21 : vector<16x256xbf16> to vector<16x256xf32>
    %c3_14 = arith.constant 3 : index
    %c0_15 = arith.constant 0 : index
    %23 = vector.load %arg2[%c3_14, %c0_15] : memref<31x256xf32, #tpu.memory_space<vmem>>, vector<1x256xf32>
    %24 = vector.broadcast %23 : vector<1x256xf32> to vector<16x256xf32>
    %25 = arith.mulf %22, %24 : vector<16x256xf32>
    %26 = arith.addf %19, %25 : vector<16x256xf32>
    %c0_16 = arith.constant 0 : index
    %c4 = arith.constant 4 : index
    %c0_17 = arith.constant 0 : index
    %27 = vector.load %arg1[%c0_16, %c4, %c0_17] : memref<1x48x256xbf16, #tpu.memory_space<vmem>>, vector<1x16x256xbf16>
    %28 = vector.shape_cast %27 : vector<1x16x256xbf16> to vector<16x256xbf16>
    %29 = arith.extf %28 : vector<16x256xbf16> to vector<16x256xf32>
    %c4_18 = arith.constant 4 : index
    %c0_19 = arith.constant 0 : index
    %30 = vector.load %arg2[%c4_18, %c0_19] : memref<31x256xf32, #tpu.memory_space<vmem>>, vector<1x256xf32>
    %31 = vector.broadcast %30 : vector<1x256xf32> to vector<16x256xf32>
    %32 = arith.mulf %29, %31 : vector<16x256xf32>
    %33 = arith.addf %26, %32 : vector<16x256xf32>
    %c0_20 = arith.constant 0 : index
    %c5 = arith.constant 5 : index
    %c0_21 = arith.constant 0 : index
    %34 = vector.load %arg1[%c0_20, %c5, %c0_21] : memref<1x48x256xbf16, #tpu.memory_space<vmem>>, vector<1x16x256xbf16>
    %35 = vector.shape_cast %34 : vector<1x16x256xbf16> to vector<16x256xbf16>
    %36 = arith.extf %35 : vector<16x256xbf16> to vector<16x256xf32>
    %c5_22 = arith.constant 5 : index
    %c0_23 = arith.constant 0 : index
    %37 = vector.load %arg2[%c5_22, %c0_23] : memref<31x256xf32, #tpu.memory_space<vmem>>, vector<1x256xf32>
    %38 = vector.broadcast %37 : vector<1x256xf32> to vector<16x256xf32>
    %39 = arith.mulf %36, %38 : vector<16x256xf32>
    %40 = arith.addf %33, %39 : vector<16x256xf32>
    %c0_24 = arith.constant 0 : index
    %c6 = arith.constant 6 : index
    %c0_25 = arith.constant 0 : index
    %41 = vector.load %arg1[%c0_24, %c6, %c0_25] : memref<1x48x256xbf16, #tpu.memory_space<vmem>>, vector<1x16x256xbf16>
    %42 = vector.shape_cast %41 : vector<1x16x256xbf16> to vector<16x256xbf16>
    %43 = arith.extf %42 : vector<16x256xbf16> to vector<16x256xf32>
    %c6_26 = arith.constant 6 : index
    %c0_27 = arith.constant 0 : index
    %44 = vector.load %arg2[%c6_26, %c0_27] : memref<31x256xf32, #tpu.memory_space<vmem>>, vector<1x256xf32>
    %45 = vector.broadcast %44 : vector<1x256xf32> to vector<16x256xf32>
    %46 = arith.mulf %43, %45 : vector<16x256xf32>
    %47 = arith.addf %40, %46 : vector<16x256xf32>
    %c0_28 = arith.constant 0 : index
    %c7 = arith.constant 7 : index
    %c0_29 = arith.constant 0 : index
    %48 = vector.load %arg1[%c0_28, %c7, %c0_29] : memref<1x48x256xbf16, #tpu.memory_space<vmem>>, vector<1x16x256xbf16>
    %49 = vector.shape_cast %48 : vector<1x16x256xbf16> to vector<16x256xbf16>
    %50 = arith.extf %49 : vector<16x256xbf16> to vector<16x256xf32>
    %c7_30 = arith.constant 7 : index
    %c0_31 = arith.constant 0 : index
    %51 = vector.load %arg2[%c7_30, %c0_31] : memref<31x256xf32, #tpu.memory_space<vmem>>, vector<1x256xf32>
    %52 = vector.broadcast %51 : vector<1x256xf32> to vector<16x256xf32>
    %53 = arith.mulf %50, %52 : vector<16x256xf32>
    %54 = arith.addf %47, %53 : vector<16x256xf32>
    %c0_32 = arith.constant 0 : index
    %c8 = arith.constant 8 : index
    %c0_33 = arith.constant 0 : index
    %55 = vector.load %arg1[%c0_32, %c8, %c0_33] : memref<1x48x256xbf16, #tpu.memory_space<vmem>>, vector<1x16x256xbf16>
    %56 = vector.shape_cast %55 : vector<1x16x256xbf16> to vector<16x256xbf16>
    %57 = arith.extf %56 : vector<16x256xbf16> to vector<16x256xf32>
    %c8_34 = arith.constant 8 : index
    %c0_35 = arith.constant 0 : index
    %58 = vector.load %arg2[%c8_34, %c0_35] : memref<31x256xf32, #tpu.memory_space<vmem>>, vector<1x256xf32>
    %59 = vector.broadcast %58 : vector<1x256xf32> to vector<16x256xf32>
    %60 = arith.mulf %57, %59 : vector<16x256xf32>
    %61 = arith.addf %54, %60 : vector<16x256xf32>
    %c0_36 = arith.constant 0 : index
    %c9 = arith.constant 9 : index
    %c0_37 = arith.constant 0 : index
    %62 = vector.load %arg1[%c0_36, %c9, %c0_37] : memref<1x48x256xbf16, #tpu.memory_space<vmem>>, vector<1x16x256xbf16>
    %63 = vector.shape_cast %62 : vector<1x16x256xbf16> to vector<16x256xbf16>
    %64 = arith.extf %63 : vector<16x256xbf16> to vector<16x256xf32>
    %c9_38 = arith.constant 9 : index
    %c0_39 = arith.constant 0 : index
    %65 = vector.load %arg2[%c9_38, %c0_39] : memref<31x256xf32, #tpu.memory_space<vmem>>, vector<1x256xf32>
    %66 = vector.broadcast %65 : vector<1x256xf32> to vector<16x256xf32>
    %67 = arith.mulf %64, %66 : vector<16x256xf32>
    %68 = arith.addf %61, %67 : vector<16x256xf32>
    %c0_40 = arith.constant 0 : index
    %c10 = arith.constant 10 : index
    %c0_41 = arith.constant 0 : index
    %69 = vector.load %arg1[%c0_40, %c10, %c0_41] : memref<1x48x256xbf16, #tpu.memory_space<vmem>>, vector<1x16x256xbf16>
    %70 = vector.shape_cast %69 : vector<1x16x256xbf16> to vector<16x256xbf16>
    %71 = arith.extf %70 : vector<16x256xbf16> to vector<16x256xf32>
    %c10_42 = arith.constant 10 : index
    %c0_43 = arith.constant 0 : index
    %72 = vector.load %arg2[%c10_42, %c0_43] : memref<31x256xf32, #tpu.memory_space<vmem>>, vector<1x256xf32>
    %73 = vector.broadcast %72 : vector<1x256xf32> to vector<16x256xf32>
    %74 = arith.mulf %71, %73 : vector<16x256xf32>
    %75 = arith.addf %68, %74 : vector<16x256xf32>
    %c0_44 = arith.constant 0 : index
    %c11 = arith.constant 11 : index
    %c0_45 = arith.constant 0 : index
    %76 = vector.load %arg1[%c0_44, %c11, %c0_45] : memref<1x48x256xbf16, #tpu.memory_space<vmem>>, vector<1x16x256xbf16>
    %77 = vector.shape_cast %76 : vector<1x16x256xbf16> to vector<16x256xbf16>
    %78 = arith.extf %77 : vector<16x256xbf16> to vector<16x256xf32>
    %c11_46 = arith.constant 11 : index
    %c0_47 = arith.constant 0 : index
    %79 = vector.load %arg2[%c11_46, %c0_47] : memref<31x256xf32, #tpu.memory_space<vmem>>, vector<1x256xf32>
    %80 = vector.broadcast %79 : vector<1x256xf32> to vector<16x256xf32>
    %81 = arith.mulf %78, %80 : vector<16x256xf32>
    %82 = arith.addf %75, %81 : vector<16x256xf32>
    %c0_48 = arith.constant 0 : index
    %c12 = arith.constant 12 : index
    %c0_49 = arith.constant 0 : index
    %83 = vector.load %arg1[%c0_48, %c12, %c0_49] : memref<1x48x256xbf16, #tpu.memory_space<vmem>>, vector<1x16x256xbf16>
    %84 = vector.shape_cast %83 : vector<1x16x256xbf16> to vector<16x256xbf16>
    %85 = arith.extf %84 : vector<16x256xbf16> to vector<16x256xf32>
    %c12_50 = arith.constant 12 : index
    %c0_51 = arith.constant 0 : index
    %86 = vector.load %arg2[%c12_50, %c0_51] : memref<31x256xf32, #tpu.memory_space<vmem>>, vector<1x256xf32>
    %87 = vector.broadcast %86 : vector<1x256xf32> to vector<16x256xf32>
    %88 = arith.mulf %85, %87 : vector<16x256xf32>
    %89 = arith.addf %82, %88 : vector<16x256xf32>
    %c0_52 = arith.constant 0 : index
    %c13 = arith.constant 13 : index
    %c0_53 = arith.constant 0 : index
    %90 = vector.load %arg1[%c0_52, %c13, %c0_53] : memref<1x48x256xbf16, #tpu.memory_space<vmem>>, vector<1x16x256xbf16>
    %91 = vector.shape_cast %90 : vector<1x16x256xbf16> to vector<16x256xbf16>
    %92 = arith.extf %91 : vector<16x256xbf16> to vector<16x256xf32>
    %c13_54 = arith.constant 13 : index
    %c0_55 = arith.constant 0 : index
    %93 = vector.load %arg2[%c13_54, %c0_55] : memref<31x256xf32, #tpu.memory_space<vmem>>, vector<1x256xf32>
    %94 = vector.broadcast %93 : vector<1x256xf32> to vector<16x256xf32>
    %95 = arith.mulf %92, %94 : vector<16x256xf32>
    %96 = arith.addf %89, %95 : vector<16x256xf32>
    %c0_56 = arith.constant 0 : index
    %c14 = arith.constant 14 : index
    %c0_57 = arith.constant 0 : index
    %97 = vector.load %arg1[%c0_56, %c14, %c0_57] : memref<1x48x256xbf16, #tpu.memory_space<vmem>>, vector<1x16x256xbf16>
    %98 = vector.shape_cast %97 : vector<1x16x256xbf16> to vector<16x256xbf16>
    %99 = arith.extf %98 : vector<16x256xbf16> to vector<16x256xf32>
    %c14_58 = arith.constant 14 : index
    %c0_59 = arith.constant 0 : index
    %100 = vector.load %arg2[%c14_58, %c0_59] : memref<31x256xf32, #tpu.memory_space<vmem>>, vector<1x256xf32>
    %101 = vector.broadcast %100 : vector<1x256xf32> to vector<16x256xf32>
    %102 = arith.mulf %99, %101 : vector<16x256xf32>
    %103 = arith.addf %96, %102 : vector<16x256xf32>
    %c0_60 = arith.constant 0 : index
    %c15 = arith.constant 15 : index
    %c0_61 = arith.constant 0 : index
    %104 = vector.load %arg1[%c0_60, %c15, %c0_61] : memref<1x48x256xbf16, #tpu.memory_space<vmem>>, vector<1x16x256xbf16>
    %105 = vector.shape_cast %104 : vector<1x16x256xbf16> to vector<16x256xbf16>
    %106 = arith.extf %105 : vector<16x256xbf16> to vector<16x256xf32>
    %c15_62 = arith.constant 15 : index
    %c0_63 = arith.constant 0 : index
    %107 = vector.load %arg2[%c15_62, %c0_63] : memref<31x256xf32, #tpu.memory_space<vmem>>, vector<1x256xf32>
    %108 = vector.broadcast %107 : vector<1x256xf32> to vector<16x256xf32>
    %109 = arith.mulf %106, %108 : vector<16x256xf32>
    %110 = arith.addf %103, %109 : vector<16x256xf32>
    %c0_64 = arith.constant 0 : index
    %c16 = arith.constant 16 : index
    %c0_65 = arith.constant 0 : index
    %111 = vector.load %arg1[%c0_64, %c16, %c0_65] : memref<1x48x256xbf16, #tpu.memory_space<vmem>>, vector<1x16x256xbf16>
    %112 = vector.shape_cast %111 : vector<1x16x256xbf16> to vector<16x256xbf16>
    %113 = arith.extf %112 : vector<16x256xbf16> to vector<16x256xf32>
    %c16_66 = arith.constant 16 : index
    %c0_67 = arith.constant 0 : index
    %114 = vector.load %arg2[%c16_66, %c0_67] : memref<31x256xf32, #tpu.memory_space<vmem>>, vector<1x256xf32>
    %115 = vector.broadcast %114 : vector<1x256xf32> to vector<16x256xf32>
    %116 = arith.mulf %113, %115 : vector<16x256xf32>
    %117 = arith.addf %110, %116 : vector<16x256xf32>
    %c0_68 = arith.constant 0 : index
    %c17 = arith.constant 17 : index
    %c0_69 = arith.constant 0 : index
    %118 = vector.load %arg1[%c0_68, %c17, %c0_69] : memref<1x48x256xbf16, #tpu.memory_space<vmem>>, vector<1x16x256xbf16>
    %119 = vector.shape_cast %118 : vector<1x16x256xbf16> to vector<16x256xbf16>
    %120 = arith.extf %119 : vector<16x256xbf16> to vector<16x256xf32>
    %c17_70 = arith.constant 17 : index
    %c0_71 = arith.constant 0 : index
    %121 = vector.load %arg2[%c17_70, %c0_71] : memref<31x256xf32, #tpu.memory_space<vmem>>, vector<1x256xf32>
    %122 = vector.broadcast %121 : vector<1x256xf32> to vector<16x256xf32>
    %123 = arith.mulf %120, %122 : vector<16x256xf32>
    %124 = arith.addf %117, %123 : vector<16x256xf32>
    %c0_72 = arith.constant 0 : index
    %c18 = arith.constant 18 : index
    %c0_73 = arith.constant 0 : index
    %125 = vector.load %arg1[%c0_72, %c18, %c0_73] : memref<1x48x256xbf16, #tpu.memory_space<vmem>>, vector<1x16x256xbf16>
    %126 = vector.shape_cast %125 : vector<1x16x256xbf16> to vector<16x256xbf16>
    %127 = arith.extf %126 : vector<16x256xbf16> to vector<16x256xf32>
    %c18_74 = arith.constant 18 : index
    %c0_75 = arith.constant 0 : index
    %128 = vector.load %arg2[%c18_74, %c0_75] : memref<31x256xf32, #tpu.memory_space<vmem>>, vector<1x256xf32>
    %129 = vector.broadcast %128 : vector<1x256xf32> to vector<16x256xf32>
    %130 = arith.mulf %127, %129 : vector<16x256xf32>
    %131 = arith.addf %124, %130 : vector<16x256xf32>
    %c0_76 = arith.constant 0 : index
    %c19 = arith.constant 19 : index
    %c0_77 = arith.constant 0 : index
    %132 = vector.load %arg1[%c0_76, %c19, %c0_77] : memref<1x48x256xbf16, #tpu.memory_space<vmem>>, vector<1x16x256xbf16>
    %133 = vector.shape_cast %132 : vector<1x16x256xbf16> to vector<16x256xbf16>
    %134 = arith.extf %133 : vector<16x256xbf16> to vector<16x256xf32>
    %c19_78 = arith.constant 19 : index
    %c0_79 = arith.constant 0 : index
    %135 = vector.load %arg2[%c19_78, %c0_79] : memref<31x256xf32, #tpu.memory_space<vmem>>, vector<1x256xf32>
    %136 = vector.broadcast %135 : vector<1x256xf32> to vector<16x256xf32>
    %137 = arith.mulf %134, %136 : vector<16x256xf32>
    %138 = arith.addf %131, %137 : vector<16x256xf32>
    %c0_80 = arith.constant 0 : index
    %c20 = arith.constant 20 : index
    %c0_81 = arith.constant 0 : index
    %139 = vector.load %arg1[%c0_80, %c20, %c0_81] : memref<1x48x256xbf16, #tpu.memory_space<vmem>>, vector<1x16x256xbf16>
    %140 = vector.shape_cast %139 : vector<1x16x256xbf16> to vector<16x256xbf16>
    %141 = arith.extf %140 : vector<16x256xbf16> to vector<16x256xf32>
    %c20_82 = arith.constant 20 : index
    %c0_83 = arith.constant 0 : index
    %142 = vector.load %arg2[%c20_82, %c0_83] : memref<31x256xf32, #tpu.memory_space<vmem>>, vector<1x256xf32>
    %143 = vector.broadcast %142 : vector<1x256xf32> to vector<16x256xf32>
    %144 = arith.mulf %141, %143 : vector<16x256xf32>
    %145 = arith.addf %138, %144 : vector<16x256xf32>
    %c0_84 = arith.constant 0 : index
    %c21 = arith.constant 21 : index
    %c0_85 = arith.constant 0 : index
    %146 = vector.load %arg1[%c0_84, %c21, %c0_85] : memref<1x48x256xbf16, #tpu.memory_space<vmem>>, vector<1x16x256xbf16>
    %147 = vector.shape_cast %146 : vector<1x16x256xbf16> to vector<16x256xbf16>
    %148 = arith.extf %147 : vector<16x256xbf16> to vector<16x256xf32>
    %c21_86 = arith.constant 21 : index
    %c0_87 = arith.constant 0 : index
    %149 = vector.load %arg2[%c21_86, %c0_87] : memref<31x256xf32, #tpu.memory_space<vmem>>, vector<1x256xf32>
    %150 = vector.broadcast %149 : vector<1x256xf32> to vector<16x256xf32>
    %151 = arith.mulf %148, %150 : vector<16x256xf32>
    %152 = arith.addf %145, %151 : vector<16x256xf32>
    %c0_88 = arith.constant 0 : index
    %c22 = arith.constant 22 : index
    %c0_89 = arith.constant 0 : index
    %153 = vector.load %arg1[%c0_88, %c22, %c0_89] : memref<1x48x256xbf16, #tpu.memory_space<vmem>>, vector<1x16x256xbf16>
    %154 = vector.shape_cast %153 : vector<1x16x256xbf16> to vector<16x256xbf16>
    %155 = arith.extf %154 : vector<16x256xbf16> to vector<16x256xf32>
    %c22_90 = arith.constant 22 : index
    %c0_91 = arith.constant 0 : index
    %156 = vector.load %arg2[%c22_90, %c0_91] : memref<31x256xf32, #tpu.memory_space<vmem>>, vector<1x256xf32>
    %157 = vector.broadcast %156 : vector<1x256xf32> to vector<16x256xf32>
    %158 = arith.mulf %155, %157 : vector<16x256xf32>
    %159 = arith.addf %152, %158 : vector<16x256xf32>
    %c0_92 = arith.constant 0 : index
    %c23 = arith.constant 23 : index
    %c0_93 = arith.constant 0 : index
    %160 = vector.load %arg1[%c0_92, %c23, %c0_93] : memref<1x48x256xbf16, #tpu.memory_space<vmem>>, vector<1x16x256xbf16>
    %161 = vector.shape_cast %160 : vector<1x16x256xbf16> to vector<16x256xbf16>
    %162 = arith.extf %161 : vector<16x256xbf16> to vector<16x256xf32>
    %c23_94 = arith.constant 23 : index
    %c0_95 = arith.constant 0 : index
    %163 = vector.load %arg2[%c23_94, %c0_95] : memref<31x256xf32, #tpu.memory_space<vmem>>, vector<1x256xf32>
    %164 = vector.broadcast %163 : vector<1x256xf32> to vector<16x256xf32>
    %165 = arith.mulf %162, %164 : vector<16x256xf32>
    %166 = arith.addf %159, %165 : vector<16x256xf32>
    %c0_96 = arith.constant 0 : index
    %c24 = arith.constant 24 : index
    %c0_97 = arith.constant 0 : index
    %167 = vector.load %arg1[%c0_96, %c24, %c0_97] : memref<1x48x256xbf16, #tpu.memory_space<vmem>>, vector<1x16x256xbf16>
    %168 = vector.shape_cast %167 : vector<1x16x256xbf16> to vector<16x256xbf16>
    %169 = arith.extf %168 : vector<16x256xbf16> to vector<16x256xf32>
    %c24_98 = arith.constant 24 : index
    %c0_99 = arith.constant 0 : index
    %170 = vector.load %arg2[%c24_98, %c0_99] : memref<31x256xf32, #tpu.memory_space<vmem>>, vector<1x256xf32>
    %171 = vector.broadcast %170 : vector<1x256xf32> to vector<16x256xf32>
    %172 = arith.mulf %169, %171 : vector<16x256xf32>
    %173 = arith.addf %166, %172 : vector<16x256xf32>
    %c0_100 = arith.constant 0 : index
    %c25 = arith.constant 25 : index
    %c0_101 = arith.constant 0 : index
    %174 = vector.load %arg1[%c0_100, %c25, %c0_101] : memref<1x48x256xbf16, #tpu.memory_space<vmem>>, vector<1x16x256xbf16>
    %175 = vector.shape_cast %174 : vector<1x16x256xbf16> to vector<16x256xbf16>
    %176 = arith.extf %175 : vector<16x256xbf16> to vector<16x256xf32>
    %c25_102 = arith.constant 25 : index
    %c0_103 = arith.constant 0 : index
    %177 = vector.load %arg2[%c25_102, %c0_103] : memref<31x256xf32, #tpu.memory_space<vmem>>, vector<1x256xf32>
    %178 = vector.broadcast %177 : vector<1x256xf32> to vector<16x256xf32>
    %179 = arith.mulf %176, %178 : vector<16x256xf32>
    %180 = arith.addf %173, %179 : vector<16x256xf32>
    %c0_104 = arith.constant 0 : index
    %c26 = arith.constant 26 : index
    %c0_105 = arith.constant 0 : index
    %181 = vector.load %arg1[%c0_104, %c26, %c0_105] : memref<1x48x256xbf16, #tpu.memory_space<vmem>>, vector<1x16x256xbf16>
    %182 = vector.shape_cast %181 : vector<1x16x256xbf16> to vector<16x256xbf16>
    %183 = arith.extf %182 : vector<16x256xbf16> to vector<16x256xf32>
    %c26_106 = arith.constant 26 : index
    %c0_107 = arith.constant 0 : index
    %184 = vector.load %arg2[%c26_106, %c0_107] : memref<31x256xf32, #tpu.memory_space<vmem>>, vector<1x256xf32>
    %185 = vector.broadcast %184 : vector<1x256xf32> to vector<16x256xf32>
    %186 = arith.mulf %183, %185 : vector<16x256xf32>
    %187 = arith.addf %180, %186 : vector<16x256xf32>
    %c0_108 = arith.constant 0 : index
    %c27 = arith.constant 27 : index
    %c0_109 = arith.constant 0 : index
    %188 = vector.load %arg1[%c0_108, %c27, %c0_109] : memref<1x48x256xbf16, #tpu.memory_space<vmem>>, vector<1x16x256xbf16>
    %189 = vector.shape_cast %188 : vector<1x16x256xbf16> to vector<16x256xbf16>
    %190 = arith.extf %189 : vector<16x256xbf16> to vector<16x256xf32>
    %c27_110 = arith.constant 27 : index
    %c0_111 = arith.constant 0 : index
    %191 = vector.load %arg2[%c27_110, %c0_111] : memref<31x256xf32, #tpu.memory_space<vmem>>, vector<1x256xf32>
    %192 = vector.broadcast %191 : vector<1x256xf32> to vector<16x256xf32>
    %193 = arith.mulf %190, %192 : vector<16x256xf32>
    %194 = arith.addf %187, %193 : vector<16x256xf32>
    %c0_112 = arith.constant 0 : index
    %c28 = arith.constant 28 : index
    %c0_113 = arith.constant 0 : index
    %195 = vector.load %arg1[%c0_112, %c28, %c0_113] : memref<1x48x256xbf16, #tpu.memory_space<vmem>>, vector<1x16x256xbf16>
    %196 = vector.shape_cast %195 : vector<1x16x256xbf16> to vector<16x256xbf16>
    %197 = arith.extf %196 : vector<16x256xbf16> to vector<16x256xf32>
    %c28_114 = arith.constant 28 : index
    %c0_115 = arith.constant 0 : index
    %198 = vector.load %arg2[%c28_114, %c0_115] : memref<31x256xf32, #tpu.memory_space<vmem>>, vector<1x256xf32>
    %199 = vector.broadcast %198 : vector<1x256xf32> to vector<16x256xf32>
    %200 = arith.mulf %197, %199 : vector<16x256xf32>
    %201 = arith.addf %194, %200 : vector<16x256xf32>
    %c0_116 = arith.constant 0 : index
    %c29 = arith.constant 29 : index
    %c0_117 = arith.constant 0 : index
    %202 = vector.load %arg1[%c0_116, %c29, %c0_117] : memref<1x48x256xbf16, #tpu.memory_space<vmem>>, vector<1x16x256xbf16>
    %203 = vector.shape_cast %202 : vector<1x16x256xbf16> to vector<16x256xbf16>
    %204 = arith.extf %203 : vector<16x256xbf16> to vector<16x256xf32>
    %c29_118 = arith.constant 29 : index
    %c0_119 = arith.constant 0 : index
    %205 = vector.load %arg2[%c29_118, %c0_119] : memref<31x256xf32, #tpu.memory_space<vmem>>, vector<1x256xf32>
    %206 = vector.broadcast %205 : vector<1x256xf32> to vector<16x256xf32>
    %207 = arith.mulf %204, %206 : vector<16x256xf32>
    %208 = arith.addf %201, %207 : vector<16x256xf32>
    %c0_120 = arith.constant 0 : index
    %c30 = arith.constant 30 : index
    %c0_121 = arith.constant 0 : index
    %209 = vector.load %arg1[%c0_120, %c30, %c0_121] : memref<1x48x256xbf16, #tpu.memory_space<vmem>>, vector<1x16x256xbf16>
    %210 = vector.shape_cast %209 : vector<1x16x256xbf16> to vector<16x256xbf16>
    %211 = arith.extf %210 : vector<16x256xbf16> to vector<16x256xf32>
    %c30_122 = arith.constant 30 : index
    %c0_123 = arith.constant 0 : index
    %212 = vector.load %arg2[%c30_122, %c0_123] : memref<31x256xf32, #tpu.memory_space<vmem>>, vector<1x256xf32>
    %213 = vector.broadcast %212 : vector<1x256xf32> to vector<16x256xf32>
    %214 = arith.mulf %211, %213 : vector<16x256xf32>
    %215 = arith.addf %208, %214 : vector<16x256xf32>
    %c0_124 = arith.constant 0 : index
    %c0_125 = arith.constant 0 : index
    %216 = vector.load %arg3[%c0_124, %c0_125] : memref<1x256xf32, #tpu.memory_space<vmem>>, vector<1x256xf32>
    %217 = vector.broadcast %216 : vector<1x256xf32> to vector<16x256xf32>
    %218 = arith.addf %215, %217 : vector<16x256xf32>
    %cst = arith.constant 5.000000e-01 : f32
    %219 = vector.broadcast %cst : f32 to vector<16x256xf32>
    %220 = arith.mulf %219, %218 : vector<16x256xf32>
    %cst_126 = arith.constant 4.471500e-02 : f32
    %221 = vector.broadcast %cst_126 : f32 to vector<16x256xf32>
    %222 = arith.mulf %221, %218 : vector<16x256xf32>
    %223 = arith.mulf %222, %218 : vector<16x256xf32>
    %224 = arith.mulf %223, %218 : vector<16x256xf32>
    %225 = arith.addf %218, %224 : vector<16x256xf32>
    %cst_127 = arith.constant 0.797884583 : f32
    %226 = vector.broadcast %cst_127 : f32 to vector<16x256xf32>
    %227 = arith.mulf %226, %225 : vector<16x256xf32>
    %228 = math.tanh %227 : vector<16x256xf32>
    %cst_128 = arith.constant 1.000000e+00 : f32
    %229 = vector.broadcast %cst_128 : f32 to vector<16x256xf32>
    %230 = arith.addf %229, %228 : vector<16x256xf32>
    %231 = arith.mulf %220, %230 : vector<16x256xf32>
    %232 = arith.truncf %231 : vector<16x256xf32> to vector<16x256xbf16>
    %c0_129 = arith.constant 0 : index
    %c0_130 = arith.constant 0 : index
    %c0_131 = arith.constant 0 : index
    %233 = vector.load %arg4[%c0_129, %c0_130, %c0_131] : memref<1x16x256xbf16, #tpu.memory_space<vmem>>, vector<1x16x256xbf16>
    %234 = vector.shape_cast %233 : vector<1x16x256xbf16> to vector<16x256xbf16>
    %235 = vector.shape_cast %232 : vector<16x256xbf16> to vector<1x16x256xbf16>
    tpu.vector_store %arg4[%c0_129, %c0_130, %c0_131], %235 {strides = array<i32>} : memref<1x16x256xbf16, #tpu.memory_space<vmem>>, vector<1x16x256xbf16>,
    return
  }
  func.func @transform_0(%arg0: i32) -> (i32, i32, i32) {
    %c0_i32 = arith.constant 0 : i32
    %c0_i32_0 = arith.constant 0 : i32
    %c0_i32_1 = arith.constant 0 : i32
    return %arg0, %c0_i32, %c0_i32_0 : i32, i32, i32
  }
  func.func @transform_1(%arg0: i32) -> (i32, i32) {
    %c0_i32 = arith.constant 0 : i32
    %c0_i32_0 = arith.constant 0 : i32
    %c0_i32_1 = arith.constant 0 : i32
    return %c0_i32, %c0_i32_0 : i32, i32
  }
  func.func @transform_2(%arg0: i32) -> (i32, i32) {
    %c0_i32 = arith.constant 0 : i32
    %c0_i32_0 = arith.constant 0 : i32
    %c0_i32_1 = arith.constant 0 : i32
    return %c0_i32, %c0_i32_0 : i32, i32
  }
  func.func @transform_3(%arg0: i32) -> (i32, i32, i32) {
    %c0_i32 = arith.constant 0 : i32
    %c0_i32_0 = arith.constant 0 : i32
    %c0_i32_1 = arith.constant 0 : i32
    return %arg0, %c0_i32, %c0_i32_0 : i32, i32, i32
  }
}

module attributes {stable_mosaic.version = 11 : i64} {
  func.func @_mm_res_kernel(%arg0: i32, %arg1: i32, %arg2: i32, %arg3: memref<32x256xbf16, #tpu.memory_space<vmem>>, %arg4: memref<256x128xbf16, #tpu.memory_space<vmem>>, %arg5: memref<1x128xf32, #tpu.memory_space<vmem>>, %arg6: memref<32x128xf32, #tpu.memory_space<vmem>>, %arg7: memref<32x128xf32, #tpu.memory_space<vmem>>, %arg8: memref<32x128xf32, #tpu.memory_space<vmem>>) attributes {dimension_semantics = [#tpu.dimension_semantics<parallel>, #tpu.dimension_semantics<parallel>, #tpu.dimension_semantics<arbitrary>], iteration_bounds = array<i64: 1, 1, 1>, scalar_prefetch = 0 : i64, scratch_operands = 1 : i64, tpu.core_type = #tpu.core_type<tc>, window_params = [{transform_indices = @transform_0, window_bounds = array<i64: 32, 256>}, {transform_indices = @transform_1, window_bounds = array<i64: 256, 128>}, {transform_indices = @transform_2, window_bounds = array<i64: 1, 128>}, {transform_indices = @transform_3, window_bounds = array<i64: 32, 128>}, {transform_indices = @transform_4, window_bounds = array<i64: 32, 128>}]} {
    %c0_i32 = arith.constant 0 : i32
    %0 = arith.cmpi eq, %arg2, %c0_i32 : i32
    %1 = arith.extui %0 : i1 to i32
    %c0_i32_0 = arith.constant 0 : i32
    %2 = arith.cmpi ne, %1, %c0_i32_0 : i32
    scf.if %2 {
      %cst_10 = arith.constant 0.000000e+00 : f32
      %12 = vector.broadcast %cst_10 : f32 to vector<32x128xf32>
      %c0_11 = arith.constant 0 : index
      %c0_12 = arith.constant 0 : index
      %13 = vector.load %arg8[%c0_11, %c0_12] : memref<32x128xf32, #tpu.memory_space<vmem>>, vector<32x128xf32>
      tpu.vector_store %arg8[%c0_11, %c0_12], %12 {strides = array<i32>} : memref<32x128xf32, #tpu.memory_space<vmem>>, vector<32x128xf32>,
    } else {
    }
    %c0 = arith.constant 0 : index
    %c0_1 = arith.constant 0 : index
    %3 = vector.load %arg8[%c0, %c0_1] : memref<32x128xf32, #tpu.memory_space<vmem>>, vector<32x128xf32>
    %c0_2 = arith.constant 0 : index
    %c0_3 = arith.constant 0 : index
    %4 = vector.load %arg3[%c0_2, %c0_3] : memref<32x256xbf16, #tpu.memory_space<vmem>>, vector<32x256xbf16>
    %c0_4 = arith.constant 0 : index
    %c0_5 = arith.constant 0 : index
    %5 = vector.load %arg4[%c0_4, %c0_5] : memref<256x128xbf16, #tpu.memory_space<vmem>>, vector<256x128xbf16>
    %cst = arith.constant dense<0.000000e+00> : vector<32x128xf32>
    %6 = tpu.matmul %4, %5, %cst {dimension_numbers = #tpu.dot_dimension_numbers<[1], [0], [0], [1], [0, 0, 1, 1], [], []>} : vector<32x256xbf16>, vector<256x128xbf16>, vector<32x128xf32> -> vector<32x128xf32>
    %7 = arith.addf %3, %6 : vector<32x128xf32>
    %c0_6 = arith.constant 0 : index
    %c0_7 = arith.constant 0 : index
    %8 = vector.load %arg8[%c0_6, %c0_7] : memref<32x128xf32, #tpu.memory_space<vmem>>, vector<32x128xf32>
    tpu.vector_store %arg8[%c0_6, %c0_7], %7 {strides = array<i32>} : memref<32x128xf32, #tpu.memory_space<vmem>>, vector<32x128xf32>,
    %c0_i32_8 = arith.constant 0 : i32
    %9 = arith.cmpi eq, %arg2, %c0_i32_8 : i32
    %10 = arith.extui %9 : i1 to i32
    %c0_i32_9 = arith.constant 0 : i32
    %11 = arith.cmpi ne, %10, %c0_i32_9 : i32
    scf.if %11 {
      %c0_10 = arith.constant 0 : index
      %c0_11 = arith.constant 0 : index
      %12 = vector.load %arg6[%c0_10, %c0_11] : memref<32x128xf32, #tpu.memory_space<vmem>>, vector<32x128xf32>
      %c0_12 = arith.constant 0 : index
      %c0_13 = arith.constant 0 : index
      %13 = vector.load %arg8[%c0_12, %c0_13] : memref<32x128xf32, #tpu.memory_space<vmem>>, vector<32x128xf32>
      %c0_14 = arith.constant 0 : index
      %c0_15 = arith.constant 0 : index
      %14 = vector.load %arg5[%c0_14, %c0_15] : memref<1x128xf32, #tpu.memory_space<vmem>>, vector<1x128xf32>
      %15 = vector.broadcast %14 : vector<1x128xf32> to vector<32x128xf32>
      %16 = arith.addf %13, %15 : vector<32x128xf32>
      %cst_16 = arith.constant 1.000000e+00 : f32
      %17 = vector.broadcast %cst_16 : f32 to vector<32x128xf32>
      %18 = arith.mulf %17, %16 : vector<32x128xf32>
      %19 = arith.addf %12, %18 : vector<32x128xf32>
      %c0_17 = arith.constant 0 : index
      %c0_18 = arith.constant 0 : index
      %20 = vector.load %arg7[%c0_17, %c0_18] : memref<32x128xf32, #tpu.memory_space<vmem>>, vector<32x128xf32>
      tpu.vector_store %arg7[%c0_17, %c0_18], %19 {strides = array<i32>} : memref<32x128xf32, #tpu.memory_space<vmem>>, vector<32x128xf32>,
    } else {
    }
    return
  }
  func.func @transform_0(%arg0: i32, %arg1: i32, %arg2: i32) -> (i32, i32) {
    %c0_i32 = arith.constant 0 : i32
    return %arg0, %arg2 : i32, i32
  }
  func.func @transform_1(%arg0: i32, %arg1: i32, %arg2: i32) -> (i32, i32) {
    %c0_i32 = arith.constant 0 : i32
    return %arg2, %arg1 : i32, i32
  }
  func.func @transform_2(%arg0: i32, %arg1: i32, %arg2: i32) -> (i32, i32) {
    %c0_i32 = arith.constant 0 : i32
    %c0_i32_0 = arith.constant 0 : i32
    return %c0_i32, %arg1 : i32, i32
  }
  func.func @transform_3(%arg0: i32, %arg1: i32, %arg2: i32) -> (i32, i32) {
    %c0_i32 = arith.constant 0 : i32
    return %arg0, %arg1 : i32, i32
  }
  func.func @transform_4(%arg0: i32, %arg1: i32, %arg2: i32) -> (i32, i32) {
    %c0_i32 = arith.constant 0 : i32
    return %arg0, %arg1 : i32, i32
  }
}

module attributes {stable_mosaic.version = 11 : i64} {
  func.func @_ln_mm_kernel(%arg0: i32, %arg1: i32, %arg2: memref<32x128xf32, #tpu.memory_space<vmem>>, %arg3: memref<1x128xf32, #tpu.memory_space<vmem>>, %arg4: memref<1x128xf32, #tpu.memory_space<vmem>>, %arg5: memref<128x512xbf16, #tpu.memory_space<vmem>>, %arg6: memref<1x512xf32, #tpu.memory_space<vmem>>, %arg7: memref<32x512xbf16, #tpu.memory_space<vmem>>) attributes {dimension_semantics = [#tpu.dimension_semantics<parallel>, #tpu.dimension_semantics<parallel>], iteration_bounds = array<i64: 1, 1>, scalar_prefetch = 0 : i64, scratch_operands = 0 : i64, tpu.core_type = #tpu.core_type<tc>, window_params = [{transform_indices = @transform_0, window_bounds = array<i64: 32, 128>}, {pipeline_mode = #tpu.pipeline_mode<synchronous>, transform_indices = @transform_1, window_bounds = array<i64: 1, 128>}, {pipeline_mode = #tpu.pipeline_mode<synchronous>, transform_indices = @transform_2, window_bounds = array<i64: 1, 128>}, {transform_indices = @transform_3, window_bounds = array<i64: 128, 512>}, {transform_indices = @transform_4, window_bounds = array<i64: 1, 512>}, {transform_indices = @transform_5, window_bounds = array<i64: 32, 512>}]} {
    %c0 = arith.constant 0 : index
    %c0_0 = arith.constant 0 : index
    %0 = vector.load %arg2[%c0, %c0_0] : memref<32x128xf32, #tpu.memory_space<vmem>>, vector<32x128xf32>
    %cst = arith.constant dense<0.000000e+00> : vector<32xf32>
    %1 = vector.multi_reduction <add>, %0, %cst [1] : vector<32x128xf32> to vector<32xf32>
    %2 = vector.shape_cast %1 : vector<32xf32> to vector<32x1xf32>
    %cst_1 = arith.constant 1.280000e+02 : f32
    %3 = vector.broadcast %cst_1 : f32 to vector<32x1xf32>
    %4 = arith.divf %2, %3 : vector<32x1xf32>
    %5 = vector.broadcast %4 : vector<32x1xf32> to vector<32x128xf32>
    %6 = arith.subf %0, %5 : vector<32x128xf32>
    %7 = arith.mulf %6, %6 : vector<32x128xf32>
    %cst_2 = arith.constant dense<0.000000e+00> : vector<32xf32>
    %8 = vector.multi_reduction <add>, %7, %cst_2 [1] : vector<32x128xf32> to vector<32xf32>
    %9 = vector.shape_cast %8 : vector<32xf32> to vector<32x1xf32>
    %cst_3 = arith.constant 1.280000e+02 : f32
    %10 = vector.broadcast %cst_3 : f32 to vector<32x1xf32>
    %11 = arith.divf %9, %10 : vector<32x1xf32>
    %cst_4 = arith.constant 9.99999974E-6 : f32
    %12 = vector.broadcast %cst_4 : f32 to vector<32x1xf32>
    %13 = arith.addf %11, %12 : vector<32x1xf32>
    %14 = math.rsqrt %13 : vector<32x1xf32>
    %15 = vector.broadcast %14 : vector<32x1xf32> to vector<32x128xf32>
    %16 = arith.mulf %6, %15 : vector<32x128xf32>
    %c0_5 = arith.constant 0 : index
    %c0_6 = arith.constant 0 : index
    %17 = vector.load %arg3[%c0_5, %c0_6] : memref<1x128xf32, #tpu.memory_space<vmem>>, vector<1x128xf32>
    %18 = vector.broadcast %17 : vector<1x128xf32> to vector<32x128xf32>
    %19 = arith.mulf %16, %18 : vector<32x128xf32>
    %c0_7 = arith.constant 0 : index
    %c0_8 = arith.constant 0 : index
    %20 = vector.load %arg4[%c0_7, %c0_8] : memref<1x128xf32, #tpu.memory_space<vmem>>, vector<1x128xf32>
    %21 = vector.broadcast %20 : vector<1x128xf32> to vector<32x128xf32>
    %22 = arith.addf %19, %21 : vector<32x128xf32>
    %23 = arith.truncf %22 : vector<32x128xf32> to vector<32x128xbf16>
    %c0_9 = arith.constant 0 : index
    %c0_10 = arith.constant 0 : index
    %24 = vector.load %arg5[%c0_9, %c0_10] : memref<128x512xbf16, #tpu.memory_space<vmem>>, vector<128x512xbf16>
    %cst_11 = arith.constant dense<0.000000e+00> : vector<32x512xf32>
    %25 = tpu.matmul %23, %24, %cst_11 {dimension_numbers = #tpu.dot_dimension_numbers<[1], [0], [0], [1], [0, 0, 1, 1], [], []>} : vector<32x128xbf16>, vector<128x512xbf16>, vector<32x512xf32> -> vector<32x512xf32>
    %c0_12 = arith.constant 0 : index
    %c0_13 = arith.constant 0 : index
    %26 = vector.load %arg6[%c0_12, %c0_13] : memref<1x512xf32, #tpu.memory_space<vmem>>, vector<1x512xf32>
    %27 = vector.broadcast %26 : vector<1x512xf32> to vector<32x512xf32>
    %28 = arith.addf %25, %27 : vector<32x512xf32>
    %cst_14 = arith.constant 5.000000e-01 : f32
    %29 = vector.broadcast %cst_14 : f32 to vector<32x512xf32>
    %30 = arith.mulf %29, %28 : vector<32x512xf32>
    %cst_15 = arith.constant 4.471500e-02 : f32
    %31 = vector.broadcast %cst_15 : f32 to vector<32x512xf32>
    %32 = arith.mulf %31, %28 : vector<32x512xf32>
    %33 = arith.mulf %32, %28 : vector<32x512xf32>
    %34 = arith.mulf %33, %28 : vector<32x512xf32>
    %35 = arith.addf %28, %34 : vector<32x512xf32>
    %cst_16 = arith.constant 0.797884583 : f32
    %36 = vector.broadcast %cst_16 : f32 to vector<32x512xf32>
    %37 = arith.mulf %36, %35 : vector<32x512xf32>
    %38 = math.tanh %37 : vector<32x512xf32>
    %cst_17 = arith.constant 1.000000e+00 : f32
    %39 = vector.broadcast %cst_17 : f32 to vector<32x512xf32>
    %40 = arith.addf %39, %38 : vector<32x512xf32>
    %41 = arith.mulf %30, %40 : vector<32x512xf32>
    %42 = arith.truncf %41 : vector<32x512xf32> to vector<32x512xbf16>
    %c0_18 = arith.constant 0 : index
    %c0_19 = arith.constant 0 : index
    %43 = vector.load %arg7[%c0_18, %c0_19] : memref<32x512xbf16, #tpu.memory_space<vmem>>, vector<32x512xbf16>
    tpu.vector_store %arg7[%c0_18, %c0_19], %42 {strides = array<i32>} : memref<32x512xbf16, #tpu.memory_space<vmem>>, vector<32x512xbf16>,
    return
  }
  func.func @transform_0(%arg0: i32, %arg1: i32) -> (i32, i32) {
    %c0_i32 = arith.constant 0 : i32
    %c0_i32_0 = arith.constant 0 : i32
    return %arg0, %c0_i32 : i32, i32
  }
  func.func @transform_1(%arg0: i32, %arg1: i32) -> (i32, i32) {
    %c0_i32 = arith.constant 0 : i32
    %c0_i32_0 = arith.constant 0 : i32
    %c0_i32_1 = arith.constant 0 : i32
    return %c0_i32, %c0_i32_0 : i32, i32
  }
  func.func @transform_2(%arg0: i32, %arg1: i32) -> (i32, i32) {
    %c0_i32 = arith.constant 0 : i32
    %c0_i32_0 = arith.constant 0 : i32
    %c0_i32_1 = arith.constant 0 : i32
    return %c0_i32, %c0_i32_0 : i32, i32
  }
  func.func @transform_3(%arg0: i32, %arg1: i32) -> (i32, i32) {
    %c0_i32 = arith.constant 0 : i32
    %c0_i32_0 = arith.constant 0 : i32
    return %c0_i32, %arg1 : i32, i32
  }
  func.func @transform_4(%arg0: i32, %arg1: i32) -> (i32, i32) {
    %c0_i32 = arith.constant 0 : i32
    %c0_i32_0 = arith.constant 0 : i32
    return %c0_i32, %arg1 : i32, i32
  }
  func.func @transform_5(%arg0: i32, %arg1: i32) -> (i32, i32) {
    %c0_i32 = arith.constant 0 : i32
    return %arg0, %arg1 : i32, i32
  }
}

module attributes {stable_mosaic.version = 11 : i64} {
  func.func @_mm_res_kernel(%arg0: i32, %arg1: i32, %arg2: i32, %arg3: memref<32x512xbf16, #tpu.memory_space<vmem>>, %arg4: memref<512x128xbf16, #tpu.memory_space<vmem>>, %arg5: memref<1x128xf32, #tpu.memory_space<vmem>>, %arg6: memref<32x128xf32, #tpu.memory_space<vmem>>, %arg7: memref<1x128xf32, #tpu.memory_space<vmem>>, %arg8: memref<1x128xf32, #tpu.memory_space<vmem>>, %arg9: memref<32x128xf32, #tpu.memory_space<vmem>>, %arg10: memref<32x128xf32, #tpu.memory_space<vmem>>) attributes {dimension_semantics = [#tpu.dimension_semantics<parallel>, #tpu.dimension_semantics<parallel>, #tpu.dimension_semantics<arbitrary>], iteration_bounds = array<i64: 1, 1, 1>, scalar_prefetch = 0 : i64, scratch_operands = 1 : i64, tpu.core_type = #tpu.core_type<tc>, window_params = [{transform_indices = @transform_0, window_bounds = array<i64: 32, 512>}, {transform_indices = @transform_1, window_bounds = array<i64: 512, 128>}, {transform_indices = @transform_2, window_bounds = array<i64: 1, 128>}, {transform_indices = @transform_3, window_bounds = array<i64: 32, 128>}, {transform_indices = @transform_4, window_bounds = array<i64: 1, 128>}, {transform_indices = @transform_5, window_bounds = array<i64: 1, 128>}, {transform_indices = @transform_6, window_bounds = array<i64: 32, 128>}]} {
    %c0_i32 = arith.constant 0 : i32
    %0 = arith.cmpi eq, %arg2, %c0_i32 : i32
    %1 = arith.extui %0 : i1 to i32
    %c0_i32_0 = arith.constant 0 : i32
    %2 = arith.cmpi ne, %1, %c0_i32_0 : i32
    scf.if %2 {
      %cst_10 = arith.constant 0.000000e+00 : f32
      %12 = vector.broadcast %cst_10 : f32 to vector<32x128xf32>
      %c0_11 = arith.constant 0 : index
      %c0_12 = arith.constant 0 : index
      %13 = vector.load %arg10[%c0_11, %c0_12] : memref<32x128xf32, #tpu.memory_space<vmem>>, vector<32x128xf32>
      tpu.vector_store %arg10[%c0_11, %c0_12], %12 {strides = array<i32>} : memref<32x128xf32, #tpu.memory_space<vmem>>, vector<32x128xf32>,
    } else {
    }
    %c0 = arith.constant 0 : index
    %c0_1 = arith.constant 0 : index
    %3 = vector.load %arg10[%c0, %c0_1] : memref<32x128xf32, #tpu.memory_space<vmem>>, vector<32x128xf32>
    %c0_2 = arith.constant 0 : index
    %c0_3 = arith.constant 0 : index
    %4 = vector.load %arg3[%c0_2, %c0_3] : memref<32x512xbf16, #tpu.memory_space<vmem>>, vector<32x512xbf16>
    %c0_4 = arith.constant 0 : index
    %c0_5 = arith.constant 0 : index
    %5 = vector.load %arg4[%c0_4, %c0_5] : memref<512x128xbf16, #tpu.memory_space<vmem>>, vector<512x128xbf16>
    %cst = arith.constant dense<0.000000e+00> : vector<32x128xf32>
    %6 = tpu.matmul %4, %5, %cst {dimension_numbers = #tpu.dot_dimension_numbers<[1], [0], [0], [1], [0, 0, 1, 1], [], []>} : vector<32x512xbf16>, vector<512x128xbf16>, vector<32x128xf32> -> vector<32x128xf32>
    %7 = arith.addf %3, %6 : vector<32x128xf32>
    %c0_6 = arith.constant 0 : index
    %c0_7 = arith.constant 0 : index
    %8 = vector.load %arg10[%c0_6, %c0_7] : memref<32x128xf32, #tpu.memory_space<vmem>>, vector<32x128xf32>
    tpu.vector_store %arg10[%c0_6, %c0_7], %7 {strides = array<i32>} : memref<32x128xf32, #tpu.memory_space<vmem>>, vector<32x128xf32>,
    %c0_i32_8 = arith.constant 0 : i32
    %9 = arith.cmpi eq, %arg2, %c0_i32_8 : i32
    %10 = arith.extui %9 : i1 to i32
    %c0_i32_9 = arith.constant 0 : i32
    %11 = arith.cmpi ne, %10, %c0_i32_9 : i32
    scf.if %11 {
      %c0_10 = arith.constant 0 : index
      %c0_11 = arith.constant 0 : index
      %12 = vector.load %arg6[%c0_10, %c0_11] : memref<32x128xf32, #tpu.memory_space<vmem>>, vector<32x128xf32>
      %c0_12 = arith.constant 0 : index
      %c0_13 = arith.constant 0 : index
      %13 = vector.load %arg10[%c0_12, %c0_13] : memref<32x128xf32, #tpu.memory_space<vmem>>, vector<32x128xf32>
      %c0_14 = arith.constant 0 : index
      %c0_15 = arith.constant 0 : index
      %14 = vector.load %arg5[%c0_14, %c0_15] : memref<1x128xf32, #tpu.memory_space<vmem>>, vector<1x128xf32>
      %15 = vector.broadcast %14 : vector<1x128xf32> to vector<32x128xf32>
      %16 = arith.addf %13, %15 : vector<32x128xf32>
      %cst_16 = arith.constant 5.000000e-01 : f32
      %17 = vector.broadcast %cst_16 : f32 to vector<32x128xf32>
      %18 = arith.mulf %17, %16 : vector<32x128xf32>
      %19 = arith.addf %12, %18 : vector<32x128xf32>
      %cst_17 = arith.constant dense<0.000000e+00> : vector<32xf32>
      %20 = vector.multi_reduction <add>, %19, %cst_17 [1] : vector<32x128xf32> to vector<32xf32>
      %21 = vector.shape_cast %20 : vector<32xf32> to vector<32x1xf32>
      %cst_18 = arith.constant 1.280000e+02 : f32
      %22 = vector.broadcast %cst_18 : f32 to vector<32x1xf32>
      %23 = arith.divf %21, %22 : vector<32x1xf32>
      %24 = vector.broadcast %23 : vector<32x1xf32> to vector<32x128xf32>
      %25 = arith.subf %19, %24 : vector<32x128xf32>
      %26 = arith.mulf %25, %25 : vector<32x128xf32>
      %cst_19 = arith.constant dense<0.000000e+00> : vector<32xf32>
      %27 = vector.multi_reduction <add>, %26, %cst_19 [1] : vector<32x128xf32> to vector<32xf32>
      %28 = vector.shape_cast %27 : vector<32xf32> to vector<32x1xf32>
      %cst_20 = arith.constant 1.280000e+02 : f32
      %29 = vector.broadcast %cst_20 : f32 to vector<32x1xf32>
      %30 = arith.divf %28, %29 : vector<32x1xf32>
      %cst_21 = arith.constant 9.99999974E-6 : f32
      %31 = vector.broadcast %cst_21 : f32 to vector<32x1xf32>
      %32 = arith.addf %30, %31 : vector<32x1xf32>
      %33 = math.rsqrt %32 : vector<32x1xf32>
      %34 = vector.broadcast %33 : vector<32x1xf32> to vector<32x128xf32>
      %35 = arith.mulf %25, %34 : vector<32x128xf32>
      %c0_22 = arith.constant 0 : index
      %c0_23 = arith.constant 0 : index
      %36 = vector.load %arg7[%c0_22, %c0_23] : memref<1x128xf32, #tpu.memory_space<vmem>>, vector<1x128xf32>
      %37 = vector.broadcast %36 : vector<1x128xf32> to vector<32x128xf32>
      %38 = arith.mulf %35, %37 : vector<32x128xf32>
      %c0_24 = arith.constant 0 : index
      %c0_25 = arith.constant 0 : index
      %39 = vector.load %arg8[%c0_24, %c0_25] : memref<1x128xf32, #tpu.memory_space<vmem>>, vector<1x128xf32>
      %40 = vector.broadcast %39 : vector<1x128xf32> to vector<32x128xf32>
      %41 = arith.addf %38, %40 : vector<32x128xf32>
      %c0_26 = arith.constant 0 : index
      %c0_27 = arith.constant 0 : index
      %42 = vector.load %arg9[%c0_26, %c0_27] : memref<32x128xf32, #tpu.memory_space<vmem>>, vector<32x128xf32>
      tpu.vector_store %arg9[%c0_26, %c0_27], %41 {strides = array<i32>} : memref<32x128xf32, #tpu.memory_space<vmem>>, vector<32x128xf32>,
    } else {
    }
    return
  }
  func.func @transform_0(%arg0: i32, %arg1: i32, %arg2: i32) -> (i32, i32) {
    %c0_i32 = arith.constant 0 : i32
    return %arg0, %arg2 : i32, i32
  }
  func.func @transform_1(%arg0: i32, %arg1: i32, %arg2: i32) -> (i32, i32) {
    %c0_i32 = arith.constant 0 : i32
    return %arg2, %arg1 : i32, i32
  }
  func.func @transform_2(%arg0: i32, %arg1: i32, %arg2: i32) -> (i32, i32) {
    %c0_i32 = arith.constant 0 : i32
    %c0_i32_0 = arith.constant 0 : i32
    return %c0_i32, %arg1 : i32, i32
  }
  func.func @transform_3(%arg0: i32, %arg1: i32, %arg2: i32) -> (i32, i32) {
    %c0_i32 = arith.constant 0 : i32
    return %arg0, %arg1 : i32, i32
  }
  func.func @transform_4(%arg0: i32, %arg1: i32, %arg2: i32) -> (i32, i32) {
    %c0_i32 = arith.constant 0 : i32
    %c0_i32_0 = arith.constant 0 : i32
    return %c0_i32, %arg1 : i32, i32
  }
  func.func @transform_5(%arg0: i32, %arg1: i32, %arg2: i32) -> (i32, i32) {
    %c0_i32 = arith.constant 0 : i32
    %c0_i32_0 = arith.constant 0 : i32
    return %c0_i32, %arg1 : i32, i32
  }
  func.func @transform_6(%arg0: i32, %arg1: i32, %arg2: i32) -> (i32, i32) {
    %c0_i32 = arith.constant 0 : i32
    return %arg0, %arg1 : i32, i32
  }
}

</mosaic_0001>

<bundles_post_ra>
// kernel: conformer_block.11
= control target key start
LH: loop header
LB: loop body
LE: loop exit
PB: predicated region body
PF: predicated region fallthrough
CT: control target
= control target key end

     0   :  { %s791_s1 = inlined_call_operand.vmem [shape: bf16[512,128], index: 1, kind: input, shape index: {}]   ;;  %s792_s0 = inlined_call_operand.vmem [shape: bf16[32,512], index: 0, kind: input, shape index: {}]   ;;  %s793_s2 = inlined_call_operand.vmem [shape: f32[1,128], index: 2, kind: input, shape index: {}]   ;;  %s794_s3 = inlined_call_operand.vmem [shape: f32[32,128], index: 3, kind: input, shape index: {}]   ;;  %s795_s4 = inlined_call_operand.vmem [shape: f32[32,128], index: 4, kind: output, shape index: {}]  }
   0x1   :  { %v575_v0 = vld [vmem:[%s791_s1 + $0x40] sm:$0xff]   ;;  %v579_v4 = vld [vmem:[%s791_s1 + $0x48] sm:$0xff]   ;;  %v583_v8 = vld [vmem:[%s791_s1 + $0x50] sm:$0xff]  }
   0x2   :  { %v576_v1 = vld [vmem:[%s791_s1 + $0xc0] sm:$0xff]   ;;  %519 = vmatprep.subr.bf16.mxu0 %v575_v0  ;;  %v580_v5 = vld [vmem:[%s791_s1 + $0xc8] sm:$0xff]   ;;  %v584_v9 = vld [vmem:[%s791_s1 + $0xd0] sm:$0xff]  }
   0x3   :  { %v577_v2 = vld [vmem:[%s791_s1] sm:$0xff]   ;;  %547 = vmatprep.subr.bf16.mxu1 %v576_v1  ;;  %v581_v6 = vld [vmem:[%s791_s1 + $0x8] sm:$0xff]   ;;  %v585_v10 = vld [vmem:[%s791_s1 + $0x10] sm:$0xff]  }
   0x4   :  { %v578_v3 = vld [vmem:[%s791_s1 + $0x80] sm:$0xff]   ;;  %520 = vmatpush3.bf16.msra.mxu0 %v577_v2  ;;  %v582_v7 = vld [vmem:[%s791_s1 + $0x88] sm:$0xff]   ;;  %v586_v11 = vld [vmem:[%s791_s1 + $0x90] sm:$0xff]  }
   0x5   :  { %548 = vmatpush3.bf16.msra.mxu1 %v578_v3  ;;  %521 = vmatprep.subr.bf16.mxu0 %v579_v4  ;;  %v587_v12 = vld [vmem:[%s791_s1 + $0x58] sm:$0xff]   ;;  %v591_v16 = vld [vmem:[%s791_s1 + $0x60] sm:$0xff]   ;;  %v595_v20 = vld [vmem:[%s791_s1 + $0x68] sm:$0xff]  }
   0x6   :  { %549 = vmatprep.subr.bf16.mxu1 %v580_v5  ;;  %v588_v13 = vld [vmem:[%s791_s1 + $0xd8] sm:$0xff]   ;;  %v592_v17 = vld [vmem:[%s791_s1 + $0xe0] sm:$0xff]   ;;  %v596_v21 = vld [vmem:[%s791_s1 + $0xe8] sm:$0xff]  }
   0x7   :  { %v589_v14 = vld [vmem:[%s791_s1 + $0x18] sm:$0xff]   ;;  %v593_v18 = vld [vmem:[%s791_s1 + $0x20] sm:$0xff]   ;;  %v597_v22 = vld [vmem:[%s791_s1 + $0x28] sm:$0xff]  }
   0x8   :  { %522 = vmatpush3.bf16.msra.mxu0 %v581_v6  ;;  %v590_v15 = vld [vmem:[%s791_s1 + $0x98] sm:$0xff]   ;;  %v594_v19 = vld [vmem:[%s791_s1 + $0xa0] sm:$0xff]   ;;  %v598_v23 = vld [vmem:[%s791_s1 + $0xa8] sm:$0xff]  }
   0x9   :  { %550 = vmatpush3.bf16.msra.mxu1 %v582_v7  ;;  %523 = vmatprep.subr.bf16.mxu0 %v583_v8  ;;  %v599_v24 = vld [vmem:[%s791_s1 + $0x70] sm:$0xff]   ;;  %v603_v28 = vld [vmem:[%s791_s1 + $0x78] sm:$0xff]   ;;  %v518_v49 = vld [vmem:[%s793_s2] ss:$0 sm:$0xff] }
   0xa   :  { %551 = vmatprep.subr.bf16.mxu1 %v584_v9  ;;  %v600_v25 = vld [vmem:[%s791_s1 + $0xf0] sm:$0xff]   ;;  %v604_v29 = vld [vmem:[%s791_s1 + $0xf8] sm:$0xff]   ;;  %v443_v56 = vld [vmem:[%s794_s3] sm:$0xff] }
   0xb   :  { %v601_v26 = vld [vmem:[%s791_s1 + $0x30] sm:$0xff]   ;;  %v605_v30 = vld [vmem:[%s791_s1 + $0x38] sm:$0xff]   ;;  %v444_v62 = vld [vmem:[%s794_s3 + $0x8] sm:$0xff] }
   0xc   :  { %524 = vmatpush3.bf16.msra.mxu0 %v585_v10  ;;  %v602_v27 = vld [vmem:[%s791_s1 + $0xb0] sm:$0xff]   ;;  %v606_v31 = vld [vmem:[%s791_s1 + $0xb8] sm:$0xff]  }
   0xd   :  { %552 = vmatpush3.bf16.msra.mxu1 %v586_v11  ;;  %525 = vmatprep.subr.bf16.mxu0 %v587_v12  ;;  %v607_v32 = vld [vmem:[%s792_s0] ss:$16 sps:$4 sm:$0xff]   ;;  %v609_v33 = vld [vmem:[%s792_s0 + $0x4] ss:$16 sps:$4 sm:$0xff]   ;;  %v610_v34 = vld [vmem:[%s792_s0 + $0x8] ss:$16 sps:$4 sm:$0xff]  }
   0xe   :  { %553 = vmatprep.subr.bf16.mxu1 %v588_v13  ;;  %v612_v35 = vld [vmem:[%s792_s0 + $0xc] ss:$16 sps:$4 sm:$0xff]   ;;  %366 = vmatprep.mubr.bf16.mxu0 %v609_v33  ;;  %v613_v36 = vld [vmem:[%s792_s0 + $0x24] ss:$16 sps:$4 sm:$0xff]   ;;  %v617_v38 = vld [vmem:[%s792_s0 + $0x20] ss:$16 sps:$4 sm:$0xff]  }
   0xf   :  { %415 = vmatprep.mubr.bf16.mxu1 %v612_v35  ;;  %v615_v37 = vld [vmem:[%s792_s0 + $0x2c] ss:$16 sps:$4 sm:$0xff]   ;;  %v618_v39 = vld [vmem:[%s792_s0 + $0x28] ss:$16 sps:$4 sm:$0xff]  }
  0x10   :  { %526 = vmatpush3.bf16.msra.mxu0 %v589_v14  ;;  %v445_v14 = vld [vmem:[%s794_s3 + $0x10] sm:$0xff] }
  0x11   :  { %554 = vmatpush3.bf16.msra.mxu1 %v590_v15  ;;  %527 = vmatprep.subr.bf16.mxu0 %v591_v16 }
  0x12   :  { %555 = vmatprep.subr.bf16.mxu1 %v592_v17  ;;  %v446_v17 = vld [vmem:[%s794_s3 + $0x18] sm:$0xff] }
  0x14   :  { %528 = vmatpush3.bf16.msra.mxu0 %v593_v18 }
  0x15   :  { %556 = vmatpush3.bf16.msra.mxu1 %v594_v19  ;;  %529 = vmatprep.subr.bf16.mxu0 %v595_v20 }
  0x16   :  { %557 = vmatprep.subr.bf16.mxu1 %v596_v21 }
  0x18   :  { %530 = vmatpush3.bf16.msra.mxu0 %v597_v22 }
  0x19   :  { %558 = vmatpush3.bf16.msra.mxu1 %v598_v23  ;;  %531 = vmatprep.subr.bf16.mxu0 %v599_v24 }
  0x1a   :  { %559 = vmatprep.subr.bf16.mxu1 %v600_v25 }
  0x1c   :  { %532 = vmatpush3.bf16.msra.mxu0 %v601_v26 }
  0x1d   :  { %560 = vmatpush3.bf16.msra.mxu1 %v602_v27  ;;  %533 = vmatprep.subr.bf16.mxu0 %v603_v28 }
  0x1e   :  { %561 = vmatprep.subr.bf16.mxu1 %v604_v29 }
  0x20   :  { %534 = vmatpush3.bf16.msra.mxu0 %v605_v30 }
  0x21   :  { %562 = vmatpush3.bf16.msra.mxu1 %v606_v31 }
  0x23   :  { %367 = vmatmul.mubr.bf16.vlgmr.msra.gmra.mrb[0].mxu0 %v607_v32 }
  0x24   :  { %416 = vmatmul.mubr.bf16.vlgmr.msra.gmra.mrb[0].mxu1 %v610_v34  ;;  %374 = vmatprep.mubr.bf16.mxu0 %v613_v36 }
  0x25   :  { %423 = vmatprep.mubr.bf16.mxu1 %v615_v37 }
  0x2b   :  { %375 = vmatmul.mubr.bf16.gmra.mrb[4].mxu0 %v617_v38 }
  0x2c   :  { %424 = vmatmul.mubr.bf16.gmra.mrb[4].mxu1 %v618_v39 }
  0xf6   :  { %v535_v40 = vpop.f32.mrb[0].mxu0 }
  0xf7   :  { %v563_v41 = vpop.f32.mrb[0].mxu1  ;;  %v536_v42 = vpop.f32.mrb[1].mxu0 }
  0xf8   :  { %v537_v43 = vadd.f32 %v536_v42, %v535_v40  ;;  %v564_v44 = vpop.f32.mrb[1].mxu1  ;;  %v538_v45 = vpop.f32.mrb[2].mxu0 }
  0xf9   :  { %v565_v46 = vadd.f32 %v564_v44, %v563_v41  ;;  %v566_v47 = vpop.f32.mrb[2].mxu1  ;;  %v539_v48 = vpop.f32.mrb[3].mxu0 }
  0xfa   :  { %v540_v50 = vadd.f32 %v539_v48, %v538_v45  ;;  %v567_v51 = vpop.f32.mrb[3].mxu1 }
  0xfb   :  { %v418_v52 = vadd.f32 %v565_v46, %v537_v43  ;;  %v568_v53 = vadd.f32 %v567_v51, %v566_v47 }
  0xfd   :  { %v458_v54 = vadd.f32 %v518_v49, %v418_v52  ;;  %v421_v55 = vadd.f32 %v568_v53, %v540_v50 }
  0xfe   :  { %v541_v57 = vpop.f32.mrb[4].mxu0 }
  0xff   :  { %v462_v58 = vmul.f32 0.5, %v458_v54  ;;  %v459_v59 = vadd.f32 %v518_v49, %v421_v55  ;;  %v569_v60 = vpop.f32.mrb[4].mxu1  ;;  %v542_v61 = vpop.f32.mrb[5].mxu0 }
 0x100   :  { %v543_v63 = vadd.f32 %v542_v61, %v541_v57  ;;  %v570_v0 = vpop.f32.mrb[5].mxu1  ;;  %v544_v1 = vpop.f32.mrb[6].mxu0 }
 0x101   :  { %v466_v2 = vadd.f32 %v462_v58, %v443_v56  ;;  %v463_v3 = vmul.f32 0.5, %v459_v59  ;;  %v571_v4 = vadd.f32 %v570_v0, %v569_v60  ;;  %v572_v5 = vpop.f32.mrb[6].mxu1  ;;  %v545_v6 = vpop.f32.mrb[7].mxu0 }
 0x102   :  { %v546_v7 = vadd.f32 %v545_v6, %v544_v1  ;;  %v573_v8 = vpop.f32.mrb[7].mxu1 }
 0x103   :  { %470 = vst [vmem:[%s795_s4] sm:$0xff] %v466_v2  ;;  %v467_v9 = vadd.f32 %v463_v3, %v444_v62  ;;  %v426_v10 = vadd.f32 %v571_v4, %v543_v63  ;;  %v574_v11 = vadd.f32 %v573_v8, %v572_v5 }
 0x105   :  { %471 = vst [vmem:[%s795_s4 + $0x8] sm:$0xff] %v467_v9  ;;  %v460_v12 = vadd.f32 %v518_v49, %v426_v10  ;;  %v429_v13 = vadd.f32 %v574_v11, %v546_v7 }
 0x107   :  { %v464_v15 = vmul.f32 0.5, %v460_v12  ;;  %v461_v16 = vadd.f32 %v518_v49, %v429_v13 }
 0x109   :  { %v468_v18 = vadd.f32 %v464_v15, %v445_v14  ;;  %v465_v19 = vmul.f32 0.5, %v461_v16 }
 0x10b   :  { %472 = vst [vmem:[%s795_s4 + $0x10] sm:$0xff] %v468_v18  ;;  %v469_v20 = vadd.f32 %v465_v19, %v446_v17 }
 0x10d   :  { %473 = vst [vmem:[%s795_s4 + $0x18] sm:$0xff] %v469_v20 }

// kernel: conformer_block.10
= control target key start
LH: loop header
LB: loop body
LE: loop exit
PB: predicated region body
PF: predicated region fallthrough
CT: control target
= control target key end

     0   :  { %10 = vsyncpa [#allocation3], 0  ;;  %s1181_s0 = inlined_call_operand.vmem [shape: f32[32,128], index: 0, kind: input, shape index: {}]   ;;  %s1182_s1 = inlined_call_operand.hbm [shape: f32[1,128], index: 1, kind: input, shape index: {}]   ;;  %s1183_s2 = inlined_call_operand.hbm [shape: f32[1,128], index: 2, kind: input, shape index: {}]   ;;  %s1184_s3 = inlined_call_operand.hbm [shape: bf16[128,512], index: 3, kind: input, shape index: {}]   ;;  %s1185_s4 = inlined_call_operand.hbm [shape: f32[1,512], index: 4, kind: input, shape index: {}]   ;;  %s1186_s5 = inlined_call_operand.vmem [shape: bf16[32,512], index: 5, kind: output, shape index: {}]  }
   0x1   :  { %11 = vsyncpa [#allocation5], 0 }
   0x2   :  { %12 = vsyncpa [#allocation8], 0  ;;  %s909_s18 = smov [#allocation4]   ;;  %s910_s20 = smov [#allocation2]  }
   0x3   :  { %s31_s19 = sshll.u32 %s909_s18, 4  ;;  %s21_s21 = sshll.u32 %s910_s20, 4  ;;  %s32_s19 = int_to_ptr.vmem [resolvable:$true] %s31_s19  ;;  %s22_s21 = int_to_ptr.vmem [resolvable:$true] %s21_s21 }
   0x4   :  { %s815_s24 = scalar_lea.hbm %s1183_s2, 16 }
   0x5   :  { %p816_p0 = scmp.ne.s32.totalorder %s1183_s2, %s815_s24  ;;  %p819_p1 = scmp.lt.u32.totalorder %s815_s24, %s1183_s2 }
   0x7   :  { %p821_p2 = pnand %p819_p1, %p816_p0 }
   0x9   :  { %824 = shalt.err (!%p821_p2)
}
   0xa   :  { %s825_s29 = scalar_lea.vmem %s32_s19, 16  ;;  %s829_s30 = scalar_lea.vmem %s32_s19, 32 }
   0xb   :  { %p826_p3 = scmp.ne.s32.totalorder %s32_s19, %s825_s29  ;;  %p830_p4 = scmp.lt.s32.totalorder %s32_s19, %s32_s19 }
   0xc   :  { %p831_p5 = scmp.lt.s32.totalorder %s829_s30, %s825_s29 }
   0xe   :  { %p832_p6 = por %p831_p5, %p830_p4 }
  0x10   :  { %p833_p7 = pnand %p832_p6, %p826_p3 }
  0x12   :  { %836 = shalt.err (!%p833_p7)
}
  0x13   :  { %34 = dma.hbm_to_vmem [thread:$0]  %s1183_s2, 16, %s32_s19, [#allocation5]  }
  0x14   :  { %s837_s10 = scalar_lea.hbm %s1182_s1, 16 }
  0x15   :  { %p838_p8 = scmp.ne.s32.totalorder %s1182_s1, %s837_s10  ;;  %p841_p9 = scmp.lt.u32.totalorder %s837_s10, %s1182_s1 }
  0x17   :  { %p843_p10 = pnand %p841_p9, %p838_p8 }
  0x19   :  { %846 = shalt.err (!%p843_p10)
}
  0x1a   :  { %s847_s15 = scalar_lea.vmem %s22_s21, 16  ;;  %s851_s16 = scalar_lea.vmem %s22_s21, 32 }
  0x1b   :  { %p848_p11 = scmp.ne.s32.totalorder %s22_s21, %s847_s15  ;;  %p852_p12 = scmp.lt.s32.totalorder %s22_s21, %s22_s21 }
  0x1c   :  { %p853_p13 = scmp.lt.s32.totalorder %s851_s16, %s847_s15 }
  0x1e   :  { %p854_p0 = por %p853_p13, %p852_p12 }
  0x20   :  { %p855_p1 = pnand %p854_p0, %p848_p11 }
  0x22   :  { %858 = shalt.err (!%p855_p1)
}
  0x23   :  { %24 = dma.hbm_to_vmem [thread:$0]  %s1182_s1, 16, %s22_s21, [#allocation3]  }
  0x24   :  { %s911_s18 = smov [#allocation6]   ;;  %s859_s23 = scalar_lea.hbm %s1184_s3, 4096 }
  0x25   :  { %s40_s19 = sshll.u32 %s911_s18, 4  ;;  %p860_p2 = scmp.ne.s32.totalorder %s1184_s3, %s859_s23  ;;  %s41_s19 = int_to_ptr.vmem [resolvable:$true] %s40_s19 }
  0x26   :  { %p863_p3 = scmp.lt.u32.totalorder %s859_s23, %s1184_s3 }
  0x28   :  { %p865_p4 = pnand %p863_p3, %p860_p2 }
  0x2a   :  { %868 = shalt.err (!%p865_p4)
}
  0x2b   :  { %s869_s28 = scalar_lea.vmem %s41_s19, 4096  ;;  %p874_p6 = scmp.lt.s32.totalorder %s41_s19, %s41_s19 }
  0x2c   :  { %p870_p5 = scmp.ne.s32.totalorder %s41_s19, %s869_s28  ;;  %p875_p7 = scmp.lt.s32.totalorder %s869_s28, %s869_s28 }
  0x2e   :  { %p876_p8 = por %p875_p7, %p874_p6 }
  0x30   :  { %p877_p9 = pnand %p876_p8, %p870_p5 }
  0x32   :  { %880 = shalt.err (!%p877_p9)
}
  0x33   :  { %s912_s1 = smov 256   ;;  %s913_s21 = smov 16  }
  0x34   :  { %46 = dma.hbm_to_vmem [thread:$0]  %s1184_s3, 4096, %s41_s19, [#allocation5], %s912_s1, %s912_s1, %s913_s21  }
  0x35   :  { %s914_s6 = smov [#allocation7]   ;;  %s881_s10 = scalar_lea.hbm %s1185_s4, 64 }
  0x36   :  { %s53_s7 = sshll.u32 %s914_s6, 4  ;;  %p882_p10 = scmp.ne.s32.totalorder %s1185_s4, %s881_s10  ;;  %s54_s7 = int_to_ptr.vmem [resolvable:$true] %s53_s7 }
  0x37   :  { %p885_p11 = scmp.lt.u32.totalorder %s881_s10, %s1185_s4 }
  0x39   :  { %p887_p12 = pnand %p885_p11, %p882_p10 }
  0x3b   :  { %890 = shalt.err (!%p887_p12)
}
  0x3c   :  { %s891_s15 = scalar_lea.vmem %s54_s7, 64  ;;  %p896_p0 = scmp.lt.s32.totalorder %s54_s7, %s54_s7 }
  0x3d   :  { %p892_p13 = scmp.ne.s32.totalorder %s54_s7, %s891_s15  ;;  %p897_p1 = scmp.lt.s32.totalorder %s891_s15, %s891_s15 }
  0x3f   :  { %p898_p2 = por %p897_p1, %p896_p0 }
  0x41   :  { %p899_p3 = pnand %p898_p2, %p892_p13 }
  0x43   :  { %902 = shalt.err (!%p899_p3)
}
  0x44   :  { %56 = dma.hbm_to_vmem [thread:$0]  %s1185_s4, 64, %s54_s7, [#allocation8]  }
  0x45   :  { %903 = dma.done.wait [#allocation3], 16  }
  0x46   :  { %904 = vsyncadd [#allocation3], 4294967280 }
  0x47   :  { %905 = dma.done.wait [#allocation5], 4112  }
  0x48   :  { %906 = vsyncadd [#allocation5], 4294963184 }
  0x49   :  { %907 = dma.done.wait [#allocation8], 64  }
  0x4a   :  { %908 = vsyncadd [#allocation8], 4294967232  ;;  %v70_v0 = vld [vmem:[%s1181_s0] sm:$0xff]  ;;  %v72_v1 = vld [vmem:[%s1181_s0 + $0x10] sm:$0xff]  ;;  %v915_v50 = vmov 0  }
  0x4b   :  { %v71_v2 = vld [vmem:[%s1181_s0 + $0x8] sm:$0xff]  ;;  %74 = vadd.xlane.f32.xlu0 %v70_v0  ;;  %78 = vadd.xlane.f32.xlu1 %v72_v1  ;;  %v73_v3 = vld [vmem:[%s1181_s0 + $0x18] sm:$0xff]  ;;  %v729_v5 = vld [vmem:[#allocation6 + $0xc] ss:$16 sps:$4 sm:$0xff]  }
  0x4c   :  { %v727_v4 = vld [vmem:[#allocation6 + $0x4] ss:$16 sps:$4 sm:$0xff]   ;;  %v731_v6 = vld [vmem:[#allocation6] ss:$16 sps:$4 sm:$0xff]   ;;  %v732_v7 = vld [vmem:[#allocation6 + $0x8] ss:$16 sps:$4 sm:$0xff]   ;;  %410 = vmatprep.subr.bf16.mxu1 %v729_v5  ;;  %389 = vmatprep.mubr.bf16.mxu0 %v915_v50 }
  0x4d   :  { %v733_v8 = vld [vmem:[#allocation6 + $0x24] ss:$16 sps:$4 sm:$0xff]   ;;  %v735_v9 = vld [vmem:[#allocation6 + $0x2c] ss:$16 sps:$4 sm:$0xff]   ;;  %357 = vmatprep.subr.bf16.mxu0 %v727_v4  ;;  %411 = vmatpush1.bf16.msra.mxu1 %v732_v7  ;;  %v737_v26 = vld [vmem:[#allocation6 + $0x20] ss:$16 sps:$4 sm:$0xff]  }
  0x4e   :  { %358 = vmatpush1.bf16.msra.mxu0 %v731_v6  ;;  %412 = vmatprep.subr.bf16.mxu1 %v735_v9  ;;  %v738_v27 = vld [vmem:[#allocation6 + $0x28] ss:$16 sps:$4 sm:$0xff]   ;;  %v739_v28 = vld [vmem:[#allocation6 + $0x44] ss:$16 sps:$4 sm:$0xff]   ;;  %v741_v29 = vld [vmem:[#allocation6 + $0x4c] ss:$16 sps:$4 sm:$0xff]  }
  0x4f   :  { %76 = vadd.xlane.f32.xlu0 %v71_v2  ;;  %80 = vadd.xlane.f32.xlu1 %v73_v3  ;;  %v743_v30 = vld [vmem:[#allocation6 + $0x40] ss:$16 sps:$4 sm:$0xff]   ;;  %v744_v31 = vld [vmem:[#allocation6 + $0x48] ss:$16 sps:$4 sm:$0xff]   ;;  %v745_v32 = vld [vmem:[#allocation6 + $0x64] ss:$16 sps:$4 sm:$0xff]  }
  0x50   :  { %359 = vmatprep.subr.bf16.mxu0 %v733_v8  ;;  %v747_v33 = vld [vmem:[#allocation6 + $0x6c] ss:$16 sps:$4 sm:$0xff]   ;;  %v749_v34 = vld [vmem:[#allocation6 + $0x60] ss:$16 sps:$4 sm:$0xff]   ;;  %v750_v35 = vld [vmem:[#allocation6 + $0x68] ss:$16 sps:$4 sm:$0xff]   ;;  %442 = vmatprep.mubr.bf16.mxu1 %v915_v50 }
  0x51   :  { %413 = vmatpush1.bf16.msra.mxu1 %v738_v27  ;;  %v751_v36 = vld [vmem:[#allocation6 + $0x84] ss:$16 sps:$4 sm:$0xff]   ;;  %v753_v37 = vld [vmem:[#allocation6 + $0x8c] ss:$16 sps:$4 sm:$0xff]   ;;  %v755_v38 = vld [vmem:[#allocation6 + $0x80] ss:$16 sps:$4 sm:$0xff]  }
  0x52   :  { %360 = vmatpush1.bf16.msra.mxu0 %v737_v26  ;;  %414 = vmatprep.subr.bf16.mxu1 %v741_v29  ;;  %v756_v39 = vld [vmem:[#allocation6 + $0x88] ss:$16 sps:$4 sm:$0xff]   ;;  %v757_v40 = vld [vmem:[#allocation6 + $0xa4] ss:$16 sps:$4 sm:$0xff]   ;;  %v759_v41 = vld [vmem:[#allocation6 + $0xac] ss:$16 sps:$4 sm:$0xff]  }
  0x53   :  { %361 = vmatprep.subr.bf16.mxu0 %v739_v28  ;;  %v761_v42 = vld [vmem:[#allocation6 + $0xa0] ss:$16 sps:$4 sm:$0xff]   ;;  %v762_v43 = vld [vmem:[#allocation6 + $0xa8] ss:$16 sps:$4 sm:$0xff]   ;;  %v763_v44 = vld [vmem:[#allocation6 + $0xc4] ss:$16 sps:$4 sm:$0xff]  }
  0x54   :  { %v765_v45 = vld [vmem:[#allocation6 + $0xcc] ss:$16 sps:$4 sm:$0xff]   ;;  %v767_v46 = vld [vmem:[#allocation6 + $0xc0] ss:$16 sps:$4 sm:$0xff]   ;;  %v768_v47 = vld [vmem:[#allocation6 + $0xc8] ss:$16 sps:$4 sm:$0xff]  }
  0x55   :  { %415 = vmatpush1.bf16.msra.mxu1 %v744_v31  ;;  %v769_v48 = vld [vmem:[#allocation6 + $0xe4] ss:$16 sps:$4 sm:$0xff]   ;;  %v771_v49 = vld [vmem:[#allocation6 + $0xec] ss:$16 sps:$4 sm:$0xff]   ;;  %v773_v51 = vld [vmem:[#allocation6 + $0xe0] ss:$16 sps:$4 sm:$0xff]  }
  0x56   :  { %362 = vmatpush1.bf16.msra.mxu0 %v743_v30  ;;  %416 = vmatprep.subr.bf16.mxu1 %v747_v33  ;;  %v774_v52 = vld [vmem:[#allocation6 + $0xe8] ss:$16 sps:$4 sm:$0xff]   ;;  %v671_v8 = vld [vmem:[#allocation4] ss:$0 sm:$0xff]  ;;  %v175_v27 = vld [vmem:[#allocation7] sm:$0xf] }
  0x57   :  { %363 = vmatprep.subr.bf16.mxu0 %v745_v32 }
  0x59   :  { %417 = vmatpush1.bf16.msra.mxu1 %v750_v35 }
  0x5a   :  { %364 = vmatpush1.bf16.msra.mxu0 %v749_v34  ;;  %418 = vmatprep.subr.bf16.mxu1 %v753_v37 }
  0x5b   :  { %365 = vmatprep.subr.bf16.mxu0 %v751_v36 }
  0x5d   :  { %419 = vmatpush1.bf16.msra.mxu1 %v756_v39 }
  0x5e   :  { %366 = vmatpush1.bf16.msra.mxu0 %v755_v38  ;;  %420 = vmatprep.subr.bf16.mxu1 %v759_v41 }
  0x5f   :  { %367 = vmatprep.subr.bf16.mxu0 %v757_v40 }
  0x61   :  { %421 = vmatpush1.bf16.msra.mxu1 %v762_v43 }
  0x62   :  { %368 = vmatpush1.bf16.msra.mxu0 %v761_v42  ;;  %422 = vmatprep.subr.bf16.mxu1 %v765_v45 }
  0x63   :  { %369 = vmatprep.subr.bf16.mxu0 %v763_v44 }
  0x65   :  { %423 = vmatpush1.bf16.msra.mxu1 %v768_v47 }
  0x66   :  { %370 = vmatpush1.bf16.msra.mxu0 %v767_v46  ;;  %424 = vmatprep.subr.bf16.mxu1 %v771_v49 }
  0x67   :  { %371 = vmatprep.subr.bf16.mxu0 %v769_v48 }
  0x69   :  { %425 = vmatpush1.bf16.msra.mxu1 %v774_v52 }
  0x6a   :  { %372 = vmatpush1.bf16.msra.mxu0 %v773_v51 }
  0xd8   :  { %v75_v10 = vpop.xlane.xlu0 %74  ;;  %v79_v11 = vpop.xlane.xlu1 %78 }
  0xd9   :  { %v83_v12 = vmul.f32 0.0078125, %v75_v10  ;;  %v85_v13 = vmul.f32 0.0078125, %v79_v11 }
  0xdb   :  { %v1006_v14 = vsub.f32 %v70_v0, %v83_v12  ;;  %v1008_v15 = vsub.f32 %v72_v1, %v85_v13 }
  0xdc   :  { %v77_v16 = vpop.xlane.xlu0 %76  ;;  %v81_v17 = vpop.xlane.xlu1 %80 }
  0xdd   :  { %v84_v18 = vmul.f32 0.0078125, %v77_v16  ;;  %v91_v19 = vmul.f32 %v1006_v14, %v1006_v14  ;;  %v86_v20 = vmul.f32 0.0078125, %v81_v17  ;;  %v93_v23 = vmul.f32 %v1008_v15, %v1008_v15 }
  0xdf   :  { %v1012_v21 = vsub.f32 %v71_v2, %v84_v18  ;;  %95 = vadd.xlane.f32.xlu0 %v91_v19  ;;  %v1014_v22 = vsub.f32 %v73_v3, %v86_v20  ;;  %v670_v3 = vld [vmem:[#allocation2] ss:$0 sm:$0xff] }
  0xe1   :  { %v92_v24 = vmul.f32 %v1012_v21, %v1012_v21  ;;  %v94_v25 = vmul.f32 %v1014_v22, %v1014_v22 }
  0xe3   :  { %99 = vadd.xlane.f32.xlu0 %v93_v23  ;;  %97 = vadd.xlane.f32.xlu1 %v92_v24  ;;  %v177_v23 = vlaneseq }
  0xe5   :  { %v178_v24 = vshrl.u32 %v177_v23, 7 }
  0xe7   :  { %101 = vadd.xlane.f32.xlu1 %v94_v25  ;;  %v179_v25 = vsub.s32 0, %v178_v24  ;;  %v187_v26 = vsub.s32 2, %v178_v24  ;;  %v191_v28 = vsub.s32 3, %v178_v24 }
  0xe9   :  { %v1028_v29 = vrot.slane %v175_v27, %v187_v26  ;;  %v1032_v31 = vrot.slane %v175_v27, %v191_v28 }
 0x16c   :  { %v96_v53 = vpop.xlane.xlu0 %95 }
 0x16d   :  { %v103_v54 = vmul.f32 0.0078125, %v96_v53 }
 0x16f   :  { %v107_v55 = vadd.f32 1e-05, %v103_v54 }
 0x170   :  { %v98_v56 = vpop.xlane.xlu1 %97  ;;  %v100_v57 = vpop.xlane.xlu0 %99 }
 0x171   :  { %775 = vrsqrt.f32 %v107_v55  ;;  %v104_v58 = vmul.f32 0.0078125, %v98_v56  ;;  %v105_v59 = vmul.f32 0.0078125, %v100_v57 }
 0x173   :  { %v108_v60 = vadd.f32 1e-05, %v104_v58  ;;  %v109_v61 = vadd.f32 1e-05, %v105_v59 }
 0x174   :  { %v102_v62 = vpop.xlane.xlu1 %101 }
 0x175   :  { %777 = vrsqrt.f32 %v108_v60  ;;  %v106_v63 = vmul.f32 0.0078125, %v102_v62 }
 0x176   :  { %779 = vrsqrt.f32 %v109_v61 }
 0x177   :  { %v110_v0 = vadd.f32 1e-05, %v106_v63 }
 0x179   :  { %781 = vrsqrt.f32 %v110_v0 }
 0x17b   :  { %v776_v1 = vpop.eup %775 }
 0x17c   :  { %v115_v2 = vmul.f32 %v776_v1, %v1006_v14 }
 0x17e   :  { %v126_v6 = vmul.f32 %v670_v3, %v115_v2 }
 0x17f   :  { %v778_v4 = vpop.eup %777 }
 0x180   :  { %v116_v5 = vmul.f32 %v778_v4, %v1012_v21  ;;  %v780_v7 = vpop.eup %779  ;;  %v137_v11 = vadd.f32 %v671_v8, %v126_v6 }
 0x181   :  { %v117_v13 = vmul.f32 %v780_v7, %v1008_v15  ;;  %v183_v15 = vsub.s32 1, %v178_v24 }
 0x182   :  { %v127_v9 = vmul.f32 %v670_v3, %v116_v5 }
 0x183   :  { %v782_v10 = vpop.eup %781  ;;  %v128_v14 = vmul.f32 %v670_v3, %v117_v13  ;;  %v1030_v30 = vrot.slane %v175_v27, %v183_v15 }
 0x184   :  { %v138_v12 = vadd.f32 %v671_v8, %v127_v9  ;;  %v118_v16 = vmul.f32 %v782_v10, %v1014_v22  ;;  %v1026_v22 = vrot.slane %v175_v27, %v179_v25 }
 0x185   :  { %v139_v20 = vadd.f32 %v671_v8, %v128_v14 }
 0x186   :  { %v141_v17 = vpack.c.bf16 %v138_v12, %v137_v11  ;;  %v129_v18 = vmul.f32 %v670_v3, %v118_v16 }
 0x188   :  { %390 = vmatmul.mubr.bf16.vlgmr.msra.gmra.mrb[0].mxu0 %v141_v17  ;;  %443 = vmatmul.mubr.bf16.vlgmr.msra.gmra.mrb[0].mxu1 %v141_v17  ;;  %v140_v19 = vadd.f32 %v671_v8, %v129_v18 }
 0x189   :  { %399 = vmatprep.mubr.bf16.mxu0 %v915_v50  ;;  %452 = vmatprep.mubr.bf16.mxu1 %v915_v50 }
 0x18a   :  { %v142_v21 = vpack.c.bf16 %v140_v19, %v139_v20 }
 0x190   :  { %400 = vmatmul.mubr.bf16.gmra.mrb[4].mxu0 %v142_v21  ;;  %453 = vmatmul.mubr.bf16.gmra.mrb[4].mxu1 %v142_v21 }
 0x25b   :  { %v391_v32 = vpop.f32.mrb[0].mxu0  ;;  %v444_v33 = vpop.f32.mrb[0].mxu1 }
 0x25c   :  { %v1035_v34 = vadd.f32 %v391_v32, %v1026_v22  ;;  %v1038_v35 = vadd.f32 %v444_v33, %v1028_v29  ;;  %v393_v36 = vpop.f32.mrb[1].mxu0  ;;  %v446_v37 = vpop.f32.mrb[1].mxu1 }
 0x25d   :  { %v1041_v38 = vadd.f32 %v393_v36, %v1030_v30  ;;  %v1044_v39 = vadd.f32 %v446_v37, %v1032_v31  ;;  %v395_v40 = vpop.f32.mrb[2].mxu0  ;;  %v448_v41 = vpop.f32.mrb[2].mxu1 }
 0x25e   :  { %v479_v42 = vmul.f32 0.044715, %v1035_v34  ;;  %v481_v43 = vmul.f32 0.044715, %v1038_v35  ;;  %v1053_v48 = vadd.f32 %v395_v40, %v1026_v22  ;;  %v1056_v49 = vadd.f32 %v448_v41, %v1028_v29  ;;  %v397_v50 = vpop.f32.mrb[3].mxu0  ;;  %v450_v51 = vpop.f32.mrb[3].mxu1 }
 0x25f   :  { %v480_v44 = vmul.f32 0.044715, %v1041_v38  ;;  %v482_v45 = vmul.f32 0.044715, %v1044_v39  ;;  %v1061_v54 = vadd.f32 %v397_v50, %v1030_v30  ;;  %v1073_v2 = vadd.f32 %v450_v51, %v1032_v31 }
 0x260   :  { %v495_v46 = vmul.f32 %v479_v42, %v1035_v34  ;;  %v497_v47 = vmul.f32 %v481_v43, %v1038_v35  ;;  %v483_v57 = vmul.f32 0.044715, %v1053_v48  ;;  %v485_v60 = vmul.f32 0.044715, %v1056_v49 }
 0x261   :  { %v496_v52 = vmul.f32 %v480_v44, %v1041_v38  ;;  %v498_v53 = vmul.f32 %v482_v45, %v1044_v39  ;;  %v484_v8 = vmul.f32 0.044715, %v1061_v54  ;;  %v486_v23 = vmul.f32 0.044715, %v1073_v2 }
 0x262   :  { %v511_v55 = vmul.f32 %v495_v46, %v1035_v34  ;;  %v513_v56 = vmul.f32 %v497_v47, %v1038_v35  ;;  %v499_v1 = vmul.f32 %v483_v57, %v1053_v48  ;;  %v501_v7 = vmul.f32 %v485_v60, %v1056_v49 }
 0x263   :  { %v512_v58 = vmul.f32 %v496_v52, %v1041_v38  ;;  %v514_v59 = vmul.f32 %v498_v53, %v1044_v39  ;;  %v401_v61 = vpop.f32.mrb[4].mxu0  ;;  %v454_v62 = vpop.f32.mrb[4].mxu1  ;;  %v500_v19 = vmul.f32 %v484_v8, %v1061_v54  ;;  %v502_v28 = vmul.f32 %v486_v23, %v1073_v2 }
 0x264   :  { %v527_v63 = vadd.f32 %v511_v55, %v1035_v34  ;;  %v529_v0 = vadd.f32 %v513_v56, %v1038_v35  ;;  %v403_v3 = vpop.f32.mrb[5].mxu0  ;;  %v456_v4 = vpop.f32.mrb[5].mxu1  ;;  %v515_v13 = vmul.f32 %v499_v1, %v1053_v48  ;;  %v517_v14 = vmul.f32 %v501_v7, %v1056_v49 }
 0x265   :  { %v528_v5 = vadd.f32 %v512_v58, %v1041_v38  ;;  %v530_v6 = vadd.f32 %v514_v59, %v1044_v39  ;;  %v405_v9 = vpop.f32.mrb[6].mxu0  ;;  %v1079_v10 = vpop.f32.mrb[6].mxu1  ;;  %v1091_v24 = vadd.f32 %v401_v61, %v1026_v22  ;;  %v516_v26 = vmul.f32 %v500_v19, %v1061_v54 }
 0x266   :  { %v543_v11 = vmul.f32 0.7978846, %v527_v63  ;;  %v545_v12 = vmul.f32 0.7978846, %v529_v0  ;;  %v1082_v16 = vpop.f32.mrb[7].mxu0  ;;  %v1086_v20 = vpop.f32.mrb[7].mxu1  ;;  %v531_v21 = vadd.f32 %v515_v13, %v1053_v48  ;;  %v533_v25 = vadd.f32 %v517_v14, %v1056_v49 }
 0x267   :  { %v544_v17 = vmul.f32 0.7978846, %v528_v5  ;;  %v546_v18 = vmul.f32 0.7978846, %v530_v6  ;;  %v1096_v27 = vadd.f32 %v454_v62, %v1028_v29  ;;  %v532_v33 = vadd.f32 %v516_v26, %v1061_v54 }
 0x268   :  { %783 = vtanh.f32 %v543_v11  ;;  %v547_v15 = vmul.f32 0.7978846, %v531_v21  ;;  %v549_v32 = vmul.f32 0.7978846, %v533_v25  ;;  %v487_v36 = vmul.f32 0.044715, %v1091_v24 }
 0x269   :  { %785 = vtanh.f32 %v545_v12  ;;  %v463_v37 = vmul.f32 0.5, %v1035_v34  ;;  %v518_v40 = vmul.f32 %v502_v28, %v1073_v2  ;;  %v489_v41 = vmul.f32 0.044715, %v1096_v27 }
 0x26a   :  { %787 = vtanh.f32 %v544_v17  ;;  %v548_v42 = vmul.f32 0.7978846, %v532_v33  ;;  %v503_v43 = vmul.f32 %v487_v36, %v1091_v24  ;;  %v1106_v44 = vadd.f32 %v403_v3, %v1030_v30 }
 0x26b   :  { %789 = vtanh.f32 %v546_v18  ;;  %v534_v45 = vadd.f32 %v518_v40, %v1073_v2  ;;  %v505_v46 = vmul.f32 %v489_v41, %v1096_v27  ;;  %v1111_v47 = vadd.f32 %v456_v4, %v1032_v31 }
 0x26c   :  { %791 = vtanh.f32 %v547_v15  ;;  %v1114_v34 = vadd.f32 %v405_v9, %v1026_v22  ;;  %v465_v50 = vmul.f32 0.5, %v1038_v35  ;;  %v519_v51 = vmul.f32 %v503_v43, %v1091_v24 }
 0x26d   :  { %793 = vtanh.f32 %v549_v32  ;;  %v488_v52 = vmul.f32 0.044715, %v1106_v44  ;;  %v464_v53 = vmul.f32 0.5, %v1041_v38  ;;  %v550_v55 = vmul.f32 0.7978846, %v534_v45 }
 0x26e   :  { %795 = vtanh.f32 %v548_v42  ;;  %v521_v56 = vmul.f32 %v505_v46, %v1096_v27  ;;  %v490_v57 = vmul.f32 0.044715, %v1111_v47  ;;  %v466_v58 = vmul.f32 0.5, %v1044_v39 }
 0x26f   :  { %v535_v59 = vadd.f32 %v519_v51, %v1091_v24  ;;  %v504_v22 = vmul.f32 %v488_v52, %v1106_v44  ;;  %v491_v35 = vmul.f32 0.044715, %v1114_v34  ;;  %v467_v61 = vmul.f32 0.5, %v1053_v48 }
 0x270   :  { %797 = vtanh.f32 %v550_v55  ;;  %v537_v62 = vadd.f32 %v521_v56, %v1096_v27  ;;  %v506_v38 = vmul.f32 %v490_v57, %v1111_v47  ;;  %v1134_v48 = vadd.f32 %v1079_v10, %v1028_v29 }
 0x271   :  { %v551_v1 = vmul.f32 0.7978846, %v535_v59  ;;  %v520_v3 = vmul.f32 %v504_v22, %v1106_v44  ;;  %v507_v39 = vmul.f32 %v491_v35, %v1114_v34  ;;  %v468_v10 = vmul.f32 0.5, %v1061_v54 }
 0x272   :  { %v784_v60 = vpop.eup %783  ;;  %v553_v6 = vmul.f32 0.7978846, %v537_v62  ;;  %v522_v7 = vmul.f32 %v506_v38, %v1111_v47  ;;  %v493_v28 = vmul.f32 0.044715, %v1134_v48  ;;  %v469_v43 = vmul.f32 0.5, %v1056_v49 }
 0x273   :  { %v786_v63 = vpop.eup %785  ;;  %v575_v0 = vadd.f32 1.0, %v784_v60  ;;  %799 = vtanh.f32 %v551_v1  ;;  %v536_v12 = vadd.f32 %v520_v3, %v1106_v44  ;;  %v523_v26 = vmul.f32 %v507_v39, %v1114_v34 }
 0x274   :  { %v788_v4 = vpop.eup %787  ;;  %v577_v5 = vadd.f32 1.0, %v786_v63  ;;  %801 = vtanh.f32 %v553_v6  ;;  %v538_v14 = vadd.f32 %v522_v7, %v1111_v47  ;;  %v509_v54 = vmul.f32 %v493_v28, %v1134_v48 }
 0x275   :  { %v790_v8 = vpop.eup %789  ;;  %v591_v9 = vmul.f32 %v575_v0, %v463_v37  ;;  %v576_v11 = vadd.f32 1.0, %v788_v4  ;;  %v552_v25 = vmul.f32 0.7978846, %v536_v12  ;;  %v539_v42 = vadd.f32 %v523_v26, %v1114_v34 }
 0x276   :  { %v792_v13 = vpop.eup %791  ;;  %v593_v17 = vmul.f32 %v577_v5, %v465_v50  ;;  %v578_v18 = vadd.f32 1.0, %v790_v8  ;;  %v554_v15 = vmul.f32 0.7978846, %v538_v14  ;;  %v408_v45 = vadd.f32 %v1082_v16, %v1030_v30 }
 0x277   :  { %v794_v19 = vpop.eup %793  ;;  %v592_v21 = vmul.f32 %v576_v11, %v464_v53  ;;  %v579_v23 = vadd.f32 1.0, %v792_v13  ;;  %803 = vtanh.f32 %v552_v25  ;;  %v461_v46 = vadd.f32 %v1086_v20, %v1032_v31 }
 0x278   :  { %v594_v29 = vmul.f32 %v578_v18, %v466_v58  ;;  %v796_v32 = vpop.eup %795  ;;  %v581_v37 = vadd.f32 1.0, %v794_v19  ;;  %805 = vtanh.f32 %v554_v15  ;;  %v470_v53 = vmul.f32 0.5, %v1073_v2 }
 0x279   :  { %v712_v33 = vpack.c.bf16 %v592_v21, %v591_v9  ;;  %v595_v36 = vmul.f32 %v579_v23, %v467_v61  ;;  %v580_v41 = vadd.f32 1.0, %v796_v32  ;;  %v525_v49 = vmul.f32 %v509_v54, %v1134_v48 }
 0x27a   :  { %v713_v40 = vpack.c.bf16 %v594_v29, %v593_v17  ;;  %v798_v50 = vpop.eup %797  ;;  %v597_v52 = vmul.f32 %v581_v37, %v469_v43  ;;  %v555_v57 = vmul.f32 0.7978846, %v539_v42  ;;  %v492_v58 = vmul.f32 0.044715, %v408_v45 }
 0x27b   :  { %655 = vst [vmem:[%s1186_s5] sm:$0xff] %v712_v33  ;;  %v596_v51 = vmul.f32 %v580_v41, %v468_v10  ;;  %v582_v55 = vadd.f32 1.0, %v798_v50  ;;  %v494_v59 = vmul.f32 0.044715, %v461_v46  ;;  %v541_v31 = vadd.f32 %v525_v49, %v1134_v48 }
 0x27c   :  { %656 = vst [vmem:[%s1186_s5 + $0x8] sm:$0xff] %v713_v40  ;;  %v508_v35 = vmul.f32 %v492_v58, %v408_v45  ;;  %v471_v38 = vmul.f32 0.5, %v1091_v24  ;;  %807 = vtanh.f32 %v555_v57  ;;  %v473_v3 = vmul.f32 0.5, %v1096_v27 }
 0x27d   :  { %v714_v56 = vpack.c.bf16 %v596_v51, %v595_v36  ;;  %v800_v30 = vpop.eup %799  ;;  %v598_v16 = vmul.f32 %v582_v55, %v470_v53  ;;  %v510_v60 = vmul.f32 %v494_v59, %v461_v46  ;;  %v557_v62 = vmul.f32 0.7978846, %v541_v31 }
 0x27e   :  { %v802_v20 = vpop.eup %801  ;;  %v583_v22 = vadd.f32 1.0, %v800_v30  ;;  %v524_v63 = vmul.f32 %v508_v35, %v408_v45  ;;  %v472_v39 = vmul.f32 0.5, %v1106_v44  ;;  %v474_v24 = vmul.f32 0.5, %v1111_v47 }
 0x27f   :  { %657 = vst [vmem:[%s1186_s5 + $0x10] sm:$0xff] %v714_v56  ;;  %v715_v2 = vpack.c.bf16 %v598_v16, %v597_v52  ;;  %v585_v61 = vadd.f32 1.0, %v802_v20  ;;  %v526_v0 = vmul.f32 %v510_v60, %v461_v46  ;;  %809 = vtanh.f32 %v557_v62 }
 0x280   :  { %v599_v5 = vmul.f32 %v583_v22, %v471_v38  ;;  %v540_v7 = vadd.f32 %v524_v63, %v408_v45  ;;  %v475_v23 = vmul.f32 0.5, %v1114_v34  ;;  %v477_v26 = vmul.f32 0.5, %v1134_v48 }
 0x281   :  { %v804_v1 = vpop.eup %803  ;;  %658 = vst [vmem:[%s1186_s5 + $0x18] sm:$0xff] %v715_v2  ;;  %v542_v8 = vadd.f32 %v526_v0, %v461_v46  ;;  %v601_v9 = vmul.f32 %v585_v61, %v473_v3  ;;  %v476_v15 = vmul.f32 0.5, %v408_v45  ;;  %v478_v33 = vmul.f32 0.5, %v461_v46 }
 0x282   :  { %v806_v4 = vpop.eup %805  ;;  %v584_v6 = vadd.f32 1.0, %v804_v1  ;;  %v556_v13 = vmul.f32 0.7978846, %v540_v7 }
 0x283   :  { %v586_v11 = vadd.f32 1.0, %v806_v4  ;;  %v558_v17 = vmul.f32 0.7978846, %v542_v8 }
 0x284   :  { %v600_v12 = vmul.f32 %v584_v6, %v472_v39  ;;  %811 = vtanh.f32 %v556_v13 }
 0x285   :  { %v602_v18 = vmul.f32 %v586_v11, %v474_v24  ;;  %813 = vtanh.f32 %v558_v17 }
 0x286   :  { %v716_v14 = vpack.c.bf16 %v600_v12, %v599_v5  ;;  %v808_v27 = vpop.eup %807 }
 0x287   :  { %v717_v19 = vpack.c.bf16 %v602_v18, %v601_v9  ;;  %v587_v47 = vadd.f32 1.0, %v808_v27 }
 0x288   :  { %659 = vst [vmem:[%s1186_s5 + $0x20] sm:$0xff] %v716_v14 }
 0x289   :  { %660 = vst [vmem:[%s1186_s5 + $0x28] sm:$0xff] %v717_v19  ;;  %v810_v44 = vpop.eup %809  ;;  %v603_v10 = vmul.f32 %v587_v47, %v475_v23 }
 0x28a   :  { %v589_v21 = vadd.f32 1.0, %v810_v44 }
 0x28c   :  { %v605_v32 = vmul.f32 %v589_v21, %v477_v26 }
 0x28e   :  { %v812_v25 = vpop.eup %811 }
 0x28f   :  { %v814_v29 = vpop.eup %813  ;;  %v588_v28 = vadd.f32 1.0, %v812_v25 }
 0x290   :  { %v590_v36 = vadd.f32 1.0, %v814_v29 }
 0x291   :  { %v604_v37 = vmul.f32 %v588_v28, %v476_v15 }
 0x292   :  { %v606_v40 = vmul.f32 %v590_v36, %v478_v33 }
 0x293   :  { %v718_v41 = vpack.c.bf16 %v604_v37, %v603_v10 }
 0x294   :  { %v719_v42 = vpack.c.bf16 %v606_v40, %v605_v32 }
 0x295   :  { %661 = vst [vmem:[%s1186_s5 + $0x30] sm:$0xff] %v718_v41 }
 0x296   :  { %662 = vst [vmem:[%s1186_s5 + $0x38] sm:$0xff] %v719_v42 }
 0x297   :  { %667 = vsyncpa [#allocation3], 1 }
 0x298   :  { %668 = vsyncpa [#allocation5], 1 }
 0x299   :  { %669 = vsyncpa [#allocation8], 1 }

// kernel: conformer_block.12
= control target key start
LH: loop header
LB: loop body
LE: loop exit
PB: predicated region body
PF: predicated region fallthrough
CT: control target
= control target key end

     0   :  { %v538_v39 = vmov 0   ;;  %s706_s0 = inlined_call_operand.vmem [shape: f32[32,128], index: 0, kind: input, shape index: {}]   ;;  %s707_s3 = inlined_call_operand.vmem [shape: bf16[128,384], index: 3, kind: input, shape index: {}]   ;;  %s708_s1 = inlined_call_operand.vmem [shape: f32[1,128], index: 1, kind: input, shape index: {}]   ;;  %s709_s2 = inlined_call_operand.vmem [shape: f32[1,128], index: 2, kind: input, shape index: {}]   ;;  %s710_s4 = inlined_call_operand.vmem [shape: f32[1,384], index: 4, kind: input, shape index: {}]   ;;  %s711_s5 = inlined_call_operand.vmem [shape: bf16[32,384], index: 5, kind: output, shape index: {}]  }
   0x1   :  { %v21_v0 = vld [vmem:[%s706_s0] sm:$0xff]  ;;  %v23_v1 = vld [vmem:[%s706_s0 + $0x10] sm:$0xff]  ;;  %v22_v2 = vld [vmem:[%s706_s0 + $0x8] sm:$0xff]  ;;  %303 = vmatprep.mubr.bf16.mxu0 %v538_v39 }
   0x2   :  { %25 = vadd.xlane.f32.xlu0 %v21_v0  ;;  %29 = vadd.xlane.f32.xlu1 %v23_v1  ;;  %v24_v3 = vld [vmem:[%s706_s0 + $0x18] sm:$0xff]  ;;  %v498_v4 = vld [vmem:[%s707_s3 + $0x4] ss:$12 sps:$4 sm:$0xff]   ;;  %v500_v5 = vld [vmem:[%s707_s3] ss:$12 sps:$4 sm:$0xff]  }
   0x3   :  { %271 = vmatprep.subr.bf16.mxu0 %v498_v4  ;;  %v501_v6 = vld [vmem:[%s707_s3 + $0x1c] ss:$12 sps:$4 sm:$0xff]   ;;  %v504_v24 = vld [vmem:[%s707_s3 + $0x18] ss:$12 sps:$4 sm:$0xff]   ;;  %v505_v25 = vld [vmem:[%s707_s3 + $0x34] ss:$12 sps:$4 sm:$0xff]  }
   0x4   :  { %272 = vmatpush1.bf16.msra.mxu0 %v500_v5  ;;  %v503_v7 = vld [vmem:[%s707_s3 + $0x8] ss:$12 sps:$4 sm:$0xff]   ;;  %v507_v26 = vld [vmem:[%s707_s3 + $0x20] ss:$12 sps:$4 sm:$0xff]   ;;  %v508_v27 = vld [vmem:[%s707_s3 + $0x30] ss:$12 sps:$4 sm:$0xff]  }
   0x5   :  { %273 = vmatprep.subr.bf16.mxu0 %v501_v6  ;;  %477 = vmatprep.subr.bf16.mxu1 %v503_v7  ;;  %v509_v28 = vld [vmem:[%s707_s3 + $0x4c] ss:$12 sps:$4 sm:$0xff]   ;;  %v512_v30 = vld [vmem:[%s707_s3 + $0x48] ss:$12 sps:$4 sm:$0xff]   ;;  %v513_v31 = vld [vmem:[%s707_s3 + $0x64] ss:$12 sps:$4 sm:$0xff]  }
   0x6   :  { %27 = vadd.xlane.f32.xlu0 %v22_v2  ;;  %31 = vadd.xlane.f32.xlu1 %v24_v3  ;;  %v511_v29 = vld [vmem:[%s707_s3 + $0x38] ss:$12 sps:$4 sm:$0xff]   ;;  %v515_v32 = vld [vmem:[%s707_s3 + $0x50] ss:$12 sps:$4 sm:$0xff]   ;;  %v516_v33 = vld [vmem:[%s707_s3 + $0x60] ss:$12 sps:$4 sm:$0xff]  }
   0x7   :  { %478 = vmatpush3.bf16.msra.mxu1 %v503_v7  ;;  %v517_v34 = vld [vmem:[%s707_s3 + $0x7c] ss:$12 sps:$4 sm:$0xff]   ;;  %v520_v36 = vld [vmem:[%s707_s3 + $0x78] ss:$12 sps:$4 sm:$0xff]   ;;  %v521_v37 = vld [vmem:[%s707_s3 + $0x94] ss:$12 sps:$4 sm:$0xff]  }
   0x8   :  { %274 = vmatpush1.bf16.msra.mxu0 %v504_v24  ;;  %479 = vmatprep.subr.bf16.mxu1 %v507_v26  ;;  %v519_v35 = vld [vmem:[%s707_s3 + $0x68] ss:$12 sps:$4 sm:$0xff]   ;;  %v523_v38 = vld [vmem:[%s707_s3 + $0x80] ss:$12 sps:$4 sm:$0xff]   ;;  %v524_v40 = vld [vmem:[%s707_s3 + $0x90] ss:$12 sps:$4 sm:$0xff]  }
   0x9   :  { %275 = vmatprep.subr.bf16.mxu0 %v505_v25  ;;  %v525_v41 = vld [vmem:[%s707_s3 + $0xac] ss:$12 sps:$4 sm:$0xff]   ;;  %v528_v43 = vld [vmem:[%s707_s3 + $0xa8] ss:$12 sps:$4 sm:$0xff]   ;;  %v529_v44 = vld [vmem:[%s707_s3 + $0xb0] ss:$12 sps:$4 sm:$0xff]  }
   0xa   :  { %v527_v42 = vld [vmem:[%s707_s3 + $0x98] ss:$12 sps:$4 sm:$0xff]   ;;  %v425_v59 = vld [vmem:[%s708_s1] ss:$0 sm:$0xff] }
   0xb   :  { %480 = vmatpush3.bf16.msra.mxu1 %v507_v26 }
   0xc   :  { %276 = vmatpush1.bf16.msra.mxu0 %v508_v27  ;;  %481 = vmatprep.subr.bf16.mxu1 %v511_v29 }
   0xd   :  { %277 = vmatprep.subr.bf16.mxu0 %v509_v28 }
   0xf   :  { %482 = vmatpush3.bf16.msra.mxu1 %v511_v29 }
  0x10   :  { %278 = vmatpush1.bf16.msra.mxu0 %v512_v30  ;;  %483 = vmatprep.subr.bf16.mxu1 %v515_v32 }
  0x11   :  { %279 = vmatprep.subr.bf16.mxu0 %v513_v31 }
  0x13   :  { %484 = vmatpush3.bf16.msra.mxu1 %v515_v32 }
  0x14   :  { %280 = vmatpush1.bf16.msra.mxu0 %v516_v33  ;;  %485 = vmatprep.subr.bf16.mxu1 %v519_v35 }
  0x15   :  { %281 = vmatprep.subr.bf16.mxu0 %v517_v34 }
  0x17   :  { %486 = vmatpush3.bf16.msra.mxu1 %v519_v35 }
  0x18   :  { %282 = vmatpush1.bf16.msra.mxu0 %v520_v36  ;;  %487 = vmatprep.subr.bf16.mxu1 %v523_v38 }
  0x19   :  { %283 = vmatprep.subr.bf16.mxu0 %v521_v37 }
  0x1b   :  { %488 = vmatpush3.bf16.msra.mxu1 %v523_v38 }
  0x1c   :  { %284 = vmatpush1.bf16.msra.mxu0 %v524_v40  ;;  %489 = vmatprep.subr.bf16.mxu1 %v527_v42 }
  0x1d   :  { %285 = vmatprep.subr.bf16.mxu0 %v525_v41 }
  0x1f   :  { %490 = vmatpush3.bf16.msra.mxu1 %v527_v42 }
  0x20   :  { %286 = vmatpush1.bf16.msra.mxu0 %v528_v43  ;;  %491 = vmatprep.subr.bf16.mxu1 %v529_v44 }
  0x23   :  { %492 = vmatpush3.bf16.msra.mxu1 %v529_v44 }
  0x8f   :  { %v26_v8 = vpop.xlane.xlu0 %25  ;;  %v30_v9 = vpop.xlane.xlu1 %29 }
  0x90   :  { %v34_v10 = vmul.f32 0.0078125, %v26_v8  ;;  %v36_v11 = vmul.f32 0.0078125, %v30_v9 }
  0x92   :  { %v593_v12 = vsub.f32 %v21_v0, %v34_v10  ;;  %v595_v13 = vsub.f32 %v23_v1, %v36_v11  ;;  %v426_v0 = vld [vmem:[%s709_s2] ss:$0 sm:$0xff] }
  0x93   :  { %v28_v14 = vpop.xlane.xlu0 %27  ;;  %v32_v15 = vpop.xlane.xlu1 %31 }
  0x94   :  { %v35_v16 = vmul.f32 0.0078125, %v28_v14  ;;  %v42_v17 = vmul.f32 %v593_v12, %v593_v12  ;;  %v37_v18 = vmul.f32 0.0078125, %v32_v15  ;;  %v44_v21 = vmul.f32 %v595_v13, %v595_v13 }
  0x95   :  { %v128_v14 = vlaneseq }
  0x96   :  { %v599_v19 = vsub.f32 %v22_v2, %v35_v16  ;;  %46 = vadd.xlane.f32.xlu0 %v42_v17  ;;  %v601_v20 = vsub.f32 %v24_v3, %v37_v18  ;;  %v126_v16 = vld [vmem:[%s710_s4] sm:$0x7] }
  0x97   :  { %v129_v15 = vshrl.u32 %v128_v14, 7 }
  0x98   :  { %v43_v22 = vmul.f32 %v599_v19, %v599_v19  ;;  %v45_v23 = vmul.f32 %v601_v20, %v601_v20 }
  0x99   :  { %v134_v17 = vsub.s32 1, %v129_v15 }
  0x9a   :  { %50 = vadd.xlane.f32.xlu0 %v44_v21  ;;  %48 = vadd.xlane.f32.xlu1 %v43_v22 }
  0x9e   :  { %52 = vadd.xlane.f32.xlu1 %v45_v23 }
 0x123   :  { %v47_v45 = vpop.xlane.xlu0 %46 }
 0x124   :  { %v54_v46 = vmul.f32 0.0078125, %v47_v45 }
 0x126   :  { %v58_v47 = vadd.f32 1e-05, %v54_v46 }
 0x127   :  { %v49_v48 = vpop.xlane.xlu1 %48  ;;  %v51_v49 = vpop.xlane.xlu0 %50 }
 0x128   :  { %530 = vrsqrt.f32 %v58_v47  ;;  %v55_v50 = vmul.f32 0.0078125, %v49_v48  ;;  %v56_v51 = vmul.f32 0.0078125, %v51_v49 }
 0x12a   :  { %v59_v52 = vadd.f32 1e-05, %v55_v50  ;;  %v60_v53 = vadd.f32 1e-05, %v56_v51 }
 0x12b   :  { %v53_v54 = vpop.xlane.xlu1 %52 }
 0x12c   :  { %532 = vrsqrt.f32 %v59_v52  ;;  %v57_v55 = vmul.f32 0.0078125, %v53_v54 }
 0x12d   :  { %534 = vrsqrt.f32 %v60_v53 }
 0x12e   :  { %v61_v56 = vadd.f32 1e-05, %v57_v55 }
 0x130   :  { %536 = vrsqrt.f32 %v61_v56 }
 0x132   :  { %v531_v57 = vpop.eup %530 }
 0x133   :  { %v66_v58 = vmul.f32 %v531_v57, %v593_v12 }
 0x135   :  { %v77_v63 = vmul.f32 %v425_v59, %v66_v58 }
 0x136   :  { %v533_v60 = vpop.eup %532 }
 0x137   :  { %v535_v61 = vpop.eup %534  ;;  %v67_v62 = vmul.f32 %v533_v60, %v599_v19  ;;  %v88_v4 = vadd.f32 %v426_v0, %v77_v63  ;;  %v138_v19 = vsub.s32 2, %v129_v15 }
 0x138   :  { %v68_v1 = vmul.f32 %v535_v61, %v595_v13  ;;  %v130_v13 = vsub.s32 0, %v129_v15 }
 0x139   :  { %v78_v2 = vmul.f32 %v425_v59, %v67_v62  ;;  %v139_v24 = vrot.slane %v126_v16, %v138_v19 }
 0x13a   :  { %v537_v3 = vpop.eup %536  ;;  %v79_v7 = vmul.f32 %v425_v59, %v68_v1  ;;  %v131_v18 = vrot.slane %v126_v16, %v130_v13 }
 0x13b   :  { %v89_v5 = vadd.f32 %v426_v0, %v78_v2  ;;  %v69_v6 = vmul.f32 %v537_v3, %v601_v20  ;;  %v135_v20 = vrot.slane %v126_v16, %v134_v17 }
 0x13c   :  { %v90_v10 = vadd.f32 %v426_v0, %v79_v7 }
 0x13d   :  { %v92_v8 = vpack.c.bf16 %v89_v5, %v88_v4  ;;  %v80_v9 = vmul.f32 %v425_v59, %v69_v6 }
 0x13f   :  { %304 = vmatmul.mubr.bf16.vlgmr.msra.gmra.mrb[0].mxu0 %v92_v8  ;;  %493 = vmatprep.mubr.bf16.mxu1 %v92_v8  ;;  %v91_v11 = vadd.f32 %v426_v0, %v80_v9 }
 0x140   :  { %313 = vmatprep.mubr.bf16.mxu0 %v538_v39 }
 0x141   :  { %v93_v12 = vpack.c.bf16 %v91_v11, %v90_v10 }
 0x143   :  { %494 = vmatmul.mubr.bf16.vlgmr.msra.gmra.mrb[0].mxu1 %v93_v12 }
 0x147   :  { %314 = vmatmul.mubr.bf16.gmra.mrb[4].mxu0 %v93_v12 }
 0x212   :  { %v305_v21 = vpop.f32.mrb[0].mxu0 }
 0x213   :  { %v306_v22 = vadd.f32 %v305_v21, %v131_v18  ;;  %v307_v23 = vpop.f32.mrb[1].mxu0 }
 0x214   :  { %v308_v25 = vadd.f32 %v307_v23, %v135_v20  ;;  %v309_v26 = vpop.f32.mrb[2].mxu0 }
 0x215   :  { %v310_v27 = vadd.f32 %v309_v26, %v131_v18  ;;  %v311_v28 = vpop.f32.mrb[3].mxu0 }
 0x216   :  { %v459_v29 = vpack.c.bf16 %v308_v25, %v306_v22  ;;  %v312_v30 = vadd.f32 %v311_v28, %v135_v20  ;;  %v495_v31 = vpop.f32.mrb[0].mxu1 }
 0x217   :  { %v367_v32 = vadd.f32 %v495_v31, %v139_v24  ;;  %v358_v33 = vpop.f32.mrb[1].mxu1 }
 0x218   :  { %413 = vst [vmem:[%s711_s5] sm:$0xff] %v459_v29  ;;  %v461_v34 = vpack.c.bf16 %v312_v30, %v310_v27  ;;  %v359_v35 = vadd.f32 %v358_v33, %v139_v24  ;;  %v496_v36 = vpop.f32.mrb[2].mxu1 }
 0x219   :  { %v464_v37 = vpack.c.bf16 %v367_v32, %v367_v32  ;;  %v370_v38 = vadd.f32 %v496_v36, %v139_v24  ;;  %v361_v39 = vpop.f32.mrb[3].mxu1 }
 0x21a   :  { %415 = vst [vmem:[%s711_s5 + $0xc] sm:$0xff] %v461_v34  ;;  %v460_v40 = vpack.c.bf16 %v359_v35, %v359_v35  ;;  %v362_v41 = vadd.f32 %v361_v39, %v139_v24  ;;  %v315_v42 = vpop.f32.mrb[4].mxu0 }
 0x21b   :  { %418 = vst [vmem:[%s711_s5 + $0x20] sm:$0xf] %v464_v37  ;;  %v466_v43 = vpack.c.bf16 %v370_v38, %v370_v38  ;;  %v316_v44 = vadd.f32 %v315_v42, %v131_v18  ;;  %v317_v45 = vpop.f32.mrb[5].mxu0 }
 0x21c   :  { %414 = vst [vmem:[%s711_s5 + $0x8] sm:$0xf] %v460_v40  ;;  %v462_v46 = vpack.c.bf16 %v362_v41, %v362_v41  ;;  %v318_v47 = vadd.f32 %v317_v45, %v135_v20  ;;  %v319_v48 = vpop.f32.mrb[6].mxu0 }
 0x21d   :  { %420 = vst [vmem:[%s711_s5 + $0x2c] sm:$0xf] %v466_v43  ;;  %v320_v49 = vadd.f32 %v319_v48, %v131_v18  ;;  %v321_v50 = vpop.f32.mrb[7].mxu0 }
 0x21e   :  { %416 = vst [vmem:[%s711_s5 + $0x14] sm:$0xf] %v462_v46  ;;  %v463_v51 = vpack.c.bf16 %v318_v47, %v316_v44  ;;  %v322_v52 = vadd.f32 %v321_v50, %v135_v20 }
 0x220   :  { %417 = vst [vmem:[%s711_s5 + $0x18] sm:$0xff] %v463_v51  ;;  %v465_v53 = vpack.c.bf16 %v322_v52, %v320_v49 }
 0x222   :  { %419 = vst [vmem:[%s711_s5 + $0x24] sm:$0xff] %v465_v53 }

// kernel: conformer_block.14
= control target key start
LH: loop header
LB: loop body
LE: loop exit
PB: predicated region body
PF: predicated region fallthrough
CT: control target
= control target key end

     0   :  { %s334_s1 = inlined_call_operand.vmem [shape: bf16[128,128], index: 1, kind: input, shape index: {}]   ;;  %s335_s0 = inlined_call_operand.vmem [shape: bf16[32,128], index: 0, kind: input, shape index: {}]   ;;  %s336_s2 = inlined_call_operand.vmem [shape: f32[1,128], index: 2, kind: input, shape index: {}]   ;;  %s337_s3 = inlined_call_operand.vmem [shape: f32[32,128], index: 3, kind: input, shape index: {}]   ;;  %s338_s4 = inlined_call_operand.vmem [shape: f32[32,128], index: 4, kind: output, shape index: {}]  }
   0x1   :  { %v242_v0 = vld [vmem:[%s334_s1] sm:$0xff]   ;;  %v243_v1 = vld [vmem:[%s334_s1 + $0x8] sm:$0xff]   ;;  %v244_v2 = vld [vmem:[%s334_s1 + $0x10] sm:$0xff]  }
   0x2   :  { %222 = vmatprep.subr.bf16.mxu0 %v242_v0  ;;  %v245_v3 = vld [vmem:[%s334_s1 + $0x18] sm:$0xff]   ;;  %v250_v4 = vld [vmem:[%s335_s0] sm:$0xff]   ;;  %v247_v6 = vld [vmem:[%s334_s1 + $0x28] sm:$0xff]  }
   0x3   :  { %223 = vmatpush3.bf16.msra.mxu0 %v242_v0  ;;  %238 = vmatprep.mubr.bf16.mxu0 %v250_v4  ;;  %v246_v5 = vld [vmem:[%s334_s1 + $0x20] sm:$0xff]   ;;  %v248_v7 = vld [vmem:[%s334_s1 + $0x30] sm:$0xff]   ;;  %v249_v8 = vld [vmem:[%s334_s1 + $0x38] sm:$0xff]  }
   0x4   :  { %224 = vmatprep.subr.bf16.mxu0 %v243_v1  ;;  %v251_v9 = vld [vmem:[%s335_s0 + $0x8] sm:$0xff]   ;;  %v211_v10 = vld [vmem:[%s336_s2] ss:$0 sm:$0xff]  ;;  %v172_v12 = vld [vmem:[%s337_s3 + $0x10] sm:$0xff] }
   0x5   :  { %v170_v15 = vld [vmem:[%s337_s3] sm:$0xff]  ;;  %v173_v18 = vld [vmem:[%s337_s3 + $0x18] sm:$0xff]  ;;  %v171_v22 = vld [vmem:[%s337_s3 + $0x8] sm:$0xff] }
   0x7   :  { %225 = vmatpush3.bf16.msra.mxu0 %v243_v1 }
   0x8   :  { %226 = vmatprep.subr.bf16.mxu0 %v244_v2 }
   0xb   :  { %227 = vmatpush3.bf16.msra.mxu0 %v244_v2 }
   0xc   :  { %228 = vmatprep.subr.bf16.mxu0 %v245_v3 }
   0xf   :  { %229 = vmatpush3.bf16.msra.mxu0 %v245_v3 }
  0x10   :  { %230 = vmatprep.subr.bf16.mxu0 %v246_v5 }
  0x13   :  { %231 = vmatpush3.bf16.msra.mxu0 %v246_v5 }
  0x14   :  { %232 = vmatprep.subr.bf16.mxu0 %v247_v6 }
  0x17   :  { %233 = vmatpush3.bf16.msra.mxu0 %v247_v6 }
  0x18   :  { %234 = vmatprep.subr.bf16.mxu0 %v248_v7 }
  0x1b   :  { %235 = vmatpush3.bf16.msra.mxu0 %v248_v7 }
  0x1c   :  { %236 = vmatprep.subr.bf16.mxu0 %v249_v8 }
  0x1f   :  { %237 = vmatpush3.bf16.msra.mxu0 %v249_v8 }
  0x22   :  { %239 = vmatmul.mubr.bf16.vlgmr.msra.gmra.mrb[0].mxu0 %v251_v9 }
  0xf5   :  { %v240_v11 = vpop.f32.mrb[0].mxu0 }
  0xf6   :  { %v187_v13 = vadd.f32 %v240_v11, %v211_v10  ;;  %v144_v14 = vpop.f32.mrb[1].mxu0 }
  0xf7   :  { %v185_v16 = vadd.f32 %v211_v10, %v144_v14  ;;  %v241_v17 = vpop.f32.mrb[2].mxu0 }
  0xf8   :  { %v191_v19 = vadd.f32 %v187_v13, %v172_v12  ;;  %v188_v20 = vadd.f32 %v241_v17, %v211_v10  ;;  %v147_v21 = vpop.f32.mrb[3].mxu0 }
  0xf9   :  { %v189_v23 = vadd.f32 %v185_v16, %v170_v15  ;;  %v186_v24 = vadd.f32 %v211_v10, %v147_v21 }
  0xfa   :  { %195 = vst [vmem:[%s338_s4 + $0x10] sm:$0xff] %v191_v19  ;;  %v192_v25 = vadd.f32 %v188_v20, %v173_v18 }
  0xfb   :  { %193 = vst [vmem:[%s338_s4] sm:$0xff] %v189_v23  ;;  %v190_v26 = vadd.f32 %v186_v24, %v171_v22 }
  0xfc   :  { %196 = vst [vmem:[%s338_s4 + $0x18] sm:$0xff] %v192_v25 }
  0xfd   :  { %194 = vst [vmem:[%s338_s4 + $0x8] sm:$0xff] %v190_v26 }

// kernel: conformer_block.15
= control target key start
LH: loop header
LB: loop body
LE: loop exit
PB: predicated region body
PF: predicated region fallthrough
CT: control target
= control target key end

     0   :  { %v450_v33 = vmov 0   ;;  %s638_s0 = inlined_call_operand.vmem [shape: f32[32,128], index: 0, kind: input, shape index: {}]   ;;  %s639_s3 = inlined_call_operand.vmem [shape: bf16[128,256], index: 3, kind: input, shape index: {}]   ;;  %s640_s1 = inlined_call_operand.vmem [shape: f32[1,128], index: 1, kind: input, shape index: {}]   ;;  %s641_s2 = inlined_call_operand.vmem [shape: f32[1,128], index: 2, kind: input, shape index: {}]   ;;  %s642_s4 = inlined_call_operand.vmem [shape: f32[1,256], index: 4, kind: input, shape index: {}]   ;;  %s643_s5 = inlined_call_operand.vmem [shape: bf16[32,256], index: 5, kind: output, shape index: {}]  }
   0x1   :  { %v21_v0 = vld [vmem:[%s638_s0] sm:$0xff]  ;;  %v23_v1 = vld [vmem:[%s638_s0 + $0x10] sm:$0xff]  ;;  %v22_v2 = vld [vmem:[%s638_s0 + $0x8] sm:$0xff]  ;;  %234 = vmatprep.mubr.bf16.mxu0 %v450_v33  ;;  %244 = vmatprep.mubr.bf16.mxu1 %v450_v33 }
   0x2   :  { %25 = vadd.xlane.f32.xlu0 %v21_v0  ;;  %29 = vadd.xlane.f32.xlu1 %v23_v1  ;;  %v24_v3 = vld [vmem:[%s638_s0 + $0x18] sm:$0xff]  ;;  %v402_v4 = vld [vmem:[%s639_s3 + $0x4] ss:$8 sps:$4 sm:$0xff]   ;;  %v404_v5 = vld [vmem:[%s639_s3] ss:$8 sps:$4 sm:$0xff]  }
   0x3   :  { %202 = vmatprep.subr.bf16.mxu0 %v402_v4  ;;  %385 = vmatprep.subr.bf16.mxu1 %v402_v4  ;;  %v405_v6 = vld [vmem:[%s639_s3 + $0x14] ss:$8 sps:$4 sm:$0xff]   ;;  %v407_v23 = vld [vmem:[%s639_s3 + $0x10] ss:$8 sps:$4 sm:$0xff]   ;;  %v408_v24 = vld [vmem:[%s639_s3 + $0x24] ss:$8 sps:$4 sm:$0xff]  }
   0x4   :  { %203 = vmatpush1.bf16.msra.mxu0 %v404_v5  ;;  %393 = vmatpush1.bf16.msra.mxu1 %v404_v5  ;;  %v410_v25 = vld [vmem:[%s639_s3 + $0x20] ss:$8 sps:$4 sm:$0xff]   ;;  %v411_v26 = vld [vmem:[%s639_s3 + $0x34] ss:$8 sps:$4 sm:$0xff]   ;;  %v413_v27 = vld [vmem:[%s639_s3 + $0x30] ss:$8 sps:$4 sm:$0xff]   ;;  %v112_v5 = vlaneseq }
   0x5   :  { %204 = vmatprep.subr.bf16.mxu0 %v405_v6  ;;  %386 = vmatprep.subr.bf16.mxu1 %v405_v6  ;;  %v414_v28 = vld [vmem:[%s639_s3 + $0x44] ss:$8 sps:$4 sm:$0xff]   ;;  %v416_v29 = vld [vmem:[%s639_s3 + $0x40] ss:$8 sps:$4 sm:$0xff]   ;;  %v417_v30 = vld [vmem:[%s639_s3 + $0x54] ss:$8 sps:$4 sm:$0xff]  }
   0x6   :  { %27 = vadd.xlane.f32.xlu0 %v22_v2  ;;  %31 = vadd.xlane.f32.xlu1 %v24_v3  ;;  %v419_v31 = vld [vmem:[%s639_s3 + $0x50] ss:$8 sps:$4 sm:$0xff]   ;;  %v420_v32 = vld [vmem:[%s639_s3 + $0x64] ss:$8 sps:$4 sm:$0xff]   ;;  %v422_v34 = vld [vmem:[%s639_s3 + $0x60] ss:$8 sps:$4 sm:$0xff]  }
   0x7   :  { %v423_v35 = vld [vmem:[%s639_s3 + $0x74] ss:$8 sps:$4 sm:$0xff]   ;;  %v425_v36 = vld [vmem:[%s639_s3 + $0x70] ss:$8 sps:$4 sm:$0xff]   ;;  %v359_v51 = vld [vmem:[%s640_s1] ss:$0 sm:$0xff] }
   0x8   :  { %205 = vmatpush1.bf16.msra.mxu0 %v407_v23  ;;  %394 = vmatpush1.bf16.msra.mxu1 %v407_v23  ;;  %v360_v56 = vld [vmem:[%s641_s2] ss:$0 sm:$0xff]  ;;  %v113_v6 = vshrl.u32 %v112_v5, 7 }
   0x9   :  { %206 = vmatprep.subr.bf16.mxu0 %v408_v24  ;;  %387 = vmatprep.subr.bf16.mxu1 %v408_v24 }
   0xc   :  { %207 = vmatpush1.bf16.msra.mxu0 %v410_v25  ;;  %395 = vmatpush1.bf16.msra.mxu1 %v410_v25 }
   0xd   :  { %208 = vmatprep.subr.bf16.mxu0 %v411_v26  ;;  %388 = vmatprep.subr.bf16.mxu1 %v411_v26 }
  0x10   :  { %209 = vmatpush1.bf16.msra.mxu0 %v413_v27  ;;  %396 = vmatpush1.bf16.msra.mxu1 %v413_v27 }
  0x11   :  { %210 = vmatprep.subr.bf16.mxu0 %v414_v28  ;;  %389 = vmatprep.subr.bf16.mxu1 %v414_v28 }
  0x14   :  { %211 = vmatpush1.bf16.msra.mxu0 %v416_v29  ;;  %397 = vmatpush1.bf16.msra.mxu1 %v416_v29 }
  0x15   :  { %212 = vmatprep.subr.bf16.mxu0 %v417_v30  ;;  %390 = vmatprep.subr.bf16.mxu1 %v417_v30 }
  0x18   :  { %213 = vmatpush1.bf16.msra.mxu0 %v419_v31  ;;  %398 = vmatpush1.bf16.msra.mxu1 %v419_v31 }
  0x19   :  { %214 = vmatprep.subr.bf16.mxu0 %v420_v32  ;;  %391 = vmatprep.subr.bf16.mxu1 %v420_v32 }
  0x1c   :  { %215 = vmatpush1.bf16.msra.mxu0 %v422_v34  ;;  %399 = vmatpush1.bf16.msra.mxu1 %v422_v34 }
  0x1d   :  { %216 = vmatprep.subr.bf16.mxu0 %v423_v35  ;;  %392 = vmatprep.subr.bf16.mxu1 %v423_v35 }
  0x20   :  { %217 = vmatpush1.bf16.msra.mxu0 %v425_v36  ;;  %400 = vmatpush1.bf16.msra.mxu1 %v425_v36 }
  0x8f   :  { %v26_v7 = vpop.xlane.xlu0 %25  ;;  %v30_v8 = vpop.xlane.xlu1 %29 }
  0x90   :  { %v34_v9 = vmul.f32 0.0078125, %v26_v7  ;;  %v36_v10 = vmul.f32 0.0078125, %v30_v8  ;;  %v114_v7 = vsub.s32 0, %v113_v6  ;;  %v110_v8 = vld [vmem:[%s642_s4] sm:$0x3] }
  0x92   :  { %v502_v11 = vsub.f32 %v21_v0, %v34_v9  ;;  %v504_v12 = vsub.f32 %v23_v1, %v36_v10  ;;  %v118_v9 = vsub.s32 1, %v113_v6  ;;  %v115_v10 = vrot.slane %v110_v8, %v114_v7 }
  0x93   :  { %v28_v13 = vpop.xlane.xlu0 %27  ;;  %v32_v14 = vpop.xlane.xlu1 %31 }
  0x94   :  { %v35_v15 = vmul.f32 0.0078125, %v28_v13  ;;  %v42_v16 = vmul.f32 %v502_v11, %v502_v11  ;;  %v37_v17 = vmul.f32 0.0078125, %v32_v14  ;;  %v44_v20 = vmul.f32 %v504_v12, %v504_v12 }
  0x96   :  { %v508_v18 = vsub.f32 %v22_v2, %v35_v15  ;;  %46 = vadd.xlane.f32.xlu0 %v42_v16  ;;  %v510_v19 = vsub.f32 %v24_v3, %v37_v17 }
  0x98   :  { %v43_v21 = vmul.f32 %v508_v18, %v508_v18  ;;  %v45_v22 = vmul.f32 %v510_v19, %v510_v19 }
  0x9a   :  { %50 = vadd.xlane.f32.xlu0 %v44_v20  ;;  %48 = vadd.xlane.f32.xlu1 %v43_v21 }
  0x9e   :  { %52 = vadd.xlane.f32.xlu1 %v45_v22 }
 0x123   :  { %v47_v37 = vpop.xlane.xlu0 %46 }
 0x124   :  { %v54_v38 = vmul.f32 0.0078125, %v47_v37 }
 0x126   :  { %v58_v39 = vadd.f32 1e-05, %v54_v38 }
 0x127   :  { %v49_v40 = vpop.xlane.xlu1 %48  ;;  %v51_v41 = vpop.xlane.xlu0 %50 }
 0x128   :  { %426 = vrsqrt.f32 %v58_v39  ;;  %v55_v42 = vmul.f32 0.0078125, %v49_v40  ;;  %v56_v43 = vmul.f32 0.0078125, %v51_v41 }
 0x12a   :  { %v59_v44 = vadd.f32 1e-05, %v55_v42  ;;  %v60_v45 = vadd.f32 1e-05, %v56_v43 }
 0x12b   :  { %v53_v46 = vpop.xlane.xlu1 %52 }
 0x12c   :  { %428 = vrsqrt.f32 %v59_v44  ;;  %v57_v47 = vmul.f32 0.0078125, %v53_v46 }
 0x12d   :  { %430 = vrsqrt.f32 %v60_v45 }
 0x12e   :  { %v61_v48 = vadd.f32 1e-05, %v57_v47 }
 0x130   :  { %432 = vrsqrt.f32 %v61_v48 }
 0x132   :  { %v427_v49 = vpop.eup %426 }
 0x133   :  { %v66_v50 = vmul.f32 %v427_v49, %v502_v11  ;;  %v119_v11 = vrot.slane %v110_v8, %v118_v9 }
 0x135   :  { %v77_v55 = vmul.f32 %v359_v51, %v66_v50 }
 0x136   :  { %v429_v52 = vpop.eup %428 }
 0x137   :  { %v431_v53 = vpop.eup %430  ;;  %v67_v54 = vmul.f32 %v429_v52, %v508_v18  ;;  %v88_v60 = vadd.f32 %v360_v56, %v77_v55 }
 0x138   :  { %v68_v57 = vmul.f32 %v431_v53, %v504_v12 }
 0x139   :  { %v78_v58 = vmul.f32 %v359_v51, %v67_v54 }
 0x13a   :  { %v433_v59 = vpop.eup %432  ;;  %v79_v63 = vmul.f32 %v359_v51, %v68_v57 }
 0x13b   :  { %v89_v61 = vadd.f32 %v360_v56, %v78_v58  ;;  %v69_v62 = vmul.f32 %v433_v59, %v510_v19 }
 0x13c   :  { %v90_v2 = vadd.f32 %v360_v56, %v79_v63 }
 0x13d   :  { %v92_v0 = vpack.c.bf16 %v89_v61, %v88_v60  ;;  %v80_v1 = vmul.f32 %v359_v51, %v69_v62 }
 0x13f   :  { %235 = vmatmul.mubr.bf16.vlgmr.msra.gmra.mrb[0].mxu0 %v92_v0  ;;  %v91_v3 = vadd.f32 %v360_v56, %v80_v1 }
 0x141   :  { %v93_v4 = vpack.c.bf16 %v91_v3, %v90_v2 }
 0x143   :  { %245 = vmatmul.mubr.bf16.vlgmr.msra.gmra.mrb[0].mxu1 %v93_v4 }
 0x212   :  { %v236_v12 = vpop.f32.mrb[0].mxu0 }
 0x213   :  { %v570_v13 = vadd.f32 %v236_v12, %v115_v10  ;;  %v238_v14 = vpop.f32.mrb[1].mxu0 }
 0x214   :  { %v572_v15 = vadd.f32 %v238_v14, %v119_v11  ;;  %v240_v16 = vpop.f32.mrb[2].mxu0 }
 0x215   :  { %v263_v17 = vmul.f32 0.044715, %v570_v13  ;;  %v575_v18 = vadd.f32 %v240_v16, %v115_v10  ;;  %v242_v19 = vpop.f32.mrb[3].mxu0  ;;  %v255_v6 = vmul.f32 0.5, %v570_v13 }
 0x216   :  { %v264_v20 = vmul.f32 0.044715, %v572_v15  ;;  %v578_v21 = vadd.f32 %v242_v19, %v119_v11  ;;  %v246_v22 = vpop.f32.mrb[0].mxu1  ;;  %v256_v9 = vmul.f32 0.5, %v572_v15 }
 0x217   :  { %v271_v23 = vmul.f32 %v263_v17, %v570_v13  ;;  %v265_v24 = vmul.f32 0.044715, %v575_v18  ;;  %v582_v25 = vadd.f32 %v246_v22, %v115_v10  ;;  %v248_v26 = vpop.f32.mrb[1].mxu1  ;;  %v257_v14 = vmul.f32 0.5, %v575_v18 }
 0x218   :  { %v272_v27 = vmul.f32 %v264_v20, %v572_v15  ;;  %v266_v28 = vmul.f32 0.044715, %v578_v21  ;;  %v586_v29 = vadd.f32 %v248_v26, %v119_v11  ;;  %v250_v30 = vpop.f32.mrb[2].mxu1  ;;  %v258_v20 = vmul.f32 0.5, %v578_v21 }
 0x219   :  { %v279_v31 = vmul.f32 %v271_v23, %v570_v13  ;;  %v273_v32 = vmul.f32 %v265_v24, %v575_v18  ;;  %v267_v33 = vmul.f32 0.044715, %v582_v25  ;;  %v252_v34 = vpop.f32.mrb[3].mxu1  ;;  %v597_v41 = vadd.f32 %v250_v30, %v115_v10 }
 0x21a   :  { %v280_v35 = vmul.f32 %v272_v27, %v572_v15  ;;  %v274_v36 = vmul.f32 %v266_v28, %v578_v21  ;;  %v268_v37 = vmul.f32 0.044715, %v586_v29  ;;  %v604_v48 = vadd.f32 %v252_v34, %v119_v11 }
 0x21b   :  { %v287_v38 = vadd.f32 %v279_v31, %v570_v13  ;;  %v281_v39 = vmul.f32 %v273_v32, %v575_v18  ;;  %v275_v40 = vmul.f32 %v267_v33, %v582_v25  ;;  %v269_v52 = vmul.f32 0.044715, %v597_v41 }
 0x21c   :  { %v288_v42 = vadd.f32 %v280_v35, %v572_v15  ;;  %v282_v43 = vmul.f32 %v274_v36, %v578_v21  ;;  %v276_v44 = vmul.f32 %v268_v37, %v586_v29  ;;  %v270_v59 = vmul.f32 0.044715, %v604_v48 }
 0x21d   :  { %v295_v45 = vmul.f32 0.7978846, %v287_v38  ;;  %v289_v46 = vadd.f32 %v281_v39, %v575_v18  ;;  %v283_v47 = vmul.f32 %v275_v40, %v582_v25  ;;  %v277_v57 = vmul.f32 %v269_v52, %v597_v41 }
 0x21e   :  { %v296_v49 = vmul.f32 0.7978846, %v288_v42  ;;  %v290_v50 = vadd.f32 %v282_v43, %v578_v21  ;;  %v284_v51 = vmul.f32 %v276_v44, %v586_v29  ;;  %v278_v62 = vmul.f32 %v270_v59, %v604_v48 }
 0x21f   :  { %434 = vtanh.f32 %v295_v45  ;;  %v297_v53 = vmul.f32 0.7978846, %v289_v46  ;;  %v291_v54 = vadd.f32 %v283_v47, %v582_v25  ;;  %v285_v61 = vmul.f32 %v277_v57, %v597_v41 }
 0x220   :  { %436 = vtanh.f32 %v296_v49  ;;  %v298_v55 = vmul.f32 0.7978846, %v290_v50  ;;  %v292_v56 = vadd.f32 %v284_v51, %v586_v29  ;;  %v286_v0 = vmul.f32 %v278_v62, %v604_v48 }
 0x221   :  { %438 = vtanh.f32 %v297_v53  ;;  %v299_v58 = vmul.f32 0.7978846, %v291_v54  ;;  %v293_v63 = vadd.f32 %v285_v61, %v597_v41  ;;  %v259_v13 = vmul.f32 0.5, %v582_v25 }
 0x222   :  { %440 = vtanh.f32 %v298_v55  ;;  %v300_v60 = vmul.f32 0.7978846, %v292_v56  ;;  %v294_v2 = vadd.f32 %v286_v0, %v604_v48  ;;  %v260_v15 = vmul.f32 0.5, %v586_v29 }
 0x223   :  { %442 = vtanh.f32 %v299_v58  ;;  %v301_v1 = vmul.f32 0.7978846, %v293_v63  ;;  %v261_v34 = vmul.f32 0.5, %v597_v41  ;;  %v262_v36 = vmul.f32 0.5, %v604_v48 }
 0x224   :  { %444 = vtanh.f32 %v300_v60  ;;  %v302_v4 = vmul.f32 0.7978846, %v294_v2 }
 0x225   :  { %446 = vtanh.f32 %v301_v1 }
 0x226   :  { %448 = vtanh.f32 %v302_v4 }
 0x229   :  { %v435_v3 = vpop.eup %434 }
 0x22a   :  { %v437_v5 = vpop.eup %436  ;;  %v311_v7 = vadd.f32 1.0, %v435_v3 }
 0x22b   :  { %v439_v8 = vpop.eup %438  ;;  %v312_v10 = vadd.f32 1.0, %v437_v5 }
 0x22c   :  { %v441_v11 = vpop.eup %440  ;;  %v319_v12 = vmul.f32 %v311_v7, %v255_v6  ;;  %v313_v16 = vadd.f32 1.0, %v439_v8 }
 0x22d   :  { %v443_v17 = vpop.eup %442  ;;  %v320_v19 = vmul.f32 %v312_v10, %v256_v9  ;;  %v314_v22 = vadd.f32 1.0, %v441_v11 }
 0x22e   :  { %v445_v23 = vpop.eup %444  ;;  %v321_v24 = vmul.f32 %v313_v16, %v257_v14  ;;  %v315_v26 = vadd.f32 1.0, %v443_v17 }
 0x22f   :  { %v381_v27 = vpack.c.bf16 %v320_v19, %v319_v12  ;;  %v322_v28 = vmul.f32 %v314_v22, %v258_v20  ;;  %v316_v30 = vadd.f32 1.0, %v445_v23  ;;  %v447_v33 = vpop.eup %446 }
 0x230   :  { %v323_v31 = vmul.f32 %v315_v26, %v259_v13  ;;  %v317_v25 = vadd.f32 1.0, %v447_v33  ;;  %v449_v35 = vpop.eup %448 }
 0x231   :  { %351 = vst [vmem:[%s643_s5] sm:$0xff] %v381_v27  ;;  %v382_v18 = vpack.c.bf16 %v322_v28, %v321_v24  ;;  %v324_v32 = vmul.f32 %v316_v30, %v260_v15  ;;  %v318_v37 = vadd.f32 1.0, %v449_v35 }
 0x232   :  { %v325_v29 = vmul.f32 %v317_v25, %v261_v34 }
 0x233   :  { %352 = vst [vmem:[%s643_s5 + $0x8] sm:$0xff] %v382_v18  ;;  %v383_v21 = vpack.c.bf16 %v324_v32, %v323_v31  ;;  %v326_v38 = vmul.f32 %v318_v37, %v262_v36 }
 0x235   :  { %353 = vst [vmem:[%s643_s5 + $0x10] sm:$0xff] %v383_v21  ;;  %v384_v39 = vpack.c.bf16 %v326_v38, %v325_v29 }
 0x237   :  { %354 = vst [vmem:[%s643_s5 + $0x18] sm:$0xff] %v384_v39 }

// kernel: conformer_block.13
= control target key start
LH: loop header
LB: loop body
LE: loop exit
PB: predicated region body
PF: predicated region fallthrough
CT: control target
= control target key end

     0   :  { %s1780_s6 = smov 0   ;;  %s2096_s0 = inlined_call_operand.vmem [shape: bf16[2,16,384], index: 0, kind: input, shape index: {}]   ;;  %s2097_s1 = inlined_call_operand.vmem [shape: bf16[2,16,128], index: 1, kind: output, shape index: {}]  }
   0x1 LB: > { %s1436_s7 = sadd.s32 4294967295, %s1759_s6   ;;  %p1440_p0 = scmp.ge.s32.totalorder %s1759_s6, 1  ;;  %s1759_s6 = sphi %s1780_s6, %s11_s6  }
   0x2   : > { %p87_p1 = scmp.lt.s32.totalorder %s1759_s6, 3 }
   0x4   : > { %p88_p2 = pnand %p1440_p0, %p87_p1 }
   0x5   : > { %p107_p3 = scmp.lt.s32.totalorder (!%p88_p2), %s1436_s7, 1  ;;  %v1761_v0 = vmov (!%p88_p2), 0.0   ;;  %vm1762_vm0 = vmmov (!%p88_p2), 0   ;;  %vm134_vm1 = vcmask (!%p88_p2), 130048   ;;  %s1763_s12 = smov (!%p88_p2), 112   ;;  %vm265_vm2 = vcmask (!%p88_p2), 125952  }
   0x6   : > { %91 = sbr.rel (%p88_p2) target bundleno = 1543 (0x607), region = 24  ;;  %1551 = vmatprep.subr.bf16.mxu0 (!%p88_p2), %v1761_v0  ;;  %1553 = vmatprep.mubr.msk.bf16.mxu0 (!%p88_p2), %vm1762_vm0, %v1761_v0  ;;  %s1764_s13 = smov (!%p88_p2), 80   ;;  %vm424_vm3 = vcmask (!%p88_p2), 257152   ;;  %vm583_vm4 = vcmask (!%p88_p2), 388352   ;;  %vm742_vm5 = vcmask (!%p88_p2), 519552   ;;  %vm901_vm6 = vcmask (!%p88_p2), 650752  }
   0x7   : > { %1557 = vmatprep.subr.bf16.mxu1 (!%p88_p2), %v1761_v0  ;;  %1559 = vmatprep.mubr.msk.bf16.mxu1 (!%p88_p2), %vm1762_vm0, %v1761_v0  ;;  %s1765_s14 = smov (!%p88_p2), 64   ;;  %s1766_s15 = smov (!%p88_p2), 48   ;;  %vm1060_vm7 = vcmask (!%p88_p2), 781952   ;;  %vm1219_vm8 = vcmask (!%p88_p2), 913152   ;;  %vm1378_vm9 = vcmask (!%p88_p2), 1044352  }
   0x8   : > { %s1767_s16 = smov (!%p88_p2), 32   ;;  %s1768_s17 = smov (!%p88_p2), 16  }
   0x9   : > { %s1769_s18 = smov (!%p88_p2), 96  }
   0xd   : > { %s2099_s7 = smov (!%p107_p3, %s1436_s7), 1 }
   0xe   : > { %s1647_s8 = smul.u32 24, %s2099_s7  ;;  %s1502_s19 = sshll.u32 %s2099_s7, 3 }
   0xf   : > { %s1882_s22 = scalar_lea.vmem %s2097_s1, %s1502_s19 }
  0x10   : > { %s1800_s11 = scalar_lea.vmem %s2096_s0, %s1647_s8 }
  0x11   : > { %v1665_v1 = vld [vmem:[%s1800_s11 + $0x4] ss:$12 sps:$4 sm:$0xff]   ;;  %v1666_v3 = vld [vmem:[%s1800_s11] ss:$12 sps:$4 sm:$0xff]   ;;  %v1681_v29 = vld [vmem:[%s1800_s11 + $0x8] ss:$12 sps:$4 sm:$0xff]  }
  0x12   : > { %v139_v2 = vsel %vm134_vm1, %v1665_v1, 0  ;;  %v1667_v12 = vld [vmem:[%s1800_s11 + $0x4] ss:$12 sps:$4 sm:$0xff]   ;;  %v1668_v28 = vld [vmem:[%s1800_s11] ss:$12 sps:$4 sm:$0xff]   ;;  %1558 = vmatpush3.bf16.msra.mxu1 %v1681_v29 }
  0x13   : > { %1552 = vmatpush3.bf16.xpose.msra.mxu0 %v139_v2  ;;  %v1670_v13 = vld [vmem:[%s1800_s11 + $0x4] ss:$12 sps:$4 sm:$0xff]   ;;  %1563 = vmatprep.subr.bf16.mxu1 %v1761_v0  ;;  %v1671_v31 = vld [vmem:[%s1800_s11] ss:$12 sps:$4 sm:$0xff]  }
  0x14   : > { %1569 = vmatprep.subr.bf16.mxu0 %v1761_v0  ;;  %v1672_v14 = vld [vmem:[%s1800_s11 + $0x4] ss:$12 sps:$4 sm:$0xff]   ;;  %v1673_v32 = vld [vmem:[%s1800_s11] ss:$12 sps:$4 sm:$0xff]  }
  0x15   : > { %v1674_v15 = vld [vmem:[%s1800_s11 + $0x4] ss:$12 sps:$4 sm:$0xff]   ;;  %v1675_v33 = vld [vmem:[%s1800_s11] ss:$12 sps:$4 sm:$0xff]  }
  0x16   : > { %v1676_v16 = vld [vmem:[%s1800_s11 + $0x4] ss:$12 sps:$4 sm:$0xff]   ;;  %v1677_v34 = vld [vmem:[%s1800_s11] ss:$12 sps:$4 sm:$0xff]  }
  0x17   : > { %v1678_v17 = vld [vmem:[%s1800_s11 + $0x4] ss:$12 sps:$4 sm:$0xff]   ;;  %v1679_v35 = vld [vmem:[%s1800_s11] ss:$12 sps:$4 sm:$0xff]  }
  0x18   : > { %v1669_v30 = vld [vmem:[%s1800_s11 + $0x4] ss:$12 sps:$4 sm:$0xff]   ;;  %v1680_v36 = vld [vmem:[%s1800_s11] ss:$12 sps:$4 sm:$0xff]  }
  0x1a   : > { %1554 = vmatmul.mubr.msk.bf16.vlgmr.msra.gmra.mrb[0].mxu0 %vm134_vm1, %v1666_v3 }
  0x1b   : > { %1571 = vmatprep.mubr.msk.bf16.mxu0 %vm1762_vm0, %v1761_v0 }
  0xed   : > { %v175_v4 = vpop.f32.mrb[0].mxu0 }
  0xee   : > { %v182_v5 = vmul.f32 0.25, %v175_v4  ;;  %v1555_v6 = vpop.f32.mrb[1].mxu0 }
  0xef   : > { %v178_v7 = vpop.f32.mrb[2].mxu0 }
  0xf0   : > { %v183_v8 = vmul.f32 0.25, %v178_v7  ;;  %v1556_v9 = vpop.f32.mrb[3].mxu0  ;;  %v184_v10 = vsel %vm134_vm1, %v182_v5, -inf }
  0xf1   : > { %185 = vmax.xlane.f32.xlu0 %v184_v10 }
  0xf2   : > { %v187_v11 = vsel %vm134_vm1, %v183_v8, -inf }
  0xf5   : > { %188 = vmax.xlane.f32.xlu0 %v187_v11 }
 0x10b   : > { %286 = vrot.lane.b32.xlu0 %v1667_v12, %s1763_s12 }
 0x10f   : > { %604 = vrot.lane.b32.xlu0 %v1670_v13, %s1764_s13 }
 0x113   : > { %763 = vrot.lane.b32.xlu0 %v1672_v14, %s1765_s14 }
 0x117   : > { %922 = vrot.lane.b32.xlu0 %v1674_v15, %s1766_s15 }
 0x11b   : > { %1081 = vrot.lane.b32.xlu0 %v1676_v16, %s1767_s16 }
 0x11f   : > { %1240 = vrot.lane.b32.xlu0 %v1678_v17, %s1768_s17 }
 0x17e   : > { %v186_v18 = vpop.xlane.xlu0 %185 }
 0x17f   : > { %v190_v19 = vsub.f32 %v182_v5, %v186_v18 }
 0x181   : > { %v192_v20 = vmul.f32 1.442695, %v190_v19 }
 0x182   : > { %v189_v21 = vpop.xlane.xlu0 %188 }
 0x183   : > { %1689 = vpow2.f32 %v192_v20  ;;  %v191_v22 = vsub.f32 %v183_v8, %v189_v21 }
 0x185   : > { %v194_v23 = vmul.f32 1.442695, %v191_v22 }
 0x186   : > { %v287_v41 = vpop.permute.xlu0 %286 }
 0x187   : > { %1691 = vpow2.f32 %v194_v23  ;;  %v292_v45 = vsel %vm134_vm1, %v287_v41, 0 }
 0x18a   : > { %v605_v49 = vpop.permute.xlu0 %604 }
 0x18b   : > { %v610_v51 = vsel %vm134_vm1, %v605_v49, 0 }
 0x18d   : > { %v1690_v24 = vpop.eup %1689 }
 0x18e   : > { %v196_v25 = vsel %vm134_vm1, %v1690_v24, 0.0  ;;  %v764_v52 = vpop.permute.xlu0 %763 }
 0x18f   : > { %197 = vadd.xlane.f32.xlu1 %v196_v25  ;;  %v769_v54 = vsel %vm134_vm1, %v764_v52, 0 }
 0x191   : > { %v1692_v26 = vpop.eup %1691 }
 0x192   : > { %v199_v27 = vsel %vm134_vm1, %v1692_v26, 0.0  ;;  %v923_v55 = vpop.permute.xlu0 %922 }
 0x193   : > { %200 = vadd.xlane.f32.xlu1 %v199_v27  ;;  %v928_v57 = vsel %vm134_vm1, %v923_v55, 0 }
 0x196   : > { %v1082_v58 = vpop.permute.xlu0 %1081 }
 0x197   : > { %v1087_v60 = vsel %vm134_vm1, %v1082_v58, 0 }
 0x19a   : > { %v1241_v61 = vpop.permute.xlu0 %1240 }
 0x19b   : > { %v1246_v63 = vsel %vm134_vm1, %v1241_v61, 0 }
 0x1a4   : > { %279 = vrot.lane.b32.xlu1 %v1668_v28, %s1763_s12 }
 0x1a8   : > { %445 = vrot.lane.b32.xlu1 %v1669_v30, %s1769_s18 }
 0x1ac   : > { %438 = vrot.lane.b32.xlu1 %v1671_v31, %s1769_s18 }
 0x1b0   : > { %597 = vrot.lane.b32.xlu1 %v1673_v32, %s1764_s13 }
 0x1b4   : > { %756 = vrot.lane.b32.xlu1 %v1675_v33, %s1765_s14 }
 0x1b8   : > { %915 = vrot.lane.b32.xlu1 %v1677_v34, %s1766_s15 }
 0x1bc   : > { %1074 = vrot.lane.b32.xlu1 %v1679_v35, %s1767_s16 }
 0x1c0   : > { %1233 = vrot.lane.b32.xlu1 %v1680_v36, %s1768_s17 }
 0x21c   : > { %v198_v37 = vpop.xlane.xlu1 %197 }
 0x21d   : > { %1693 = vrcp.f32 %v198_v37 }
 0x220   : > { %v201_v38 = vpop.xlane.xlu1 %200 }
 0x221   : > { %1695 = vrcp.f32 %v201_v38 }
 0x224   : > { %v280_v44 = vpop.permute.xlu1 %279 }
 0x227   : > { %v1694_v39 = vpop.eup %1693 }
 0x228   : > { %v203_v42 = vmul.f32 %v1694_v39, %v1690_v24  ;;  %v446_v47 = vpop.permute.xlu1 %445 }
 0x229   : > { %v451_v48 = vsel %vm134_vm1, %v446_v47, 0 }
 0x22b   : > { %v1696_v40 = vpop.eup %1695 }
 0x22c   : > { %v205_v43 = vmul.f32 %v1696_v40, %v1692_v26  ;;  %v439_v50 = vpop.permute.xlu1 %438 }
 0x22e   : > { %v206_v46 = vpack.c.bf16 %v205_v43, %v203_v42 }
 0x230   : > { %1560 = vmatmul.mubr.msk.bf16.vlgmr.msra.gmra.mrb[0].mxu1 %vm134_vm1, %v206_v46  ;;  %v598_v53 = vpop.permute.xlu1 %597 }
 0x231   : > { %1564 = vmatpush3.bf16.xpose.msra.mxu1 %v292_v45  ;;  %1565 = vmatprep.mubr.msk.bf16.mxu1 %vm1762_vm0, %v1761_v0 }
 0x232   : > { %1575 = vmatprep.subr.bf16.mxu1 %v1761_v0 }
 0x234   : > { %v757_v56 = vpop.permute.xlu1 %756 }
 0x238   : > { %1566 = vmatmul.mubr.msk.bf16.vlgmr.msra.gmra.mrb[4].mxu1 %vm134_vm1, %v280_v44  ;;  %v916_v59 = vpop.permute.xlu1 %915 }
 0x239   : > { %1576 = vmatpush3.bf16.xpose.msra.mxu1 %v451_v48  ;;  %1577 = vmatprep.mubr.msk.bf16.mxu1 %vm1762_vm0, %v1761_v0 }
 0x23a   : > { %1587 = vmatprep.subr.bf16.mxu1 %v1761_v0 }
 0x23c   : > { %v1075_v62 = vpop.permute.xlu1 %1074 }
 0x240   : > { %1578 = vmatmul.mubr.msk.bf16.vlgmr.msra.gmra.mrb[8].mxu1 %vm134_vm1, %v439_v50  ;;  %v1234_v1 = vpop.permute.xlu1 %1233 }
 0x241   : > { %1588 = vmatpush3.bf16.xpose.msra.mxu1 %v610_v51  ;;  %1589 = vmatprep.mubr.msk.bf16.mxu1 %vm1762_vm0, %v1761_v0 }
 0x242   : > { %1599 = vmatprep.subr.bf16.mxu1 %v1761_v0 }
 0x248   : > { %1590 = vmatmul.mubr.msk.bf16.vlgmr.msra.gmra.mrb[12].mxu1 %vm134_vm1, %v598_v53 }
 0x249   : > { %1600 = vmatpush3.bf16.xpose.msra.mxu1 %v769_v54  ;;  %1601 = vmatprep.mubr.msk.bf16.mxu1 %vm1762_vm0, %v1761_v0 }
 0x24a   : > { %1611 = vmatprep.subr.bf16.mxu1 %v1761_v0 }
 0x250   : > { %1602 = vmatmul.mubr.msk.bf16.vlgmr.msra.gmra.mrb[16].mxu1 %vm134_vm1, %v757_v56 }
 0x251   : > { %1612 = vmatpush3.bf16.xpose.msra.mxu1 %v928_v57  ;;  %1613 = vmatprep.mubr.msk.bf16.mxu1 %vm1762_vm0, %v1761_v0 }
 0x252   : > { %1623 = vmatprep.subr.bf16.mxu1 %v1761_v0 }
 0x258   : > { %1614 = vmatmul.mubr.msk.bf16.vlgmr.msra.gmra.mrb[20].mxu1 %vm134_vm1, %v916_v59 }
 0x259   : > { %1624 = vmatpush3.bf16.xpose.msra.mxu1 %v1087_v60  ;;  %1625 = vmatprep.mubr.msk.bf16.mxu1 %vm1762_vm0, %v1761_v0 }
 0x25a   : > { %1635 = vmatprep.subr.bf16.mxu1 %v1761_v0 }
 0x260   : > { %1626 = vmatmul.mubr.msk.bf16.vlgmr.msra.gmra.mrb[24].mxu1 %vm134_vm1, %v1075_v62  ;;  %v1682_v62 = vld [vmem:[%s1800_s11 + $0x8] ss:$12 sps:$4 sm:$0xff]  }
 0x261   : > { %1636 = vmatpush3.bf16.xpose.msra.mxu1 %v1246_v63  ;;  %1637 = vmatprep.mubr.msk.bf16.mxu1 %vm1762_vm0, %v1761_v0  ;;  %v1683_v63 = vld [vmem:[%s1800_s11 + $0x8] ss:$12 sps:$4 sm:$0xff]  }
 0x268   : > { %1638 = vmatmul.mubr.msk.bf16.vlgmr.msra.gmra.mrb[28].mxu1 %vm134_vm1, %v1234_v1 }
 0x303   : > { %v250_v2 = vpop.f32.mrb[0].mxu1 }
 0x304   : > { %v1503_v3 = vpack.c.bf16 %v250_v2, %v250_v2  ;;  %v1561_v4 = vpop.f32.mrb[1].mxu1 }
 0x305   : > { %v253_v5 = vpop.f32.mrb[2].mxu1 }
 0x306   : > { %266 = vst.msk [vmem:[%s1882_s22] sm:$0xf] %vm265_vm2, %v1503_v3  ;;  %v1504_v6 = vpack.c.bf16 %v253_v5, %v253_v5  ;;  %v1562_v7 = vpop.f32.mrb[3].mxu1 }
 0x308   : > { %267 = vst.msk [vmem:[%s1882_s22 + $0x4] sm:$0xf] %vm265_vm2, %v1504_v6 }
 0x30b   : > { %v328_v8 = vpop.f32.mrb[4].mxu1 }
 0x30c   : > { %v1886_v9 = vmul.f32 0.25, %v328_v8  ;;  %v1567_v10 = vpop.f32.mrb[5].mxu1 }
 0x30d   : > { %v331_v11 = vpop.f32.mrb[6].mxu1 }
 0x30e   : > { %v1888_v12 = vmul.f32 0.25, %v331_v11  ;;  %v1568_v13 = vpop.f32.mrb[7].mxu1  ;;  %v337_v14 = vsel %vm134_vm1, %v1886_v9, -inf }
 0x30f   : > { %338 = vmax.xlane.f32.xlu0 %v337_v14 }
 0x310   : > { %v340_v15 = vsel %vm134_vm1, %v1888_v12, -inf }
 0x311   : > { %341 = vmax.xlane.f32.xlu1 %v340_v15 }
 0x313   : > { %v487_v16 = vpop.f32.mrb[8].mxu1 }
 0x314   : > { %v1894_v17 = vmul.f32 0.25, %v487_v16  ;;  %v1579_v18 = vpop.f32.mrb[9].mxu1 }
 0x315   : > { %v490_v19 = vpop.f32.mrb[10].mxu1 }
 0x316   : > { %v1896_v20 = vmul.f32 0.25, %v490_v19  ;;  %v1580_v21 = vpop.f32.mrb[11].mxu1  ;;  %v496_v22 = vsel %vm134_vm1, %v1894_v17, -inf }
 0x317   : > { %497 = vmax.xlane.f32.xlu0 %v496_v22 }
 0x318   : > { %v499_v23 = vsel %vm134_vm1, %v1896_v20, -inf }
 0x31b   : > { %500 = vmax.xlane.f32.xlu0 %v499_v23  ;;  %v646_v24 = vpop.f32.mrb[12].mxu1 }
 0x31c   : > { %v1902_v25 = vmul.f32 0.25, %v646_v24  ;;  %v1591_v26 = vpop.f32.mrb[13].mxu1 }
 0x31d   : > { %v649_v27 = vpop.f32.mrb[14].mxu1 }
 0x31e   : > { %v1904_v28 = vmul.f32 0.25, %v649_v27  ;;  %v1592_v29 = vpop.f32.mrb[15].mxu1  ;;  %v655_v30 = vsel %vm134_vm1, %v1902_v25, -inf }
 0x31f   : > { %656 = vmax.xlane.f32.xlu0 %v655_v30 }
 0x320   : > { %v658_v31 = vsel %vm134_vm1, %v1904_v28, -inf }
 0x321   : > { %659 = vmax.xlane.f32.xlu1 %v658_v31 }
 0x323   : > { %v805_v32 = vpop.f32.mrb[16].mxu1 }
 0x324   : > { %v1910_v33 = vmul.f32 0.25, %v805_v32  ;;  %v1603_v34 = vpop.f32.mrb[17].mxu1 }
 0x325   : > { %v808_v35 = vpop.f32.mrb[18].mxu1 }
 0x326   : > { %v1912_v36 = vmul.f32 0.25, %v808_v35  ;;  %v1604_v37 = vpop.f32.mrb[19].mxu1  ;;  %v814_v38 = vsel %vm134_vm1, %v1910_v33, -inf }
 0x327   : > { %815 = vmax.xlane.f32.xlu0 %v814_v38 }
 0x328   : > { %v817_v39 = vsel %vm134_vm1, %v1912_v36, -inf }
 0x329   : > { %818 = vmax.xlane.f32.xlu1 %v817_v39 }
 0x32b   : > { %v964_v40 = vpop.f32.mrb[20].mxu1 }
 0x32c   : > { %v1918_v41 = vmul.f32 0.25, %v964_v40  ;;  %v1615_v42 = vpop.f32.mrb[21].mxu1 }
 0x32d   : > { %v967_v43 = vpop.f32.mrb[22].mxu1 }
 0x32e   : > { %v1920_v44 = vmul.f32 0.25, %v967_v43  ;;  %v1616_v45 = vpop.f32.mrb[23].mxu1  ;;  %v973_v46 = vsel %vm134_vm1, %v1918_v41, -inf }
 0x32f   : > { %974 = vmax.xlane.f32.xlu0 %v973_v46 }
 0x330   : > { %v976_v47 = vsel %vm134_vm1, %v1920_v44, -inf }
 0x331   : > { %977 = vmax.xlane.f32.xlu1 %v976_v47 }
 0x333   : > { %v1123_v48 = vpop.f32.mrb[24].mxu1 }
 0x334   : > { %v1926_v49 = vmul.f32 0.25, %v1123_v48  ;;  %v1627_v50 = vpop.f32.mrb[25].mxu1 }
 0x335   : > { %v1126_v51 = vpop.f32.mrb[26].mxu1 }
 0x336   : > { %v1928_v52 = vmul.f32 0.25, %v1126_v51  ;;  %v1628_v53 = vpop.f32.mrb[27].mxu1  ;;  %v1132_v54 = vsel %vm134_vm1, %v1926_v49, -inf }
 0x337   : > { %1133 = vmax.xlane.f32.xlu0 %v1132_v54 }
 0x338   : > { %v1135_v55 = vsel %vm134_vm1, %v1928_v52, -inf }
 0x339   : > { %1136 = vmax.xlane.f32.xlu1 %v1135_v55 }
 0x33b   : > { %v1282_v56 = vpop.f32.mrb[28].mxu1 }
 0x33c   : > { %v1639_v57 = vpop.f32.mrb[29].mxu1  ;;  %v1942_v1 = vmul.f32 0.25, %v1282_v56  ;;  %v1684_v56 = vld [vmem:[%s1800_s11 + $0x8] ss:$12 sps:$4 sm:$0xff]  }
 0x33d   : > { %v1285_v58 = vpop.f32.mrb[30].mxu1 }
 0x33e   : > { %v1934_v59 = vmul.f32 0.25, %v1285_v58  ;;  %v1640_v60 = vpop.f32.mrb[31].mxu1  ;;  %v1291_v2 = vsel %vm134_vm1, %v1942_v1, -inf }
 0x340   : > { %v1294_v61 = vsel %vm134_vm1, %v1934_v59, -inf }
 0x341   : > { %1295 = vmax.xlane.f32.xlu1 %v1294_v61 }
 0x34d   : > { %365 = vrot.lane.b32.xlu0 %v1682_v62, %s1763_s12 }
 0x352   : > { %524 = vrot.lane.b32.xlu1 %v1683_v63, %s1769_s18 }
 0x36c   : > { %1292 = vmax.xlane.f32.xlu0 %v1291_v2 }
 0x39c   : > { %v339_v3 = vpop.xlane.xlu0 %338 }
 0x39d   : > { %v343_v4 = vsub.f32 %v1886_v9, %v339_v3 }
 0x39e   : > { %v342_v5 = vpop.xlane.xlu1 %341 }
 0x39f   : > { %v345_v6 = vmul.f32 1.442695, %v343_v4  ;;  %v344_v7 = vsub.f32 %v1888_v12, %v342_v5 }
 0x3a1   : > { %1697 = vpow2.f32 %v345_v6  ;;  %v347_v8 = vmul.f32 1.442695, %v344_v7 }
 0x3a3   : > { %1699 = vpow2.f32 %v347_v8 }
 0x3a4   : > { %v498_v10 = vpop.xlane.xlu0 %497 }
 0x3a5   : > { %v502_v11 = vsub.f32 %v1894_v17, %v498_v10 }
 0x3a7   : > { %v504_v13 = vmul.f32 1.442695, %v502_v11 }
 0x3a8   : > { %v501_v14 = vpop.xlane.xlu0 %500 }
 0x3a9   : > { %1701 = vpow2.f32 %v504_v13  ;;  %v503_v15 = vsub.f32 %v1896_v20, %v501_v14  ;;  %v1686_v13 = vld [vmem:[%s1800_s11 + $0x8] ss:$12 sps:$4 sm:$0xff]  }
 0x3ab   : > { %v1950_v16 = vpop.eup %1697  ;;  %v506_v18 = vmul.f32 1.442695, %v503_v15 }
 0x3ac   : > { %v657_v19 = vpop.xlane.xlu0 %656  ;;  %v349_v9 = vsel %vm134_vm1, %v1950_v16, 0.0 }
 0x3ad   : > { %v1954_v21 = vpop.eup %1699  ;;  %1703 = vpow2.f32 %v506_v18  ;;  %v661_v12 = vsub.f32 %v1902_v25, %v657_v19  ;;  %350 = vadd.xlane.f32.xlu0 %v349_v9  ;;  %v1688_v18 = vld [vmem:[%s1800_s11 + $0x8] ss:$12 sps:$4 sm:$0xff]  }
 0x3ae   : > { %v660_v22 = vpop.xlane.xlu1 %659  ;;  %v352_v17 = vsel %vm134_vm1, %v1954_v21, 0.0  ;;  %v1685_v19 = vld [vmem:[%s1800_s11 + $0x8] ss:$12 sps:$4 sm:$0xff]  }
 0x3af   : > { %v663_v23 = vmul.f32 1.442695, %v661_v12  ;;  %v662_v20 = vsub.f32 %v1904_v28, %v660_v22  ;;  %353 = vadd.xlane.f32.xlu1 %v352_v17 }
 0x3b1   : > { %1705 = vpow2.f32 %v663_v23  ;;  %v665_v24 = vmul.f32 1.442695, %v662_v20 }
 0x3b3   : > { %v1960_v26 = vpop.eup %1701  ;;  %1707 = vpow2.f32 %v665_v24 }
 0x3b4   : > { %v508_v27 = vsel %vm134_vm1, %v1960_v26, 0.0  ;;  %v816_v31 = vpop.xlane.xlu0 %815 }
 0x3b5   : > { %509 = vadd.xlane.f32.xlu0 %v508_v27  ;;  %v820_v60 = vsub.f32 %v1910_v33, %v816_v31 }
 0x3b6   : > { %v819_v29 = vpop.xlane.xlu1 %818 }
 0x3b7   : > { %v1964_v25 = vpop.eup %1703  ;;  %v821_v30 = vsub.f32 %v1912_v36, %v819_v29  ;;  %v822_v61 = vmul.f32 1.442695, %v820_v60 }
 0x3b8   : > { %v511_v32 = vsel %vm134_vm1, %v1964_v25, 0.0 }
 0x3b9   : > { %v824_v28 = vmul.f32 1.442695, %v821_v30  ;;  %512 = vadd.xlane.f32.xlu1 %v511_v32 }
 0x3bb   : > { %v1969_v34 = vpop.eup %1705  ;;  %1709 = vpow2.f32 %v824_v28 }
 0x3bc   : > { %v975_v35 = vpop.xlane.xlu0 %974  ;;  %v667_v37 = vsel %vm134_vm1, %v1969_v34, 0.0 }
 0x3bd   : > { %v1973_v38 = vpop.eup %1707  ;;  %v979_v39 = vsub.f32 %v1918_v41, %v975_v35  ;;  %668 = vadd.xlane.f32.xlu0 %v667_v37 }
 0x3be   : > { %v978_v40 = vpop.xlane.xlu1 %977  ;;  %v670_v36 = vsel %vm134_vm1, %v1973_v38, 0.0 }
 0x3bf   : > { %v981_v42 = vmul.f32 1.442695, %v979_v39  ;;  %v980_v43 = vsub.f32 %v1920_v44, %v978_v40  ;;  %671 = vadd.xlane.f32.xlu1 %v670_v36 }
 0x3c1   : > { %1711 = vpow2.f32 %v981_v42  ;;  %v983_v45 = vmul.f32 1.442695, %v980_v43 }
 0x3c3   : > { %1713 = vpow2.f32 %v983_v45 }
 0x3c4   : > { %v1134_v46 = vpop.xlane.xlu0 %1133 }
 0x3c5   : > { %v1979_v47 = vpop.eup %1709  ;;  %v1138_v62 = vsub.f32 %v1926_v49, %v1134_v46 }
 0x3c6   : > { %v1137_v48 = vpop.xlane.xlu1 %1136  ;;  %v829_v41 = vsel %vm134_vm1, %v1979_v47, 0.0 }
 0x3c7   : > { %v1139_v50 = vsub.f32 %v1928_v52, %v1137_v48  ;;  %830 = vadd.xlane.f32.xlu1 %v829_v41  ;;  %v1140_v63 = vmul.f32 1.442695, %v1138_v62 }
 0x3c8   : > { %v366_v51 = vpop.permute.xlu0 %365 }
 0x3c9   : > { %v1142_v53 = vmul.f32 1.442695, %v1139_v50  ;;  %1570 = vmatpush3.bf16.msra.mxu0 %v366_v51 }
 0x3ca   : > { %1581 = vmatprep.subr.bf16.mxu0 %v1761_v0 }
 0x3cb   : > { %v1985_v44 = vpop.eup %1711  ;;  %1715 = vpow2.f32 %v1142_v53 }
 0x3cc   : > { %v985_v54 = vsel %vm134_vm1, %v1985_v44, 0.0  ;;  %1717 = vpow2.f32 %v822_v61 }
 0x3cd   : > { %v1989_v55 = vpop.eup %1713  ;;  %986 = vadd.xlane.f32.xlu1 %v985_v54  ;;  %1719 = vpow2.f32 %v1140_v63 }
 0x3ce   : > { %v988_v57 = vsel %vm134_vm1, %v1989_v55, 0.0  ;;  %v1296_v5 = vpop.xlane.xlu1 %1295 }
 0x3cf   : > { %v1298_v49 = vsub.f32 %v1934_v59, %v1296_v5  ;;  %v1687_v59 = vld [vmem:[%s1800_s11 + $0x8] ss:$12 sps:$4 sm:$0xff]  }
 0x3d1   : > { %989 = vadd.xlane.f32.xlu1 %v988_v57  ;;  %v1301_v8 = vmul.f32 1.442695, %v1298_v49 }
 0x3d2   : > { %v525_v9 = vpop.permute.xlu1 %524 }
 0x3d3   : > { %683 = vrot.lane.b32.xlu0 %v1684_v56, %s1764_s13 }
 0x3d5   : > { %v1995_v52 = vpop.eup %1715 }
 0x3d6   : > { %v1147_v58 = vsel %vm134_vm1, %v1995_v52, 0.0  ;;  %v2001_v2 = vpop.eup %1717 }
 0x3d7   : > { %1148 = vadd.xlane.f32.xlu1 %v1147_v58  ;;  %v826_v3 = vsel %vm134_vm1, %v2001_v2, 0.0  ;;  %v2005_v4 = vpop.eup %1719 }
 0x3d8   : > { %v1144_v33 = vsel %vm134_vm1, %v2005_v4, 0.0 }
 0x3f2   : > { %827 = vadd.xlane.f32.xlu0 %v826_v3 }
 0x3f6   : > { %1145 = vadd.xlane.f32.xlu0 %v1144_v33 }
 0x3f9   : > { %v1293_v6 = vpop.xlane.xlu0 %1292 }
 0x3fa   : > { %v1297_v7 = vsub.f32 %v1942_v1, %v1293_v6 }
 0x3fc   : > { %v1299_v10 = vmul.f32 1.442695, %v1297_v7 }
 0x3fe   : > { %1721 = vpow2.f32 %v1299_v10 }
 0x3ff   : > { %1723 = vpow2.f32 %v1301_v8 }
 0x408   : > { %v2011_v11 = vpop.eup %1721 }
 0x409   : > { %v1303_v14 = vsel %vm134_vm1, %v2011_v11, 0.0  ;;  %v2016_v15 = vpop.eup %1723 }
 0x40a   : > { %1304 = vadd.xlane.f32.xlu1 %v1303_v14  ;;  %v1306_v1 = vsel %vm134_vm1, %v2016_v15, 0.0 }
 0x40c   : > { %1001 = vrot.lane.b32.xlu0 %v1686_v13, %s1766_s15 }
 0x40e   : > { %1307 = vadd.xlane.f32.xlu1 %v1306_v1 }
 0x410   : > { %1160 = vrot.lane.b32.xlu0 %v1687_v59, %s1767_s16 }
 0x414   : > { %1319 = vrot.lane.b32.xlu0 %v1688_v18, %s1768_s17 }
 0x41f   : > { %842 = vrot.lane.b32.xlu1 %v1685_v19, %s1765_s14 }
 0x43a   : > { %v351_v12 = vpop.xlane.xlu0 %350 }
 0x43b   : > { %1725 = vrcp.f32 %v351_v12 }
 0x43c   : > { %v354_v22 = vpop.xlane.xlu1 %353 }
 0x43d   : > { %1727 = vrcp.f32 %v354_v22 }
 0x442   : > { %v510_v17 = vpop.xlane.xlu0 %509 }
 0x443   : > { %1729 = vrcp.f32 %v510_v17 }
 0x445   : > { %v1726_v23 = vpop.eup %1725 }
 0x446   : > { %v513_v20 = vpop.xlane.xlu1 %512  ;;  %v356_v27 = vmul.f32 %v1726_v23, %v1950_v16 }
 0x447   : > { %v1728_v24 = vpop.eup %1727  ;;  %1731 = vrcp.f32 %v513_v20 }
 0x448   : > { %v358_v29 = vmul.f32 %v1728_v24, %v1954_v21 }
 0x44a   : > { %v669_v30 = vpop.xlane.xlu0 %668  ;;  %v359_v31 = vpack.c.bf16 %v358_v29, %v356_v27 }
 0x44b   : > { %1733 = vrcp.f32 %v669_v30 }
 0x44c   : > { %v672_v32 = vpop.xlane.xlu1 %671  ;;  %1572 = vmatmul.mubr.msk.bf16.vlgmr.msra.gmra.mrb[4].mxu0 %vm134_vm1, %v359_v31 }
 0x44d   : > { %1735 = vrcp.f32 %v672_v32  ;;  %1582 = vmatpush3.bf16.msra.mxu0 %v525_v9  ;;  %1583 = vmatprep.mubr.msk.bf16.mxu0 %vm1762_vm0, %v1761_v0  ;;  %v1730_v28 = vpop.eup %1729 }
 0x44e   : > { %1593 = vmatprep.subr.bf16.mxu0 %v1761_v0  ;;  %v515_v37 = vmul.f32 %v1730_v28, %v1960_v26  ;;  %v684_v39 = vpop.permute.xlu0 %683 }
 0x451   : > { %v1732_v35 = vpop.eup %1731 }
 0x452   : > { %v517_v16 = vmul.f32 %v1732_v35, %v1964_v25 }
 0x454   : > { %v518_v21 = vpack.c.bf16 %v517_v16, %v515_v37  ;;  %v831_v26 = vpop.xlane.xlu1 %830 }
 0x455   : > { %v1734_v40 = vpop.eup %1733 }
 0x456   : > { %1584 = vmatmul.mubr.msk.bf16.vlgmr.msra.gmra.mrb[8].mxu0 %vm134_vm1, %v518_v21  ;;  %v674_v43 = vmul.f32 %v1734_v40, %v1969_v34 }
 0x457   : > { %v1736_v36 = vpop.eup %1735  ;;  %1594 = vmatpush3.bf16.msra.mxu0 %v684_v39  ;;  %1595 = vmatprep.mubr.msk.bf16.mxu0 %vm1762_vm0, %v1761_v0 }
 0x458   : > { %v676_v42 = vmul.f32 %v1736_v36, %v1973_v38  ;;  %1605 = vmatprep.subr.bf16.mxu0 %v1761_v0 }
 0x45a   : > { %v677_v45 = vpack.c.bf16 %v676_v42, %v674_v43  ;;  %v987_v25 = vpop.xlane.xlu1 %986 }
 0x45e   : > { %1596 = vmatmul.mubr.msk.bf16.vlgmr.msra.gmra.mrb[12].mxu0 %vm134_vm1, %v677_v45  ;;  %v990_v48 = vpop.xlane.xlu1 %989 }
 0x45f   : > { %1607 = vmatprep.mubr.msk.bf16.mxu0 %vm1762_vm0, %v1761_v0 }
 0x464   : > { %v1149_v41 = vpop.xlane.xlu1 %1148 }
 0x47f   : > { %v828_v46 = vpop.xlane.xlu0 %827 }
 0x480   : > { %1737 = vrcp.f32 %v828_v46 }
 0x481   : > { %1739 = vrcp.f32 %v831_v26 }
 0x482   : > { %1741 = vrcp.f32 %v990_v48 }
 0x483   : > { %1743 = vrcp.f32 %v987_v25  ;;  %v1146_v54 = vpop.xlane.xlu0 %1145 }
 0x484   : > { %1745 = vrcp.f32 %v1146_v54 }
 0x485   : > { %1747 = vrcp.f32 %v1149_v41 }
 0x487   : > { %v1002_v60 = vpop.permute.xlu0 %1001 }
 0x48a   : > { %v1738_v38 = vpop.eup %1737 }
 0x48b   : > { %v1740_v53 = vpop.eup %1739  ;;  %v833_v34 = vmul.f32 %v1738_v38, %v2001_v2  ;;  %v1161_v3 = vpop.permute.xlu0 %1160 }
 0x48c   : > { %v835_v56 = vmul.f32 %v1740_v53, %v1979_v47  ;;  %v1742_v61 = vpop.eup %1741 }
 0x48d   : > { %v1744_v62 = vpop.eup %1743  ;;  %v994_v63 = vmul.f32 %v1742_v61, %v1989_v55 }
 0x48e   : > { %v836_v58 = vpack.c.bf16 %v835_v56, %v833_v34  ;;  %v992_v47 = vmul.f32 %v1744_v62, %v1985_v44  ;;  %v1746_v5 = vpop.eup %1745 }
 0x48f   : > { %v1748_v33 = vpop.eup %1747  ;;  %v1151_v49 = vmul.f32 %v1746_v5, %v2005_v4  ;;  %v1320_v44 = vpop.permute.xlu0 %1319 }
 0x490   : > { %v995_v2 = vpack.c.bf16 %v994_v63, %v992_v47  ;;  %v1153_v55 = vmul.f32 %v1748_v33, %v1995_v52 }
 0x492   : > { %v1154_v6 = vpack.c.bf16 %v1153_v55, %v1151_v49 }
 0x497   : > { %v1305_v50 = vpop.xlane.xlu1 %1304 }
 0x49b   : > { %v1308_v51 = vpop.xlane.xlu1 %1307 }
 0x49c   : > { %1749 = vrcp.f32 %v1308_v51 }
 0x49d   : > { %1751 = vrcp.f32 %v1305_v50 }
 0x49f   : > { %v843_v57 = vpop.permute.xlu1 %842 }
 0x4a0   : > { %1606 = vmatpush3.bf16.msra.mxu0 %v843_v57 }
 0x4a1   : > { %1617 = vmatprep.subr.bf16.mxu0 %v1761_v0 }
 0x4a3   : > { %1608 = vmatmul.mubr.msk.bf16.vlgmr.msra.gmra.mrb[16].mxu0 %vm134_vm1, %v836_v58 }
 0x4a4   : > { %1618 = vmatpush3.bf16.msra.mxu0 %v1002_v60  ;;  %1619 = vmatprep.mubr.msk.bf16.mxu0 %vm1762_vm0, %v1761_v0 }
 0x4a5   : > { %1629 = vmatprep.subr.bf16.mxu0 %v1761_v0 }
 0x4a6   : > { %v1750_v7 = vpop.eup %1749 }
 0x4a7   : > { %v1752_v8 = vpop.eup %1751  ;;  %v1312_v10 = vmul.f32 %v1750_v7, %v2016_v15 }
 0x4a8   : > { %v1310_v13 = vmul.f32 %v1752_v8, %v2011_v11 }
 0x4aa   : > { %v1313_v14 = vpack.c.bf16 %v1312_v10, %v1310_v13 }
 0x4ab   : > { %1620 = vmatmul.mubr.msk.bf16.vlgmr.msra.gmra.mrb[20].mxu0 %vm134_vm1, %v995_v2 }
 0x4ac   : > { %1630 = vmatpush3.bf16.msra.mxu0 %v1161_v3  ;;  %1631 = vmatprep.mubr.msk.bf16.mxu0 %vm1762_vm0, %v1761_v0 }
 0x4ad   : > { %1641 = vmatprep.subr.bf16.mxu0 %v1761_v0 }
 0x4b3   : > { %1632 = vmatmul.mubr.msk.bf16.vlgmr.msra.gmra.mrb[24].mxu0 %vm134_vm1, %v1154_v6 }
 0x4b4   : > { %1642 = vmatpush3.bf16.msra.mxu0 %v1320_v44  ;;  %1643 = vmatprep.mubr.msk.bf16.mxu0 %vm1762_vm0, %v1761_v0 }
 0x4bb   : > { %1644 = vmatmul.mubr.msk.bf16.vlgmr.msra.gmra.mrb[28].mxu0 %vm134_vm1, %v1313_v14 }
 0x51f   : > { %v405_v4 = vpop.f32.mrb[4].mxu0 }
 0x520   : > { %v1505_v59 = vpack.c.bf16 %v405_v4, %v405_v4  ;;  %v1573_v52 = vpop.f32.mrb[5].mxu0 }
 0x521   : > { %v408_v1 = vpop.f32.mrb[6].mxu0 }
 0x522   : > { %v1506_v18 = vpack.c.bf16 %v408_v1, %v408_v1  ;;  %418 = vrot.lane.b32.xlu1 %v1505_v59, %s1768_s17  ;;  %v1574_v19 = vpop.f32.mrb[7].mxu0 }
 0x524   : > { %420 = vrot.lane.b32.xlu0 %v1506_v18, %s1768_s17 }
 0x529   : > { %v564_v9 = vpop.f32.mrb[8].mxu0 }
 0x52a   : > { %v1507_v12 = vpack.c.bf16 %v564_v9, %v564_v9  ;;  %v1585_v0 = vpop.f32.mrb[9].mxu0 }
 0x52b   : > { %v567_v22 = vpop.f32.mrb[10].mxu0 }
 0x52c   : > { %v1508_v15 = vpack.c.bf16 %v567_v22, %v567_v22  ;;  %577 = vrot.lane.b32.xlu1 %v1507_v12, %s1767_s16  ;;  %v1586_v11 = vpop.f32.mrb[11].mxu0 }
 0x52e   : > { %579 = vrot.lane.b32.xlu0 %v1508_v15, %s1767_s16 }
 0x531   : > { %v723_v17 = vpop.f32.mrb[12].mxu0 }
 0x532   : > { %v1509_v23 = vpack.c.bf16 %v723_v17, %v723_v17  ;;  %v1597_v20 = vpop.f32.mrb[13].mxu0 }
 0x533   : > { %v726_v24 = vpop.f32.mrb[14].mxu0 }
 0x534   : > { %v1510_v27 = vpack.c.bf16 %v726_v24, %v726_v24  ;;  %736 = vrot.lane.b32.xlu1 %v1509_v23, %s1766_s15  ;;  %v1598_v29 = vpop.f32.mrb[15].mxu0 }
 0x536   : > { %738 = vrot.lane.b32.xlu0 %v1510_v27, %s1766_s15 }
 0x576   : > { %v882_v30 = vpop.f32.mrb[16].mxu0 }
 0x577   : > { %v1511_v31 = vpack.c.bf16 %v882_v30, %v882_v30  ;;  %v1609_v32 = vpop.f32.mrb[17].mxu0 }
 0x578   : > { %v885_v28 = vpop.f32.mrb[18].mxu0 }
 0x579   : > { %v1512_v35 = vpack.c.bf16 %v885_v28, %v885_v28  ;;  %895 = vrot.lane.b32.xlu1 %v1511_v31, %s1765_s14  ;;  %v1610_v37 = vpop.f32.mrb[19].mxu0 }
 0x57b   : > { %897 = vrot.lane.b32.xlu0 %v1512_v35, %s1765_s14 }
 0x57e   : > { %v1041_v16 = vpop.f32.mrb[20].mxu0 }
 0x57f   : > { %v1513_v21 = vpack.c.bf16 %v1041_v16, %v1041_v16  ;;  %v1621_v39 = vpop.f32.mrb[21].mxu0 }
 0x580   : > { %v1044_v40 = vpop.f32.mrb[22].mxu0 }
 0x581   : > { %v1514_v36 = vpack.c.bf16 %v1044_v40, %v1044_v40  ;;  %1054 = vrot.lane.b32.xlu1 %v1513_v21, %s1764_s13  ;;  %v1622_v42 = vpop.f32.mrb[23].mxu0 }
 0x583   : > { %1056 = vrot.lane.b32.xlu0 %v1514_v36, %s1764_s13 }
 0x586   : > { %v1200_v43 = vpop.f32.mrb[24].mxu0 }
 0x587   : > { %v1515_v45 = vpack.c.bf16 %v1200_v43, %v1200_v43  ;;  %v1633_v26 = vpop.f32.mrb[25].mxu0 }
 0x588   : > { %v1203_v25 = vpop.f32.mrb[26].mxu0 }
 0x589   : > { %v1516_v46 = vpack.c.bf16 %v1203_v25, %v1203_v25  ;;  %1213 = vrot.lane.b32.xlu1 %v1515_v45, %s1769_s18  ;;  %v1634_v48 = vpop.f32.mrb[27].mxu0 }
 0x58b   : > { %1215 = vrot.lane.b32.xlu0 %v1516_v46, %s1769_s18 }
 0x58e   : > { %v1359_v41 = vpop.f32.mrb[28].mxu0 }
 0x58f   : > { %v1517_v50 = vpack.c.bf16 %v1359_v41, %v1359_v41  ;;  %v1645_v38 = vpop.f32.mrb[29].mxu0 }
 0x590   : > { %v1362_v51 = vpop.f32.mrb[30].mxu0 }
 0x591   : > { %v1518_v53 = vpack.c.bf16 %v1362_v51, %v1362_v51  ;;  %1372 = vrot.lane.b32.xlu1 %v1517_v50, %s1763_s12  ;;  %v1646_v34 = vpop.f32.mrb[31].mxu0 }
 0x593   : > { %1374 = vrot.lane.b32.xlu0 %v1518_v53, %s1763_s12 }
 0x594   : > { %v419_v54 = vpop.permute.xlu1 %418 }
 0x595   : > { %425 = vst.msk [vmem:[%s1882_s22] sm:$0xf] %vm424_vm3, %v419_v54 }
 0x596   : > { %v421_v56 = vpop.permute.xlu0 %420 }
 0x597   : > { %426 = vst.msk [vmem:[%s1882_s22 + $0x4] sm:$0xf] %vm424_vm3, %v421_v56 }
 0x59e   : > { %v578_v57 = vpop.permute.xlu1 %577 }
 0x59f   : > { %584 = vst.msk [vmem:[%s1882_s22] sm:$0xf] %vm583_vm4, %v578_v57 }
 0x5a0   : > { %v580_v58 = vpop.permute.xlu0 %579 }
 0x5a1   : > { %585 = vst.msk [vmem:[%s1882_s22 + $0x4] sm:$0xf] %vm583_vm4, %v580_v58 }
 0x5a6   : > { %v737_v60 = vpop.permute.xlu1 %736 }
 0x5a7   : > { %743 = vst.msk [vmem:[%s1882_s22] sm:$0xf] %vm742_vm5, %v737_v60 }
 0x5a8   : > { %v739_v61 = vpop.permute.xlu0 %738 }
 0x5a9   : > { %744 = vst.msk [vmem:[%s1882_s22 + $0x4] sm:$0xf] %vm742_vm5, %v739_v61 }
 0x5eb   : > { %v896_v62 = vpop.permute.xlu1 %895 }
 0x5ec   : > { %902 = vst.msk [vmem:[%s1882_s22] sm:$0xf] %vm901_vm6, %v896_v62 }
 0x5ed   : > { %v898_v63 = vpop.permute.xlu0 %897 }
 0x5ee   : > { %903 = vst.msk [vmem:[%s1882_s22 + $0x4] sm:$0xf] %vm901_vm6, %v898_v63 }
 0x5f3   : > { %v1055_v47 = vpop.permute.xlu1 %1054 }
 0x5f4   : > { %1061 = vst.msk [vmem:[%s1882_s22] sm:$0xf] %vm1060_vm7, %v1055_v47 }
 0x5f5   : > { %v1057_v2 = vpop.permute.xlu0 %1056 }
 0x5f6   : > { %1062 = vst.msk [vmem:[%s1882_s22 + $0x4] sm:$0xf] %vm1060_vm7, %v1057_v2 }
 0x5fb   : > { %v1214_v3 = vpop.permute.xlu1 %1213 }
 0x5fc   : > { %1220 = vst.msk [vmem:[%s1882_s22] sm:$0xf] %vm1219_vm8, %v1214_v3 }
 0x5fd   : > { %v1216_v5 = vpop.permute.xlu0 %1215 }
 0x5fe   : > { %1221 = vst.msk [vmem:[%s1882_s22 + $0x4] sm:$0xf] %vm1219_vm8, %v1216_v5 }
 0x603   : > { %v1373_v33 = vpop.permute.xlu1 %1372 }
 0x604   : > { %1379 = vst.msk [vmem:[%s1882_s22] sm:$0xf] %vm1378_vm9, %v1373_v33 }
 0x605   : > { %v1375_v49 = vpop.permute.xlu0 %1374 }
 0x606   : > { %1380 = vst.msk [vmem:[%s1882_s22 + $0x4] sm:$0xf] %vm1378_vm9, %v1375_v49 }
 0x607 PF: > { %s11_s6 = sadd.s32 1, %s1759_s6  }
 0x608   : > { %p8_p4 = scmp.ge.s32.totalorder %s11_s6, 4  }
 0x60a   :  { %10 = sbr.rel (!%p8_p4) target bundleno = 1 (0x1), region = 54 }

// kernel: conformer_block.17
= control target key start
LH: loop header
LB: loop body
LE: loop exit
PB: predicated region body
PF: predicated region fallthrough
CT: control target
= control target key end

     0   :  { %s472_s1 = inlined_call_operand.vmem [shape: bf16[256,128], index: 1, kind: input, shape index: {}]   ;;  %s473_s0 = inlined_call_operand.vmem [shape: bf16[32,256], index: 0, kind: input, shape index: {}]   ;;  %s474_s2 = inlined_call_operand.vmem [shape: f32[1,128], index: 2, kind: input, shape index: {}]   ;;  %s475_s3 = inlined_call_operand.vmem [shape: f32[32,128], index: 3, kind: input, shape index: {}]   ;;  %s476_s4 = inlined_call_operand.vmem [shape: f32[32,128], index: 4, kind: output, shape index: {}]  }
   0x1   :  { %v338_v0 = vld [vmem:[%s472_s1 + $0x40] sm:$0xff]   ;;  %v340_v2 = vld [vmem:[%s472_s1 + $0x48] sm:$0xff]   ;;  %v342_v4 = vld [vmem:[%s472_s1 + $0x50] sm:$0xff]  }
   0x2   :  { %v339_v1 = vld [vmem:[%s472_s1] sm:$0xff]   ;;  %294 = vmatprep.subr.bf16.mxu0 %v338_v0  ;;  %322 = vmatprep.subr.bf16.mxu1 %v338_v0  ;;  %v341_v3 = vld [vmem:[%s472_s1 + $0x8] sm:$0xff]   ;;  %v343_v5 = vld [vmem:[%s472_s1 + $0x10] sm:$0xff]  }
   0x3   :  { %295 = vmatpush3.bf16.msra.mxu0 %v339_v1  ;;  %330 = vmatpush3.bf16.msra.mxu1 %v339_v1  ;;  %v344_v6 = vld [vmem:[%s472_s1 + $0x58] sm:$0xff]   ;;  %v346_v8 = vld [vmem:[%s472_s1 + $0x60] sm:$0xff]   ;;  %v348_v10 = vld [vmem:[%s472_s1 + $0x68] sm:$0xff]  }
   0x4   :  { %296 = vmatprep.subr.bf16.mxu0 %v340_v2  ;;  %323 = vmatprep.subr.bf16.mxu1 %v340_v2  ;;  %v345_v7 = vld [vmem:[%s472_s1 + $0x18] sm:$0xff]   ;;  %v347_v9 = vld [vmem:[%s472_s1 + $0x20] sm:$0xff]   ;;  %v349_v13 = vld [vmem:[%s472_s1 + $0x28] sm:$0xff]  }
   0x5   :  { %v356_v11 = vld [vmem:[%s473_s0 + $0x4] ss:$8 sps:$4 sm:$0xff]   ;;  %v359_v12 = vld [vmem:[%s473_s0 + $0x14] ss:$8 sps:$4 sm:$0xff]   ;;  %v354_v18 = vld [vmem:[%s473_s0] ss:$8 sps:$4 sm:$0xff]  }
   0x6   :  { %v350_v14 = vld [vmem:[%s472_s1 + $0x70] sm:$0xff]   ;;  %214 = vmatprep.mubr.bf16.mxu0 %v356_v11  ;;  %222 = vmatprep.mubr.bf16.mxu1 %v359_v12  ;;  %v352_v16 = vld [vmem:[%s472_s1 + $0x78] sm:$0xff]   ;;  %v293_v23 = vld [vmem:[%s474_s2] ss:$0 sm:$0xff] }
   0x7   :  { %297 = vmatpush3.bf16.msra.mxu0 %v341_v3  ;;  %331 = vmatpush3.bf16.msra.mxu1 %v341_v3  ;;  %v351_v15 = vld [vmem:[%s472_s1 + $0x30] sm:$0xff]   ;;  %v353_v17 = vld [vmem:[%s472_s1 + $0x38] sm:$0xff]   ;;  %v242_v29 = vld [vmem:[%s475_s3] sm:$0xff] }
   0x8   :  { %298 = vmatprep.subr.bf16.mxu0 %v342_v4  ;;  %324 = vmatprep.subr.bf16.mxu1 %v342_v4  ;;  %v357_v19 = vld [vmem:[%s473_s0 + $0x10] ss:$8 sps:$4 sm:$0xff]   ;;  %v243_v37 = vld [vmem:[%s475_s3 + $0x8] sm:$0xff] }
   0x9   :  { %v244_v30 = vld [vmem:[%s475_s3 + $0x10] sm:$0xff]  ;;  %v245_v38 = vld [vmem:[%s475_s3 + $0x18] sm:$0xff] }
   0xb   :  { %299 = vmatpush3.bf16.msra.mxu0 %v343_v5  ;;  %332 = vmatpush3.bf16.msra.mxu1 %v343_v5 }
   0xc   :  { %300 = vmatprep.subr.bf16.mxu0 %v344_v6  ;;  %325 = vmatprep.subr.bf16.mxu1 %v344_v6 }
   0xf   :  { %301 = vmatpush3.bf16.msra.mxu0 %v345_v7  ;;  %333 = vmatpush3.bf16.msra.mxu1 %v345_v7 }
  0x10   :  { %302 = vmatprep.subr.bf16.mxu0 %v346_v8  ;;  %326 = vmatprep.subr.bf16.mxu1 %v346_v8 }
  0x13   :  { %303 = vmatpush3.bf16.msra.mxu0 %v347_v9  ;;  %334 = vmatpush3.bf16.msra.mxu1 %v347_v9 }
  0x14   :  { %304 = vmatprep.subr.bf16.mxu0 %v348_v10  ;;  %327 = vmatprep.subr.bf16.mxu1 %v348_v10 }
  0x17   :  { %305 = vmatpush3.bf16.msra.mxu0 %v349_v13  ;;  %335 = vmatpush3.bf16.msra.mxu1 %v349_v13 }
  0x18   :  { %306 = vmatprep.subr.bf16.mxu0 %v350_v14  ;;  %328 = vmatprep.subr.bf16.mxu1 %v350_v14 }
  0x1b   :  { %307 = vmatpush3.bf16.msra.mxu0 %v351_v15  ;;  %336 = vmatpush3.bf16.msra.mxu1 %v351_v15 }
  0x1c   :  { %308 = vmatprep.subr.bf16.mxu0 %v352_v16  ;;  %329 = vmatprep.subr.bf16.mxu1 %v352_v16 }
  0x1f   :  { %309 = vmatpush3.bf16.msra.mxu0 %v353_v17  ;;  %337 = vmatpush3.bf16.msra.mxu1 %v353_v17 }
  0x22   :  { %215 = vmatmul.mubr.bf16.vlgmr.msra.gmra.mrb[0].mxu0 %v354_v18  ;;  %223 = vmatmul.mubr.bf16.vlgmr.msra.gmra.mrb[0].mxu1 %v357_v19 }
  0xf5   :  { %v310_v20 = vpop.f32.mrb[0].mxu0  ;;  %v316_v21 = vpop.f32.mrb[0].mxu1 }
  0xf6   :  { %v311_v22 = vpop.f32.mrb[1].mxu0  ;;  %v317_v24 = vpop.f32.mrb[1].mxu1 }
  0xf7   :  { %v312_v25 = vadd.f32 %v311_v22, %v310_v20  ;;  %v318_v26 = vadd.f32 %v317_v24, %v316_v21  ;;  %v313_v27 = vpop.f32.mrb[2].mxu0  ;;  %v319_v28 = vpop.f32.mrb[2].mxu1 }
  0xf8   :  { %v314_v31 = vpop.f32.mrb[3].mxu0  ;;  %v320_v32 = vpop.f32.mrb[3].mxu1 }
  0xf9   :  { %v257_v33 = vadd.f32 %v312_v25, %v293_v23  ;;  %v259_v34 = vadd.f32 %v318_v26, %v293_v23  ;;  %v315_v35 = vadd.f32 %v314_v31, %v313_v27  ;;  %v321_v36 = vadd.f32 %v320_v32, %v319_v28 }
  0xfb   :  { %v261_v39 = vadd.f32 %v257_v33, %v242_v29  ;;  %v263_v40 = vadd.f32 %v259_v34, %v244_v30  ;;  %v258_v41 = vadd.f32 %v315_v35, %v293_v23  ;;  %v260_v42 = vadd.f32 %v321_v36, %v293_v23 }
  0xfd   :  { %265 = vst [vmem:[%s476_s4] sm:$0xff] %v261_v39  ;;  %267 = vst [vmem:[%s476_s4 + $0x10] sm:$0xff] %v263_v40  ;;  %v262_v43 = vadd.f32 %v258_v41, %v243_v37  ;;  %v264_v44 = vadd.f32 %v260_v42, %v245_v38 }
  0xff   :  { %266 = vst [vmem:[%s476_s4 + $0x8] sm:$0xff] %v262_v43  ;;  %268 = vst [vmem:[%s476_s4 + $0x18] sm:$0xff] %v264_v44 }

// kernel: conformer_block.18
= control target key start
LH: loop header
LB: loop body
LE: loop exit
PB: predicated region body
PF: predicated region fallthrough
CT: control target
= control target key end

     0   :  { %v757_v50 = vmov 0   ;;  %s1080_s0 = inlined_call_operand.vmem [shape: f32[32,128], index: 0, kind: input, shape index: {}]   ;;  %s1081_s3 = inlined_call_operand.vmem [shape: bf16[128,512], index: 3, kind: input, shape index: {}]   ;;  %s1082_s1 = inlined_call_operand.vmem [shape: f32[1,128], index: 1, kind: input, shape index: {}]   ;;  %s1083_s2 = inlined_call_operand.vmem [shape: f32[1,128], index: 2, kind: input, shape index: {}]   ;;  %s1084_s4 = inlined_call_operand.vmem [shape: f32[1,512], index: 4, kind: input, shape index: {}]   ;;  %s1085_s5 = inlined_call_operand.vmem [shape: bf16[32,512], index: 5, kind: output, shape index: {}]  }
   0x1   :  { %v21_v0 = vld [vmem:[%s1080_s0] sm:$0xff]  ;;  %v23_v1 = vld [vmem:[%s1080_s0 + $0x10] sm:$0xff]  ;;  %v22_v2 = vld [vmem:[%s1080_s0 + $0x8] sm:$0xff]  ;;  %340 = vmatprep.mubr.bf16.mxu0 %v757_v50  ;;  %393 = vmatprep.mubr.bf16.mxu1 %v757_v50 }
   0x2   :  { %25 = vadd.xlane.f32.xlu0 %v21_v0  ;;  %29 = vadd.xlane.f32.xlu1 %v23_v1  ;;  %v24_v3 = vld [vmem:[%s1080_s0 + $0x18] sm:$0xff]  ;;  %v669_v4 = vld [vmem:[%s1081_s3 + $0x4] ss:$16 sps:$4 sm:$0xff]   ;;  %v673_v6 = vld [vmem:[%s1081_s3] ss:$16 sps:$4 sm:$0xff]  }
   0x3   :  { %v671_v5 = vld [vmem:[%s1081_s3 + $0xc] ss:$16 sps:$4 sm:$0xff]   ;;  %308 = vmatprep.subr.bf16.mxu0 %v669_v4  ;;  %v674_v7 = vld [vmem:[%s1081_s3 + $0x8] ss:$16 sps:$4 sm:$0xff]   ;;  %v675_v8 = vld [vmem:[%s1081_s3 + $0x24] ss:$16 sps:$4 sm:$0xff]  }
   0x4   :  { %361 = vmatprep.subr.bf16.mxu1 %v671_v5  ;;  %309 = vmatpush1.bf16.msra.mxu0 %v673_v6  ;;  %v677_v9 = vld [vmem:[%s1081_s3 + $0x2c] ss:$16 sps:$4 sm:$0xff]   ;;  %v679_v26 = vld [vmem:[%s1081_s3 + $0x20] ss:$16 sps:$4 sm:$0xff]   ;;  %v680_v27 = vld [vmem:[%s1081_s3 + $0x28] ss:$16 sps:$4 sm:$0xff]  }
   0x5   :  { %362 = vmatpush1.bf16.msra.mxu1 %v674_v7  ;;  %310 = vmatprep.subr.bf16.mxu0 %v675_v8  ;;  %v681_v28 = vld [vmem:[%s1081_s3 + $0x44] ss:$16 sps:$4 sm:$0xff]   ;;  %v683_v29 = vld [vmem:[%s1081_s3 + $0x4c] ss:$16 sps:$4 sm:$0xff]   ;;  %v685_v30 = vld [vmem:[%s1081_s3 + $0x40] ss:$16 sps:$4 sm:$0xff]  }
   0x6   :  { %27 = vadd.xlane.f32.xlu0 %v22_v2  ;;  %31 = vadd.xlane.f32.xlu1 %v24_v3  ;;  %v686_v31 = vld [vmem:[%s1081_s3 + $0x48] ss:$16 sps:$4 sm:$0xff]   ;;  %v687_v32 = vld [vmem:[%s1081_s3 + $0x64] ss:$16 sps:$4 sm:$0xff]   ;;  %v689_v33 = vld [vmem:[%s1081_s3 + $0x6c] ss:$16 sps:$4 sm:$0xff]  }
   0x7   :  { %363 = vmatprep.subr.bf16.mxu1 %v677_v9  ;;  %v691_v34 = vld [vmem:[%s1081_s3 + $0x60] ss:$16 sps:$4 sm:$0xff]   ;;  %v692_v35 = vld [vmem:[%s1081_s3 + $0x68] ss:$16 sps:$4 sm:$0xff]   ;;  %v693_v36 = vld [vmem:[%s1081_s3 + $0x84] ss:$16 sps:$4 sm:$0xff]  }
   0x8   :  { %311 = vmatpush1.bf16.msra.mxu0 %v679_v26  ;;  %v695_v37 = vld [vmem:[%s1081_s3 + $0x8c] ss:$16 sps:$4 sm:$0xff]   ;;  %v697_v38 = vld [vmem:[%s1081_s3 + $0x80] ss:$16 sps:$4 sm:$0xff]   ;;  %v698_v39 = vld [vmem:[%s1081_s3 + $0x88] ss:$16 sps:$4 sm:$0xff]  }
   0x9   :  { %364 = vmatpush1.bf16.msra.mxu1 %v680_v27  ;;  %312 = vmatprep.subr.bf16.mxu0 %v681_v28  ;;  %v699_v40 = vld [vmem:[%s1081_s3 + $0xa4] ss:$16 sps:$4 sm:$0xff]   ;;  %v701_v41 = vld [vmem:[%s1081_s3 + $0xac] ss:$16 sps:$4 sm:$0xff]   ;;  %v703_v42 = vld [vmem:[%s1081_s3 + $0xa0] ss:$16 sps:$4 sm:$0xff]  }
   0xa   :  { %365 = vmatprep.subr.bf16.mxu1 %v683_v29  ;;  %v704_v43 = vld [vmem:[%s1081_s3 + $0xa8] ss:$16 sps:$4 sm:$0xff]   ;;  %v705_v44 = vld [vmem:[%s1081_s3 + $0xc4] ss:$16 sps:$4 sm:$0xff]   ;;  %v707_v45 = vld [vmem:[%s1081_s3 + $0xcc] ss:$16 sps:$4 sm:$0xff]  }
   0xb   :  { %v709_v46 = vld [vmem:[%s1081_s3 + $0xc0] ss:$16 sps:$4 sm:$0xff]   ;;  %v710_v47 = vld [vmem:[%s1081_s3 + $0xc8] ss:$16 sps:$4 sm:$0xff]   ;;  %v711_v48 = vld [vmem:[%s1081_s3 + $0xe4] ss:$16 sps:$4 sm:$0xff]  }
   0xc   :  { %313 = vmatpush1.bf16.msra.mxu0 %v685_v30  ;;  %v713_v49 = vld [vmem:[%s1081_s3 + $0xec] ss:$16 sps:$4 sm:$0xff]   ;;  %v715_v51 = vld [vmem:[%s1081_s3 + $0xe0] ss:$16 sps:$4 sm:$0xff]   ;;  %v716_v52 = vld [vmem:[%s1081_s3 + $0xe8] ss:$16 sps:$4 sm:$0xff]  }
   0xd   :  { %366 = vmatpush1.bf16.msra.mxu1 %v686_v31  ;;  %314 = vmatprep.subr.bf16.mxu0 %v687_v32  ;;  %v619_v8 = vld [vmem:[%s1083_s2] ss:$0 sm:$0xff] }
   0xe   :  { %367 = vmatprep.subr.bf16.mxu1 %v689_v33 }
  0x10   :  { %315 = vmatpush1.bf16.msra.mxu0 %v691_v34 }
  0x11   :  { %368 = vmatpush1.bf16.msra.mxu1 %v692_v35  ;;  %316 = vmatprep.subr.bf16.mxu0 %v693_v36 }
  0x12   :  { %369 = vmatprep.subr.bf16.mxu1 %v695_v37 }
  0x14   :  { %317 = vmatpush1.bf16.msra.mxu0 %v697_v38 }
  0x15   :  { %370 = vmatpush1.bf16.msra.mxu1 %v698_v39  ;;  %318 = vmatprep.subr.bf16.mxu0 %v699_v40 }
  0x16   :  { %371 = vmatprep.subr.bf16.mxu1 %v701_v41 }
  0x18   :  { %319 = vmatpush1.bf16.msra.mxu0 %v703_v42 }
  0x19   :  { %372 = vmatpush1.bf16.msra.mxu1 %v704_v43  ;;  %320 = vmatprep.subr.bf16.mxu0 %v705_v44 }
  0x1a   :  { %373 = vmatprep.subr.bf16.mxu1 %v707_v45 }
  0x1c   :  { %321 = vmatpush1.bf16.msra.mxu0 %v709_v46 }
  0x1d   :  { %374 = vmatpush1.bf16.msra.mxu1 %v710_v47  ;;  %322 = vmatprep.subr.bf16.mxu0 %v711_v48 }
  0x1e   :  { %375 = vmatprep.subr.bf16.mxu1 %v713_v49 }
  0x20   :  { %323 = vmatpush1.bf16.msra.mxu0 %v715_v51 }
  0x21   :  { %376 = vmatpush1.bf16.msra.mxu1 %v716_v52 }
  0x8f   :  { %v26_v10 = vpop.xlane.xlu0 %25  ;;  %v30_v11 = vpop.xlane.xlu1 %29 }
  0x90   :  { %v34_v12 = vmul.f32 0.0078125, %v26_v10  ;;  %v36_v13 = vmul.f32 0.0078125, %v30_v11 }
  0x92   :  { %v818_v14 = vsub.f32 %v21_v0, %v34_v12  ;;  %v820_v15 = vsub.f32 %v23_v1, %v36_v13 }
  0x93   :  { %v28_v16 = vpop.xlane.xlu0 %27  ;;  %v32_v17 = vpop.xlane.xlu1 %31 }
  0x94   :  { %v35_v18 = vmul.f32 0.0078125, %v28_v16  ;;  %v42_v19 = vmul.f32 %v818_v14, %v818_v14  ;;  %v37_v20 = vmul.f32 0.0078125, %v32_v17  ;;  %v44_v23 = vmul.f32 %v820_v15, %v820_v15 }
  0x96   :  { %v824_v21 = vsub.f32 %v22_v2, %v35_v18  ;;  %46 = vadd.xlane.f32.xlu0 %v42_v19  ;;  %v826_v22 = vsub.f32 %v24_v3, %v37_v20  ;;  %v618_v3 = vld [vmem:[%s1082_s1] ss:$0 sm:$0xff] }
  0x98   :  { %v43_v24 = vmul.f32 %v824_v21, %v824_v21  ;;  %v45_v25 = vmul.f32 %v826_v22, %v826_v22 }
  0x9a   :  { %50 = vadd.xlane.f32.xlu0 %v44_v23  ;;  %48 = vadd.xlane.f32.xlu1 %v43_v24  ;;  %v128_v23 = vlaneseq }
  0x9c   :  { %v129_v24 = vshrl.u32 %v128_v23, 7 }
  0x9e   :  { %52 = vadd.xlane.f32.xlu1 %v45_v25  ;;  %v130_v25 = vsub.s32 0, %v129_v24  ;;  %v138_v26 = vsub.s32 2, %v129_v24  ;;  %v142_v27 = vsub.s32 3, %v129_v24 }
 0x123   :  { %v47_v53 = vpop.xlane.xlu0 %46 }
 0x124   :  { %v54_v54 = vmul.f32 0.0078125, %v47_v53 }
 0x126   :  { %v58_v55 = vadd.f32 1e-05, %v54_v54 }
 0x127   :  { %v49_v56 = vpop.xlane.xlu1 %48  ;;  %v51_v57 = vpop.xlane.xlu0 %50 }
 0x128   :  { %717 = vrsqrt.f32 %v58_v55  ;;  %v55_v58 = vmul.f32 0.0078125, %v49_v56  ;;  %v56_v59 = vmul.f32 0.0078125, %v51_v57 }
 0x12a   :  { %v59_v60 = vadd.f32 1e-05, %v55_v58  ;;  %v60_v61 = vadd.f32 1e-05, %v56_v59 }
 0x12b   :  { %v53_v62 = vpop.xlane.xlu1 %52 }
 0x12c   :  { %719 = vrsqrt.f32 %v59_v60  ;;  %v57_v63 = vmul.f32 0.0078125, %v53_v62 }
 0x12d   :  { %721 = vrsqrt.f32 %v60_v61 }
 0x12e   :  { %v61_v0 = vadd.f32 1e-05, %v57_v63 }
 0x130   :  { %723 = vrsqrt.f32 %v61_v0 }
 0x132   :  { %v718_v1 = vpop.eup %717 }
 0x133   :  { %v66_v2 = vmul.f32 %v718_v1, %v818_v14 }
 0x135   :  { %v77_v6 = vmul.f32 %v618_v3, %v66_v2 }
 0x136   :  { %v720_v4 = vpop.eup %719 }
 0x137   :  { %v67_v5 = vmul.f32 %v720_v4, %v824_v21  ;;  %v722_v7 = vpop.eup %721  ;;  %v88_v11 = vadd.f32 %v619_v8, %v77_v6 }
 0x138   :  { %v68_v13 = vmul.f32 %v722_v7, %v820_v15  ;;  %v126_v15 = vld [vmem:[%s1084_s4] sm:$0xf] }
 0x139   :  { %v78_v9 = vmul.f32 %v618_v3, %v67_v5  ;;  %v925_v28 = vrot.slane %v126_v15, %v130_v25  ;;  %v927_v29 = vrot.slane %v126_v15, %v138_v26  ;;  %v931_v31 = vrot.slane %v126_v15, %v142_v27 }
 0x13a   :  { %v724_v10 = vpop.eup %723  ;;  %v79_v18 = vmul.f32 %v618_v3, %v68_v13 }
 0x13b   :  { %v89_v12 = vadd.f32 %v619_v8, %v78_v9  ;;  %v69_v14 = vmul.f32 %v724_v10, %v826_v22  ;;  %v134_v22 = vsub.s32 1, %v129_v24 }
 0x13c   :  { %v90_v20 = vadd.f32 %v619_v8, %v79_v18 }
 0x13d   :  { %v92_v16 = vpack.c.bf16 %v89_v12, %v88_v11  ;;  %v80_v17 = vmul.f32 %v618_v3, %v69_v14  ;;  %v929_v30 = vrot.slane %v126_v15, %v134_v22 }
 0x13f   :  { %341 = vmatmul.mubr.bf16.vlgmr.msra.gmra.mrb[0].mxu0 %v92_v16  ;;  %394 = vmatmul.mubr.bf16.vlgmr.msra.gmra.mrb[0].mxu1 %v92_v16  ;;  %v91_v19 = vadd.f32 %v619_v8, %v80_v17 }
 0x140   :  { %350 = vmatprep.mubr.bf16.mxu0 %v757_v50  ;;  %403 = vmatprep.mubr.bf16.mxu1 %v757_v50 }
 0x141   :  { %v93_v21 = vpack.c.bf16 %v91_v19, %v90_v20 }
 0x147   :  { %351 = vmatmul.mubr.bf16.gmra.mrb[4].mxu0 %v93_v21  ;;  %404 = vmatmul.mubr.bf16.gmra.mrb[4].mxu1 %v93_v21 }
 0x212   :  { %v342_v32 = vpop.f32.mrb[0].mxu0  ;;  %v395_v33 = vpop.f32.mrb[0].mxu1 }
 0x213   :  { %v934_v34 = vadd.f32 %v342_v32, %v925_v28  ;;  %v937_v35 = vadd.f32 %v395_v33, %v927_v29  ;;  %v344_v36 = vpop.f32.mrb[1].mxu0  ;;  %v397_v37 = vpop.f32.mrb[1].mxu1 }
 0x214   :  { %v940_v38 = vadd.f32 %v344_v36, %v929_v30  ;;  %v943_v39 = vadd.f32 %v397_v37, %v931_v31  ;;  %v346_v40 = vpop.f32.mrb[2].mxu0  ;;  %v399_v41 = vpop.f32.mrb[2].mxu1 }
 0x215   :  { %v430_v42 = vmul.f32 0.044715, %v934_v34  ;;  %v432_v43 = vmul.f32 0.044715, %v937_v35  ;;  %v952_v48 = vadd.f32 %v346_v40, %v925_v28  ;;  %v955_v49 = vadd.f32 %v399_v41, %v927_v29  ;;  %v348_v50 = vpop.f32.mrb[3].mxu0  ;;  %v401_v51 = vpop.f32.mrb[3].mxu1 }
 0x216   :  { %v431_v44 = vmul.f32 0.044715, %v940_v38  ;;  %v433_v45 = vmul.f32 0.044715, %v943_v39  ;;  %v960_v54 = vadd.f32 %v348_v50, %v929_v30  ;;  %v972_v2 = vadd.f32 %v401_v51, %v931_v31 }
 0x217   :  { %v446_v46 = vmul.f32 %v430_v42, %v934_v34  ;;  %v448_v47 = vmul.f32 %v432_v43, %v937_v35  ;;  %v434_v57 = vmul.f32 0.044715, %v952_v48  ;;  %v436_v60 = vmul.f32 0.044715, %v955_v49 }
 0x218   :  { %v447_v52 = vmul.f32 %v431_v44, %v940_v38  ;;  %v449_v53 = vmul.f32 %v433_v45, %v943_v39  ;;  %v435_v8 = vmul.f32 0.044715, %v960_v54  ;;  %v437_v23 = vmul.f32 0.044715, %v972_v2 }
 0x219   :  { %v462_v55 = vmul.f32 %v446_v46, %v934_v34  ;;  %v464_v56 = vmul.f32 %v448_v47, %v937_v35  ;;  %v450_v1 = vmul.f32 %v434_v57, %v952_v48  ;;  %v452_v7 = vmul.f32 %v436_v60, %v955_v49 }
 0x21a   :  { %v463_v58 = vmul.f32 %v447_v52, %v940_v38  ;;  %v465_v59 = vmul.f32 %v449_v53, %v943_v39  ;;  %v352_v61 = vpop.f32.mrb[4].mxu0  ;;  %v405_v62 = vpop.f32.mrb[4].mxu1  ;;  %v451_v19 = vmul.f32 %v435_v8, %v960_v54  ;;  %v453_v27 = vmul.f32 %v437_v23, %v972_v2 }
 0x21b   :  { %v478_v63 = vadd.f32 %v462_v55, %v934_v34  ;;  %v480_v0 = vadd.f32 %v464_v56, %v937_v35  ;;  %v354_v3 = vpop.f32.mrb[5].mxu0  ;;  %v407_v4 = vpop.f32.mrb[5].mxu1  ;;  %v466_v13 = vmul.f32 %v450_v1, %v952_v48  ;;  %v468_v18 = vmul.f32 %v452_v7, %v955_v49 }
 0x21c   :  { %v479_v5 = vadd.f32 %v463_v58, %v940_v38  ;;  %v481_v6 = vadd.f32 %v465_v59, %v943_v39  ;;  %v356_v9 = vpop.f32.mrb[6].mxu0  ;;  %v978_v10 = vpop.f32.mrb[6].mxu1  ;;  %v990_v24 = vadd.f32 %v352_v61, %v925_v28  ;;  %v467_v26 = vmul.f32 %v451_v19, %v960_v54 }
 0x21d   :  { %v494_v11 = vmul.f32 0.7978846, %v478_v63  ;;  %v496_v12 = vmul.f32 0.7978846, %v480_v0  ;;  %v981_v14 = vpop.f32.mrb[7].mxu0  ;;  %v985_v20 = vpop.f32.mrb[7].mxu1  ;;  %v482_v21 = vadd.f32 %v466_v13, %v952_v48  ;;  %v484_v25 = vadd.f32 %v468_v18, %v955_v49 }
 0x21e   :  { %v495_v16 = vmul.f32 0.7978846, %v479_v5  ;;  %v497_v17 = vmul.f32 0.7978846, %v481_v6  ;;  %v995_v15 = vadd.f32 %v405_v62, %v927_v29  ;;  %v483_v33 = vadd.f32 %v467_v26, %v960_v54 }
 0x21f   :  { %725 = vtanh.f32 %v494_v11  ;;  %v498_v22 = vmul.f32 0.7978846, %v482_v21  ;;  %v500_v32 = vmul.f32 0.7978846, %v484_v25  ;;  %v438_v36 = vmul.f32 0.044715, %v990_v24 }
 0x220   :  { %727 = vtanh.f32 %v496_v12  ;;  %v414_v37 = vmul.f32 0.5, %v934_v34  ;;  %v469_v40 = vmul.f32 %v453_v27, %v972_v2  ;;  %v440_v41 = vmul.f32 0.044715, %v995_v15 }
 0x221   :  { %729 = vtanh.f32 %v495_v16  ;;  %v499_v42 = vmul.f32 0.7978846, %v483_v33  ;;  %v454_v43 = vmul.f32 %v438_v36, %v990_v24  ;;  %v1005_v44 = vadd.f32 %v354_v3, %v929_v30 }
 0x222   :  { %731 = vtanh.f32 %v497_v17  ;;  %v485_v45 = vadd.f32 %v469_v40, %v972_v2  ;;  %v456_v46 = vmul.f32 %v440_v41, %v995_v15  ;;  %v1010_v47 = vadd.f32 %v407_v4, %v931_v31 }
 0x223   :  { %733 = vtanh.f32 %v498_v22  ;;  %v1013_v34 = vadd.f32 %v356_v9, %v925_v28  ;;  %v416_v50 = vmul.f32 0.5, %v937_v35  ;;  %v470_v51 = vmul.f32 %v454_v43, %v990_v24 }
 0x224   :  { %735 = vtanh.f32 %v500_v32  ;;  %v439_v52 = vmul.f32 0.044715, %v1005_v44  ;;  %v415_v53 = vmul.f32 0.5, %v940_v38  ;;  %v501_v55 = vmul.f32 0.7978846, %v485_v45 }
 0x225   :  { %737 = vtanh.f32 %v499_v42  ;;  %v472_v56 = vmul.f32 %v456_v46, %v995_v15  ;;  %v441_v57 = vmul.f32 0.044715, %v1010_v47  ;;  %v417_v58 = vmul.f32 0.5, %v943_v39 }
 0x226   :  { %v486_v59 = vadd.f32 %v470_v51, %v990_v24  ;;  %v455_v28 = vmul.f32 %v439_v52, %v1005_v44  ;;  %v442_v35 = vmul.f32 0.044715, %v1013_v34  ;;  %v418_v61 = vmul.f32 0.5, %v952_v48 }
 0x227   :  { %739 = vtanh.f32 %v501_v55  ;;  %v488_v62 = vadd.f32 %v472_v56, %v995_v15  ;;  %v457_v38 = vmul.f32 %v441_v57, %v1010_v47  ;;  %v1033_v48 = vadd.f32 %v978_v10, %v927_v29 }
 0x228   :  { %v502_v1 = vmul.f32 0.7978846, %v486_v59  ;;  %v471_v3 = vmul.f32 %v455_v28, %v1005_v44  ;;  %v458_v39 = vmul.f32 %v442_v35, %v1013_v34  ;;  %v419_v10 = vmul.f32 0.5, %v960_v54 }
 0x229   :  { %v726_v60 = vpop.eup %725  ;;  %v504_v6 = vmul.f32 0.7978846, %v488_v62  ;;  %v473_v7 = vmul.f32 %v457_v38, %v1010_v47  ;;  %v444_v27 = vmul.f32 0.044715, %v1033_v48  ;;  %v420_v43 = vmul.f32 0.5, %v955_v49 }
 0x22a   :  { %v728_v63 = vpop.eup %727  ;;  %v526_v0 = vadd.f32 1.0, %v726_v60  ;;  %741 = vtanh.f32 %v502_v1  ;;  %v487_v12 = vadd.f32 %v471_v3, %v1005_v44  ;;  %v474_v26 = vmul.f32 %v458_v39, %v1013_v34 }
 0x22b   :  { %v730_v4 = vpop.eup %729  ;;  %v528_v5 = vadd.f32 1.0, %v728_v63  ;;  %743 = vtanh.f32 %v504_v6  ;;  %v489_v18 = vadd.f32 %v473_v7, %v1010_v47  ;;  %v460_v54 = vmul.f32 %v444_v27, %v1033_v48 }
 0x22c   :  { %v732_v8 = vpop.eup %731  ;;  %v542_v9 = vmul.f32 %v526_v0, %v414_v37  ;;  %v527_v11 = vadd.f32 1.0, %v730_v4  ;;  %v503_v25 = vmul.f32 0.7978846, %v487_v12  ;;  %v490_v42 = vadd.f32 %v474_v26, %v1013_v34 }
 0x22d   :  { %v734_v13 = vpop.eup %733  ;;  %v544_v16 = vmul.f32 %v528_v5, %v416_v50  ;;  %v529_v17 = vadd.f32 1.0, %v732_v8  ;;  %v505_v22 = vmul.f32 0.7978846, %v489_v18  ;;  %v359_v45 = vadd.f32 %v981_v14, %v929_v30 }
 0x22e   :  { %v736_v19 = vpop.eup %735  ;;  %v543_v21 = vmul.f32 %v527_v11, %v415_v53  ;;  %v530_v23 = vadd.f32 1.0, %v734_v13  ;;  %745 = vtanh.f32 %v503_v25  ;;  %v412_v46 = vadd.f32 %v985_v20, %v931_v31 }
 0x22f   :  { %v545_v29 = vmul.f32 %v529_v17, %v417_v58  ;;  %v738_v32 = vpop.eup %737  ;;  %v532_v37 = vadd.f32 1.0, %v736_v19  ;;  %747 = vtanh.f32 %v505_v22  ;;  %v421_v53 = vmul.f32 0.5, %v972_v2 }
 0x230   :  { %v660_v33 = vpack.c.bf16 %v543_v21, %v542_v9  ;;  %v546_v36 = vmul.f32 %v530_v23, %v418_v61  ;;  %v531_v41 = vadd.f32 1.0, %v738_v32  ;;  %v476_v49 = vmul.f32 %v460_v54, %v1033_v48 }
 0x231   :  { %v661_v40 = vpack.c.bf16 %v545_v29, %v544_v16  ;;  %v740_v50 = vpop.eup %739  ;;  %v548_v52 = vmul.f32 %v532_v37, %v420_v43  ;;  %v506_v57 = vmul.f32 0.7978846, %v490_v42  ;;  %v443_v58 = vmul.f32 0.044715, %v359_v45 }
 0x232   :  { %606 = vst [vmem:[%s1085_s5] sm:$0xff] %v660_v33  ;;  %v547_v51 = vmul.f32 %v531_v41, %v419_v10  ;;  %v533_v55 = vadd.f32 1.0, %v740_v50  ;;  %v445_v59 = vmul.f32 0.044715, %v412_v46  ;;  %v492_v31 = vadd.f32 %v476_v49, %v1033_v48 }
 0x233   :  { %607 = vst [vmem:[%s1085_s5 + $0x8] sm:$0xff] %v661_v40  ;;  %v459_v35 = vmul.f32 %v443_v58, %v359_v45  ;;  %v422_v38 = vmul.f32 0.5, %v990_v24  ;;  %749 = vtanh.f32 %v506_v57  ;;  %v424_v3 = vmul.f32 0.5, %v995_v15 }
 0x234   :  { %v662_v56 = vpack.c.bf16 %v547_v51, %v546_v36  ;;  %v742_v30 = vpop.eup %741  ;;  %v549_v14 = vmul.f32 %v533_v55, %v421_v53  ;;  %v461_v60 = vmul.f32 %v445_v59, %v412_v46  ;;  %v508_v62 = vmul.f32 0.7978846, %v492_v31 }
 0x235   :  { %v744_v20 = vpop.eup %743  ;;  %v534_v28 = vadd.f32 1.0, %v742_v30  ;;  %v475_v63 = vmul.f32 %v459_v35, %v359_v45  ;;  %v423_v39 = vmul.f32 0.5, %v1005_v44  ;;  %v425_v24 = vmul.f32 0.5, %v1010_v47 }
 0x236   :  { %608 = vst [vmem:[%s1085_s5 + $0x10] sm:$0xff] %v662_v56  ;;  %v663_v2 = vpack.c.bf16 %v549_v14, %v548_v52  ;;  %v536_v61 = vadd.f32 1.0, %v744_v20  ;;  %v477_v0 = vmul.f32 %v461_v60, %v412_v46  ;;  %751 = vtanh.f32 %v508_v62 }
 0x237   :  { %v550_v5 = vmul.f32 %v534_v28, %v422_v38  ;;  %v491_v7 = vadd.f32 %v475_v63, %v359_v45  ;;  %v426_v23 = vmul.f32 0.5, %v1013_v34  ;;  %v428_v26 = vmul.f32 0.5, %v1033_v48 }
 0x238   :  { %v746_v1 = vpop.eup %745  ;;  %609 = vst [vmem:[%s1085_s5 + $0x18] sm:$0xff] %v663_v2  ;;  %v493_v8 = vadd.f32 %v477_v0, %v412_v46  ;;  %v552_v9 = vmul.f32 %v536_v61, %v424_v3  ;;  %v427_v22 = vmul.f32 0.5, %v359_v45  ;;  %v429_v33 = vmul.f32 0.5, %v412_v46 }
 0x239   :  { %v748_v4 = vpop.eup %747  ;;  %v535_v6 = vadd.f32 1.0, %v746_v1  ;;  %v507_v13 = vmul.f32 0.7978846, %v491_v7 }
 0x23a   :  { %v537_v11 = vadd.f32 1.0, %v748_v4  ;;  %v509_v16 = vmul.f32 0.7978846, %v493_v8 }
 0x23b   :  { %v551_v12 = vmul.f32 %v535_v6, %v423_v39  ;;  %753 = vtanh.f32 %v507_v13 }
 0x23c   :  { %v553_v17 = vmul.f32 %v537_v11, %v425_v24  ;;  %755 = vtanh.f32 %v509_v16 }
 0x23d   :  { %v664_v18 = vpack.c.bf16 %v551_v12, %v550_v5  ;;  %v750_v15 = vpop.eup %749 }
 0x23e   :  { %v665_v19 = vpack.c.bf16 %v553_v17, %v552_v9  ;;  %v538_v47 = vadd.f32 1.0, %v750_v15 }
 0x23f   :  { %610 = vst [vmem:[%s1085_s5 + $0x20] sm:$0xff] %v664_v18 }
 0x240   :  { %611 = vst [vmem:[%s1085_s5 + $0x28] sm:$0xff] %v665_v19  ;;  %v752_v44 = vpop.eup %751  ;;  %v554_v10 = vmul.f32 %v538_v47, %v426_v23 }
 0x241   :  { %v540_v21 = vadd.f32 1.0, %v752_v44 }
 0x243   :  { %v556_v32 = vmul.f32 %v540_v21, %v428_v26 }
 0x245   :  { %v754_v25 = vpop.eup %753 }
 0x246   :  { %v756_v29 = vpop.eup %755  ;;  %v539_v27 = vadd.f32 1.0, %v754_v25 }
 0x247   :  { %v541_v36 = vadd.f32 1.0, %v756_v29 }
 0x248   :  { %v555_v37 = vmul.f32 %v539_v27, %v427_v22 }
 0x249   :  { %v557_v40 = vmul.f32 %v541_v36, %v429_v33 }
 0x24a   :  { %v666_v41 = vpack.c.bf16 %v555_v37, %v554_v10 }
 0x24b   :  { %v667_v42 = vpack.c.bf16 %v557_v40, %v556_v32 }
 0x24c   :  { %612 = vst [vmem:[%s1085_s5 + $0x30] sm:$0xff] %v666_v41 }
 0x24d   :  { %613 = vst [vmem:[%s1085_s5 + $0x38] sm:$0xff] %v667_v42 }

// kernel: conformer_block.16
= control target key start
LH: loop header
LB: loop body
LE: loop exit
PB: predicated region body
PF: predicated region fallthrough
CT: control target
= control target key end

     0   :  { %s1722_s12 = smov 0   ;;  %s2200_s0 = inlined_call_operand.vmem [shape: bf16[2,48,256], index: 0, kind: input, shape index: {}]   ;;  %s2201_s1 = inlined_call_operand.vmem [shape: f32[31,256], index: 1, kind: input, shape index: {}]   ;;  %s2202_s2 = inlined_call_operand.vmem [shape: f32[1,256], index: 2, kind: input, shape index: {}]   ;;  %s2203_s3 = inlined_call_operand.vmem [shape: bf16[2,16,256], index: 3, kind: output, shape index: {}]  }
   0x1 LB: > { %s1632_s13 = sadd.s32 4294967295, %s1700_s12   ;;  %p1636_p0 = scmp.ge.s32.totalorder %s1700_s12, 1  ;;  %s1700_s12 = sphi %s1722_s12, %s13_s12  }
   0x2   : > { %p137_p1 = scmp.lt.s32.totalorder %s1700_s12, 3 }
   0x4   : > { %p138_p2 = pnand %p1636_p0, %p137_p1 }
   0x5   : > { %p161_p3 = scmp.lt.s32.totalorder (!%p138_p2), %s1632_s13, 1  ;;  %v179_v0 = vlaneseq (!%p138_p2)  ;;  %v177_v1 = vld [vmem:[%s2201_s1] ss:$8 sm:$0x3] (!%p138_p2)  ;;  %vm221_vm0 = vcmask (!%p138_p2), 1046528   ;;  %vm268_vm1 = vcmask (!%p138_p2), 1045504  }
   0x6   : > { %141 = sbr.rel (%p138_p2) target bundleno = 222 (0xde), region = 32  ;;  %v1640_v3 = vld [vmem:[%s2201_s1 + $0x1] ss:$8 sm:$0x3] (!%p138_p2)  ;;  %vm315_vm2 = vcmask (!%p138_p2), 1044480   ;;  %vm362_vm3 = vcmask (!%p138_p2), 1043456  }
   0x7   : > { %v180_v2 = vshrl.u32 (!%p138_p2), %v179_v0, 7  ;;  %v1641_v4 = vld [vmem:[%s2201_s1 + $0x2] ss:$8 sm:$0x3] (!%p138_p2)  ;;  %vm409_vm4 = vcmask (!%p138_p2), 1042432   ;;  %vm456_vm5 = vcmask (!%p138_p2), 1041408  }
   0x8   : > { %v1642_v7 = vld [vmem:[%s2201_s1 + $0x3] ss:$8 sm:$0x3] (!%p138_p2)  ;;  %vm503_vm6 = vcmask (!%p138_p2), 1040384  }
   0x9   : > { %v1742_v5 = vsub.s32 (!%p138_p2), 0, %v180_v2  ;;  %v1744_v6 = vsub.s32 (!%p138_p2), 1, %v180_v2 }
   0xb   : > { %v182_v8 = vrot.slane (!%p138_p2), %v177_v1, %v1742_v5  ;;  %v186_v9 = vrot.slane (!%p138_p2), %v177_v1, %v1744_v6  ;;  %v202_v10 = vrot.slane (!%p138_p2), %v1640_v3, %v1742_v5  ;;  %v206_v11 = vrot.slane (!%p138_p2), %v1640_v3, %v1744_v6 }
   0xc   : > { %v249_v15 = vrot.slane (!%p138_p2), %v1641_v4, %v1742_v5  ;;  %v253_v16 = vrot.slane (!%p138_p2), %v1641_v4, %v1744_v6  ;;  %v1764_v17 = vrot.slane (!%p138_p2), %v1642_v7, %v1742_v5  ;;  %v1767_v18 = vrot.slane (!%p138_p2), %v1642_v7, %v1744_v6 }
   0xd   : > { %s2205_s13 = smov (!%p161_p3, %s1632_s13), 1 }
   0xe   : > { %s1677_s20 = smul.u32 48, %s2205_s13  ;;  %s1674_s6 = sshll.u32 %s2205_s13, 4 }
   0xf   : > { %s170_s9 = scalar_lea.vmem %s2203_s3, %s1674_s6 }
  0x10   : > { %s1752_s25 = scalar_lea.vmem %s2200_s0, %s1677_s20 }
  0x11   : > { %v171_v12 = vld [vmem:[%s1752_s25] sm:$0xff]  ;;  %v172_v13 = vld [vmem:[%s1752_s25 + $0x8] sm:$0xff]  ;;  %v193_v14 = vld [vmem:[%s1752_s25 + $0x10] sm:$0x11] }
  0x12   : > { %v173_v19 = vunpack.c.l.bf16 %v171_v12  ;;  %v174_v20 = vunpack.c.h.bf16 %v171_v12  ;;  %v1769_v21 = vunpack.c.l.bf16 %v172_v13  ;;  %v1771_v22 = vunpack.c.h.bf16 %v172_v13  ;;  %v240_v23 = vld [vmem:[%s1752_s25] sm:$0xee]  ;;  %v287_v56 = vld [vmem:[%s1752_s25 + $0x10] sm:$0x33] }
  0x13   : > { %v194_v24 = vunpack.c.l.bf16 %v193_v14  ;;  %v195_v25 = vunpack.c.h.bf16 %v193_v14  ;;  %v241_v26 = vunpack.c.l.bf16 %v240_v23  ;;  %v242_v27 = vunpack.c.h.bf16 %v240_v23 }
  0x14   : > { %v189_v28 = vmul.f32 %v182_v8, %v173_v19  ;;  %v190_v29 = vmul.f32 %v186_v9, %v174_v20  ;;  %v191_v30 = vmul.f32 %v182_v8, %v1769_v21  ;;  %v192_v31 = vmul.f32 %v186_v9, %v1771_v22 }
  0x15   : > { %v209_v32 = vmul.f32 %v202_v10, %v173_v19  ;;  %v210_v33 = vmul.f32 %v206_v11, %v174_v20  ;;  %v211_v34 = vmul.f32 %v202_v10, %v1769_v21  ;;  %v212_v35 = vmul.f32 %v206_v11, %v1771_v22 }
  0x16   : > { %v213_v36 = vmul.f32 %v202_v10, %v194_v24  ;;  %v214_v37 = vmul.f32 %v206_v11, %v195_v25  ;;  %v256_v38 = vmul.f32 %v249_v15, %v241_v26  ;;  %v257_v39 = vmul.f32 %v253_v16, %v242_v27  ;;  %v334_v11 = vld [vmem:[%s1752_s25] sm:$0xcc] }
  0x17   : > { %v222_v40 = vrot.slane %v209_v32, 1  ;;  %v223_v41 = vrot.slane %v211_v34, 1  ;;  %v225_v42 = vrot.slane %v210_v33, 1  ;;  %v226_v43 = vrot.slane %v212_v35, 1 }
  0x18   : > { %v228_v44 = vrot.slane %v213_v36, 1  ;;  %v230_v45 = vrot.slane %v214_v37, 1  ;;  %v258_v46 = vmul.f32 %v249_v15, %v1769_v21  ;;  %v259_v47 = vmul.f32 %v253_v16, %v1771_v22 }
  0x19   : > { %v224_v48 = vsel %vm221_vm0, %v222_v40, %v223_v41  ;;  %v227_v49 = vsel %vm221_vm0, %v225_v42, %v226_v43  ;;  %v260_v50 = vmul.f32 %v249_v15, %v194_v24  ;;  %v261_v51 = vmul.f32 %v253_v16, %v195_v25  ;;  %v1643_v24 = vld [vmem:[%s2201_s1 + $0x4] ss:$8 sm:$0x3]  ;;  %v1802_v25 = vld [vmem:[%s1752_s25 + $0x10] sm:$0x77] }
  0x1a   : > { %v229_v52 = vsel %vm221_vm0, %v223_v41, %v228_v44  ;;  %v231_v53 = vsel %vm221_vm0, %v226_v43, %v230_v45  ;;  %v236_v54 = vadd.f32 %v224_v48, %v189_v28  ;;  %v237_v55 = vadd.f32 %v227_v49, %v190_v29  ;;  %v1644_v40 = vld [vmem:[%s2201_s1 + $0x5] ss:$8 sm:$0x3] }
  0x1b   : > { %v238_v57 = vadd.f32 %v229_v52, %v191_v30  ;;  %v239_v58 = vadd.f32 %v231_v53, %v192_v31  ;;  %v269_v59 = vrot.slane %v256_v38, 2  ;;  %v270_v60 = vrot.slane %v258_v46, 2 }
  0x1c   : > { %v272_v61 = vrot.slane %v257_v39, 2  ;;  %v273_v62 = vrot.slane %v259_v47, 2  ;;  %v275_v63 = vrot.slane %v260_v50, 2  ;;  %v277_v0 = vrot.slane %v261_v51, 2 }
  0x1d   : > { %v271_v1 = vsel %vm268_vm1, %v269_v59, %v270_v60  ;;  %v288_v2 = vunpack.c.l.bf16 %v287_v56  ;;  %v289_v3 = vunpack.c.h.bf16 %v287_v56  ;;  %v303_v4 = vmul.f32 %v1764_v17, %v241_v26 }
  0x1e   : > { %v274_v7 = vsel %vm268_vm1, %v272_v61, %v273_v62  ;;  %v276_v8 = vsel %vm268_vm1, %v270_v60, %v275_v63  ;;  %v278_v9 = vsel %vm268_vm1, %v273_v62, %v277_v0  ;;  %v283_v10 = vadd.f32 %v271_v1, %v236_v54 }
  0x1f   : > { %v284_v12 = vadd.f32 %v274_v7, %v237_v55  ;;  %v285_v13 = vadd.f32 %v276_v8, %v238_v57  ;;  %v286_v14 = vadd.f32 %v278_v9, %v239_v58  ;;  %v304_v15 = vmul.f32 %v1767_v18, %v242_v27  ;;  %v428_v7 = vld [vmem:[%s1752_s25] sm:$0x88] }
  0x20   : > { %v305_v16 = vmul.f32 %v1764_v17, %v1769_v21  ;;  %v306_v19 = vmul.f32 %v1767_v18, %v1771_v22  ;;  %v307_v20 = vmul.f32 %v1764_v17, %v288_v2  ;;  %v308_v23 = vmul.f32 %v1767_v18, %v289_v3 }
  0x21   : > { %v316_v26 = vrot.slane %v303_v4, 3  ;;  %v319_v28 = vrot.slane %v304_v15, 3  ;;  %v335_v27 = vunpack.c.l.bf16 %v334_v11  ;;  %v336_v29 = vunpack.c.h.bf16 %v334_v11 }
  0x22   : > { %v317_v30 = vrot.slane %v305_v16, 3  ;;  %v320_v31 = vrot.slane %v306_v19, 3  ;;  %v322_v32 = vrot.slane %v307_v20, 3  ;;  %v324_v33 = vrot.slane %v308_v23, 3 }
  0x23   : > { %v343_v34 = vrot.slane %v1643_v24, %v1742_v5  ;;  %v347_v17 = vrot.slane %v1643_v24, %v1744_v6  ;;  %v382_v18 = vunpack.c.l.bf16 %v1802_v25  ;;  %v383_v35 = vunpack.c.h.bf16 %v1802_v25 }
  0x24   : > { %v318_v36 = vsel %vm315_vm2, %v316_v26, %v317_v30  ;;  %v321_v37 = vsel %vm315_vm2, %v319_v28, %v320_v31  ;;  %v323_v38 = vsel %vm315_vm2, %v317_v30, %v322_v32  ;;  %v325_v39 = vsel %vm315_vm2, %v320_v31, %v324_v33 }
  0x25   : > { %v330_v41 = vadd.f32 %v318_v36, %v283_v10  ;;  %v331_v42 = vadd.f32 %v321_v37, %v284_v12  ;;  %v332_v43 = vadd.f32 %v323_v38, %v285_v13  ;;  %v333_v44 = vadd.f32 %v325_v39, %v286_v14  ;;  %v1645_v12 = vld [vmem:[%s2201_s1 + $0x6] ss:$8 sm:$0x3] }
  0x26   : > { %v350_v45 = vmul.f32 %v343_v34, %v335_v27  ;;  %v351_v46 = vmul.f32 %v347_v17, %v336_v29  ;;  %v352_v47 = vmul.f32 %v343_v34, %v1769_v21  ;;  %v353_v48 = vmul.f32 %v347_v17, %v1771_v22 }
  0x27   : > { %v354_v49 = vmul.f32 %v343_v34, %v288_v2  ;;  %v355_v50 = vmul.f32 %v347_v17, %v289_v3  ;;  %v390_v51 = vrot.slane %v1644_v40, %v1742_v5  ;;  %v394_v52 = vrot.slane %v1644_v40, %v1744_v6  ;;  %v475_v34 = vld [vmem:[%s1752_s25 + $0x10] sm:$0xff] }
  0x28   : > { %v363_v53 = vrot.slane %v350_v45, 4  ;;  %v364_v54 = vrot.slane %v352_v47, 4  ;;  %v366_v55 = vrot.slane %v351_v46, 4  ;;  %v367_v56 = vrot.slane %v353_v48, 4 }
  0x29   : > { %v369_v57 = vrot.slane %v354_v49, 4  ;;  %v371_v58 = vrot.slane %v355_v50, 4  ;;  %v397_v59 = vmul.f32 %v390_v51, %v335_v27  ;;  %v398_v60 = vmul.f32 %v394_v52, %v336_v29 }
  0x2a   : > { %v365_v61 = vsel %vm362_vm3, %v363_v53, %v364_v54  ;;  %v368_v62 = vsel %vm362_vm3, %v366_v55, %v367_v56  ;;  %v399_v63 = vmul.f32 %v390_v51, %v1769_v21  ;;  %v400_v0 = vmul.f32 %v394_v52, %v1771_v22 }
  0x2b   : > { %v370_v1 = vsel %vm362_vm3, %v364_v54, %v369_v57  ;;  %v372_v2 = vsel %vm362_vm3, %v367_v56, %v371_v58  ;;  %v377_v3 = vadd.f32 %v365_v61, %v330_v41  ;;  %v378_v4 = vadd.f32 %v368_v62, %v331_v42 }
  0x2c   : > { %v379_v8 = vadd.f32 %v370_v1, %v332_v43  ;;  %v380_v9 = vadd.f32 %v372_v2, %v333_v44  ;;  %v401_v10 = vmul.f32 %v390_v51, %v382_v18  ;;  %v402_v11 = vmul.f32 %v394_v52, %v383_v35  ;;  %v1646_v43 = vld [vmem:[%s2201_s1 + $0x7] ss:$8 sm:$0x3]  ;;  %v1647_v44 = vld [vmem:[%s2201_s1 + $0x10] ss:$8 sm:$0x3] }
  0x2d   : > { %v410_v13 = vrot.slane %v397_v59, 5  ;;  %v411_v14 = vrot.slane %v399_v63, 5  ;;  %v413_v15 = vrot.slane %v398_v60, 5  ;;  %v414_v16 = vrot.slane %v400_v0, 5 }
  0x2e   : > { %v416_v19 = vrot.slane %v401_v10, 5  ;;  %v418_v20 = vrot.slane %v402_v11, 5  ;;  %v429_v23 = vunpack.c.l.bf16 %v428_v7  ;;  %v430_v24 = vunpack.c.h.bf16 %v428_v7 }
  0x2f   : > { %v412_v26 = vsel %vm409_vm4, %v410_v13, %v411_v14  ;;  %v415_v28 = vsel %vm409_vm4, %v413_v15, %v414_v16  ;;  %v437_v27 = vrot.slane %v1645_v12, %v1742_v5  ;;  %v441_v29 = vrot.slane %v1645_v12, %v1744_v6 }
  0x30   : > { %v417_v30 = vsel %vm409_vm4, %v411_v14, %v416_v19  ;;  %v419_v31 = vsel %vm409_vm4, %v414_v16, %v418_v20  ;;  %v424_v32 = vadd.f32 %v412_v26, %v377_v3  ;;  %v425_v33 = vadd.f32 %v415_v28, %v378_v4  ;;  %v1648_v19 = vld [vmem:[%s2201_s1 + $0x11] ss:$8 sm:$0x3]  ;;  %v1879_v28 = vld [vmem:[%s1752_s25 + $0x8] sm:$0xee] }
  0x31   : > { %v426_v17 = vadd.f32 %v417_v30, %v379_v8  ;;  %v427_v36 = vadd.f32 %v419_v31, %v380_v9  ;;  %v444_v37 = vmul.f32 %v437_v27, %v429_v23  ;;  %v445_v38 = vmul.f32 %v441_v29, %v430_v24  ;;  %v543_v8 = vld [vmem:[%s1752_s25 + $0x18] sm:$0x11] }
  0x32   : > { %v446_v39 = vmul.f32 %v437_v27, %v1769_v21  ;;  %v447_v40 = vmul.f32 %v441_v29, %v1771_v22  ;;  %v448_v41 = vmul.f32 %v437_v27, %v382_v18  ;;  %v449_v42 = vmul.f32 %v441_v29, %v383_v35 }
  0x33   : > { %v457_v45 = vrot.slane %v444_v37, 6  ;;  %v460_v46 = vrot.slane %v445_v38, 6  ;;  %v1852_v47 = vunpack.c.l.bf16 %v475_v34  ;;  %v1854_v48 = vunpack.c.h.bf16 %v475_v34 }
  0x34   : > { %v458_v49 = vrot.slane %v446_v39, 6  ;;  %v461_v50 = vrot.slane %v447_v40, 6  ;;  %v463_v18 = vrot.slane %v448_v41, 6  ;;  %v465_v51 = vrot.slane %v449_v42, 6 }
  0x35   : > { %v484_v25 = vrot.slane %v1646_v43, %v1742_v5  ;;  %v488_v35 = vrot.slane %v1646_v43, %v1744_v6  ;;  %v528_v52 = vrot.slane %v1647_v44, %v1742_v5  ;;  %v532_v53 = vrot.slane %v1647_v44, %v1744_v6  ;;  %v1649_v40 = vld [vmem:[%s2201_s1 + $0x12] ss:$8 sm:$0x3] }
  0x36   : > { %v459_v54 = vsel %vm456_vm5, %v457_v45, %v458_v49  ;;  %v462_v55 = vsel %vm456_vm5, %v460_v46, %v461_v50  ;;  %v464_v56 = vsel %vm456_vm5, %v458_v49, %v463_v18  ;;  %v466_v57 = vsel %vm456_vm5, %v461_v50, %v465_v51 }
  0x37   : > { %v471_v58 = vadd.f32 %v459_v54, %v424_v32  ;;  %v472_v59 = vadd.f32 %v462_v55, %v425_v33  ;;  %v473_v60 = vadd.f32 %v464_v56, %v426_v17  ;;  %v474_v61 = vadd.f32 %v466_v57, %v427_v36 }
  0x38   : > { %v491_v62 = vmul.f32 %v484_v25, %v429_v23  ;;  %v492_v63 = vmul.f32 %v488_v35, %v430_v24  ;;  %v493_v0 = vmul.f32 %v484_v25, %v1769_v21  ;;  %v494_v1 = vmul.f32 %v488_v35, %v1771_v22 }
  0x39   : > { %v495_v2 = vmul.f32 %v484_v25, %v1852_v47  ;;  %v496_v3 = vmul.f32 %v488_v35, %v1854_v48  ;;  %v535_v4 = vmul.f32 %v528_v52, %v1769_v21  ;;  %v536_v7 = vmul.f32 %v532_v53, %v1771_v22 }
  0x3a   : > { %v504_v9 = vrot.slane %v491_v62, 7  ;;  %v505_v10 = vrot.slane %v493_v0, 7  ;;  %v507_v11 = vrot.slane %v492_v63, 7  ;;  %v508_v12 = vrot.slane %v494_v1, 7  ;;  %v635_v62 = vld [vmem:[%s1752_s25 + $0x18] sm:$0x33] }
  0x3b   : > { %v510_v13 = vrot.slane %v495_v2, 7  ;;  %v512_v14 = vrot.slane %v496_v3, 7  ;;  %v537_v15 = vmul.f32 %v528_v52, %v1852_v47  ;;  %v538_v16 = vmul.f32 %v532_v53, %v1854_v48  ;;  %v1650_v3 = vld [vmem:[%s2201_s1 + $0x13] ss:$8 sm:$0x3] }
  0x3c   : > { %v506_v20 = vsel %vm503_vm6, %v504_v9, %v505_v10  ;;  %v509_v23 = vsel %vm503_vm6, %v507_v11, %v508_v12  ;;  %v544_v24 = vunpack.c.l.bf16 %v543_v8  ;;  %v545_v26 = vunpack.c.h.bf16 %v543_v8 }
  0x3d   : > { %v511_v27 = vsel %vm503_vm6, %v505_v10, %v510_v13  ;;  %v513_v29 = vsel %vm503_vm6, %v508_v12, %v512_v14  ;;  %v518_v30 = vadd.f32 %v506_v20, %v471_v58  ;;  %v519_v31 = vadd.f32 %v509_v23, %v472_v59  ;;  %v1907_v10 = vld [vmem:[%s1752_s25 + $0x8] sm:$0xcc] }
  0x3e   : > { %v520_v32 = vadd.f32 %v511_v27, %v473_v60  ;;  %v521_v33 = vadd.f32 %v513_v29, %v474_v61  ;;  %v552_v34 = vrot.slane %v1648_v19, %v1742_v5  ;;  %v556_v17 = vrot.slane %v1648_v19, %v1744_v6 }
  0x3f   : > { %v539_v36 = vadd.f32 %v535_v4, %v518_v30  ;;  %v540_v37 = vadd.f32 %v536_v7, %v519_v31  ;;  %v590_v38 = vunpack.c.l.bf16 %v1879_v28  ;;  %v591_v39 = vunpack.c.h.bf16 %v1879_v28 }
  0x40   : > { %v541_v41 = vadd.f32 %v537_v15, %v520_v32  ;;  %v542_v42 = vadd.f32 %v538_v16, %v521_v33  ;;  %v559_v43 = vmul.f32 %v552_v34, %v1769_v21  ;;  %v560_v44 = vmul.f32 %v556_v17, %v1771_v22  ;;  %v1651_v32 = vld [vmem:[%s2201_s1 + $0x14] ss:$8 sm:$0x3] }
  0x41   : > { %v561_v45 = vmul.f32 %v552_v34, %v1852_v47  ;;  %v562_v46 = vmul.f32 %v556_v17, %v1854_v48  ;;  %v563_v49 = vmul.f32 %v552_v34, %v544_v24  ;;  %v564_v50 = vmul.f32 %v556_v17, %v545_v26 }
  0x42   : > { %v571_v18 = vrot.slane %v559_v43, 1  ;;  %v574_v51 = vrot.slane %v560_v44, 1  ;;  %v598_v25 = vrot.slane %v1649_v40, %v1742_v5  ;;  %v602_v35 = vrot.slane %v1649_v40, %v1744_v6 }
  0x43   : > { %v572_v52 = vrot.slane %v561_v45, 1  ;;  %v575_v53 = vrot.slane %v562_v46, 1  ;;  %v577_v54 = vrot.slane %v563_v49, 1  ;;  %v579_v55 = vrot.slane %v564_v50, 1 }
  0x44   : > { %v605_v21 = vmul.f32 %v598_v25, %v590_v38  ;;  %v606_v56 = vmul.f32 %v602_v35, %v591_v39  ;;  %v607_v22 = vmul.f32 %v598_v25, %v1852_v47  ;;  %v608_v57 = vmul.f32 %v602_v35, %v1854_v48 }
  0x45   : > { %v573_v58 = vsel %vm221_vm0, %v571_v18, %v572_v52  ;;  %v576_v59 = vsel %vm221_vm0, %v574_v51, %v575_v53  ;;  %v578_v60 = vsel %vm221_vm0, %v572_v52, %v577_v54  ;;  %v580_v61 = vsel %vm221_vm0, %v575_v53, %v579_v55 }
  0x46   : > { %v585_v63 = vadd.f32 %v573_v58, %v539_v36  ;;  %v586_v0 = vadd.f32 %v576_v59, %v540_v37  ;;  %v587_v1 = vadd.f32 %v578_v60, %v541_v41  ;;  %v588_v2 = vadd.f32 %v580_v61, %v542_v42  ;;  %v1652_v59 = vld [vmem:[%s2201_s1 + $0x15] ss:$8 sm:$0x3] }
  0x47   : > { %v609_v4 = vmul.f32 %v598_v25, %v544_v24  ;;  %v610_v7 = vmul.f32 %v602_v35, %v545_v26  ;;  %v617_v8 = vrot.slane %v605_v21, 2  ;;  %v618_v9 = vrot.slane %v607_v22, 2  ;;  %v727_v21 = vld [vmem:[%s1752_s25 + $0x18] sm:$0x77] }
  0x48   : > { %v620_v11 = vrot.slane %v606_v56, 2  ;;  %v621_v12 = vrot.slane %v608_v57, 2  ;;  %v636_v13 = vunpack.c.l.bf16 %v635_v62  ;;  %v637_v14 = vunpack.c.h.bf16 %v635_v62 }
  0x49   : > { %v619_v15 = vsel %vm268_vm1, %v617_v8, %v618_v9  ;;  %v623_v16 = vrot.slane %v609_v4, 2  ;;  %v625_v19 = vrot.slane %v610_v7, 2  ;;  %v644_v20 = vrot.slane %v1650_v3, %v1742_v5 }
  0x4a   : > { %v622_v23 = vsel %vm268_vm1, %v620_v11, %v621_v12  ;;  %v631_v28 = vadd.f32 %v619_v15, %v585_v63  ;;  %v648_v24 = vrot.slane %v1650_v3, %v1744_v6  ;;  %v682_v26 = vunpack.c.l.bf16 %v1907_v10 }
  0x4b   : > { %v624_v27 = vsel %vm268_vm1, %v618_v9, %v623_v16  ;;  %v626_v29 = vsel %vm268_vm1, %v621_v12, %v625_v19  ;;  %v632_v30 = vadd.f32 %v622_v23, %v586_v0  ;;  %v651_v31 = vmul.f32 %v644_v20, %v590_v38  ;;  %v1935_v0 = vld [vmem:[%s1752_s25 + $0x8] sm:$0x88]  ;;  %v1653_v23 = vld [vmem:[%s2201_s1 + $0x16] ss:$8 sm:$0x3] }
  0x4c   : > { %v633_v33 = vadd.f32 %v624_v27, %v587_v1  ;;  %v634_v34 = vadd.f32 %v626_v29, %v588_v2  ;;  %v652_v17 = vmul.f32 %v648_v24, %v591_v39  ;;  %v653_v36 = vmul.f32 %v644_v20, %v1852_v47 }
  0x4d   : > { %v654_v37 = vmul.f32 %v648_v24, %v1854_v48  ;;  %v655_v40 = vmul.f32 %v644_v20, %v636_v13  ;;  %v656_v41 = vmul.f32 %v648_v24, %v637_v14  ;;  %v663_v42 = vrot.slane %v651_v31, 3 }
  0x4e   : > { %v664_v43 = vrot.slane %v653_v36, 3  ;;  %v666_v44 = vrot.slane %v652_v17, 3  ;;  %v683_v45 = vunpack.c.h.bf16 %v1907_v10  ;;  %v690_v38 = vrot.slane %v1651_v32, %v1742_v5 }
  0x4f   : > { %v667_v46 = vrot.slane %v654_v37, 3  ;;  %v669_v49 = vrot.slane %v655_v40, 3  ;;  %v671_v50 = vrot.slane %v656_v41, 3  ;;  %v694_v18 = vrot.slane %v1651_v32, %v1744_v6 }
  0x50   : > { %v665_v39 = vsel %vm315_vm2, %v663_v42, %v664_v43  ;;  %v697_v51 = vmul.f32 %v690_v38, %v682_v26  ;;  %v699_v25 = vmul.f32 %v690_v38, %v1852_v47  ;;  %v701_v35 = vmul.f32 %v690_v38, %v636_v13 }
  0x51   : > { %v668_v52 = vsel %vm315_vm2, %v666_v44, %v667_v46  ;;  %v670_v53 = vsel %vm315_vm2, %v664_v43, %v669_v49  ;;  %v672_v54 = vsel %vm315_vm2, %v667_v46, %v671_v50  ;;  %v677_v55 = vadd.f32 %v665_v39, %v631_v28  ;;  %v819_v39 = vld [vmem:[%s1752_s25 + $0x18] sm:$0xff] }
  0x52   : > { %v678_v56 = vadd.f32 %v668_v52, %v632_v30  ;;  %v679_v22 = vadd.f32 %v670_v53, %v633_v33  ;;  %v680_v57 = vadd.f32 %v672_v54, %v634_v34  ;;  %v698_v58 = vmul.f32 %v694_v18, %v683_v45  ;;  %v1654_v53 = vld [vmem:[%s2201_s1 + $0x17] ss:$8 sm:$0x3] }
  0x53   : > { %v700_v60 = vmul.f32 %v694_v18, %v1854_v48  ;;  %v702_v61 = vmul.f32 %v694_v18, %v637_v14  ;;  %v709_v62 = vrot.slane %v697_v51, 4  ;;  %v710_v63 = vrot.slane %v699_v25, 4 }
  0x54   : > { %v712_v1 = vrot.slane %v698_v58, 4  ;;  %v715_v2 = vrot.slane %v701_v35, 4  ;;  %v728_v3 = vunpack.c.l.bf16 %v727_v21  ;;  %v729_v4 = vunpack.c.h.bf16 %v727_v21 }
  0x55   : > { %v711_v7 = vsel %vm362_vm3, %v709_v62, %v710_v63  ;;  %v713_v8 = vrot.slane %v700_v60, 4  ;;  %v717_v9 = vrot.slane %v702_v61, 4  ;;  %v736_v10 = vrot.slane %v1652_v59, %v1742_v5 }
  0x56   : > { %v716_v11 = vsel %vm362_vm3, %v710_v63, %v715_v2  ;;  %v723_v12 = vadd.f32 %v711_v7, %v677_v55  ;;  %v740_v13 = vrot.slane %v1652_v59, %v1744_v6  ;;  %v774_v14 = vunpack.c.l.bf16 %v1935_v0 }
  0x57   : > { %v714_v15 = vsel %vm362_vm3, %v712_v1, %v713_v8  ;;  %v718_v16 = vsel %vm362_vm3, %v713_v8, %v717_v9  ;;  %v725_v19 = vadd.f32 %v716_v11, %v679_v22  ;;  %v743_v20 = vmul.f32 %v736_v10, %v682_v26  ;;  %v1655_v22 = vld [vmem:[%s2201_s1 + $0x20] ss:$8 sm:$0x3] }
  0x58   : > { %v724_v28 = vadd.f32 %v714_v15, %v678_v56  ;;  %v726_v24 = vadd.f32 %v718_v16, %v680_v57  ;;  %v744_v27 = vmul.f32 %v740_v13, %v683_v45  ;;  %v745_v29 = vmul.f32 %v736_v10, %v1852_v47 }
  0x59   : > { %v746_v30 = vmul.f32 %v740_v13, %v1854_v48  ;;  %v747_v31 = vmul.f32 %v736_v10, %v728_v3  ;;  %v748_v32 = vmul.f32 %v740_v13, %v729_v4  ;;  %v755_v33 = vrot.slane %v743_v20, 5 }
  0x5a   : > { %v756_v34 = vrot.slane %v745_v29, 5  ;;  %v758_v17 = vrot.slane %v744_v27, 5  ;;  %v775_v36 = vunpack.c.h.bf16 %v1935_v0  ;;  %v782_v26 = vrot.slane %v1653_v23, %v1742_v5 }
  0x5b   : > { %v759_v37 = vrot.slane %v746_v30, 5  ;;  %v761_v40 = vrot.slane %v747_v31, 5  ;;  %v763_v41 = vrot.slane %v748_v32, 5  ;;  %v786_v42 = vrot.slane %v1653_v23, %v1744_v6 }
  0x5c   : > { %v757_v43 = vsel %vm409_vm4, %v755_v33, %v756_v34  ;;  %v789_v44 = vmul.f32 %v782_v26, %v774_v14  ;;  %v791_v45 = vmul.f32 %v782_v26, %v1852_v47  ;;  %v793_v38 = vmul.f32 %v782_v26, %v728_v3 }
  0x5d   : > { %v760_v46 = vsel %vm409_vm4, %v758_v17, %v759_v37  ;;  %v762_v49 = vsel %vm409_vm4, %v756_v34, %v761_v40  ;;  %v764_v50 = vsel %vm409_vm4, %v759_v37, %v763_v41  ;;  %v769_v18 = vadd.f32 %v757_v43, %v723_v12  ;;  %v1656_v37 = vld [vmem:[%s2201_s1 + $0x21] ss:$8 sm:$0x3]  ;;  %v1991_v40 = vld [vmem:[%s1752_s25 + $0x10] sm:$0xee] }
  0x5e   : > { %v770_v51 = vadd.f32 %v760_v46, %v724_v28  ;;  %v771_v25 = vadd.f32 %v762_v49, %v725_v19  ;;  %v772_v35 = vadd.f32 %v764_v50, %v726_v24  ;;  %v790_v52 = vmul.f32 %v786_v42, %v775_v36  ;;  %v886_v28 = vld [vmem:[%s1752_s25 + $0x20] sm:$0x11] }
  0x5f   : > { %v792_v54 = vmul.f32 %v786_v42, %v1854_v48  ;;  %v794_v55 = vmul.f32 %v786_v42, %v729_v4  ;;  %v801_v21 = vrot.slane %v789_v44, 6  ;;  %v802_v56 = vrot.slane %v791_v45, 6 }
  0x60   : > { %v804_v57 = vrot.slane %v790_v52, 6  ;;  %v807_v58 = vrot.slane %v793_v38, 6  ;;  %v1965_v59 = vunpack.c.l.bf16 %v819_v39  ;;  %v1967_v60 = vunpack.c.h.bf16 %v819_v39 }
  0x61   : > { %v803_v61 = vsel %vm456_vm5, %v801_v21, %v802_v56  ;;  %v805_v62 = vrot.slane %v792_v54, 6  ;;  %v809_v63 = vrot.slane %v794_v55, 6  ;;  %v828_v0 = vrot.slane %v1654_v53, %v1742_v5 }
  0x62   : > { %v808_v1 = vsel %vm456_vm5, %v802_v56, %v807_v58  ;;  %v815_v2 = vadd.f32 %v803_v61, %v769_v18  ;;  %v832_v3 = vrot.slane %v1654_v53, %v1744_v6  ;;  %v871_v4 = vrot.slane %v1655_v22, %v1742_v5 }
  0x63   : > { %v806_v7 = vsel %vm456_vm5, %v804_v57, %v805_v62  ;;  %v810_v8 = vsel %vm456_vm5, %v805_v62, %v809_v63  ;;  %v817_v9 = vadd.f32 %v808_v1, %v771_v25  ;;  %v835_v10 = vmul.f32 %v828_v0, %v774_v14  ;;  %v1657_v25 = vld [vmem:[%s2201_s1 + $0x22] ss:$8 sm:$0x3] }
  0x64   : > { %v816_v11 = vadd.f32 %v806_v7, %v770_v51  ;;  %v818_v12 = vadd.f32 %v810_v8, %v772_v35  ;;  %v836_v13 = vmul.f32 %v832_v3, %v775_v36  ;;  %v837_v15 = vmul.f32 %v828_v0, %v1852_v47 }
  0x65   : > { %v838_v16 = vmul.f32 %v832_v3, %v1854_v48  ;;  %v839_v19 = vmul.f32 %v828_v0, %v1965_v59  ;;  %v840_v20 = vmul.f32 %v832_v3, %v1967_v60  ;;  %v847_v23 = vrot.slane %v835_v10, 7 }
  0x66   : > { %v848_v24 = vrot.slane %v837_v15, 7  ;;  %v850_v27 = vrot.slane %v836_v13, 7  ;;  %v875_v29 = vrot.slane %v1655_v22, %v1744_v6  ;;  %v878_v14 = vmul.f32 %v871_v4, %v1852_v47 }
  0x67   : > { %v851_v30 = vrot.slane %v838_v16, 7  ;;  %v853_v31 = vrot.slane %v839_v19, 7  ;;  %v855_v32 = vrot.slane %v840_v20, 7  ;;  %v880_v33 = vmul.f32 %v871_v4, %v1965_v59  ;;  %v978_v16 = vld [vmem:[%s1752_s25 + $0x20] sm:$0x33] }
  0x68   : > { %v849_v34 = vsel %vm503_vm6, %v847_v23, %v848_v24  ;;  %v879_v17 = vmul.f32 %v875_v29, %v1854_v48  ;;  %v881_v36 = vmul.f32 %v875_v29, %v1967_v60  ;;  %v887_v26 = vunpack.c.l.bf16 %v886_v28 }
  0x69   : > { %v852_v41 = vsel %vm503_vm6, %v850_v27, %v851_v30  ;;  %v854_v42 = vsel %vm503_vm6, %v848_v24, %v853_v31  ;;  %v856_v43 = vsel %vm503_vm6, %v851_v30, %v855_v32  ;;  %v861_v44 = vadd.f32 %v849_v34, %v815_v2  ;;  %v1658_v24 = vld [vmem:[%s2201_s1 + $0x23] ss:$8 sm:$0x3] }
  0x6a   : > { %v862_v45 = vadd.f32 %v852_v41, %v816_v11  ;;  %v863_v38 = vadd.f32 %v854_v42, %v817_v9  ;;  %v864_v46 = vadd.f32 %v856_v43, %v818_v12  ;;  %v888_v49 = vunpack.c.h.bf16 %v886_v28 }
  0x6b   : > { %v882_v50 = vadd.f32 %v878_v14, %v861_v44  ;;  %v895_v18 = vrot.slane %v1656_v37, %v1742_v5  ;;  %v899_v39 = vrot.slane %v1656_v37, %v1744_v6  ;;  %v933_v51 = vunpack.c.l.bf16 %v1991_v40  ;;  %v1024_v44 = vld [vmem:[%s1752_s25 + $0x10] sm:$0xcc] }
  0x6c   : > { %v883_v35 = vadd.f32 %v879_v17, %v862_v45  ;;  %v884_v52 = vadd.f32 %v880_v33, %v863_v38  ;;  %v885_v53 = vadd.f32 %v881_v36, %v864_v46  ;;  %v934_v54 = vunpack.c.h.bf16 %v1991_v40 }
  0x6d   : > { %v902_v55 = vmul.f32 %v895_v18, %v1852_v47  ;;  %v903_v21 = vmul.f32 %v899_v39, %v1854_v48  ;;  %v904_v56 = vmul.f32 %v895_v18, %v1965_v59  ;;  %v905_v22 = vmul.f32 %v899_v39, %v1967_v60 }
  0x6e   : > { %v906_v57 = vmul.f32 %v895_v18, %v887_v26  ;;  %v907_v58 = vmul.f32 %v899_v39, %v888_v49  ;;  %v941_v61 = vrot.slane %v1657_v25, %v1742_v5  ;;  %v945_v62 = vrot.slane %v1657_v25, %v1744_v6 }
  0x6f   : > { %v914_v63 = vrot.slane %v902_v55, 1  ;;  %v915_v0 = vrot.slane %v904_v56, 1  ;;  %v917_v1 = vrot.slane %v903_v21, 1  ;;  %v918_v2 = vrot.slane %v905_v22, 1 }
  0x70   : > { %v920_v3 = vrot.slane %v906_v57, 1  ;;  %v922_v4 = vrot.slane %v907_v58, 1  ;;  %v948_v47 = vmul.f32 %v941_v61, %v933_v51  ;;  %v949_v7 = vmul.f32 %v945_v62, %v934_v54 }
  0x71   : > { %v916_v48 = vsel %vm221_vm0, %v914_v63, %v915_v0  ;;  %v919_v8 = vsel %vm221_vm0, %v917_v1, %v918_v2  ;;  %v950_v9 = vmul.f32 %v941_v61, %v1965_v59  ;;  %v951_v10 = vmul.f32 %v945_v62, %v1967_v60 }
  0x72   : > { %v921_v11 = vsel %vm221_vm0, %v915_v0, %v920_v3  ;;  %v923_v12 = vsel %vm221_vm0, %v918_v2, %v922_v4  ;;  %v928_v13 = vadd.f32 %v916_v48, %v882_v50  ;;  %v929_v15 = vadd.f32 %v919_v8, %v883_v35  ;;  %v1659_v35 = vld [vmem:[%s2201_s1 + $0x24] ss:$8 sm:$0x3]  ;;  %v1660_v4 = vld [vmem:[%s2201_s1 + $0x25] ss:$8 sm:$0x3] }
  0x73   : > { %v930_v19 = vadd.f32 %v921_v11, %v884_v52  ;;  %v931_v20 = vadd.f32 %v923_v12, %v885_v53  ;;  %v952_v23 = vmul.f32 %v941_v61, %v887_v26  ;;  %v953_v28 = vmul.f32 %v945_v62, %v888_v49  ;;  %v2032_v52 = vld [vmem:[%s1752_s25 + $0x20] sm:$0x77] }
  0x74   : > { %v960_v27 = vrot.slane %v948_v47, 2  ;;  %v961_v29 = vrot.slane %v950_v9, 2  ;;  %v963_v14 = vrot.slane %v949_v7, 2  ;;  %v964_v30 = vrot.slane %v951_v10, 2 }
  0x75   : > { %v966_v31 = vrot.slane %v952_v23, 2  ;;  %v968_v32 = vrot.slane %v953_v28, 2  ;;  %v979_v33 = vunpack.c.l.bf16 %v978_v16  ;;  %v980_v34 = vunpack.c.h.bf16 %v978_v16 }
  0x76   : > { %v962_v17 = vsel %vm268_vm1, %v960_v27, %v961_v29  ;;  %v965_v36 = vsel %vm268_vm1, %v963_v14, %v964_v30  ;;  %v987_v26 = vrot.slane %v1658_v24, %v1742_v5  ;;  %v991_v37 = vrot.slane %v1658_v24, %v1744_v6 }
  0x77   : > { %v967_v40 = vsel %vm268_vm1, %v961_v29, %v966_v31  ;;  %v969_v41 = vsel %vm268_vm1, %v964_v30, %v968_v32  ;;  %v974_v42 = vadd.f32 %v962_v17, %v928_v13  ;;  %v975_v43 = vadd.f32 %v965_v36, %v929_v15 }
  0x78   : > { %v976_v45 = vadd.f32 %v967_v40, %v930_v19  ;;  %v977_v38 = vadd.f32 %v969_v41, %v931_v20  ;;  %v994_v46 = vmul.f32 %v987_v26, %v933_v51  ;;  %v995_v49 = vmul.f32 %v991_v37, %v934_v54  ;;  %v1116_v40 = vld [vmem:[%s1752_s25 + $0x10] sm:$0x88] }
  0x79   : > { %v996_v50 = vmul.f32 %v987_v26, %v1965_v59  ;;  %v997_v18 = vmul.f32 %v991_v37, %v1967_v60  ;;  %v998_v39 = vmul.f32 %v987_v26, %v979_v33  ;;  %v999_v25 = vmul.f32 %v991_v37, %v980_v34 }
  0x7a   : > { %v1006_v53 = vrot.slane %v994_v46, 3  ;;  %v1009_v55 = vrot.slane %v995_v49, 3  ;;  %v1025_v21 = vunpack.c.l.bf16 %v1024_v44  ;;  %v1026_v56 = vunpack.c.h.bf16 %v1024_v44 }
  0x7b   : > { %v1007_v22 = vrot.slane %v996_v50, 3  ;;  %v1010_v57 = vrot.slane %v997_v18, 3  ;;  %v1012_v51 = vrot.slane %v998_v39, 3  ;;  %v1014_v54 = vrot.slane %v999_v25, 3 }
  0x7c   : > { %v1033_v58 = vrot.slane %v1659_v35, %v1742_v5  ;;  %v1037_v61 = vrot.slane %v1659_v35, %v1744_v6  ;;  %v1071_v62 = vunpack.c.l.bf16 %v2032_v52  ;;  %v1072_v63 = vunpack.c.h.bf16 %v2032_v52 }
  0x7d   : > { %v1008_v0 = vsel %vm315_vm2, %v1006_v53, %v1007_v22  ;;  %v1011_v1 = vsel %vm315_vm2, %v1009_v55, %v1010_v57  ;;  %v1013_v2 = vsel %vm315_vm2, %v1007_v22, %v1012_v51  ;;  %v1015_v3 = vsel %vm315_vm2, %v1010_v57, %v1014_v54 }
  0x7e   : > { %v1020_v47 = vadd.f32 %v1008_v0, %v974_v42  ;;  %v1021_v7 = vadd.f32 %v1011_v1, %v975_v43  ;;  %v1022_v48 = vadd.f32 %v1013_v2, %v976_v45  ;;  %v1023_v8 = vadd.f32 %v1015_v3, %v977_v38  ;;  %v1661_v45 = vld [vmem:[%s2201_s1 + $0x26] ss:$8 sm:$0x3] }
  0x7f   : > { %v1040_v9 = vmul.f32 %v1033_v58, %v1025_v21  ;;  %v1041_v10 = vmul.f32 %v1037_v61, %v1026_v56  ;;  %v1042_v11 = vmul.f32 %v1033_v58, %v1965_v59  ;;  %v1043_v12 = vmul.f32 %v1037_v61, %v1967_v60 }
  0x80   : > { %v1044_v13 = vmul.f32 %v1033_v58, %v979_v33  ;;  %v1045_v15 = vmul.f32 %v1037_v61, %v980_v34  ;;  %v1079_v16 = vrot.slane %v1660_v4, %v1742_v5  ;;  %v1083_v19 = vrot.slane %v1660_v4, %v1744_v6  ;;  %v1162_v58 = vld [vmem:[%s1752_s25 + $0x20] sm:$0xff] }
  0x81   : > { %v1052_v20 = vrot.slane %v1040_v9, 4  ;;  %v1053_v23 = vrot.slane %v1042_v11, 4  ;;  %v1055_v28 = vrot.slane %v1041_v10, 4  ;;  %v1056_v24 = vrot.slane %v1043_v12, 4 }
  0x82   : > { %v1058_v27 = vrot.slane %v1044_v13, 4  ;;  %v1060_v29 = vrot.slane %v1045_v15, 4  ;;  %v1086_v14 = vmul.f32 %v1079_v16, %v1025_v21  ;;  %v1087_v30 = vmul.f32 %v1083_v19, %v1026_v56 }
  0x83   : > { %v1054_v31 = vsel %vm362_vm3, %v1052_v20, %v1053_v23  ;;  %v1057_v32 = vsel %vm362_vm3, %v1055_v28, %v1056_v24  ;;  %v1088_v33 = vmul.f32 %v1079_v16, %v1965_v59  ;;  %v1089_v34 = vmul.f32 %v1083_v19, %v1967_v60 }
  0x84   : > { %v1059_v17 = vsel %vm362_vm3, %v1053_v23, %v1058_v27  ;;  %v1061_v36 = vsel %vm362_vm3, %v1056_v24, %v1060_v29  ;;  %v1066_v26 = vadd.f32 %v1054_v31, %v1020_v47  ;;  %v1067_v37 = vadd.f32 %v1057_v32, %v1021_v7 }
  0x85   : > { %v1068_v41 = vadd.f32 %v1059_v17, %v1022_v48  ;;  %v1069_v42 = vadd.f32 %v1061_v36, %v1023_v8  ;;  %v1090_v43 = vmul.f32 %v1079_v16, %v1071_v62  ;;  %v1091_v44 = vmul.f32 %v1083_v19, %v1072_v63  ;;  %v1662_v48 = vld [vmem:[%s2201_s1 + $0x27] ss:$8 sm:$0x3]  ;;  %v1663_v8 = vld [vmem:[%s2201_s1 + $0x30] ss:$8 sm:$0x3] }
  0x86   : > { %v1098_v38 = vrot.slane %v1086_v14, 5  ;;  %v1099_v46 = vrot.slane %v1088_v33, 5  ;;  %v1101_v49 = vrot.slane %v1087_v30, 5  ;;  %v1102_v50 = vrot.slane %v1089_v34, 5 }
  0x87   : > { %v1104_v18 = vrot.slane %v1090_v43, 5  ;;  %v1106_v39 = vrot.slane %v1091_v44, 5  ;;  %v1117_v25 = vunpack.c.l.bf16 %v1116_v40  ;;  %v1118_v35 = vunpack.c.h.bf16 %v1116_v40 }
  0x88   : > { %v1100_v53 = vsel %vm409_vm4, %v1098_v38, %v1099_v46  ;;  %v1103_v55 = vsel %vm409_vm4, %v1101_v49, %v1102_v50  ;;  %v1125_v21 = vrot.slane %v1661_v45, %v1742_v5  ;;  %v1129_v56 = vrot.slane %v1661_v45, %v1744_v6 }
  0x89   : > { %v1105_v22 = vsel %vm409_vm4, %v1099_v46, %v1104_v18  ;;  %v1107_v57 = vsel %vm409_vm4, %v1102_v50, %v1106_v39  ;;  %v1112_v51 = vadd.f32 %v1100_v53, %v1066_v26  ;;  %v1113_v54 = vadd.f32 %v1103_v55, %v1067_v37  ;;  %v1664_v18 = vld [vmem:[%s2201_s1 + $0x31] ss:$8 sm:$0x3] }
  0x8a   : > { %v1114_v61 = vadd.f32 %v1105_v22, %v1068_v41  ;;  %v1115_v0 = vadd.f32 %v1107_v57, %v1069_v42  ;;  %v1132_v1 = vmul.f32 %v1125_v21, %v1117_v25  ;;  %v1133_v2 = vmul.f32 %v1129_v56, %v1118_v35  ;;  %v1231_v41 = vld [vmem:[%s1752_s25 + $0x28] sm:$0x11]  ;;  %v2109_v55 = vld [vmem:[%s1752_s25 + $0x18] sm:$0xee] }
  0x8b   : > { %v1134_v3 = vmul.f32 %v1125_v21, %v1965_v59  ;;  %v1135_v4 = vmul.f32 %v1129_v56, %v1967_v60  ;;  %v1136_v47 = vmul.f32 %v1125_v21, %v1071_v62  ;;  %v1137_v7 = vmul.f32 %v1129_v56, %v1072_v63 }
  0x8c   : > { %v1144_v9 = vrot.slane %v1132_v1, 6  ;;  %v1147_v10 = vrot.slane %v1133_v2, 6  ;;  %v2082_v11 = vunpack.c.l.bf16 %v1162_v58  ;;  %v2084_v12 = vunpack.c.h.bf16 %v1162_v58 }
  0x8d   : > { %v1145_v13 = vrot.slane %v1134_v3, 6  ;;  %v1148_v15 = vrot.slane %v1135_v4, 6  ;;  %v1150_v62 = vrot.slane %v1136_v47, 6  ;;  %v1152_v16 = vrot.slane %v1137_v7, 6 }
  0x8e   : > { %v1171_v52 = vrot.slane %v1662_v48, %v1742_v5  ;;  %v1175_v63 = vrot.slane %v1662_v48, %v1744_v6  ;;  %v1214_v19 = vrot.slane %v1663_v8, %v1742_v5  ;;  %v1218_v20 = vrot.slane %v1663_v8, %v1744_v6  ;;  %v1665_v4 = vld [vmem:[%s2201_s1 + $0x32] ss:$8 sm:$0x3] }
  0x8f   : > { %v1146_v23 = vsel %vm456_vm5, %v1144_v9, %v1145_v13  ;;  %v1149_v28 = vsel %vm456_vm5, %v1147_v10, %v1148_v15  ;;  %v1151_v24 = vsel %vm456_vm5, %v1145_v13, %v1150_v62  ;;  %v1153_v27 = vsel %vm456_vm5, %v1148_v15, %v1152_v16 }
  0x90   : > { %v1158_v29 = vadd.f32 %v1146_v23, %v1112_v51  ;;  %v1159_v14 = vadd.f32 %v1149_v28, %v1113_v54  ;;  %v1160_v30 = vadd.f32 %v1151_v24, %v1114_v61  ;;  %v1161_v31 = vadd.f32 %v1153_v27, %v1115_v0 }
  0x91   : > { %v1178_v32 = vmul.f32 %v1171_v52, %v1117_v25  ;;  %v1179_v33 = vmul.f32 %v1175_v63, %v1118_v35  ;;  %v1180_v34 = vmul.f32 %v1171_v52, %v1965_v59  ;;  %v1181_v17 = vmul.f32 %v1175_v63, %v1967_v60 }
  0x92   : > { %v1182_v36 = vmul.f32 %v1171_v52, %v2082_v11  ;;  %v1183_v26 = vmul.f32 %v1175_v63, %v2084_v12  ;;  %v1221_v37 = vmul.f32 %v1214_v19, %v1965_v59  ;;  %v1222_v40 = vmul.f32 %v1218_v20, %v1967_v60 }
  0x93   : > { %v1190_v42 = vrot.slane %v1178_v32, 7  ;;  %v1191_v43 = vrot.slane %v1180_v34, 7  ;;  %v1193_v44 = vrot.slane %v1179_v33, 7  ;;  %v1194_v45 = vrot.slane %v1181_v17, 7  ;;  %v1327_v32 = vld [vmem:[%s1752_s25 + $0x28] sm:$0x33] }
  0x94   : > { %v1196_v38 = vrot.slane %v1182_v36, 7  ;;  %v1198_v46 = vrot.slane %v1183_v26, 7  ;;  %v1223_v49 = vmul.f32 %v1214_v19, %v2082_v11  ;;  %v1224_v50 = vmul.f32 %v1218_v20, %v2084_v12  ;;  %v1666_v26 = vld [vmem:[%s2201_s1 + $0x33] ss:$8 sm:$0x3] }
  0x95   : > { %v1192_v39 = vsel %vm503_vm6, %v1190_v42, %v1191_v43  ;;  %v1195_v25 = vsel %vm503_vm6, %v1193_v44, %v1194_v45  ;;  %v1236_v35 = vunpack.c.l.bf16 %v1231_v41  ;;  %v1237_v53 = vunpack.c.h.bf16 %v1231_v41 }
  0x96   : > { %v1197_v21 = vsel %vm503_vm6, %v1191_v43, %v1196_v38  ;;  %v1199_v56 = vsel %vm503_vm6, %v1194_v45, %v1198_v46  ;;  %v1204_v22 = vadd.f32 %v1192_v39, %v1158_v29  ;;  %v1205_v57 = vadd.f32 %v1195_v25, %v1159_v14  ;;  %v2137_v43 = vld [vmem:[%s1752_s25 + $0x18] sm:$0xcc] }
  0x97   : > { %v1206_v51 = vadd.f32 %v1197_v21, %v1160_v30  ;;  %v1207_v54 = vadd.f32 %v1199_v56, %v1161_v31  ;;  %v1244_v58 = vrot.slane %v1664_v18, %v1742_v5  ;;  %v1248_v61 = vrot.slane %v1664_v18, %v1744_v6 }
  0x98   : > { %v1225_v0 = vadd.f32 %v1221_v37, %v1204_v22  ;;  %v1226_v1 = vadd.f32 %v1222_v40, %v1205_v57  ;;  %v1282_v2 = vunpack.c.l.bf16 %v2109_v55  ;;  %v1283_v3 = vunpack.c.h.bf16 %v2109_v55 }
  0x99   : > { %v1227_v47 = vadd.f32 %v1223_v49, %v1206_v51  ;;  %v1228_v7 = vadd.f32 %v1224_v50, %v1207_v54  ;;  %v1251_v48 = vmul.f32 %v1244_v58, %v1965_v59  ;;  %v1252_v8 = vmul.f32 %v1248_v61, %v1967_v60  ;;  %v1667_v51 = vld [vmem:[%s2201_s1 + $0x34] ss:$8 sm:$0x3] }
  0x9a   : > { %v1253_v9 = vmul.f32 %v1244_v58, %v2082_v11  ;;  %v1254_v10 = vmul.f32 %v1248_v61, %v2084_v12  ;;  %v1255_v13 = vmul.f32 %v1244_v58, %v1236_v35  ;;  %v1256_v15 = vmul.f32 %v1248_v61, %v1237_v53 }
  0x9b   : > { %v1263_v62 = vrot.slane %v1251_v48, 1  ;;  %v1266_v16 = vrot.slane %v1252_v8, 1  ;;  %v1290_v52 = vrot.slane %v1665_v4, %v1742_v5  ;;  %v1294_v63 = vrot.slane %v1665_v4, %v1744_v6 }
  0x9c   : > { %v1264_v19 = vrot.slane %v1253_v9, 1  ;;  %v1267_v20 = vrot.slane %v1254_v10, 1  ;;  %v1269_v23 = vrot.slane %v1255_v13, 1  ;;  %v1271_v28 = vrot.slane %v1256_v15, 1 }
  0x9d   : > { %v1297_v59 = vmul.f32 %v1290_v52, %v1282_v2  ;;  %v1298_v24 = vmul.f32 %v1294_v63, %v1283_v3  ;;  %v1299_v60 = vmul.f32 %v1290_v52, %v2082_v11  ;;  %v1300_v27 = vmul.f32 %v1294_v63, %v2084_v12 }
  0x9e   : > { %v1265_v29 = vsel %vm221_vm0, %v1263_v62, %v1264_v19  ;;  %v1268_v14 = vsel %vm221_vm0, %v1266_v16, %v1267_v20  ;;  %v1270_v30 = vsel %vm221_vm0, %v1264_v19, %v1269_v23  ;;  %v1272_v31 = vsel %vm221_vm0, %v1267_v20, %v1271_v28 }
  0x9f   : > { %v1277_v33 = vadd.f32 %v1265_v29, %v1225_v0  ;;  %v1278_v34 = vadd.f32 %v1268_v14, %v1226_v1  ;;  %v1279_v17 = vadd.f32 %v1270_v30, %v1227_v47  ;;  %v1280_v36 = vadd.f32 %v1272_v31, %v1228_v7  ;;  %v1668_v14 = vld [vmem:[%s2201_s1 + $0x35] ss:$8 sm:$0x3] }
  0xa0   : > { %v1301_v37 = vmul.f32 %v1290_v52, %v1236_v35  ;;  %v1302_v40 = vmul.f32 %v1294_v63, %v1237_v53  ;;  %v1309_v41 = vrot.slane %v1297_v59, 2  ;;  %v1310_v42 = vrot.slane %v1299_v60, 2  ;;  %v1419_v59 = vld [vmem:[%s1752_s25 + $0x28] sm:$0x77] }
  0xa1   : > { %v1312_v44 = vrot.slane %v1298_v24, 2  ;;  %v1313_v45 = vrot.slane %v1300_v27, 2  ;;  %v1328_v38 = vunpack.c.l.bf16 %v1327_v32  ;;  %v1329_v46 = vunpack.c.h.bf16 %v1327_v32 }
  0xa2   : > { %v1311_v49 = vsel %vm268_vm1, %v1309_v41, %v1310_v42  ;;  %v1315_v50 = vrot.slane %v1301_v37, 2  ;;  %v1317_v18 = vrot.slane %v1302_v40, 2  ;;  %v1336_v39 = vrot.slane %v1666_v26, %v1742_v5 }
  0xa3   : > { %v1314_v25 = vsel %vm268_vm1, %v1312_v44, %v1313_v45  ;;  %v1323_v55 = vadd.f32 %v1311_v49, %v1277_v33  ;;  %v1340_v35 = vrot.slane %v1666_v26, %v1744_v6  ;;  %v1374_v53 = vunpack.c.l.bf16 %v2137_v43 }
  0xa4   : > { %v1316_v21 = vsel %vm268_vm1, %v1310_v42, %v1315_v50  ;;  %v1318_v56 = vsel %vm268_vm1, %v1313_v45, %v1317_v18  ;;  %v1324_v22 = vadd.f32 %v1314_v25, %v1278_v34  ;;  %v1343_v57 = vmul.f32 %v1336_v39, %v1282_v2  ;;  %v1465_v34 = vld [vmem:[%s1752_s25 + $0x18] sm:$0x88]  ;;  %v1669_v25 = vld [vmem:[%s2201_s1 + $0x36] ss:$8 sm:$0x3] }
  0xa5   : > { %v1325_v54 = vadd.f32 %v1316_v21, %v1279_v17  ;;  %v1326_v58 = vadd.f32 %v1318_v56, %v1280_v36  ;;  %v1344_v61 = vmul.f32 %v1340_v35, %v1283_v3  ;;  %v1345_v0 = vmul.f32 %v1336_v39, %v2082_v11 }
  0xa6   : > { %v1346_v1 = vmul.f32 %v1340_v35, %v2084_v12  ;;  %v1347_v4 = vmul.f32 %v1336_v39, %v1328_v38  ;;  %v1348_v47 = vmul.f32 %v1340_v35, %v1329_v46  ;;  %v1355_v7 = vrot.slane %v1343_v57, 3 }
  0xa7   : > { %v1356_v48 = vrot.slane %v1345_v0, 3  ;;  %v1358_v8 = vrot.slane %v1344_v61, 3  ;;  %v1375_v9 = vunpack.c.h.bf16 %v2137_v43  ;;  %v1382_v2 = vrot.slane %v1667_v51, %v1742_v5 }
  0xa8   : > { %v1359_v10 = vrot.slane %v1346_v1, 3  ;;  %v1361_v13 = vrot.slane %v1347_v4, 3  ;;  %v1363_v15 = vrot.slane %v1348_v47, 3  ;;  %v1386_v62 = vrot.slane %v1667_v51, %v1744_v6 }
  0xa9   : > { %v1357_v3 = vsel %vm315_vm2, %v1355_v7, %v1356_v48  ;;  %v1389_v16 = vmul.f32 %v1382_v2, %v1374_v53  ;;  %v1391_v52 = vmul.f32 %v1382_v2, %v2082_v11  ;;  %v1393_v63 = vmul.f32 %v1382_v2, %v1328_v38 }
  0xaa   : > { %v1360_v19 = vsel %vm315_vm2, %v1358_v8, %v1359_v10  ;;  %v1362_v20 = vsel %vm315_vm2, %v1356_v48, %v1361_v13  ;;  %v1364_v23 = vsel %vm315_vm2, %v1359_v10, %v1363_v15  ;;  %v1369_v28 = vadd.f32 %v1357_v3, %v1323_v55 }
  0xab   : > { %v1370_v24 = vadd.f32 %v1360_v19, %v1324_v22  ;;  %v1371_v60 = vadd.f32 %v1362_v20, %v1325_v54  ;;  %v1372_v27 = vadd.f32 %v1364_v23, %v1326_v58  ;;  %v1390_v29 = vmul.f32 %v1386_v62, %v1375_v9 }
  0xac   : > { %v1392_v30 = vmul.f32 %v1386_v62, %v2084_v12  ;;  %v1394_v31 = vmul.f32 %v1386_v62, %v1329_v46  ;;  %v1401_v32 = vrot.slane %v1389_v16, 4  ;;  %v1402_v33 = vrot.slane %v1391_v52, 4  ;;  %v1511_v62 = vld [vmem:[%s2202_s2] sm:$0x3] }
  0xad   : > { %v1404_v17 = vrot.slane %v1390_v29, 4  ;;  %v1407_v36 = vrot.slane %v1393_v63, 4  ;;  %v1420_v26 = vunpack.c.l.bf16 %v1419_v59  ;;  %v1421_v37 = vunpack.c.h.bf16 %v1419_v59 }
  0xae   : > { %v1403_v40 = vsel %vm362_vm3, %v1401_v32, %v1402_v33  ;;  %v1405_v41 = vrot.slane %v1392_v30, 4  ;;  %v1409_v42 = vrot.slane %v1394_v31, 4  ;;  %v1428_v43 = vrot.slane %v1668_v14, %v1742_v5 }
  0xaf   : > { %v1408_v44 = vsel %vm362_vm3, %v1402_v33, %v1407_v36  ;;  %v1415_v45 = vadd.f32 %v1403_v40, %v1369_v28  ;;  %v1432_v38 = vrot.slane %v1668_v14, %v1744_v6  ;;  %v1466_v49 = vunpack.c.l.bf16 %v1465_v34 }
  0xb0   : > { %v1406_v46 = vsel %vm362_vm3, %v1404_v17, %v1405_v41  ;;  %v1410_v50 = vsel %vm362_vm3, %v1405_v41, %v1409_v42  ;;  %v1417_v18 = vadd.f32 %v1408_v44, %v1371_v60  ;;  %v1435_v39 = vmul.f32 %v1428_v43, %v1374_v53 }
  0xb1   : > { %v1416_v55 = vadd.f32 %v1406_v46, %v1370_v24  ;;  %v1418_v35 = vadd.f32 %v1410_v50, %v1372_v27  ;;  %v1436_v21 = vmul.f32 %v1432_v38, %v1375_v9  ;;  %v1437_v56 = vmul.f32 %v1428_v43, %v2082_v11 }
  0xb2   : > { %v1438_v22 = vmul.f32 %v1432_v38, %v2084_v12  ;;  %v1439_v57 = vmul.f32 %v1428_v43, %v1420_v26  ;;  %v1440_v51 = vmul.f32 %v1432_v38, %v1421_v37  ;;  %v1447_v54 = vrot.slane %v1435_v39, 5 }
  0xb3   : > { %v1448_v58 = vrot.slane %v1437_v56, 5  ;;  %v1450_v61 = vrot.slane %v1436_v21, 5  ;;  %v1467_v0 = vunpack.c.h.bf16 %v1465_v34  ;;  %v1474_v1 = vrot.slane %v1669_v25, %v1742_v5 }
  0xb4   : > { %v1451_v53 = vrot.slane %v1438_v22, 5  ;;  %v1453_v4 = vrot.slane %v1439_v57, 5  ;;  %v1455_v47 = vrot.slane %v1440_v51, 5  ;;  %v1478_v7 = vrot.slane %v1669_v25, %v1744_v6 }
  0xb5   : > { %v1449_v48 = vsel %vm409_vm4, %v1447_v54, %v1448_v58  ;;  %v1481_v8 = vmul.f32 %v1474_v1, %v1466_v49  ;;  %v1483_v9 = vmul.f32 %v1474_v1, %v2082_v11  ;;  %v1485_v2 = vmul.f32 %v1474_v1, %v1420_v26 }
  0xb6   : > { %v1452_v10 = vsel %vm409_vm4, %v1450_v61, %v1451_v53  ;;  %v1454_v13 = vsel %vm409_vm4, %v1448_v58, %v1453_v4  ;;  %v1456_v15 = vsel %vm409_vm4, %v1451_v53, %v1455_v47  ;;  %v1461_v3 = vadd.f32 %v1449_v48, %v1415_v45 }
  0xb7   : > { %v1462_v16 = vadd.f32 %v1452_v10, %v1416_v55  ;;  %v1463_v52 = vadd.f32 %v1454_v13, %v1417_v18  ;;  %v1482_v63 = vmul.f32 %v1478_v7, %v1467_v0  ;;  %v1484_v19 = vmul.f32 %v1478_v7, %v2084_v12 }
  0xb8   : > { %v1486_v20 = vmul.f32 %v1478_v7, %v1421_v37  ;;  %v1493_v23 = vrot.slane %v1481_v8, 6  ;;  %v1494_v11 = vrot.slane %v1483_v9, 6  ;;  %v1464_v28 = vadd.f32 %v1456_v15, %v1418_v35 }
  0xb9   : > { %v1496_v59 = vrot.slane %v1482_v63, 6  ;;  %v1499_v24 = vrot.slane %v1485_v2, 6  ;;  %v1516_v60 = vrot.slane %v1511_v62, %v1742_v5  ;;  %v1497_v29 = vrot.slane %v1484_v19, 6 }
  0xba   : > { %v1495_v27 = vsel %vm456_vm5, %v1493_v23, %v1494_v11  ;;  %v1501_v14 = vrot.slane %v1486_v20, 6  ;;  %v1520_v32 = vrot.slane %v1511_v62, %v1744_v6 }
  0xbb   : > { %v1500_v30 = vsel %vm456_vm5, %v1494_v11, %v1499_v24  ;;  %v1507_v31 = vadd.f32 %v1495_v27, %v1461_v3  ;;  %v1498_v33 = vsel %vm456_vm5, %v1496_v59, %v1497_v29 }
  0xbc   : > { %v1502_v12 = vsel %vm456_vm5, %v1497_v29, %v1501_v14  ;;  %v1509_v34 = vadd.f32 %v1500_v30, %v1463_v52  ;;  %v1508_v17 = vadd.f32 %v1498_v33, %v1462_v16 }
  0xbd   : > { %v1510_v36 = vadd.f32 %v1502_v12, %v1464_v28  ;;  %v1523_v26 = vadd.f32 %v1516_v60, %v1507_v31 }
  0xbe   : > { %v1525_v37 = vadd.f32 %v1516_v60, %v1509_v34  ;;  %v1524_v40 = vadd.f32 %v1520_v32, %v1508_v17 }
  0xbf   : > { %v1526_v5 = vadd.f32 %v1520_v32, %v1510_v36  ;;  %v1531_v41 = vmul.f32 0.044715, %v1523_v26  ;;  %v1527_v54 = vmul.f32 0.5, %v1523_v26 }
  0xc0   : > { %v1533_v42 = vmul.f32 0.044715, %v1525_v37  ;;  %v1532_v43 = vmul.f32 0.044715, %v1524_v40  ;;  %v1528_v61 = vmul.f32 0.5, %v1524_v40  ;;  %v1529_v1 = vmul.f32 0.5, %v1525_v37 }
  0xc1   : > { %v1534_v44 = vmul.f32 0.044715, %v1526_v5  ;;  %v1535_v45 = vmul.f32 %v1531_v41, %v1523_v26  ;;  %v1530_v47 = vmul.f32 0.5, %v1526_v5 }
  0xc2   : > { %v1537_v38 = vmul.f32 %v1533_v42, %v1525_v37  ;;  %v1536_v49 = vmul.f32 %v1532_v43, %v1524_v40 }
  0xc3   : > { %v1538_v46 = vmul.f32 %v1534_v44, %v1526_v5  ;;  %v1539_v6 = vmul.f32 %v1535_v45, %v1523_v26 }
  0xc4   : > { %v1541_v50 = vmul.f32 %v1537_v38, %v1525_v37  ;;  %v1540_v18 = vmul.f32 %v1536_v49, %v1524_v40 }
  0xc5   : > { %v1542_v39 = vmul.f32 %v1538_v46, %v1526_v5  ;;  %v1543_v25 = vadd.f32 %v1539_v6, %v1523_v26 }
  0xc6   : > { %v1545_v55 = vadd.f32 %v1541_v50, %v1525_v37  ;;  %v1544_v35 = vadd.f32 %v1540_v18, %v1524_v40 }
  0xc7   : > { %v1546_v21 = vadd.f32 %v1542_v39, %v1526_v5  ;;  %v1547_v56 = vmul.f32 0.7978846, %v1543_v25 }
  0xc8   : > { %v1549_v22 = vmul.f32 0.7978846, %v1545_v55  ;;  %v1548_v57 = vmul.f32 0.7978846, %v1544_v35 }
  0xc9   : > { %v1550_v51 = vmul.f32 0.7978846, %v1546_v21  ;;  %1686 = vtanh.f32 %v1547_v56 }
  0xca   : > { %1688 = vtanh.f32 %v1548_v57 }
  0xcb   : > { %1690 = vtanh.f32 %v1549_v22 }
  0xcc   : > { %1692 = vtanh.f32 %v1550_v51 }
  0xd3   : > { %v1687_v58 = vpop.eup %1686 }
  0xd4   : > { %v1689_v0 = vpop.eup %1688  ;;  %v1555_v53 = vadd.f32 1.0, %v1687_v58 }
  0xd5   : > { %v1691_v4 = vpop.eup %1690  ;;  %v1556_v7 = vadd.f32 1.0, %v1689_v0 }
  0xd6   : > { %v1693_v48 = vpop.eup %1692  ;;  %v1557_v8 = vadd.f32 1.0, %v1691_v4  ;;  %v1559_v9 = vmul.f32 %v1555_v53, %v1527_v54 }
  0xd7   : > { %v1558_v2 = vadd.f32 1.0, %v1693_v48  ;;  %v1560_v10 = vmul.f32 %v1556_v7, %v1528_v61 }
  0xd8   : > { %v1561_v13 = vmul.f32 %v1557_v8, %v1529_v1 }
  0xd9   : > { %v1562_v15 = vmul.f32 %v1558_v2, %v1530_v47  ;;  %v1675_v62 = vpack.c.bf16 %v1560_v10, %v1559_v9 }
  0xdb   : > { %v1676_v3 = vpack.c.bf16 %v1562_v15, %v1561_v13  ;;  %1575 = vst [vmem:[%s170_s9] sm:$0xff] %v1675_v62 }
  0xdd   : > { %1576 = vst [vmem:[%s170_s9 + $0x8] sm:$0xff] %v1676_v3 }
  0xde PF: > { %s13_s12 = sadd.s32 1, %s1700_s12  }
  0xdf   : > { %p10_p4 = scmp.ge.s32.totalorder %s13_s12, 4  }
  0xe1   :  { %12 = sbr.rel (!%p10_p4) target bundleno = 1 (0x1), region = 92 }

// kernel: conformer_block.19
= control target key start
LH: loop header
LB: loop body
LE: loop exit
PB: predicated region body
PF: predicated region fallthrough
CT: control target
= control target key end

     0   :  { %s933_s0 = inlined_call_operand.vmem [shape: bf16[32,512], index: 0, kind: input, shape index: {}]   ;;  %s934_s1 = inlined_call_operand.vmem [shape: bf16[512,128], index: 1, kind: input, shape index: {}]   ;;  %s935_s2 = inlined_call_operand.vmem [shape: f32[1,128], index: 2, kind: input, shape index: {}]   ;;  %s936_s3 = inlined_call_operand.vmem [shape: f32[32,128], index: 3, kind: input, shape index: {}]   ;;  %s937_s4 = inlined_call_operand.vmem [shape: f32[1,128], index: 4, kind: input, shape index: {}]   ;;  %s938_s5 = inlined_call_operand.vmem [shape: f32[1,128], index: 5, kind: input, shape index: {}]   ;;  %s939_s6 = inlined_call_operand.hbm [shape: f32[32,128], index: 6, kind: output, shape index: {}]  }
   0x1   :  { %v666_v0 = vld [vmem:[%s934_s1 + $0x40] sm:$0xff]   ;;  %v670_v4 = vld [vmem:[%s934_s1 + $0x48] sm:$0xff]   ;;  %v674_v8 = vld [vmem:[%s934_s1 + $0x50] sm:$0xff]  }
   0x2   :  { %v667_v1 = vld [vmem:[%s934_s1 + $0xc0] sm:$0xff]   ;;  %607 = vmatprep.subr.bf16.mxu0 %v666_v0  ;;  %v671_v5 = vld [vmem:[%s934_s1 + $0xc8] sm:$0xff]   ;;  %v675_v9 = vld [vmem:[%s934_s1 + $0xd0] sm:$0xff]  }
   0x3   :  { %v668_v2 = vld [vmem:[%s934_s1] sm:$0xff]   ;;  %635 = vmatprep.subr.bf16.mxu1 %v667_v1  ;;  %v672_v6 = vld [vmem:[%s934_s1 + $0x8] sm:$0xff]   ;;  %v676_v10 = vld [vmem:[%s934_s1 + $0x10] sm:$0xff]  }
   0x4   :  { %v669_v3 = vld [vmem:[%s934_s1 + $0x80] sm:$0xff]   ;;  %608 = vmatpush3.bf16.msra.mxu0 %v668_v2  ;;  %v673_v7 = vld [vmem:[%s934_s1 + $0x88] sm:$0xff]   ;;  %v677_v11 = vld [vmem:[%s934_s1 + $0x90] sm:$0xff]  }
   0x5   :  { %636 = vmatpush3.bf16.msra.mxu1 %v669_v3  ;;  %609 = vmatprep.subr.bf16.mxu0 %v670_v4  ;;  %v678_v12 = vld [vmem:[%s934_s1 + $0x58] sm:$0xff]   ;;  %v682_v16 = vld [vmem:[%s934_s1 + $0x60] sm:$0xff]   ;;  %v686_v20 = vld [vmem:[%s934_s1 + $0x68] sm:$0xff]  }
   0x6   :  { %637 = vmatprep.subr.bf16.mxu1 %v671_v5  ;;  %v679_v13 = vld [vmem:[%s934_s1 + $0xd8] sm:$0xff]   ;;  %v683_v17 = vld [vmem:[%s934_s1 + $0xe0] sm:$0xff]   ;;  %v687_v21 = vld [vmem:[%s934_s1 + $0xe8] sm:$0xff]  }
   0x7   :  { %v680_v14 = vld [vmem:[%s934_s1 + $0x18] sm:$0xff]   ;;  %v684_v18 = vld [vmem:[%s934_s1 + $0x20] sm:$0xff]   ;;  %v688_v22 = vld [vmem:[%s934_s1 + $0x28] sm:$0xff]  }
   0x8   :  { %610 = vmatpush3.bf16.msra.mxu0 %v672_v6  ;;  %v681_v15 = vld [vmem:[%s934_s1 + $0x98] sm:$0xff]   ;;  %v685_v19 = vld [vmem:[%s934_s1 + $0xa0] sm:$0xff]   ;;  %v689_v23 = vld [vmem:[%s934_s1 + $0xa8] sm:$0xff]  }
   0x9   :  { %638 = vmatpush3.bf16.msra.mxu1 %v673_v7  ;;  %611 = vmatprep.subr.bf16.mxu0 %v674_v8  ;;  %v690_v24 = vld [vmem:[%s934_s1 + $0x70] sm:$0xff]   ;;  %v694_v28 = vld [vmem:[%s934_s1 + $0x78] sm:$0xff]  }
   0xa   :  { %639 = vmatprep.subr.bf16.mxu1 %v675_v9  ;;  %v691_v25 = vld [vmem:[%s934_s1 + $0xf0] sm:$0xff]   ;;  %v695_v29 = vld [vmem:[%s934_s1 + $0xf8] sm:$0xff]  }
   0xb   :  { %v692_v26 = vld [vmem:[%s934_s1 + $0x30] sm:$0xff]   ;;  %v696_v30 = vld [vmem:[%s934_s1 + $0x38] sm:$0xff]  }
   0xc   :  { %612 = vmatpush3.bf16.msra.mxu0 %v676_v10  ;;  %v693_v27 = vld [vmem:[%s934_s1 + $0xb0] sm:$0xff]   ;;  %v697_v31 = vld [vmem:[%s934_s1 + $0xb8] sm:$0xff]  }
   0xd   :  { %640 = vmatpush3.bf16.msra.mxu1 %v677_v11  ;;  %613 = vmatprep.subr.bf16.mxu0 %v678_v12  ;;  %v698_v32 = vld [vmem:[%s933_s0] ss:$16 sps:$4 sm:$0xff]   ;;  %v700_v33 = vld [vmem:[%s933_s0 + $0x4] ss:$16 sps:$4 sm:$0xff]   ;;  %v701_v34 = vld [vmem:[%s933_s0 + $0x8] ss:$16 sps:$4 sm:$0xff]  }
   0xe   :  { %641 = vmatprep.subr.bf16.mxu1 %v679_v13  ;;  %v703_v35 = vld [vmem:[%s933_s0 + $0xc] ss:$16 sps:$4 sm:$0xff]   ;;  %373 = vmatprep.mubr.bf16.mxu0 %v700_v33  ;;  %v704_v36 = vld [vmem:[%s933_s0 + $0x24] ss:$16 sps:$4 sm:$0xff]  }
   0xf   :  { %422 = vmatprep.mubr.bf16.mxu1 %v703_v35  ;;  %v706_v37 = vld [vmem:[%s933_s0 + $0x2c] ss:$16 sps:$4 sm:$0xff]  }
  0x10   :  { %614 = vmatpush3.bf16.msra.mxu0 %v680_v14 }
  0x11   :  { %642 = vmatpush3.bf16.msra.mxu1 %v681_v15  ;;  %615 = vmatprep.subr.bf16.mxu0 %v682_v16 }
  0x12   :  { %643 = vmatprep.subr.bf16.mxu1 %v683_v17 }
  0x14   :  { %616 = vmatpush3.bf16.msra.mxu0 %v684_v18 }
  0x15   :  { %644 = vmatpush3.bf16.msra.mxu1 %v685_v19  ;;  %617 = vmatprep.subr.bf16.mxu0 %v686_v20 }
  0x16   :  { %645 = vmatprep.subr.bf16.mxu1 %v687_v21 }
  0x18   :  { %618 = vmatpush3.bf16.msra.mxu0 %v688_v22 }
  0x19   :  { %646 = vmatpush3.bf16.msra.mxu1 %v689_v23  ;;  %619 = vmatprep.subr.bf16.mxu0 %v690_v24 }
  0x1a   :  { %647 = vmatprep.subr.bf16.mxu1 %v691_v25 }
  0x1c   :  { %620 = vmatpush3.bf16.msra.mxu0 %v692_v26 }
  0x1d   :  { %648 = vmatpush3.bf16.msra.mxu1 %v693_v27  ;;  %621 = vmatprep.subr.bf16.mxu0 %v694_v28 }
  0x1e   :  { %649 = vmatprep.subr.bf16.mxu1 %v695_v29 }
  0x20   :  { %622 = vmatpush3.bf16.msra.mxu0 %v696_v30 }
  0x21   :  { %650 = vmatpush3.bf16.msra.mxu1 %v697_v31 }
  0x23   :  { %374 = vmatmul.mubr.bf16.vlgmr.msra.gmra.mrb[0].mxu0 %v698_v32 }
  0x24   :  { %423 = vmatmul.mubr.bf16.vlgmr.msra.gmra.mrb[0].mxu1 %v701_v34  ;;  %381 = vmatprep.mubr.bf16.mxu0 %v704_v36 }
  0x25   :  { %11 = vsyncpa [#allocation4], 0  ;;  %430 = vmatprep.mubr.bf16.mxu1 %v706_v37  ;;  %v708_v38 = vld [vmem:[%s933_s0 + $0x20] ss:$16 sps:$4 sm:$0xff]   ;;  %v709_v39 = vld [vmem:[%s933_s0 + $0x28] ss:$16 sps:$4 sm:$0xff]  }
  0x26   :  { %v604_v51 = vld [vmem:[%s935_s2] ss:$0 sm:$0xff]  ;;  %v451_v8 = vld [vmem:[%s936_s3 + $0x8] sm:$0xff]  ;;  %v452_v14 = vld [vmem:[%s936_s3 + $0x10] sm:$0xff] }
  0x27   :  { %v450_v57 = vld [vmem:[%s936_s3] sm:$0xff]  ;;  %v453_v19 = vld [vmem:[%s936_s3 + $0x18] sm:$0xff] }
  0x2b   :  { %382 = vmatmul.mubr.bf16.gmra.mrb[4].mxu0 %v708_v38 }
  0x2c   :  { %431 = vmatmul.mubr.bf16.gmra.mrb[4].mxu1 %v709_v39 }
  0xf6   :  { %v623_v40 = vpop.f32.mrb[0].mxu0 }
  0xf7   :  { %v651_v41 = vpop.f32.mrb[0].mxu1  ;;  %v624_v42 = vpop.f32.mrb[1].mxu0 }
  0xf8   :  { %v625_v43 = vadd.f32 %v624_v42, %v623_v40  ;;  %v652_v44 = vpop.f32.mrb[1].mxu1  ;;  %v626_v45 = vpop.f32.mrb[2].mxu0 }
  0xf9   :  { %v653_v46 = vadd.f32 %v652_v44, %v651_v41  ;;  %v654_v47 = vpop.f32.mrb[2].mxu1  ;;  %v627_v48 = vpop.f32.mrb[3].mxu0 }
  0xfa   :  { %v628_v49 = vadd.f32 %v627_v48, %v626_v45  ;;  %v655_v50 = vpop.f32.mrb[3].mxu1 }
  0xfb   :  { %v425_v52 = vadd.f32 %v653_v46, %v625_v43  ;;  %v656_v53 = vadd.f32 %v655_v50, %v654_v47 }
  0xfd   :  { %v428_v54 = vadd.f32 %v656_v53, %v628_v49  ;;  %v465_v55 = vadd.f32 %v604_v51, %v425_v52  ;;  %v605_v49 = vld [vmem:[%s937_s4] ss:$0 sm:$0xff]  ;;  %s742_s4 = smov [#allocation3]  }
  0xfe   :  { %v629_v56 = vpop.f32.mrb[4].mxu0  ;;  %v606_v52 = vld [vmem:[%s938_s5] ss:$0 sm:$0xff]  ;;  %s553_s15 = sshll.u32 %s742_s4, 4  ;;  %s554_s15 = int_to_ptr.vmem [resolvable:$true] %s553_s15 }
  0xff   :  { %v657_v58 = vpop.f32.mrb[4].mxu1  ;;  %v630_v59 = vpop.f32.mrb[5].mxu0  ;;  %v469_v60 = vmul.f32 0.5, %v465_v55  ;;  %v466_v61 = vadd.f32 %v604_v51, %v428_v54  ;;  %s718_s5 = scalar_lea.vmem %s554_s15, 512  ;;  %p723_p1 = scmp.lt.s32.totalorder %s554_s15, %s554_s15 }
 0x100   :  { %v631_v62 = vadd.f32 %v630_v59, %v629_v56  ;;  %v658_v63 = vpop.f32.mrb[5].mxu1  ;;  %v632_v0 = vpop.f32.mrb[6].mxu0  ;;  %p719_p0 = scmp.ne.s32.totalorder %s554_s15, %s718_s5  ;;  %p724_p2 = scmp.lt.s32.totalorder %s718_s5, %s718_s5 }
 0x101   :  { %v659_v1 = vadd.f32 %v658_v63, %v657_v58  ;;  %v660_v2 = vpop.f32.mrb[6].mxu1  ;;  %v633_v3 = vpop.f32.mrb[7].mxu0  ;;  %v473_v4 = vadd.f32 %v469_v60, %v450_v57  ;;  %v470_v5 = vmul.f32 0.5, %v466_v61 }
 0x102   :  { %v634_v6 = vadd.f32 %v633_v3, %v632_v0  ;;  %v661_v7 = vpop.f32.mrb[7].mxu1  ;;  %p725_p3 = por %p724_p2, %p723_p1 }
 0x103   :  { %v433_v9 = vadd.f32 %v659_v1, %v631_v62  ;;  %v662_v10 = vadd.f32 %v661_v7, %v660_v2  ;;  %477 = vadd.xlane.f32.xlu0 %v473_v4  ;;  %v474_v12 = vadd.f32 %v470_v5, %v451_v8 }
 0x104   :  { %p726_p4 = pnand %p725_p3, %p719_p0 }
 0x105   :  { %v436_v11 = vadd.f32 %v662_v10, %v634_v6  ;;  %v467_v13 = vadd.f32 %v604_v51, %v433_v9 }
 0x107   :  { %479 = vadd.xlane.f32.xlu0 %v474_v12  ;;  %v471_v15 = vmul.f32 0.5, %v467_v13  ;;  %v468_v16 = vadd.f32 %v604_v51, %v436_v11 }
 0x109   :  { %v475_v17 = vadd.f32 %v471_v15, %v452_v14  ;;  %v472_v18 = vmul.f32 0.5, %v468_v16 }
 0x10b   :  { %481 = vadd.xlane.f32.xlu1 %v475_v17  ;;  %v476_v20 = vadd.f32 %v472_v18, %v453_v19 }
 0x10f   :  { %483 = vadd.xlane.f32.xlu1 %v476_v20 }
 0x190   :  { %v478_v21 = vpop.xlane.xlu0 %477 }
 0x191   :  { %v486_v22 = vmul.f32 0.0078125, %v478_v21 }
 0x193   :  { %v490_v23 = vsub.f32 %v473_v4, %v486_v22 }
 0x194   :  { %v480_v24 = vpop.xlane.xlu0 %479 }
 0x195   :  { %v487_v25 = vmul.f32 0.0078125, %v480_v24  ;;  %v494_v26 = vmul.f32 %v490_v23, %v490_v23 }
 0x197   :  { %v491_v27 = vsub.f32 %v474_v12, %v487_v25  ;;  %498 = vadd.xlane.f32.xlu0 %v494_v26 }
 0x198   :  { %v482_v28 = vpop.xlane.xlu1 %481 }
 0x199   :  { %v488_v29 = vmul.f32 0.0078125, %v482_v28  ;;  %v495_v30 = vmul.f32 %v491_v27, %v491_v27 }
 0x19b   :  { %v492_v31 = vsub.f32 %v475_v17, %v488_v29  ;;  %500 = vadd.xlane.f32.xlu1 %v495_v30 }
 0x19c   :  { %v484_v32 = vpop.xlane.xlu1 %483 }
 0x19d   :  { %v489_v33 = vmul.f32 0.0078125, %v484_v32  ;;  %v496_v34 = vmul.f32 %v492_v31, %v492_v31 }
 0x19f   :  { %v493_v35 = vsub.f32 %v476_v20, %v489_v33  ;;  %502 = vadd.xlane.f32.xlu0 %v496_v34 }
 0x1a1   :  { %v497_v36 = vmul.f32 %v493_v35, %v493_v35 }
 0x1a3   :  { %504 = vadd.xlane.f32.xlu1 %v497_v36 }
 0x224   :  { %v499_v37 = vpop.xlane.xlu0 %498 }
 0x225   :  { %v506_v38 = vmul.f32 0.0078125, %v499_v37 }
 0x227   :  { %v510_v39 = vadd.f32 1e-05, %v506_v38 }
 0x228   :  { %v501_v40 = vpop.xlane.xlu1 %500 }
 0x229   :  { %710 = vrsqrt.f32 %v510_v39  ;;  %v507_v41 = vmul.f32 0.0078125, %v501_v40 }
 0x22b   :  { %v511_v42 = vadd.f32 1e-05, %v507_v41 }
 0x22c   :  { %v503_v43 = vpop.xlane.xlu0 %502 }
 0x22d   :  { %712 = vrsqrt.f32 %v511_v42  ;;  %v508_v44 = vmul.f32 0.0078125, %v503_v43 }
 0x22f   :  { %v512_v45 = vadd.f32 1e-05, %v508_v44 }
 0x230   :  { %v505_v46 = vpop.xlane.xlu1 %504 }
 0x231   :  { %714 = vrsqrt.f32 %v512_v45  ;;  %v509_v47 = vmul.f32 0.0078125, %v505_v46 }
 0x233   :  { %v711_v48 = vpop.eup %710  ;;  %v513_v50 = vadd.f32 1e-05, %v509_v47 }
 0x234   :  { %v518_v51 = vmul.f32 %v711_v48, %v490_v23 }
 0x235   :  { %716 = vrsqrt.f32 %v513_v50 }
 0x236   :  { %v529_v53 = vmul.f32 %v605_v49, %v518_v51 }
 0x237   :  { %v713_v54 = vpop.eup %712 }
 0x238   :  { %v519_v55 = vmul.f32 %v713_v54, %v491_v27  ;;  %v540_v56 = vadd.f32 %v606_v52, %v529_v53 }
 0x23a   :  { %v530_v57 = vmul.f32 %v605_v49, %v519_v55  ;;  %544 = vst [vmem:[#allocation3] sm:$0xff] %v540_v56 }
 0x23b   :  { %v715_v58 = vpop.eup %714 }
 0x23c   :  { %v520_v59 = vmul.f32 %v715_v58, %v492_v31  ;;  %v541_v60 = vadd.f32 %v606_v52, %v530_v57 }
 0x23e   :  { %v531_v61 = vmul.f32 %v605_v49, %v520_v59  ;;  %545 = vst [vmem:[#allocation3 + $0x8] sm:$0xff] %v541_v60 }
 0x23f   :  { %v717_v62 = vpop.eup %716 }
 0x240   :  { %v542_v63 = vadd.f32 %v606_v52, %v531_v61  ;;  %v521_v0 = vmul.f32 %v717_v62, %v493_v35 }
 0x242   :  { %546 = vst [vmem:[#allocation3 + $0x10] sm:$0xff] %v542_v63  ;;  %v532_v1 = vmul.f32 %v605_v49, %v521_v0 }
 0x244   :  { %v543_v2 = vadd.f32 %v606_v52, %v532_v1 }
 0x246   :  { %547 = vst [vmem:[#allocation3 + $0x18] sm:$0xff] %v543_v2 }
 0x247   :  { %729 = shalt.err (!%p726_p4)
}
 0x248   :  { %s730_s18 = scalar_lea.hbm %s939_s6, 512 }
 0x249   :  { %p731_p5 = scmp.ne.s32.totalorder %s939_s6, %s730_s18  ;;  %p734_p6 = scmp.lt.u32.totalorder %s730_s18, %s939_s6 }
 0x24b   :  { %p736_p7 = pnand %p734_p6, %p731_p5 }
 0x24d   :  { %739 = shalt.err (!%p736_p7)
}
 0x24e   :  { %s743_s22 = smov 128   ;;  %s744_s23 = smov 8  }
 0x24f   :  { %559 = dma.vmem_to_hbm [thread:$0]  %s554_s15, 512, %s939_s6, [#allocation4], %s743_s22, %s743_s22, %s744_s23  }
 0x250   :  { %740 = dma.done.wait [#allocation4], 512  }
 0x251   :  { %741 = vsyncadd [#allocation4], 4294966784 }
 0x252   :  { %563 = vsyncpa [#allocation4], 1 }

</bundles_post_ra>
